<compile_context>
chip_gen: v7x
topology: tpu7x:2x2x1
jax: 0.10.0
libtpu: 0.0.40
codegen_flags: <defaults>
</compile_context>

<pallas_src>
import math
import functools

import jax
import jax.numpy as jnp
from jax.experimental import pallas as pl
from jax.experimental.pallas import tpu as pltpu

MIN_NORM = 1e-15        # geoopt clamp_min on norms / denominators
ARTANH_EPS = 1e-6       # f32-safe artanh clamp (1e-7 rounds to 1.0 in f32)
PROJ_EPS = 1e-5         # Poincaré-ball projection eps
LN_EPS = 1e-6           # HyperbolicLayerNorm eps

USE_BF16_MATMUL = True  # bf16 MXU operands, f32 accumulation for the linears


def _vmem_capacity_bytes():
    # Generation-aware: 128 MiB on v5e/v6e, 64 MiB per TC on v7x.
    try:
        info = pltpu.get_tpu_info()
        cap = getattr(info, "vmem_capacity_bytes", None)
        if cap:
            return int(cap)
    except Exception:
        pass
    return 128 * 1024 * 1024


_VMEM_CAP = _vmem_capacity_bytes()
_VMEM_LIMIT = min((_VMEM_CAP * 3) // 4, 100 * 1024 * 1024)   # headroom for scratch
_ROW_TILE_TARGET = 1024 if _VMEM_CAP >= 100 * 1024 * 1024 else 512
_ACT_BUDGET = max(4 * 1024 * 1024, _VMEM_LIMIT // 6)          # activation share


# ---------------- in-kernel hyperbolic math (c = |k| = 1) ----------------

def _rcp(x):
    # EUP reciprocal — used only for direction-normalisation scalings (safe);
    # correctness-sensitive denominators use exact division.
    return pl.reciprocal(x, approx=True)


def _artanh(x):
    x = jnp.clip(x, -1.0 + ARTANH_EPS, 1.0 - ARTANH_EPS)
    return 0.5 * jnp.log((1.0 + x) / (1.0 - x))


def _norm_last(x):
    return jnp.maximum(jnp.sqrt(jnp.sum(x * x, axis=-1, keepdims=True)), MIN_NORM)


def _expmap0(u):
    n = _norm_last(u)
    return jnp.tanh(n) * u * _rcp(n)


def _logmap0(y):
    n = _norm_last(y)
    return _artanh(n) * y * _rcp(n)


def _mobius_add(x, y):
    x2 = jnp.sum(x * x, axis=-1, keepdims=True)
    y2 = jnp.sum(y * y, axis=-1, keepdims=True)
    xy = jnp.sum(x * y, axis=-1, keepdims=True)
    num = (1.0 + 2.0 * xy + y2) * x + (1.0 - x2) * y
    den = jnp.maximum(1.0 + 2.0 * xy + x2 * y2, MIN_NORM)
    return num / den                       # exact divide (boundary-sensitive)


def _project(x):
    n = _norm_last(x)
    maxnorm = 1.0 - PROJ_EPS
    return jnp.where(n > maxnorm, x * (maxnorm / n), x)   # exact divide


def _dot(a, b):
    if USE_BF16_MATMUL:  # bf16 MXU operands, f32 accumulation
        a = a.astype(jnp.bfloat16)
        b = b.astype(jnp.bfloat16)
    return jnp.dot(a, b, preferred_element_type=jnp.float32)


def _mobius_linear_body(x, wt, b):
    # MobiusLinear: mobius_matvec(W, x) ⊕ hyperbolic_bias, then project.
    xn = _norm_last(x)                              # (tm, 1)
    mx = _dot(x, wt)                                # (tm, Dout)
    mx2 = jnp.sum(mx * mx, axis=-1, keepdims=True)  # reused: norm + zero guard
    zero = mx2 == 0.0
    mxn = jnp.maximum(jnp.sqrt(mx2), MIN_NORM)
    res = jnp.tanh(mxn * _rcp(xn) * _artanh(xn)) * mx * _rcp(mxn)
    res = jnp.where(zero, jnp.zeros_like(res), res)
    res = _mobius_add(res, b)                       # bias broadcast (1, Dout)
    return _project(res)


# ---------------- Pallas kernels ----------------

def _pe_add_kernel(x_ref, pe_ref, o_ref):
    # Möbius add of the hyperbolic positional encoding; PE block is shared
    # across the batch grid axis (single DMA, no host-side tiling).
    o_ref[0] = _mobius_add(x_ref[0], pe_ref[...])


def _qkv_mobius_linear_kernel(x_ref, wt_ref, b_ref, q_ref, k_ref, v_ref, *, d_model):
    # One matmul over the concatenated [Din, 3*D] weight; the mobius_matvec
    # norms / bias-add / projection are applied per Q/K/V segment.
    x = x_ref[...]                                  # (tm, Din)
    xn = _norm_last(x)
    inv_xn = _rcp(xn)
    arx = _artanh(xn)
    mx = _dot(x, wt_ref[...])                       # (tm, 3*D)
    bias = b_ref[...]                               # (3, D)
    out_refs = (q_ref, k_ref, v_ref)
    for i in range(3):
        mxi = mx[:, i * d_model:(i + 1) * d_model]
        mx2 = jnp.sum(mxi * mxi, axis=-1, keepdims=True)
        zero = mx2 == 0.0
        mxn = jnp.maximum(jnp.sqrt(mx2), MIN_NORM)
        res = jnp.tanh(mxn * inv_xn * arx) * mxi * _rcp(mxn)
        res = jnp.where(zero, jnp.zeros_like(res), res)
        out_refs[i][...] = _project(_mobius_add(res, bias[i:i + 1, :]))


def _mobius_linear_kernel(x_ref, wt_ref, b_ref, o_ref):
    o_ref[...] = _mobius_linear_body(x_ref[...], wt_ref[...], b_ref[...])


def _residual_layernorm_kernel(x_ref, s_ref, g_ref, be_ref, hb_ref, o_ref):
    # Fused: mobius_add residual -> logmap0 -> layernorm -> expmap0 -> ⊕ hyp bias.
    x = _mobius_add(x_ref[...], s_ref[...])
    t = _logmap0(x)
    d = t.shape[-1]
    mean = jnp.mean(t, axis=-1, keepdims=True)
    diff = t - mean
    var = jnp.sum(diff * diff, axis=-1, keepdims=True) / (d - 1)   # torch std: unbiased
    std = jnp.sqrt(var)
    normed = diff * _rcp(std + LN_EPS)
    normed = g_ref[...] * normed + be_ref[...]
    res = _expmap0(normed)
    o_ref[...] = _mobius_add(res, hb_ref[...])


def _hyp_act_kernel(x_ref, o_ref):
    # HyperbolicActivation(ReLU): logmap0 -> relu -> expmap0.
    o_ref[...] = _expmap0(jnp.maximum(_logmap0(x_ref[...]), 0.0))


def _ffn_kernel(x_ref, w1t_ref, b1_ref, w2t_ref, b2_ref, o_ref):
    # Fused feed-forward: MobiusLinear -> (logmap0, ReLU, expmap0) -> MobiusLinear.
    h = _mobius_linear_body(x_ref[...], w1t_ref[...], b1_ref[...])
    h = _expmap0(jnp.maximum(_logmap0(h), 0.0))
    o_ref[...] = _mobius_linear_body(h, w2t_ref[...], b2_ref[...])


def _hyp_attention_kernel(q_ref, k_ref, v_ref, o_ref, *w_refs, num_heads, scale):
    # One (batch, q-tile) per grid step; heads handled sequentially in VMEM so
    # there is no head-transpose HBM traffic, and each head result is stored
    # directly (no concatenate / materialized copies).
    q = q_ref[0]                                    # (tq, D)
    k = k_ref[0]                                    # (S, D)
    v = v_ref[0]
    d = q.shape[-1]
    s = k.shape[0]
    dk = d // num_heads
    # Squared norms computed as dots with ones -> lands on the MXU (which has
    # slack: the QK contraction depth dk is tiny vs the 256-deep array) and
    # keeps the scarce XLU units free for the softmax reductions.
    ones_col = jnp.ones((dk, 1), jnp.float32)
    ones_row = jnp.ones((1, dk), jnp.float32)
    for h in range(num_heads):
        lo, hi = h * dk, (h + 1) * dk
        qh = q[:, lo:hi]
        kh = k[:, lo:hi]
        vh = v[:, lo:hi]
        q2 = jnp.dot(qh * qh, ones_col, preferred_element_type=jnp.float32)   # (tq, 1)
        k2 = jax.lax.dot_general(ones_row, kh * kh, (((1,), (1,)), ((), ())),
                                 preferred_element_type=jnp.float32)          # (1, S)
        qk = jax.lax.dot_general(qh, kh, (((1,), (1,)), ((), ())),
                                 preferred_element_type=jnp.float32)          # (tq, S)
        # ||(-q_i) ⊕ k_j|| from the pairwise inner products (f32: cancellation-prone).
        a = 1.0 - 2.0 * qk + k2
        b = 1.0 - q2
        den = jnp.maximum(1.0 - 2.0 * qk + q2 * k2, MIN_NORM)
        num2 = jnp.maximum(a * a * q2 - 2.0 * a * b * qk + b * b * k2, 0.0)
        ma_norm = jnp.sqrt(num2) / den                      # exact divide
        dist = 2.0 * _artanh(ma_norm)
        scores = -dist * scale
        scores = scores - jnp.max(scores, axis=-1, keepdims=True)
        e = jnp.exp(scores)
        w = e / jnp.sum(e, axis=-1, keepdims=True)          # exact softmax denom
        if w_refs:
            w_refs[0][0, h] = w
        # einstein_midpoint: softmax weights sum to 1 exactly, so the extra
        # renormalisation by (Σw + 1e-10) is the identity and is dropped.
        tv = _logmap0(vh)
        o_ref[0, :, lo:hi] = _expmap0(
            jnp.dot(w, tv, preferred_element_type=jnp.float32))


# ---------------- pallas_call wrappers ----------------

def _row_tile(n, cols):
    # cols ≈ live f32 elements per row; keeps (tile, cols) inside the activation
    # VMEM budget.  Result is always a multiple of 8 or the full extent
    # (second-to-last BlockSpec dim rule).
    target = min(_ROW_TILE_TARGET, max(8, _ACT_BUDGET // (max(cols, 1) * 4)))
    target = max(8, (target // 8) * 8)
    if n <= target:
        return n
    if n % 8 != 0:
        return n            # full-extent block is always legal
    t = target
    while t >= 8:
        if n % t == 0:
            return t
        t -= 8
    return 8


def _cparams(n_axes=1):
    return pltpu.CompilerParams(
        dimension_semantics=("parallel",) * n_axes,   # lets v7x shard across both TCs
        vmem_limit_bytes=_VMEM_LIMIT)


def pe_add_call(x, pe):
    b, s, d = x.shape
    return pl.pallas_call(
        _pe_add_kernel,
        out_shape=jax.ShapeDtypeStruct((b, s, d), jnp.float32),
        grid=(b,),
        in_specs=[pl.BlockSpec((1, s, d), lambda i: (i, 0, 0)),
                  pl.BlockSpec((s, d), lambda i: (0, 0))],     # PE reused across batch
        out_specs=pl.BlockSpec((1, s, d), lambda i: (i, 0, 0)),
        compiler_params=_cparams(1),
    )(x, pe)


def qkv_mobius_linear_call(x, wqkv_t, bqkv):
    n, din = x.shape
    d3 = wqkv_t.shape[1]
    d = d3 // 3
    tm = _row_tile(n, din + 3 * d3)
    kern = functools.partial(_qkv_mobius_linear_kernel, d_model=d)
    return pl.pallas_call(
        kern,
        out_shape=tuple(jax.ShapeDtypeStruct((n, d), jnp.float32) for _ in range(3)),
        grid=(n // tm,),
        in_specs=[pl.BlockSpec((tm, din), lambda i: (i, 0)),
                  pl.BlockSpec((din, d3), lambda i: (0, 0)),
                  pl.BlockSpec((3, d), lambda i: (0, 0))],
        out_specs=tuple(pl.BlockSpec((tm, d), lambda i: (i, 0)) for _ in range(3)),
        compiler_params=_cparams(1),
    )(x, wqkv_t, bqkv)


def mobius_linear_call(x, w_t, b):
    n, din = x.shape
    dout = w_t.shape[1]
    tm = _row_tile(n, din + 3 * dout)
    return pl.pallas_call(
        _mobius_linear_kernel,
        out_shape=jax.ShapeDtypeStruct((n, dout), jnp.float32),
        grid=(n // tm,),
        in_specs=[pl.BlockSpec((tm, din), lambda i: (i, 0)),
                  pl.BlockSpec((din, dout), lambda i: (0, 0)),
                  pl.BlockSpec((1, dout), lambda i: (0, 0))],
        out_specs=pl.BlockSpec((tm, dout), lambda i: (i, 0)),
        compiler_params=_cparams(1),
    )(x, w_t, b)


def residual_layernorm_call(x, sub, gamma, beta, hbias):
    n, d = x.shape
    tm = _row_tile(n, 6 * d)
    return pl.pallas_call(
        _residual_layernorm_kernel,
        out_shape=jax.ShapeDtypeStruct((n, d), jnp.float32),
        grid=(n // tm,),
        in_specs=[pl.BlockSpec((tm, d), lambda i: (i, 0)),
                  pl.BlockSpec((tm, d), lambda i: (i, 0)),
                  pl.BlockSpec((1, d), lambda i: (0, 0)),
                  pl.BlockSpec((1, d), lambda i: (0, 0)),
                  pl.BlockSpec((1, d), lambda i: (0, 0))],
        out_specs=pl.BlockSpec((tm, d), lambda i: (i, 0)),
        input_output_aliases={0: 0},     # residual updated in place (x buffer reused)
        compiler_params=_cparams(1),
    )(x, sub, gamma, beta, hbias)


def hyp_act_call(x):
    n, d = x.shape
    tm = _row_tile(n, 3 * d)
    return pl.pallas_call(
        _hyp_act_kernel,
        out_shape=jax.ShapeDtypeStruct((n, d), jnp.float32),
        grid=(n // tm,),
        in_specs=[pl.BlockSpec((tm, d), lambda i: (i, 0))],
        out_specs=pl.BlockSpec((tm, d), lambda i: (i, 0)),
        compiler_params=_cparams(1),
    )(x)


def ffn_call(x, w1_t, b1, w2_t, b2):
    n, d = x.shape
    d_ff = w1_t.shape[1]
    # The fused kernel keeps both FFN weight matrices resident (double-buffered
    # by the pipeline even though their block index never changes).  When that
    # plus the (tm, d_ff) hyperbolic intermediate would not fit the scoped VMEM
    # (e.g. d_model=1024 / d_ff=4096 on v7x's 64 MiB), fall back to a split
    # 3-call path that only ever holds one weight matrix at a time.
    fused_weight_bytes = 2 * 2 * (d * d_ff) * 4        # 2 matrices, double-buffered
    if fused_weight_bytes > (_VMEM_LIMIT * 3) // 5:
        h = mobius_linear_call(x, w1_t, b1)
        h = hyp_act_call(h)
        return mobius_linear_call(h, w2_t, b2)
    tm = _row_tile(n, 2 * d + 4 * d_ff)
    return pl.pallas_call(
        _ffn_kernel,
        out_shape=jax.ShapeDtypeStruct((n, d), jnp.float32),
        grid=(n // tm,),
        in_specs=[pl.BlockSpec((tm, d), lambda i: (i, 0)),
                  pl.BlockSpec((d, d_ff), lambda i: (0, 0)),
                  pl.BlockSpec((1, d_ff), lambda i: (0, 0)),
                  pl.BlockSpec((d_ff, d), lambda i: (0, 0)),
                  pl.BlockSpec((1, d), lambda i: (0, 0))],
        out_specs=pl.BlockSpec((tm, d), lambda i: (i, 0)),
        compiler_params=_cparams(1),
    )(x, w1_t, b1, w2_t, b2)


def hyp_attention_call(q, k, v, num_heads, return_weights=True):
    b, s, d = q.shape
    dk = d // num_heads
    # q-axis tiling bounds the per-step (tq, S) temporaries (flash-style VMEM
    # behaviour without changing the math) and gives the v7x megacore a finer
    # (batch, q-tile) parallel grid.
    cols = 2 * d + (num_heads + 4) * s if return_weights else 2 * d + 4 * s
    tq = _row_tile(s, cols)
    kern = functools.partial(_hyp_attention_kernel, num_heads=num_heads,
                             scale=1.0 / math.sqrt(dk))
    out_shape = [jax.ShapeDtypeStruct((b, s, d), jnp.float32)]
    out_specs = [pl.BlockSpec((1, tq, d), lambda bi, qi: (bi, qi, 0))]
    if return_weights:
        # NOTE: the (B, H, S, S) weights writeback can dominate HBM traffic at
        # large S; pass return_weights=False when the weights are not needed.
        out_shape.append(jax.ShapeDtypeStruct((b, num_heads, s, s), jnp.float32))
        out_specs.append(pl.BlockSpec((1, num_heads, tq, s),
                                      lambda bi, qi: (bi, 0, qi, 0)))
    res = pl.pallas_call(
        kern,
        out_shape=tuple(out_shape),
        grid=(b, s // tq),
        in_specs=[pl.BlockSpec((1, tq, d), lambda bi, qi: (bi, qi, 0)),
                  pl.BlockSpec((1, s, d), lambda bi, qi: (bi, 0, 0)),
                  pl.BlockSpec((1, s, d), lambda bi, qi: (bi, 0, 0))],
        out_specs=tuple(out_specs),
        compiler_params=_cparams(2),
    )(q, k, v)
    if return_weights:
        return res[0], res[1]
    return res[0], None


# ---------------- parameter init (plain JAX glue, deterministic) ----------------

def _expmap0_host(u):
    n = jnp.maximum(jnp.linalg.norm(u, axis=-1, keepdims=True), MIN_NORM)
    return jnp.tanh(n) * u / n


def init_params(key, d_model, num_layers, d_ff, max_seq_len):
    # positional encoding table (sin/cos * 0.1 mapped to the ball with expmap0)
    pos = jnp.arange(max_seq_len, dtype=jnp.float32)[:, None]
    div = jnp.exp(jnp.arange(0, d_model, 2, dtype=jnp.float32)
                  * (-math.log(10000.0) / d_model))
    pe = jnp.zeros((max_seq_len, d_model), jnp.float32)
    pe = pe.at[:, 0::2].set(jnp.sin(pos * div))
    pe = pe.at[:, 1::2].set(jnp.cos(pos * div))
    pe = _expmap0_host(pe * 0.1)

    def linear_t(k, din, dout):
        # weights stored pre-transposed: (din, dout), so no transpose per forward
        kw, kb = jax.random.split(k)
        bound = 1.0 / math.sqrt(din)
        w_t = jax.random.uniform(kw, (din, dout), jnp.float32, -bound, bound)
        b = _expmap0_host(jax.random.normal(kb, (1, dout), jnp.float32) / 400.0)
        return w_t, b

    layers = []
    for _ in range(num_layers):
        key, *ks = jax.random.split(key, 10)
        wq_t, bq = linear_t(ks[0], d_model, d_model)
        wk_t, bk = linear_t(ks[1], d_model, d_model)
        wv_t, bv = linear_t(ks[2], d_model, d_model)
        wo_t, bo = linear_t(ks[3], d_model, d_model)
        w1_t, b1 = linear_t(ks[4], d_model, d_ff)
        w2_t, b2 = linear_t(ks[5], d_ff, d_model)
        hb1 = _expmap0_host(0.01 * jax.random.normal(ks[6], (1, d_model), jnp.float32))
        hb2 = _expmap0_host(0.01 * jax.random.normal(ks[7], (1, d_model), jnp.float32))
        layers.append(dict(
            wqkv_t=jnp.concatenate([wq_t, wk_t, wv_t], axis=1),   # (D, 3D)
            bqkv=jnp.concatenate([bq, bk, bv], axis=0),           # (3, D)
            wo_t=wo_t, bo=bo, w1_t=w1_t, b1=b1, w2_t=w2_t, b2=b2,
            g1=jnp.ones((1, d_model), jnp.float32),
            be1=jnp.zeros((1, d_model), jnp.float32), hb1=hb1,
            g2=jnp.ones((1, d_model), jnp.float32),
            be2=jnp.zeros((1, d_model), jnp.float32), hb2=hb2))
    return dict(pe=pe, layers=layers)


# ---------------- full forward ----------------

def hyperbolic_transformer_forward(x, params, num_heads, return_attn=True):
    b, s, d = x.shape
    n = b * s

    # positional encoding (Möbius add of hyperbolic PE, PE reused across batch)
    x = pe_add_call(x, params['pe'][:s])
    x2 = x.reshape(n, d)

    attn_ws = []
    for lp in params['layers']:
        # --- self attention ---
        q, k, v = qkv_mobius_linear_call(x2, lp['wqkv_t'], lp['bqkv'])
        ao, aw = hyp_attention_call(q.reshape(b, s, d), k.reshape(b, s, d),
                                    v.reshape(b, s, d), num_heads,
                                    return_weights=return_attn)
        if return_attn:
            attn_ws.append(aw)
        ao = mobius_linear_call(ao.reshape(n, d), lp['wo_t'], lp['bo'])

        # residual (Möbius add) + hyperbolic layer norm (fused, in place)
        x2 = residual_layernorm_call(x2, ao, lp['g1'], lp['be1'], lp['hb1'])

        # --- feed forward (fused linear -> hyp ReLU -> linear) ---
        ff = ffn_call(x2, lp['w1_t'], lp['b1'], lp['w2_t'], lp['b2'])
        x2 = residual_layernorm_call(x2, ff, lp['g2'], lp['be2'], lp['hb2'])

    return x2.reshape(b, s, d), attn_ws


if __name__ == "__main__":
    D_MODEL, NUM_HEADS, NUM_LAYERS, D_FF, MAX_SEQ = 32, 4, 2, 64, 16
    B, S = 2, 8

    key = jax.random.PRNGKey(0)
    kx, kp = jax.random.split(key)
    params = init_params(kp, D_MODEL, NUM_LAYERS, D_FF, MAX_SEQ)

    # input points lie inside the Poincaré ball
    x = _expmap0_host(0.1 * jax.random.normal(kx, (B, S, D_MODEL), jnp.float32))

    fwd = jax.jit(functools.partial(hyperbolic_transformer_forward,
                                    num_heads=NUM_HEADS, return_attn=True))
    out, attn = fwd(x, params)
    out = jax.block_until_ready(out)
    for a in attn:
        jax.block_until_ready(a)

    assert out.shape == (B, S, D_MODEL)
    assert all(a.shape == (B, NUM_HEADS, S, S) for a in attn)
    assert bool(jnp.all(jnp.isfinite(out)))
    for a in attn:
        assert bool(jnp.all(jnp.isfinite(a)))
    print("KERNEL_OK")
</pallas_src>

<mosaic_0001>
module attributes {stable_mosaic.version = 11 : i64} {
  func.func @_pe_add_kernel(%arg0: i32, %arg1: memref<1x8x32xf32, #tpu.memory_space<vmem>>, %arg2: memref<8x32xf32, #tpu.memory_space<vmem>>, %arg3: memref<1x8x32xf32, #tpu.memory_space<vmem>>) attributes {dimension_semantics = [#tpu.dimension_semantics<parallel>], iteration_bounds = array<i64: 2>, scalar_prefetch = 0 : i64, scratch_operands = 0 : i64, tpu.core_type = #tpu.core_type<tc>, window_params = [{transform_indices = @transform_0, window_bounds = array<i64: 1, 8, 32>}, {pipeline_mode = #tpu.pipeline_mode<synchronous>, transform_indices = @transform_1, window_bounds = array<i64: 8, 32>}, {transform_indices = @transform_2, window_bounds = array<i64: 1, 8, 32>}]} {
    %c0 = arith.constant 0 : index
    %c0_0 = arith.constant 0 : index
    %c0_1 = arith.constant 0 : index
    %0 = vector.load %arg1[%c0, %c0_0, %c0_1] : memref<1x8x32xf32, #tpu.memory_space<vmem>>, vector<1x8x32xf32>
    %1 = vector.shape_cast %0 : vector<1x8x32xf32> to vector<8x32xf32>
    %c0_2 = arith.constant 0 : index
    %c0_3 = arith.constant 0 : index
    %2 = vector.load %arg2[%c0_2, %c0_3] : memref<8x32xf32, #tpu.memory_space<vmem>>, vector<8x32xf32>
    %3 = arith.mulf %1, %1 : vector<8x32xf32>
    %cst = arith.constant dense<0.000000e+00> : vector<8xf32>
    %4 = vector.multi_reduction <add>, %3, %cst [1] : vector<8x32xf32> to vector<8xf32>
    %5 = vector.shape_cast %4 : vector<8xf32> to vector<8x1xf32>
    %6 = arith.mulf %2, %2 : vector<8x32xf32>
    %cst_4 = arith.constant dense<0.000000e+00> : vector<8xf32>
    %7 = vector.multi_reduction <add>, %6, %cst_4 [1] : vector<8x32xf32> to vector<8xf32>
    %8 = vector.shape_cast %7 : vector<8xf32> to vector<8x1xf32>
    %9 = arith.mulf %1, %2 : vector<8x32xf32>
    %cst_5 = arith.constant dense<0.000000e+00> : vector<8xf32>
    %10 = vector.multi_reduction <add>, %9, %cst_5 [1] : vector<8x32xf32> to vector<8xf32>
    %11 = vector.shape_cast %10 : vector<8xf32> to vector<8x1xf32>
    %cst_6 = arith.constant 2.000000e+00 : f32
    %12 = vector.broadcast %cst_6 : f32 to vector<8x1xf32>
    %13 = arith.mulf %12, %11 : vector<8x1xf32>
    %cst_7 = arith.constant 1.000000e+00 : f32
    %14 = vector.broadcast %cst_7 : f32 to vector<8x1xf32>
    %15 = arith.addf %14, %13 : vector<8x1xf32>
    %16 = arith.addf %15, %8 : vector<8x1xf32>
    %17 = vector.broadcast %16 : vector<8x1xf32> to vector<8x32xf32>
    %18 = arith.mulf %17, %1 : vector<8x32xf32>
    %cst_8 = arith.constant 1.000000e+00 : f32
    %19 = vector.broadcast %cst_8 : f32 to vector<8x1xf32>
    %20 = arith.subf %19, %5 : vector<8x1xf32>
    %21 = vector.broadcast %20 : vector<8x1xf32> to vector<8x32xf32>
    %22 = arith.mulf %21, %2 : vector<8x32xf32>
    %23 = arith.addf %18, %22 : vector<8x32xf32>
    %cst_9 = arith.constant 2.000000e+00 : f32
    %24 = vector.broadcast %cst_9 : f32 to vector<8x1xf32>
    %25 = arith.mulf %24, %11 : vector<8x1xf32>
    %cst_10 = arith.constant 1.000000e+00 : f32
    %26 = vector.broadcast %cst_10 : f32 to vector<8x1xf32>
    %27 = arith.addf %26, %25 : vector<8x1xf32>
    %28 = arith.mulf %5, %8 : vector<8x1xf32>
    %29 = arith.addf %27, %28 : vector<8x1xf32>
    %cst_11 = arith.constant 1.000000e-15 : f32
    %30 = vector.broadcast %cst_11 : f32 to vector<8x1xf32>
    %31 = arith.maximumf %29, %30 : vector<8x1xf32>
    %32 = vector.broadcast %31 : vector<8x1xf32> to vector<8x32xf32>
    %33 = arith.divf %23, %32 : vector<8x32xf32>
    %c0_12 = arith.constant 0 : index
    %c0_13 = arith.constant 0 : index
    %c0_14 = arith.constant 0 : index
    %34 = vector.load %arg3[%c0_12, %c0_13, %c0_14] : memref<1x8x32xf32, #tpu.memory_space<vmem>>, vector<1x8x32xf32>
    %35 = vector.shape_cast %34 : vector<1x8x32xf32> to vector<8x32xf32>
    %36 = vector.shape_cast %33 : vector<8x32xf32> to vector<1x8x32xf32>
    tpu.vector_store %arg3[%c0_12, %c0_13, %c0_14], %36 {strides = array<i32>} : memref<1x8x32xf32, #tpu.memory_space<vmem>>, vector<1x8x32xf32>,
    return
  }
  func.func @transform_0(%arg0: i32) -> (i32, i32, i32) {
    %c0_i32 = arith.constant 0 : i32
    %c0_i32_0 = arith.constant 0 : i32
    %c0_i32_1 = arith.constant 0 : i32
    return %arg0, %c0_i32, %c0_i32_0 : i32, i32, i32
  }
  func.func @transform_1(%arg0: i32) -> (i32, i32) {
    %c0_i32 = arith.constant 0 : i32
    %c0_i32_0 = arith.constant 0 : i32
    %c0_i32_1 = arith.constant 0 : i32
    return %c0_i32, %c0_i32_0 : i32, i32
  }
  func.func @transform_2(%arg0: i32) -> (i32, i32, i32) {
    %c0_i32 = arith.constant 0 : i32
    %c0_i32_0 = arith.constant 0 : i32
    %c0_i32_1 = arith.constant 0 : i32
    return %arg0, %c0_i32, %c0_i32_0 : i32, i32, i32
  }
}

module attributes {stable_mosaic.version = 11 : i64} {
  func.func @_hyp_attention_kernel(%arg0: i32, %arg1: i32, %arg2: memref<1x8x32xf32, #tpu.memory_space<vmem>>, %arg3: memref<1x8x32xf32, #tpu.memory_space<vmem>>, %arg4: memref<1x8x32xf32, #tpu.memory_space<vmem>>, %arg5: memref<1x8x32xf32, #tpu.memory_space<vmem>>, %arg6: memref<1x4x8x8xf32, #tpu.memory_space<vmem>>) attributes {dimension_semantics = [#tpu.dimension_semantics<parallel>, #tpu.dimension_semantics<parallel>], iteration_bounds = array<i64: 2, 1>, scalar_prefetch = 0 : i64, scratch_operands = 0 : i64, tpu.core_type = #tpu.core_type<tc>, window_params = [{transform_indices = @transform_0, window_bounds = array<i64: 1, 8, 32>}, {transform_indices = @transform_1, window_bounds = array<i64: 1, 8, 32>}, {transform_indices = @transform_2, window_bounds = array<i64: 1, 8, 32>}, {transform_indices = @transform_3, window_bounds = array<i64: 1, 8, 32>}, {transform_indices = @transform_4, window_bounds = array<i64: 1, 4, 8, 8>}]} {
    %c0 = arith.constant 0 : index
    %c0_0 = arith.constant 0 : index
    %c0_1 = arith.constant 0 : index
    %0 = vector.load %arg2[%c0, %c0_0, %c0_1] : memref<1x8x32xf32, #tpu.memory_space<vmem>>, vector<1x8x32xf32>
    %1 = vector.shape_cast %0 : vector<1x8x32xf32> to vector<8x32xf32>
    %c0_2 = arith.constant 0 : index
    %c0_3 = arith.constant 0 : index
    %c0_4 = arith.constant 0 : index
    %2 = vector.load %arg3[%c0_2, %c0_3, %c0_4] : memref<1x8x32xf32, #tpu.memory_space<vmem>>, vector<1x8x32xf32>
    %3 = vector.shape_cast %2 : vector<1x8x32xf32> to vector<8x32xf32>
    %c0_5 = arith.constant 0 : index
    %c0_6 = arith.constant 0 : index
    %c0_7 = arith.constant 0 : index
    %4 = vector.load %arg4[%c0_5, %c0_6, %c0_7] : memref<1x8x32xf32, #tpu.memory_space<vmem>>, vector<1x8x32xf32>
    %5 = vector.shape_cast %4 : vector<1x8x32xf32> to vector<8x32xf32>
    %cst = arith.constant 1.000000e+00 : f32
    %6 = vector.broadcast %cst : f32 to vector<8x1xf32>
    %cst_8 = arith.constant 1.000000e+00 : f32
    %7 = vector.broadcast %cst_8 : f32 to vector<1x8xf32>
    %8 = vector.extract_strided_slice %1 {offsets = [0, 0], sizes = [8, 8], strides = [1, 1]} : vector<8x32xf32> to vector<8x8xf32>
    %9 = vector.extract_strided_slice %3 {offsets = [0, 0], sizes = [8, 8], strides = [1, 1]} : vector<8x32xf32> to vector<8x8xf32>
    %10 = vector.extract_strided_slice %5 {offsets = [0, 0], sizes = [8, 8], strides = [1, 1]} : vector<8x32xf32> to vector<8x8xf32>
    %11 = arith.mulf %8, %8 : vector<8x8xf32>
    %cst_9 = arith.constant dense<0.000000e+00> : vector<8x1xf32>
    %12 = tpu.matmul %11, %6, %cst_9 {dimension_numbers = #tpu.dot_dimension_numbers<[1], [0], [0], [1], [0, 0, 1, 1], [], []>} : vector<8x8xf32>, vector<8x1xf32>, vector<8x1xf32> -> vector<8x1xf32>
    %13 = arith.mulf %9, %9 : vector<8x8xf32>
    %cst_10 = arith.constant dense<0.000000e+00> : vector<1x8xf32>
    %14 = tpu.matmul %7, %13, %cst_10 {dimension_numbers = #tpu.dot_dimension_numbers<[1], [1], [0], [0], [0, 0, 1, 0], [], []>} : vector<1x8xf32>, vector<8x8xf32>, vector<1x8xf32> -> vector<1x8xf32>
    %cst_11 = arith.constant dense<0.000000e+00> : vector<8x8xf32>
    %15 = tpu.matmul %8, %9, %cst_11 {dimension_numbers = #tpu.dot_dimension_numbers<[1], [1], [0], [0], [0, 0, 1, 0], [], []>} : vector<8x8xf32>, vector<8x8xf32>, vector<8x8xf32> -> vector<8x8xf32>
    %cst_12 = arith.constant 2.000000e+00 : f32
    %16 = vector.broadcast %cst_12 : f32 to vector<8x8xf32>
    %17 = arith.mulf %16, %15 : vector<8x8xf32>
    %cst_13 = arith.constant 1.000000e+00 : f32
    %18 = vector.broadcast %cst_13 : f32 to vector<8x8xf32>
    %19 = arith.subf %18, %17 : vector<8x8xf32>
    %20 = vector.broadcast %14 : vector<1x8xf32> to vector<8x8xf32>
    %21 = arith.addf %19, %20 : vector<8x8xf32>
    %cst_14 = arith.constant 1.000000e+00 : f32
    %22 = vector.broadcast %cst_14 : f32 to vector<8x1xf32>
    %23 = arith.subf %22, %12 : vector<8x1xf32>
    %cst_15 = arith.constant 2.000000e+00 : f32
    %24 = vector.broadcast %cst_15 : f32 to vector<8x8xf32>
    %25 = arith.mulf %24, %15 : vector<8x8xf32>
    %cst_16 = arith.constant 1.000000e+00 : f32
    %26 = vector.broadcast %cst_16 : f32 to vector<8x8xf32>
    %27 = arith.subf %26, %25 : vector<8x8xf32>
    %28 = vector.broadcast %12 : vector<8x1xf32> to vector<8x8xf32>
    %29 = vector.broadcast %14 : vector<1x8xf32> to vector<8x8xf32>
    %30 = arith.mulf %28, %29 : vector<8x8xf32>
    %31 = arith.addf %27, %30 : vector<8x8xf32>
    %cst_17 = arith.constant 1.000000e-15 : f32
    %32 = vector.broadcast %cst_17 : f32 to vector<8x8xf32>
    %33 = arith.maximumf %31, %32 : vector<8x8xf32>
    %34 = arith.mulf %21, %21 : vector<8x8xf32>
    %35 = vector.broadcast %12 : vector<8x1xf32> to vector<8x8xf32>
    %36 = arith.mulf %34, %35 : vector<8x8xf32>
    %cst_18 = arith.constant 2.000000e+00 : f32
    %37 = vector.broadcast %cst_18 : f32 to vector<8x8xf32>
    %38 = arith.mulf %37, %21 : vector<8x8xf32>
    %39 = vector.broadcast %23 : vector<8x1xf32> to vector<8x8xf32>
    %40 = arith.mulf %38, %39 : vector<8x8xf32>
    %41 = arith.mulf %40, %15 : vector<8x8xf32>
    %42 = arith.subf %36, %41 : vector<8x8xf32>
    %43 = arith.mulf %23, %23 : vector<8x1xf32>
    %44 = vector.broadcast %43 : vector<8x1xf32> to vector<8x8xf32>
    %45 = vector.broadcast %14 : vector<1x8xf32> to vector<8x8xf32>
    %46 = arith.mulf %44, %45 : vector<8x8xf32>
    %47 = arith.addf %42, %46 : vector<8x8xf32>
    %cst_19 = arith.constant 0.000000e+00 : f32
    %48 = vector.broadcast %cst_19 : f32 to vector<8x8xf32>
    %49 = arith.maximumf %47, %48 : vector<8x8xf32>
    %50 = math.sqrt %49 : vector<8x8xf32>
    %51 = arith.divf %50, %33 : vector<8x8xf32>
    %cst_20 = arith.constant -0.999998986 : f32
    %cst_21 = arith.constant 0.999998986 : f32
    %52 = vector.broadcast %cst_20 : f32 to vector<8x8xf32>
    %53 = arith.maximumf %52, %51 : vector<8x8xf32>
    %54 = vector.broadcast %cst_21 : f32 to vector<8x8xf32>
    %55 = arith.minimumf %54, %53 : vector<8x8xf32>
    %cst_22 = arith.constant 1.000000e+00 : f32
    %56 = vector.broadcast %cst_22 : f32 to vector<8x8xf32>
    %57 = arith.addf %56, %55 : vector<8x8xf32>
    %cst_23 = arith.constant 1.000000e+00 : f32
    %58 = vector.broadcast %cst_23 : f32 to vector<8x8xf32>
    %59 = arith.subf %58, %55 : vector<8x8xf32>
    %60 = arith.divf %57, %59 : vector<8x8xf32>
    %61 = math.log %60 : vector<8x8xf32>
    %cst_24 = arith.constant 5.000000e-01 : f32
    %62 = vector.broadcast %cst_24 : f32 to vector<8x8xf32>
    %63 = arith.mulf %62, %61 : vector<8x8xf32>
    %cst_25 = arith.constant 2.000000e+00 : f32
    %64 = vector.broadcast %cst_25 : f32 to vector<8x8xf32>
    %65 = arith.mulf %64, %63 : vector<8x8xf32>
    %cst_26 = arith.constant 0.000000e+00 : f32
    %66 = vector.broadcast %cst_26 : f32 to vector<8x8xf32>
    %67 = arith.subf %66, %65 : vector<8x8xf32>
    %cst_27 = arith.constant 0.353553385 : f32
    %68 = vector.broadcast %cst_27 : f32 to vector<8x8xf32>
    %69 = arith.mulf %67, %68 : vector<8x8xf32>
    %cst_28 = arith.constant dense<0xFF800000> : vector<8xf32>
    %70 = vector.multi_reduction <maximumf>, %69, %cst_28 [1] : vector<8x8xf32> to vector<8xf32>
    %71 = vector.shape_cast %70 : vector<8xf32> to vector<8x1xf32>
    %72 = vector.broadcast %71 : vector<8x1xf32> to vector<8x8xf32>
    %73 = arith.subf %69, %72 : vector<8x8xf32>
    %74 = math.exp %73 : vector<8x8xf32>
    %cst_29 = arith.constant dense<0.000000e+00> : vector<8xf32>
    %75 = vector.multi_reduction <add>, %74, %cst_29 [1] : vector<8x8xf32> to vector<8xf32>
    %76 = vector.shape_cast %75 : vector<8xf32> to vector<8x1xf32>
    %77 = vector.broadcast %76 : vector<8x1xf32> to vector<8x8xf32>
    %78 = arith.divf %74, %77 : vector<8x8xf32>
    %c0_30 = arith.constant 0 : index
    %c0_31 = arith.constant 0 : index
    %c0_32 = arith.constant 0 : index
    %c0_33 = arith.constant 0 : index
    %79 = vector.load %arg6[%c0_30, %c0_31, %c0_32, %c0_33] : memref<1x4x8x8xf32, #tpu.memory_space<vmem>>, vector<1x1x8x8xf32>
    %80 = vector.shape_cast %79 : vector<1x1x8x8xf32> to vector<8x8xf32>
    %81 = vector.shape_cast %78 : vector<8x8xf32> to vector<1x1x8x8xf32>
    tpu.vector_store %arg6[%c0_30, %c0_31, %c0_32, %c0_33], %81 {strides = array<i32>} : memref<1x4x8x8xf32, #tpu.memory_space<vmem>>, vector<1x1x8x8xf32>,
    %82 = arith.mulf %10, %10 : vector<8x8xf32>
    %cst_34 = arith.constant dense<0.000000e+00> : vector<8xf32>
    %83 = vector.multi_reduction <add>, %82, %cst_34 [1] : vector<8x8xf32> to vector<8xf32>
    %84 = vector.shape_cast %83 : vector<8xf32> to vector<8x1xf32>
    %85 = math.sqrt %84 : vector<8x1xf32>
    %cst_35 = arith.constant 1.000000e-15 : f32
    %86 = vector.broadcast %cst_35 : f32 to vector<8x1xf32>
    %87 = arith.maximumf %85, %86 : vector<8x1xf32>
    %cst_36 = arith.constant -0.999998986 : f32
    %cst_37 = arith.constant 0.999998986 : f32
    %88 = vector.broadcast %cst_36 : f32 to vector<8x1xf32>
    %89 = arith.maximumf %88, %87 : vector<8x1xf32>
    %90 = vector.broadcast %cst_37 : f32 to vector<8x1xf32>
    %91 = arith.minimumf %90, %89 : vector<8x1xf32>
    %cst_38 = arith.constant 1.000000e+00 : f32
    %92 = vector.broadcast %cst_38 : f32 to vector<8x1xf32>
    %93 = arith.addf %92, %91 : vector<8x1xf32>
    %cst_39 = arith.constant 1.000000e+00 : f32
    %94 = vector.broadcast %cst_39 : f32 to vector<8x1xf32>
    %95 = arith.subf %94, %91 : vector<8x1xf32>
    %96 = arith.divf %93, %95 : vector<8x1xf32>
    %97 = math.log %96 : vector<8x1xf32>
    %cst_40 = arith.constant 5.000000e-01 : f32
    %98 = vector.broadcast %cst_40 : f32 to vector<8x1xf32>
    %99 = arith.mulf %98, %97 : vector<8x1xf32>
    %100 = vector.broadcast %99 : vector<8x1xf32> to vector<8x8xf32>
    %101 = arith.mulf %100, %10 : vector<8x8xf32>
    %102 = tpu.reciprocal %87 {approx = true} : vector<8x1xf32> -> vector<8x1xf32>
    %103 = vector.broadcast %102 : vector<8x1xf32> to vector<8x8xf32>
    %104 = arith.mulf %101, %103 : vector<8x8xf32>
    %cst_41 = arith.constant dense<0.000000e+00> : vector<8x8xf32>
    %105 = tpu.matmul %78, %104, %cst_41 {dimension_numbers = #tpu.dot_dimension_numbers<[1], [0], [0], [1], [0, 0, 1, 1], [], []>} : vector<8x8xf32>, vector<8x8xf32>, vector<8x8xf32> -> vector<8x8xf32>
    %106 = arith.mulf %105, %105 : vector<8x8xf32>
    %cst_42 = arith.constant dense<0.000000e+00> : vector<8xf32>
    %107 = vector.multi_reduction <add>, %106, %cst_42 [1] : vector<8x8xf32> to vector<8xf32>
    %108 = vector.shape_cast %107 : vector<8xf32> to vector<8x1xf32>
    %109 = math.sqrt %108 : vector<8x1xf32>
    %cst_43 = arith.constant 1.000000e-15 : f32
    %110 = vector.broadcast %cst_43 : f32 to vector<8x1xf32>
    %111 = arith.maximumf %109, %110 : vector<8x1xf32>
    %112 = math.tanh %111 : vector<8x1xf32>
    %113 = vector.broadcast %112 : vector<8x1xf32> to vector<8x8xf32>
    %114 = arith.mulf %113, %105 : vector<8x8xf32>
    %115 = tpu.reciprocal %111 {approx = true} : vector<8x1xf32> -> vector<8x1xf32>
    %116 = vector.broadcast %115 : vector<8x1xf32> to vector<8x8xf32>
    %117 = arith.mulf %114, %116 : vector<8x8xf32>
    %c0_44 = arith.constant 0 : index
    %c0_45 = arith.constant 0 : index
    %c0_46 = arith.constant 0 : index
    %118 = vector.load %arg5[%c0_44, %c0_45, %c0_46] : memref<1x8x32xf32, #tpu.memory_space<vmem>>, vector<1x8x8xf32>
    %119 = vector.shape_cast %118 : vector<1x8x8xf32> to vector<8x8xf32>
    %120 = vector.shape_cast %117 : vector<8x8xf32> to vector<1x8x8xf32>
    tpu.vector_store %arg5[%c0_44, %c0_45, %c0_46], %120 {strides = array<i32>} : memref<1x8x32xf32, #tpu.memory_space<vmem>>, vector<1x8x8xf32>,
    %121 = vector.extract_strided_slice %1 {offsets = [0, 8], sizes = [8, 8], strides = [1, 1]} : vector<8x32xf32> to vector<8x8xf32>
    %122 = vector.extract_strided_slice %3 {offsets = [0, 8], sizes = [8, 8], strides = [1, 1]} : vector<8x32xf32> to vector<8x8xf32>
    %123 = vector.extract_strided_slice %5 {offsets = [0, 8], sizes = [8, 8], strides = [1, 1]} : vector<8x32xf32> to vector<8x8xf32>
    %124 = arith.mulf %121, %121 : vector<8x8xf32>
    %cst_47 = arith.constant dense<0.000000e+00> : vector<8x1xf32>
    %125 = tpu.matmul %124, %6, %cst_47 {dimension_numbers = #tpu.dot_dimension_numbers<[1], [0], [0], [1], [0, 0, 1, 1], [], []>} : vector<8x8xf32>, vector<8x1xf32>, vector<8x1xf32> -> vector<8x1xf32>
    %126 = arith.mulf %122, %122 : vector<8x8xf32>
    %cst_48 = arith.constant dense<0.000000e+00> : vector<1x8xf32>
    %127 = tpu.matmul %7, %126, %cst_48 {dimension_numbers = #tpu.dot_dimension_numbers<[1], [1], [0], [0], [0, 0, 1, 0], [], []>} : vector<1x8xf32>, vector<8x8xf32>, vector<1x8xf32> -> vector<1x8xf32>
    %cst_49 = arith.constant dense<0.000000e+00> : vector<8x8xf32>
    %128 = tpu.matmul %121, %122, %cst_49 {dimension_numbers = #tpu.dot_dimension_numbers<[1], [1], [0], [0], [0, 0, 1, 0], [], []>} : vector<8x8xf32>, vector<8x8xf32>, vector<8x8xf32> -> vector<8x8xf32>
    %cst_50 = arith.constant 2.000000e+00 : f32
    %129 = vector.broadcast %cst_50 : f32 to vector<8x8xf32>
    %130 = arith.mulf %129, %128 : vector<8x8xf32>
    %cst_51 = arith.constant 1.000000e+00 : f32
    %131 = vector.broadcast %cst_51 : f32 to vector<8x8xf32>
    %132 = arith.subf %131, %130 : vector<8x8xf32>
    %133 = vector.broadcast %127 : vector<1x8xf32> to vector<8x8xf32>
    %134 = arith.addf %132, %133 : vector<8x8xf32>
    %cst_52 = arith.constant 1.000000e+00 : f32
    %135 = vector.broadcast %cst_52 : f32 to vector<8x1xf32>
    %136 = arith.subf %135, %125 : vector<8x1xf32>
    %cst_53 = arith.constant 2.000000e+00 : f32
    %137 = vector.broadcast %cst_53 : f32 to vector<8x8xf32>
    %138 = arith.mulf %137, %128 : vector<8x8xf32>
    %cst_54 = arith.constant 1.000000e+00 : f32
    %139 = vector.broadcast %cst_54 : f32 to vector<8x8xf32>
    %140 = arith.subf %139, %138 : vector<8x8xf32>
    %141 = vector.broadcast %125 : vector<8x1xf32> to vector<8x8xf32>
    %142 = vector.broadcast %127 : vector<1x8xf32> to vector<8x8xf32>
    %143 = arith.mulf %141, %142 : vector<8x8xf32>
    %144 = arith.addf %140, %143 : vector<8x8xf32>
    %cst_55 = arith.constant 1.000000e-15 : f32
    %145 = vector.broadcast %cst_55 : f32 to vector<8x8xf32>
    %146 = arith.maximumf %144, %145 : vector<8x8xf32>
    %147 = arith.mulf %134, %134 : vector<8x8xf32>
    %148 = vector.broadcast %125 : vector<8x1xf32> to vector<8x8xf32>
    %149 = arith.mulf %147, %148 : vector<8x8xf32>
    %cst_56 = arith.constant 2.000000e+00 : f32
    %150 = vector.broadcast %cst_56 : f32 to vector<8x8xf32>
    %151 = arith.mulf %150, %134 : vector<8x8xf32>
    %152 = vector.broadcast %136 : vector<8x1xf32> to vector<8x8xf32>
    %153 = arith.mulf %151, %152 : vector<8x8xf32>
    %154 = arith.mulf %153, %128 : vector<8x8xf32>
    %155 = arith.subf %149, %154 : vector<8x8xf32>
    %156 = arith.mulf %136, %136 : vector<8x1xf32>
    %157 = vector.broadcast %156 : vector<8x1xf32> to vector<8x8xf32>
    %158 = vector.broadcast %127 : vector<1x8xf32> to vector<8x8xf32>
    %159 = arith.mulf %157, %158 : vector<8x8xf32>
    %160 = arith.addf %155, %159 : vector<8x8xf32>
    %cst_57 = arith.constant 0.000000e+00 : f32
    %161 = vector.broadcast %cst_57 : f32 to vector<8x8xf32>
    %162 = arith.maximumf %160, %161 : vector<8x8xf32>
    %163 = math.sqrt %162 : vector<8x8xf32>
    %164 = arith.divf %163, %146 : vector<8x8xf32>
    %cst_58 = arith.constant -0.999998986 : f32
    %cst_59 = arith.constant 0.999998986 : f32
    %165 = vector.broadcast %cst_58 : f32 to vector<8x8xf32>
    %166 = arith.maximumf %165, %164 : vector<8x8xf32>
    %167 = vector.broadcast %cst_59 : f32 to vector<8x8xf32>
    %168 = arith.minimumf %167, %166 : vector<8x8xf32>
    %cst_60 = arith.constant 1.000000e+00 : f32
    %169 = vector.broadcast %cst_60 : f32 to vector<8x8xf32>
    %170 = arith.addf %169, %168 : vector<8x8xf32>
    %cst_61 = arith.constant 1.000000e+00 : f32
    %171 = vector.broadcast %cst_61 : f32 to vector<8x8xf32>
    %172 = arith.subf %171, %168 : vector<8x8xf32>
    %173 = arith.divf %170, %172 : vector<8x8xf32>
    %174 = math.log %173 : vector<8x8xf32>
    %cst_62 = arith.constant 5.000000e-01 : f32
    %175 = vector.broadcast %cst_62 : f32 to vector<8x8xf32>
    %176 = arith.mulf %175, %174 : vector<8x8xf32>
    %cst_63 = arith.constant 2.000000e+00 : f32
    %177 = vector.broadcast %cst_63 : f32 to vector<8x8xf32>
    %178 = arith.mulf %177, %176 : vector<8x8xf32>
    %cst_64 = arith.constant 0.000000e+00 : f32
    %179 = vector.broadcast %cst_64 : f32 to vector<8x8xf32>
    %180 = arith.subf %179, %178 : vector<8x8xf32>
    %cst_65 = arith.constant 0.353553385 : f32
    %181 = vector.broadcast %cst_65 : f32 to vector<8x8xf32>
    %182 = arith.mulf %180, %181 : vector<8x8xf32>
    %cst_66 = arith.constant dense<0xFF800000> : vector<8xf32>
    %183 = vector.multi_reduction <maximumf>, %182, %cst_66 [1] : vector<8x8xf32> to vector<8xf32>
    %184 = vector.shape_cast %183 : vector<8xf32> to vector<8x1xf32>
    %185 = vector.broadcast %184 : vector<8x1xf32> to vector<8x8xf32>
    %186 = arith.subf %182, %185 : vector<8x8xf32>
    %187 = math.exp %186 : vector<8x8xf32>
    %cst_67 = arith.constant dense<0.000000e+00> : vector<8xf32>
    %188 = vector.multi_reduction <add>, %187, %cst_67 [1] : vector<8x8xf32> to vector<8xf32>
    %189 = vector.shape_cast %188 : vector<8xf32> to vector<8x1xf32>
    %190 = vector.broadcast %189 : vector<8x1xf32> to vector<8x8xf32>
    %191 = arith.divf %187, %190 : vector<8x8xf32>
    %c0_68 = arith.constant 0 : index
    %c1 = arith.constant 1 : index
    %c0_69 = arith.constant 0 : index
    %c0_70 = arith.constant 0 : index
    %192 = vector.load %arg6[%c0_68, %c1, %c0_69, %c0_70] : memref<1x4x8x8xf32, #tpu.memory_space<vmem>>, vector<1x1x8x8xf32>
    %193 = vector.shape_cast %192 : vector<1x1x8x8xf32> to vector<8x8xf32>
    %194 = vector.shape_cast %191 : vector<8x8xf32> to vector<1x1x8x8xf32>
    tpu.vector_store %arg6[%c0_68, %c1, %c0_69, %c0_70], %194 {strides = array<i32>} : memref<1x4x8x8xf32, #tpu.memory_space<vmem>>, vector<1x1x8x8xf32>,
    %195 = arith.mulf %123, %123 : vector<8x8xf32>
    %cst_71 = arith.constant dense<0.000000e+00> : vector<8xf32>
    %196 = vector.multi_reduction <add>, %195, %cst_71 [1] : vector<8x8xf32> to vector<8xf32>
    %197 = vector.shape_cast %196 : vector<8xf32> to vector<8x1xf32>
    %198 = math.sqrt %197 : vector<8x1xf32>
    %cst_72 = arith.constant 1.000000e-15 : f32
    %199 = vector.broadcast %cst_72 : f32 to vector<8x1xf32>
    %200 = arith.maximumf %198, %199 : vector<8x1xf32>
    %cst_73 = arith.constant -0.999998986 : f32
    %cst_74 = arith.constant 0.999998986 : f32
    %201 = vector.broadcast %cst_73 : f32 to vector<8x1xf32>
    %202 = arith.maximumf %201, %200 : vector<8x1xf32>
    %203 = vector.broadcast %cst_74 : f32 to vector<8x1xf32>
    %204 = arith.minimumf %203, %202 : vector<8x1xf32>
    %cst_75 = arith.constant 1.000000e+00 : f32
    %205 = vector.broadcast %cst_75 : f32 to vector<8x1xf32>
    %206 = arith.addf %205, %204 : vector<8x1xf32>
    %cst_76 = arith.constant 1.000000e+00 : f32
    %207 = vector.broadcast %cst_76 : f32 to vector<8x1xf32>
    %208 = arith.subf %207, %204 : vector<8x1xf32>
    %209 = arith.divf %206, %208 : vector<8x1xf32>
    %210 = math.log %209 : vector<8x1xf32>
    %cst_77 = arith.constant 5.000000e-01 : f32
    %211 = vector.broadcast %cst_77 : f32 to vector<8x1xf32>
    %212 = arith.mulf %211, %210 : vector<8x1xf32>
    %213 = vector.broadcast %212 : vector<8x1xf32> to vector<8x8xf32>
    %214 = arith.mulf %213, %123 : vector<8x8xf32>
    %215 = tpu.reciprocal %200 {approx = true} : vector<8x1xf32> -> vector<8x1xf32>
    %216 = vector.broadcast %215 : vector<8x1xf32> to vector<8x8xf32>
    %217 = arith.mulf %214, %216 : vector<8x8xf32>
    %cst_78 = arith.constant dense<0.000000e+00> : vector<8x8xf32>
    %218 = tpu.matmul %191, %217, %cst_78 {dimension_numbers = #tpu.dot_dimension_numbers<[1], [0], [0], [1], [0, 0, 1, 1], [], []>} : vector<8x8xf32>, vector<8x8xf32>, vector<8x8xf32> -> vector<8x8xf32>
    %219 = arith.mulf %218, %218 : vector<8x8xf32>
    %cst_79 = arith.constant dense<0.000000e+00> : vector<8xf32>
    %220 = vector.multi_reduction <add>, %219, %cst_79 [1] : vector<8x8xf32> to vector<8xf32>
    %221 = vector.shape_cast %220 : vector<8xf32> to vector<8x1xf32>
    %222 = math.sqrt %221 : vector<8x1xf32>
    %cst_80 = arith.constant 1.000000e-15 : f32
    %223 = vector.broadcast %cst_80 : f32 to vector<8x1xf32>
    %224 = arith.maximumf %222, %223 : vector<8x1xf32>
    %225 = math.tanh %224 : vector<8x1xf32>
    %226 = vector.broadcast %225 : vector<8x1xf32> to vector<8x8xf32>
    %227 = arith.mulf %226, %218 : vector<8x8xf32>
    %228 = tpu.reciprocal %224 {approx = true} : vector<8x1xf32> -> vector<8x1xf32>
    %229 = vector.broadcast %228 : vector<8x1xf32> to vector<8x8xf32>
    %230 = arith.mulf %227, %229 : vector<8x8xf32>
    %c0_81 = arith.constant 0 : index
    %c0_82 = arith.constant 0 : index
    %c8 = arith.constant 8 : index
    %231 = vector.load %arg5[%c0_81, %c0_82, %c8] : memref<1x8x32xf32, #tpu.memory_space<vmem>>, vector<1x8x8xf32>
    %232 = vector.shape_cast %231 : vector<1x8x8xf32> to vector<8x8xf32>
    %233 = vector.shape_cast %230 : vector<8x8xf32> to vector<1x8x8xf32>
    tpu.vector_store %arg5[%c0_81, %c0_82, %c8], %233 {strides = array<i32>} : memref<1x8x32xf32, #tpu.memory_space<vmem>>, vector<1x8x8xf32>,
    %234 = vector.extract_strided_slice %1 {offsets = [0, 16], sizes = [8, 8], strides = [1, 1]} : vector<8x32xf32> to vector<8x8xf32>
    %235 = vector.extract_strided_slice %3 {offsets = [0, 16], sizes = [8, 8], strides = [1, 1]} : vector<8x32xf32> to vector<8x8xf32>
    %236 = vector.extract_strided_slice %5 {offsets = [0, 16], sizes = [8, 8], strides = [1, 1]} : vector<8x32xf32> to vector<8x8xf32>
    %237 = arith.mulf %234, %234 : vector<8x8xf32>
    %cst_83 = arith.constant dense<0.000000e+00> : vector<8x1xf32>
    %238 = tpu.matmul %237, %6, %cst_83 {dimension_numbers = #tpu.dot_dimension_numbers<[1], [0], [0], [1], [0, 0, 1, 1], [], []>} : vector<8x8xf32>, vector<8x1xf32>, vector<8x1xf32> -> vector<8x1xf32>
    %239 = arith.mulf %235, %235 : vector<8x8xf32>
    %cst_84 = arith.constant dense<0.000000e+00> : vector<1x8xf32>
    %240 = tpu.matmul %7, %239, %cst_84 {dimension_numbers = #tpu.dot_dimension_numbers<[1], [1], [0], [0], [0, 0, 1, 0], [], []>} : vector<1x8xf32>, vector<8x8xf32>, vector<1x8xf32> -> vector<1x8xf32>
    %cst_85 = arith.constant dense<0.000000e+00> : vector<8x8xf32>
    %241 = tpu.matmul %234, %235, %cst_85 {dimension_numbers = #tpu.dot_dimension_numbers<[1], [1], [0], [0], [0, 0, 1, 0], [], []>} : vector<8x8xf32>, vector<8x8xf32>, vector<8x8xf32> -> vector<8x8xf32>
    %cst_86 = arith.constant 2.000000e+00 : f32
    %242 = vector.broadcast %cst_86 : f32 to vector<8x8xf32>
    %243 = arith.mulf %242, %241 : vector<8x8xf32>
    %cst_87 = arith.constant 1.000000e+00 : f32
    %244 = vector.broadcast %cst_87 : f32 to vector<8x8xf32>
    %245 = arith.subf %244, %243 : vector<8x8xf32>
    %246 = vector.broadcast %240 : vector<1x8xf32> to vector<8x8xf32>
    %247 = arith.addf %245, %246 : vector<8x8xf32>
    %cst_88 = arith.constant 1.000000e+00 : f32
    %248 = vector.broadcast %cst_88 : f32 to vector<8x1xf32>
    %249 = arith.subf %248, %238 : vector<8x1xf32>
    %cst_89 = arith.constant 2.000000e+00 : f32
    %250 = vector.broadcast %cst_89 : f32 to vector<8x8xf32>
    %251 = arith.mulf %250, %241 : vector<8x8xf32>
    %cst_90 = arith.constant 1.000000e+00 : f32
    %252 = vector.broadcast %cst_90 : f32 to vector<8x8xf32>
    %253 = arith.subf %252, %251 : vector<8x8xf32>
    %254 = vector.broadcast %238 : vector<8x1xf32> to vector<8x8xf32>
    %255 = vector.broadcast %240 : vector<1x8xf32> to vector<8x8xf32>
    %256 = arith.mulf %254, %255 : vector<8x8xf32>
    %257 = arith.addf %253, %256 : vector<8x8xf32>
    %cst_91 = arith.constant 1.000000e-15 : f32
    %258 = vector.broadcast %cst_91 : f32 to vector<8x8xf32>
    %259 = arith.maximumf %257, %258 : vector<8x8xf32>
    %260 = arith.mulf %247, %247 : vector<8x8xf32>
    %261 = vector.broadcast %238 : vector<8x1xf32> to vector<8x8xf32>
    %262 = arith.mulf %260, %261 : vector<8x8xf32>
    %cst_92 = arith.constant 2.000000e+00 : f32
    %263 = vector.broadcast %cst_92 : f32 to vector<8x8xf32>
    %264 = arith.mulf %263, %247 : vector<8x8xf32>
    %265 = vector.broadcast %249 : vector<8x1xf32> to vector<8x8xf32>
    %266 = arith.mulf %264, %265 : vector<8x8xf32>
    %267 = arith.mulf %266, %241 : vector<8x8xf32>
    %268 = arith.subf %262, %267 : vector<8x8xf32>
    %269 = arith.mulf %249, %249 : vector<8x1xf32>
    %270 = vector.broadcast %269 : vector<8x1xf32> to vector<8x8xf32>
    %271 = vector.broadcast %240 : vector<1x8xf32> to vector<8x8xf32>
    %272 = arith.mulf %270, %271 : vector<8x8xf32>
    %273 = arith.addf %268, %272 : vector<8x8xf32>
    %cst_93 = arith.constant 0.000000e+00 : f32
    %274 = vector.broadcast %cst_93 : f32 to vector<8x8xf32>
    %275 = arith.maximumf %273, %274 : vector<8x8xf32>
    %276 = math.sqrt %275 : vector<8x8xf32>
    %277 = arith.divf %276, %259 : vector<8x8xf32>
    %cst_94 = arith.constant -0.999998986 : f32
    %cst_95 = arith.constant 0.999998986 : f32
    %278 = vector.broadcast %cst_94 : f32 to vector<8x8xf32>
    %279 = arith.maximumf %278, %277 : vector<8x8xf32>
    %280 = vector.broadcast %cst_95 : f32 to vector<8x8xf32>
    %281 = arith.minimumf %280, %279 : vector<8x8xf32>
    %cst_96 = arith.constant 1.000000e+00 : f32
    %282 = vector.broadcast %cst_96 : f32 to vector<8x8xf32>
    %283 = arith.addf %282, %281 : vector<8x8xf32>
    %cst_97 = arith.constant 1.000000e+00 : f32
    %284 = vector.broadcast %cst_97 : f32 to vector<8x8xf32>
    %285 = arith.subf %284, %281 : vector<8x8xf32>
    %286 = arith.divf %283, %285 : vector<8x8xf32>
    %287 = math.log %286 : vector<8x8xf32>
    %cst_98 = arith.constant 5.000000e-01 : f32
    %288 = vector.broadcast %cst_98 : f32 to vector<8x8xf32>
    %289 = arith.mulf %288, %287 : vector<8x8xf32>
    %cst_99 = arith.constant 2.000000e+00 : f32
    %290 = vector.broadcast %cst_99 : f32 to vector<8x8xf32>
    %291 = arith.mulf %290, %289 : vector<8x8xf32>
    %cst_100 = arith.constant 0.000000e+00 : f32
    %292 = vector.broadcast %cst_100 : f32 to vector<8x8xf32>
    %293 = arith.subf %292, %291 : vector<8x8xf32>
    %cst_101 = arith.constant 0.353553385 : f32
    %294 = vector.broadcast %cst_101 : f32 to vector<8x8xf32>
    %295 = arith.mulf %293, %294 : vector<8x8xf32>
    %cst_102 = arith.constant dense<0xFF800000> : vector<8xf32>
    %296 = vector.multi_reduction <maximumf>, %295, %cst_102 [1] : vector<8x8xf32> to vector<8xf32>
    %297 = vector.shape_cast %296 : vector<8xf32> to vector<8x1xf32>
    %298 = vector.broadcast %297 : vector<8x1xf32> to vector<8x8xf32>
    %299 = arith.subf %295, %298 : vector<8x8xf32>
    %300 = math.exp %299 : vector<8x8xf32>
    %cst_103 = arith.constant dense<0.000000e+00> : vector<8xf32>
    %301 = vector.multi_reduction <add>, %300, %cst_103 [1] : vector<8x8xf32> to vector<8xf32>
    %302 = vector.shape_cast %301 : vector<8xf32> to vector<8x1xf32>
    %303 = vector.broadcast %302 : vector<8x1xf32> to vector<8x8xf32>
    %304 = arith.divf %300, %303 : vector<8x8xf32>
    %c0_104 = arith.constant 0 : index
    %c2 = arith.constant 2 : index
    %c0_105 = arith.constant 0 : index
    %c0_106 = arith.constant 0 : index
    %305 = vector.load %arg6[%c0_104, %c2, %c0_105, %c0_106] : memref<1x4x8x8xf32, #tpu.memory_space<vmem>>, vector<1x1x8x8xf32>
    %306 = vector.shape_cast %305 : vector<1x1x8x8xf32> to vector<8x8xf32>
    %307 = vector.shape_cast %304 : vector<8x8xf32> to vector<1x1x8x8xf32>
    tpu.vector_store %arg6[%c0_104, %c2, %c0_105, %c0_106], %307 {strides = array<i32>} : memref<1x4x8x8xf32, #tpu.memory_space<vmem>>, vector<1x1x8x8xf32>,
    %308 = arith.mulf %236, %236 : vector<8x8xf32>
    %cst_107 = arith.constant dense<0.000000e+00> : vector<8xf32>
    %309 = vector.multi_reduction <add>, %308, %cst_107 [1] : vector<8x8xf32> to vector<8xf32>
    %310 = vector.shape_cast %309 : vector<8xf32> to vector<8x1xf32>
    %311 = math.sqrt %310 : vector<8x1xf32>
    %cst_108 = arith.constant 1.000000e-15 : f32
    %312 = vector.broadcast %cst_108 : f32 to vector<8x1xf32>
    %313 = arith.maximumf %311, %312 : vector<8x1xf32>
    %cst_109 = arith.constant -0.999998986 : f32
    %cst_110 = arith.constant 0.999998986 : f32
    %314 = vector.broadcast %cst_109 : f32 to vector<8x1xf32>
    %315 = arith.maximumf %314, %313 : vector<8x1xf32>
    %316 = vector.broadcast %cst_110 : f32 to vector<8x1xf32>
    %317 = arith.minimumf %316, %315 : vector<8x1xf32>
    %cst_111 = arith.constant 1.000000e+00 : f32
    %318 = vector.broadcast %cst_111 : f32 to vector<8x1xf32>
    %319 = arith.addf %318, %317 : vector<8x1xf32>
    %cst_112 = arith.constant 1.000000e+00 : f32
    %320 = vector.broadcast %cst_112 : f32 to vector<8x1xf32>
    %321 = arith.subf %320, %317 : vector<8x1xf32>
    %322 = arith.divf %319, %321 : vector<8x1xf32>
    %323 = math.log %322 : vector<8x1xf32>
    %cst_113 = arith.constant 5.000000e-01 : f32
    %324 = vector.broadcast %cst_113 : f32 to vector<8x1xf32>
    %325 = arith.mulf %324, %323 : vector<8x1xf32>
    %326 = vector.broadcast %325 : vector<8x1xf32> to vector<8x8xf32>
    %327 = arith.mulf %326, %236 : vector<8x8xf32>
    %328 = tpu.reciprocal %313 {approx = true} : vector<8x1xf32> -> vector<8x1xf32>
    %329 = vector.broadcast %328 : vector<8x1xf32> to vector<8x8xf32>
    %330 = arith.mulf %327, %329 : vector<8x8xf32>
    %cst_114 = arith.constant dense<0.000000e+00> : vector<8x8xf32>
    %331 = tpu.matmul %304, %330, %cst_114 {dimension_numbers = #tpu.dot_dimension_numbers<[1], [0], [0], [1], [0, 0, 1, 1], [], []>} : vector<8x8xf32>, vector<8x8xf32>, vector<8x8xf32> -> vector<8x8xf32>
    %332 = arith.mulf %331, %331 : vector<8x8xf32>
    %cst_115 = arith.constant dense<0.000000e+00> : vector<8xf32>
    %333 = vector.multi_reduction <add>, %332, %cst_115 [1] : vector<8x8xf32> to vector<8xf32>
    %334 = vector.shape_cast %333 : vector<8xf32> to vector<8x1xf32>
    %335 = math.sqrt %334 : vector<8x1xf32>
    %cst_116 = arith.constant 1.000000e-15 : f32
    %336 = vector.broadcast %cst_116 : f32 to vector<8x1xf32>
    %337 = arith.maximumf %335, %336 : vector<8x1xf32>
    %338 = math.tanh %337 : vector<8x1xf32>
    %339 = vector.broadcast %338 : vector<8x1xf32> to vector<8x8xf32>
    %340 = arith.mulf %339, %331 : vector<8x8xf32>
    %341 = tpu.reciprocal %337 {approx = true} : vector<8x1xf32> -> vector<8x1xf32>
    %342 = vector.broadcast %341 : vector<8x1xf32> to vector<8x8xf32>
    %343 = arith.mulf %340, %342 : vector<8x8xf32>
    %c0_117 = arith.constant 0 : index
    %c0_118 = arith.constant 0 : index
    %c16 = arith.constant 16 : index
    %344 = vector.load %arg5[%c0_117, %c0_118, %c16] : memref<1x8x32xf32, #tpu.memory_space<vmem>>, vector<1x8x8xf32>
    %345 = vector.shape_cast %344 : vector<1x8x8xf32> to vector<8x8xf32>
    %346 = vector.shape_cast %343 : vector<8x8xf32> to vector<1x8x8xf32>
    tpu.vector_store %arg5[%c0_117, %c0_118, %c16], %346 {strides = array<i32>} : memref<1x8x32xf32, #tpu.memory_space<vmem>>, vector<1x8x8xf32>,
    %347 = vector.extract_strided_slice %1 {offsets = [0, 24], sizes = [8, 8], strides = [1, 1]} : vector<8x32xf32> to vector<8x8xf32>
    %348 = vector.extract_strided_slice %3 {offsets = [0, 24], sizes = [8, 8], strides = [1, 1]} : vector<8x32xf32> to vector<8x8xf32>
    %349 = vector.extract_strided_slice %5 {offsets = [0, 24], sizes = [8, 8], strides = [1, 1]} : vector<8x32xf32> to vector<8x8xf32>
    %350 = arith.mulf %347, %347 : vector<8x8xf32>
    %cst_119 = arith.constant dense<0.000000e+00> : vector<8x1xf32>
    %351 = tpu.matmul %350, %6, %cst_119 {dimension_numbers = #tpu.dot_dimension_numbers<[1], [0], [0], [1], [0, 0, 1, 1], [], []>} : vector<8x8xf32>, vector<8x1xf32>, vector<8x1xf32> -> vector<8x1xf32>
    %352 = arith.mulf %348, %348 : vector<8x8xf32>
    %cst_120 = arith.constant dense<0.000000e+00> : vector<1x8xf32>
    %353 = tpu.matmul %7, %352, %cst_120 {dimension_numbers = #tpu.dot_dimension_numbers<[1], [1], [0], [0], [0, 0, 1, 0], [], []>} : vector<1x8xf32>, vector<8x8xf32>, vector<1x8xf32> -> vector<1x8xf32>
    %cst_121 = arith.constant dense<0.000000e+00> : vector<8x8xf32>
    %354 = tpu.matmul %347, %348, %cst_121 {dimension_numbers = #tpu.dot_dimension_numbers<[1], [1], [0], [0], [0, 0, 1, 0], [], []>} : vector<8x8xf32>, vector<8x8xf32>, vector<8x8xf32> -> vector<8x8xf32>
    %cst_122 = arith.constant 2.000000e+00 : f32
    %355 = vector.broadcast %cst_122 : f32 to vector<8x8xf32>
    %356 = arith.mulf %355, %354 : vector<8x8xf32>
    %cst_123 = arith.constant 1.000000e+00 : f32
    %357 = vector.broadcast %cst_123 : f32 to vector<8x8xf32>
    %358 = arith.subf %357, %356 : vector<8x8xf32>
    %359 = vector.broadcast %353 : vector<1x8xf32> to vector<8x8xf32>
    %360 = arith.addf %358, %359 : vector<8x8xf32>
    %cst_124 = arith.constant 1.000000e+00 : f32
    %361 = vector.broadcast %cst_124 : f32 to vector<8x1xf32>
    %362 = arith.subf %361, %351 : vector<8x1xf32>
    %cst_125 = arith.constant 2.000000e+00 : f32
    %363 = vector.broadcast %cst_125 : f32 to vector<8x8xf32>
    %364 = arith.mulf %363, %354 : vector<8x8xf32>
    %cst_126 = arith.constant 1.000000e+00 : f32
    %365 = vector.broadcast %cst_126 : f32 to vector<8x8xf32>
    %366 = arith.subf %365, %364 : vector<8x8xf32>
    %367 = vector.broadcast %351 : vector<8x1xf32> to vector<8x8xf32>
    %368 = vector.broadcast %353 : vector<1x8xf32> to vector<8x8xf32>
    %369 = arith.mulf %367, %368 : vector<8x8xf32>
    %370 = arith.addf %366, %369 : vector<8x8xf32>
    %cst_127 = arith.constant 1.000000e-15 : f32
    %371 = vector.broadcast %cst_127 : f32 to vector<8x8xf32>
    %372 = arith.maximumf %370, %371 : vector<8x8xf32>
    %373 = arith.mulf %360, %360 : vector<8x8xf32>
    %374 = vector.broadcast %351 : vector<8x1xf32> to vector<8x8xf32>
    %375 = arith.mulf %373, %374 : vector<8x8xf32>
    %cst_128 = arith.constant 2.000000e+00 : f32
    %376 = vector.broadcast %cst_128 : f32 to vector<8x8xf32>
    %377 = arith.mulf %376, %360 : vector<8x8xf32>
    %378 = vector.broadcast %362 : vector<8x1xf32> to vector<8x8xf32>
    %379 = arith.mulf %377, %378 : vector<8x8xf32>
    %380 = arith.mulf %379, %354 : vector<8x8xf32>
    %381 = arith.subf %375, %380 : vector<8x8xf32>
    %382 = arith.mulf %362, %362 : vector<8x1xf32>
    %383 = vector.broadcast %382 : vector<8x1xf32> to vector<8x8xf32>
    %384 = vector.broadcast %353 : vector<1x8xf32> to vector<8x8xf32>
    %385 = arith.mulf %383, %384 : vector<8x8xf32>
    %386 = arith.addf %381, %385 : vector<8x8xf32>
    %cst_129 = arith.constant 0.000000e+00 : f32
    %387 = vector.broadcast %cst_129 : f32 to vector<8x8xf32>
    %388 = arith.maximumf %386, %387 : vector<8x8xf32>
    %389 = math.sqrt %388 : vector<8x8xf32>
    %390 = arith.divf %389, %372 : vector<8x8xf32>
    %cst_130 = arith.constant -0.999998986 : f32
    %cst_131 = arith.constant 0.999998986 : f32
    %391 = vector.broadcast %cst_130 : f32 to vector<8x8xf32>
    %392 = arith.maximumf %391, %390 : vector<8x8xf32>
    %393 = vector.broadcast %cst_131 : f32 to vector<8x8xf32>
    %394 = arith.minimumf %393, %392 : vector<8x8xf32>
    %cst_132 = arith.constant 1.000000e+00 : f32
    %395 = vector.broadcast %cst_132 : f32 to vector<8x8xf32>
    %396 = arith.addf %395, %394 : vector<8x8xf32>
    %cst_133 = arith.constant 1.000000e+00 : f32
    %397 = vector.broadcast %cst_133 : f32 to vector<8x8xf32>
    %398 = arith.subf %397, %394 : vector<8x8xf32>
    %399 = arith.divf %396, %398 : vector<8x8xf32>
    %400 = math.log %399 : vector<8x8xf32>
    %cst_134 = arith.constant 5.000000e-01 : f32
    %401 = vector.broadcast %cst_134 : f32 to vector<8x8xf32>
    %402 = arith.mulf %401, %400 : vector<8x8xf32>
    %cst_135 = arith.constant 2.000000e+00 : f32
    %403 = vector.broadcast %cst_135 : f32 to vector<8x8xf32>
    %404 = arith.mulf %403, %402 : vector<8x8xf32>
    %cst_136 = arith.constant 0.000000e+00 : f32
    %405 = vector.broadcast %cst_136 : f32 to vector<8x8xf32>
    %406 = arith.subf %405, %404 : vector<8x8xf32>
    %cst_137 = arith.constant 0.353553385 : f32
    %407 = vector.broadcast %cst_137 : f32 to vector<8x8xf32>
    %408 = arith.mulf %406, %407 : vector<8x8xf32>
    %cst_138 = arith.constant dense<0xFF800000> : vector<8xf32>
    %409 = vector.multi_reduction <maximumf>, %408, %cst_138 [1] : vector<8x8xf32> to vector<8xf32>
    %410 = vector.shape_cast %409 : vector<8xf32> to vector<8x1xf32>
    %411 = vector.broadcast %410 : vector<8x1xf32> to vector<8x8xf32>
    %412 = arith.subf %408, %411 : vector<8x8xf32>
    %413 = math.exp %412 : vector<8x8xf32>
    %cst_139 = arith.constant dense<0.000000e+00> : vector<8xf32>
    %414 = vector.multi_reduction <add>, %413, %cst_139 [1] : vector<8x8xf32> to vector<8xf32>
    %415 = vector.shape_cast %414 : vector<8xf32> to vector<8x1xf32>
    %416 = vector.broadcast %415 : vector<8x1xf32> to vector<8x8xf32>
    %417 = arith.divf %413, %416 : vector<8x8xf32>
    %c0_140 = arith.constant 0 : index
    %c3 = arith.constant 3 : index
    %c0_141 = arith.constant 0 : index
    %c0_142 = arith.constant 0 : index
    %418 = vector.load %arg6[%c0_140, %c3, %c0_141, %c0_142] : memref<1x4x8x8xf32, #tpu.memory_space<vmem>>, vector<1x1x8x8xf32>
    %419 = vector.shape_cast %418 : vector<1x1x8x8xf32> to vector<8x8xf32>
    %420 = vector.shape_cast %417 : vector<8x8xf32> to vector<1x1x8x8xf32>
    tpu.vector_store %arg6[%c0_140, %c3, %c0_141, %c0_142], %420 {strides = array<i32>} : memref<1x4x8x8xf32, #tpu.memory_space<vmem>>, vector<1x1x8x8xf32>,
    %421 = arith.mulf %349, %349 : vector<8x8xf32>
    %cst_143 = arith.constant dense<0.000000e+00> : vector<8xf32>
    %422 = vector.multi_reduction <add>, %421, %cst_143 [1] : vector<8x8xf32> to vector<8xf32>
    %423 = vector.shape_cast %422 : vector<8xf32> to vector<8x1xf32>
    %424 = math.sqrt %423 : vector<8x1xf32>
    %cst_144 = arith.constant 1.000000e-15 : f32
    %425 = vector.broadcast %cst_144 : f32 to vector<8x1xf32>
    %426 = arith.maximumf %424, %425 : vector<8x1xf32>
    %cst_145 = arith.constant -0.999998986 : f32
    %cst_146 = arith.constant 0.999998986 : f32
    %427 = vector.broadcast %cst_145 : f32 to vector<8x1xf32>
    %428 = arith.maximumf %427, %426 : vector<8x1xf32>
    %429 = vector.broadcast %cst_146 : f32 to vector<8x1xf32>
    %430 = arith.minimumf %429, %428 : vector<8x1xf32>
    %cst_147 = arith.constant 1.000000e+00 : f32
    %431 = vector.broadcast %cst_147 : f32 to vector<8x1xf32>
    %432 = arith.addf %431, %430 : vector<8x1xf32>
    %cst_148 = arith.constant 1.000000e+00 : f32
    %433 = vector.broadcast %cst_148 : f32 to vector<8x1xf32>
    %434 = arith.subf %433, %430 : vector<8x1xf32>
    %435 = arith.divf %432, %434 : vector<8x1xf32>
    %436 = math.log %435 : vector<8x1xf32>
    %cst_149 = arith.constant 5.000000e-01 : f32
    %437 = vector.broadcast %cst_149 : f32 to vector<8x1xf32>
    %438 = arith.mulf %437, %436 : vector<8x1xf32>
    %439 = vector.broadcast %438 : vector<8x1xf32> to vector<8x8xf32>
    %440 = arith.mulf %439, %349 : vector<8x8xf32>
    %441 = tpu.reciprocal %426 {approx = true} : vector<8x1xf32> -> vector<8x1xf32>
    %442 = vector.broadcast %441 : vector<8x1xf32> to vector<8x8xf32>
    %443 = arith.mulf %440, %442 : vector<8x8xf32>
    %cst_150 = arith.constant dense<0.000000e+00> : vector<8x8xf32>
    %444 = tpu.matmul %417, %443, %cst_150 {dimension_numbers = #tpu.dot_dimension_numbers<[1], [0], [0], [1], [0, 0, 1, 1], [], []>} : vector<8x8xf32>, vector<8x8xf32>, vector<8x8xf32> -> vector<8x8xf32>
    %445 = arith.mulf %444, %444 : vector<8x8xf32>
    %cst_151 = arith.constant dense<0.000000e+00> : vector<8xf32>
    %446 = vector.multi_reduction <add>, %445, %cst_151 [1] : vector<8x8xf32> to vector<8xf32>
    %447 = vector.shape_cast %446 : vector<8xf32> to vector<8x1xf32>
    %448 = math.sqrt %447 : vector<8x1xf32>
    %cst_152 = arith.constant 1.000000e-15 : f32
    %449 = vector.broadcast %cst_152 : f32 to vector<8x1xf32>
    %450 = arith.maximumf %448, %449 : vector<8x1xf32>
    %451 = math.tanh %450 : vector<8x1xf32>
    %452 = vector.broadcast %451 : vector<8x1xf32> to vector<8x8xf32>
    %453 = arith.mulf %452, %444 : vector<8x8xf32>
    %454 = tpu.reciprocal %450 {approx = true} : vector<8x1xf32> -> vector<8x1xf32>
    %455 = vector.broadcast %454 : vector<8x1xf32> to vector<8x8xf32>
    %456 = arith.mulf %453, %455 : vector<8x8xf32>
    %c0_153 = arith.constant 0 : index
    %c0_154 = arith.constant 0 : index
    %c24 = arith.constant 24 : index
    %457 = vector.load %arg5[%c0_153, %c0_154, %c24] : memref<1x8x32xf32, #tpu.memory_space<vmem>>, vector<1x8x8xf32>
    %458 = vector.shape_cast %457 : vector<1x8x8xf32> to vector<8x8xf32>
    %459 = vector.shape_cast %456 : vector<8x8xf32> to vector<1x8x8xf32>
    tpu.vector_store %arg5[%c0_153, %c0_154, %c24], %459 {strides = array<i32>} : memref<1x8x32xf32, #tpu.memory_space<vmem>>, vector<1x8x8xf32>,
    return
  }
  func.func @transform_0(%arg0: i32, %arg1: i32) -> (i32, i32, i32) {
    %c0_i32 = arith.constant 0 : i32
    %c0_i32_0 = arith.constant 0 : i32
    return %arg0, %arg1, %c0_i32 : i32, i32, i32
  }
  func.func @transform_1(%arg0: i32, %arg1: i32) -> (i32, i32, i32) {
    %c0_i32 = arith.constant 0 : i32
    %c0_i32_0 = arith.constant 0 : i32
    %c0_i32_1 = arith.constant 0 : i32
    return %arg0, %c0_i32, %c0_i32_0 : i32, i32, i32
  }
  func.func @transform_2(%arg0: i32, %arg1: i32) -> (i32, i32, i32) {
    %c0_i32 = arith.constant 0 : i32
    %c0_i32_0 = arith.constant 0 : i32
    %c0_i32_1 = arith.constant 0 : i32
    return %arg0, %c0_i32, %c0_i32_0 : i32, i32, i32
  }
  func.func @transform_3(%arg0: i32, %arg1: i32) -> (i32, i32, i32) {
    %c0_i32 = arith.constant 0 : i32
    %c0_i32_0 = arith.constant 0 : i32
    return %arg0, %arg1, %c0_i32 : i32, i32, i32
  }
  func.func @transform_4(%arg0: i32, %arg1: i32) -> (i32, i32, i32, i32) {
    %c0_i32 = arith.constant 0 : i32
    %c0_i32_0 = arith.constant 0 : i32
    %c0_i32_1 = arith.constant 0 : i32
    return %arg0, %c0_i32, %arg1, %c0_i32_0 : i32, i32, i32, i32
  }
}

module attributes {stable_mosaic.version = 11 : i64} {
  func.func @_qkv_mobius_linear_kernel(%arg0: i32, %arg1: memref<16x32xf32, #tpu.memory_space<vmem>>, %arg2: memref<32x96xf32, #tpu.memory_space<vmem>>, %arg3: memref<3x32xf32, #tpu.memory_space<vmem>>, %arg4: memref<16x32xf32, #tpu.memory_space<vmem>>, %arg5: memref<16x32xf32, #tpu.memory_space<vmem>>, %arg6: memref<16x32xf32, #tpu.memory_space<vmem>>) attributes {dimension_semantics = [#tpu.dimension_semantics<parallel>], iteration_bounds = array<i64: 1>, scalar_prefetch = 0 : i64, scratch_operands = 0 : i64, tpu.core_type = #tpu.core_type<tc>, window_params = [{transform_indices = @transform_0, window_bounds = array<i64: 16, 32>}, {pipeline_mode = #tpu.pipeline_mode<synchronous>, transform_indices = @transform_1, window_bounds = array<i64: 32, 96>}, {pipeline_mode = #tpu.pipeline_mode<synchronous>, transform_indices = @transform_2, window_bounds = array<i64: 3, 32>}, {transform_indices = @transform_3, window_bounds = array<i64: 16, 32>}, {transform_indices = @transform_4, window_bounds = array<i64: 16, 32>}, {transform_indices = @transform_5, window_bounds = array<i64: 16, 32>}]} {
    %c0 = arith.constant 0 : index
    %c0_0 = arith.constant 0 : index
    %0 = vector.load %arg1[%c0, %c0_0] : memref<16x32xf32, #tpu.memory_space<vmem>>, vector<16x32xf32>
    %1 = arith.mulf %0, %0 : vector<16x32xf32>
    %cst = arith.constant dense<0.000000e+00> : vector<16xf32>
    %2 = vector.multi_reduction <add>, %1, %cst [1] : vector<16x32xf32> to vector<16xf32>
    %3 = vector.shape_cast %2 : vector<16xf32> to vector<16x1xf32>
    %4 = math.sqrt %3 : vector<16x1xf32>
    %cst_1 = arith.constant 1.000000e-15 : f32
    %5 = vector.broadcast %cst_1 : f32 to vector<16x1xf32>
    %6 = arith.maximumf %4, %5 : vector<16x1xf32>
    %7 = tpu.reciprocal %6 {approx = true} : vector<16x1xf32> -> vector<16x1xf32>
    %cst_2 = arith.constant -0.999998986 : f32
    %cst_3 = arith.constant 0.999998986 : f32
    %8 = vector.broadcast %cst_2 : f32 to vector<16x1xf32>
    %9 = arith.maximumf %8, %6 : vector<16x1xf32>
    %10 = vector.broadcast %cst_3 : f32 to vector<16x1xf32>
    %11 = arith.minimumf %10, %9 : vector<16x1xf32>
    %cst_4 = arith.constant 1.000000e+00 : f32
    %12 = vector.broadcast %cst_4 : f32 to vector<16x1xf32>
    %13 = arith.addf %12, %11 : vector<16x1xf32>
    %cst_5 = arith.constant 1.000000e+00 : f32
    %14 = vector.broadcast %cst_5 : f32 to vector<16x1xf32>
    %15 = arith.subf %14, %11 : vector<16x1xf32>
    %16 = arith.divf %13, %15 : vector<16x1xf32>
    %17 = math.log %16 : vector<16x1xf32>
    %cst_6 = arith.constant 5.000000e-01 : f32
    %18 = vector.broadcast %cst_6 : f32 to vector<16x1xf32>
    %19 = arith.mulf %18, %17 : vector<16x1xf32>
    %c0_7 = arith.constant 0 : index
    %c0_8 = arith.constant 0 : index
    %20 = vector.load %arg2[%c0_7, %c0_8] : memref<32x96xf32, #tpu.memory_space<vmem>>, vector<32x96xf32>
    %21 = arith.truncf %0 : vector<16x32xf32> to vector<16x32xbf16>
    %22 = arith.truncf %20 : vector<32x96xf32> to vector<32x96xbf16>
    %cst_9 = arith.constant dense<0.000000e+00> : vector<16x96xf32>
    %23 = tpu.matmul %21, %22, %cst_9 {dimension_numbers = #tpu.dot_dimension_numbers<[1], [0], [0], [1], [0, 0, 1, 1], [], []>} : vector<16x32xbf16>, vector<32x96xbf16>, vector<16x96xf32> -> vector<16x96xf32>
    %c0_10 = arith.constant 0 : index
    %c0_11 = arith.constant 0 : index
    %24 = vector.load %arg3[%c0_10, %c0_11] : memref<3x32xf32, #tpu.memory_space<vmem>>, vector<3x32xf32>
    %25 = vector.extract_strided_slice %23 {offsets = [0, 0], sizes = [16, 32], strides = [1, 1]} : vector<16x96xf32> to vector<16x32xf32>
    %26 = arith.mulf %25, %25 : vector<16x32xf32>
    %cst_12 = arith.constant dense<0.000000e+00> : vector<16xf32>
    %27 = vector.multi_reduction <add>, %26, %cst_12 [1] : vector<16x32xf32> to vector<16xf32>
    %28 = vector.shape_cast %27 : vector<16xf32> to vector<16x1xf32>
    %cst_13 = arith.constant 0.000000e+00 : f32
    %29 = vector.broadcast %cst_13 : f32 to vector<16x1xf32>
    %30 = arith.cmpf oeq, %28, %29 : vector<16x1xf32>
    %31 = math.sqrt %28 : vector<16x1xf32>
    %cst_14 = arith.constant 1.000000e-15 : f32
    %32 = vector.broadcast %cst_14 : f32 to vector<16x1xf32>
    %33 = arith.maximumf %31, %32 : vector<16x1xf32>
    %34 = arith.mulf %33, %7 : vector<16x1xf32>
    %35 = arith.mulf %34, %19 : vector<16x1xf32>
    %36 = math.tanh %35 : vector<16x1xf32>
    %37 = vector.broadcast %36 : vector<16x1xf32> to vector<16x32xf32>
    %38 = arith.mulf %37, %25 : vector<16x32xf32>
    %39 = tpu.reciprocal %33 {approx = true} : vector<16x1xf32> -> vector<16x1xf32>
    %40 = vector.broadcast %39 : vector<16x1xf32> to vector<16x32xf32>
    %41 = arith.mulf %38, %40 : vector<16x32xf32>
    %cst_15 = arith.constant 0.000000e+00 : f32
    %42 = vector.broadcast %cst_15 : f32 to vector<16x32xf32>
    %43 = vector.shape_cast %30 : vector<16x1xi1> to vector<16x1xi1>
    %44 = vector.broadcast %43 : vector<16x1xi1> to vector<16x32xi1>
    %45 = arith.select %44, %42, %41 : vector<16x32xi1>, vector<16x32xf32>
    %46 = vector.extract_strided_slice %24 {offsets = [0, 0], sizes = [1, 32], strides = [1, 1]} : vector<3x32xf32> to vector<1x32xf32>
    %47 = arith.mulf %45, %45 : vector<16x32xf32>
    %cst_16 = arith.constant dense<0.000000e+00> : vector<16xf32>
    %48 = vector.multi_reduction <add>, %47, %cst_16 [1] : vector<16x32xf32> to vector<16xf32>
    %49 = vector.shape_cast %48 : vector<16xf32> to vector<16x1xf32>
    %50 = arith.mulf %46, %46 : vector<1x32xf32>
    %cst_17 = arith.constant dense<0.000000e+00> : vector<1xf32>
    %51 = vector.multi_reduction <add>, %50, %cst_17 [1] : vector<1x32xf32> to vector<1xf32>
    %52 = vector.shape_cast %51 : vector<1xf32> to vector<1x1xf32>
    %53 = vector.broadcast %46 : vector<1x32xf32> to vector<16x32xf32>
    %54 = arith.mulf %45, %53 : vector<16x32xf32>
    %cst_18 = arith.constant dense<0.000000e+00> : vector<16xf32>
    %55 = vector.multi_reduction <add>, %54, %cst_18 [1] : vector<16x32xf32> to vector<16xf32>
    %56 = vector.shape_cast %55 : vector<16xf32> to vector<16x1xf32>
    %cst_19 = arith.constant 2.000000e+00 : f32
    %57 = vector.broadcast %cst_19 : f32 to vector<16x1xf32>
    %58 = arith.mulf %57, %56 : vector<16x1xf32>
    %cst_20 = arith.constant 1.000000e+00 : f32
    %59 = vector.broadcast %cst_20 : f32 to vector<16x1xf32>
    %60 = arith.addf %59, %58 : vector<16x1xf32>
    %61 = vector.broadcast %52 : vector<1x1xf32> to vector<16x1xf32>
    %62 = arith.addf %60, %61 : vector<16x1xf32>
    %63 = vector.broadcast %62 : vector<16x1xf32> to vector<16x32xf32>
    %64 = arith.mulf %63, %45 : vector<16x32xf32>
    %cst_21 = arith.constant 1.000000e+00 : f32
    %65 = vector.broadcast %cst_21 : f32 to vector<16x1xf32>
    %66 = arith.subf %65, %49 : vector<16x1xf32>
    %67 = vector.broadcast %66 : vector<16x1xf32> to vector<16x32xf32>
    %68 = vector.broadcast %46 : vector<1x32xf32> to vector<16x32xf32>
    %69 = arith.mulf %67, %68 : vector<16x32xf32>
    %70 = arith.addf %64, %69 : vector<16x32xf32>
    %cst_22 = arith.constant 2.000000e+00 : f32
    %71 = vector.broadcast %cst_22 : f32 to vector<16x1xf32>
    %72 = arith.mulf %71, %56 : vector<16x1xf32>
    %cst_23 = arith.constant 1.000000e+00 : f32
    %73 = vector.broadcast %cst_23 : f32 to vector<16x1xf32>
    %74 = arith.addf %73, %72 : vector<16x1xf32>
    %75 = vector.broadcast %52 : vector<1x1xf32> to vector<16x1xf32>
    %76 = arith.mulf %49, %75 : vector<16x1xf32>
    %77 = arith.addf %74, %76 : vector<16x1xf32>
    %cst_24 = arith.constant 1.000000e-15 : f32
    %78 = vector.broadcast %cst_24 : f32 to vector<16x1xf32>
    %79 = arith.maximumf %77, %78 : vector<16x1xf32>
    %80 = vector.broadcast %79 : vector<16x1xf32> to vector<16x32xf32>
    %81 = arith.divf %70, %80 : vector<16x32xf32>
    %82 = arith.mulf %81, %81 : vector<16x32xf32>
    %cst_25 = arith.constant dense<0.000000e+00> : vector<16xf32>
    %83 = vector.multi_reduction <add>, %82, %cst_25 [1] : vector<16x32xf32> to vector<16xf32>
    %84 = vector.shape_cast %83 : vector<16xf32> to vector<16x1xf32>
    %85 = math.sqrt %84 : vector<16x1xf32>
    %cst_26 = arith.constant 1.000000e-15 : f32
    %86 = vector.broadcast %cst_26 : f32 to vector<16x1xf32>
    %87 = arith.maximumf %85, %86 : vector<16x1xf32>
    %cst_27 = arith.constant 0.999989986 : f32
    %88 = vector.broadcast %cst_27 : f32 to vector<16x1xf32>
    %89 = arith.cmpf ogt, %87, %88 : vector<16x1xf32>
    %cst_28 = arith.constant 0.999989986 : f32
    %90 = vector.broadcast %cst_28 : f32 to vector<16x1xf32>
    %91 = arith.divf %90, %87 : vector<16x1xf32>
    %92 = vector.broadcast %91 : vector<16x1xf32> to vector<16x32xf32>
    %93 = arith.mulf %81, %92 : vector<16x32xf32>
    %94 = vector.shape_cast %89 : vector<16x1xi1> to vector<16x1xi1>
    %95 = vector.broadcast %94 : vector<16x1xi1> to vector<16x32xi1>
    %96 = arith.select %95, %93, %81 : vector<16x32xi1>, vector<16x32xf32>
    %c0_29 = arith.constant 0 : index
    %c0_30 = arith.constant 0 : index
    %97 = vector.load %arg4[%c0_29, %c0_30] : memref<16x32xf32, #tpu.memory_space<vmem>>, vector<16x32xf32>
    tpu.vector_store %arg4[%c0_29, %c0_30], %96 {strides = array<i32>} : memref<16x32xf32, #tpu.memory_space<vmem>>, vector<16x32xf32>,
    %98 = vector.extract_strided_slice %23 {offsets = [0, 32], sizes = [16, 32], strides = [1, 1]} : vector<16x96xf32> to vector<16x32xf32>
    %99 = arith.mulf %98, %98 : vector<16x32xf32>
    %cst_31 = arith.constant dense<0.000000e+00> : vector<16xf32>
    %100 = vector.multi_reduction <add>, %99, %cst_31 [1] : vector<16x32xf32> to vector<16xf32>
    %101 = vector.shape_cast %100 : vector<16xf32> to vector<16x1xf32>
    %cst_32 = arith.constant 0.000000e+00 : f32
    %102 = vector.broadcast %cst_32 : f32 to vector<16x1xf32>
    %103 = arith.cmpf oeq, %101, %102 : vector<16x1xf32>
    %104 = math.sqrt %101 : vector<16x1xf32>
    %cst_33 = arith.constant 1.000000e-15 : f32
    %105 = vector.broadcast %cst_33 : f32 to vector<16x1xf32>
    %106 = arith.maximumf %104, %105 : vector<16x1xf32>
    %107 = arith.mulf %106, %7 : vector<16x1xf32>
    %108 = arith.mulf %107, %19 : vector<16x1xf32>
    %109 = math.tanh %108 : vector<16x1xf32>
    %110 = vector.broadcast %109 : vector<16x1xf32> to vector<16x32xf32>
    %111 = arith.mulf %110, %98 : vector<16x32xf32>
    %112 = tpu.reciprocal %106 {approx = true} : vector<16x1xf32> -> vector<16x1xf32>
    %113 = vector.broadcast %112 : vector<16x1xf32> to vector<16x32xf32>
    %114 = arith.mulf %111, %113 : vector<16x32xf32>
    %cst_34 = arith.constant 0.000000e+00 : f32
    %115 = vector.broadcast %cst_34 : f32 to vector<16x32xf32>
    %116 = vector.shape_cast %103 : vector<16x1xi1> to vector<16x1xi1>
    %117 = vector.broadcast %116 : vector<16x1xi1> to vector<16x32xi1>
    %118 = arith.select %117, %115, %114 : vector<16x32xi1>, vector<16x32xf32>
    %119 = vector.extract_strided_slice %24 {offsets = [1, 0], sizes = [1, 32], strides = [1, 1]} : vector<3x32xf32> to vector<1x32xf32>
    %120 = arith.mulf %118, %118 : vector<16x32xf32>
    %cst_35 = arith.constant dense<0.000000e+00> : vector<16xf32>
    %121 = vector.multi_reduction <add>, %120, %cst_35 [1] : vector<16x32xf32> to vector<16xf32>
    %122 = vector.shape_cast %121 : vector<16xf32> to vector<16x1xf32>
    %123 = arith.mulf %119, %119 : vector<1x32xf32>
    %cst_36 = arith.constant dense<0.000000e+00> : vector<1xf32>
    %124 = vector.multi_reduction <add>, %123, %cst_36 [1] : vector<1x32xf32> to vector<1xf32>
    %125 = vector.shape_cast %124 : vector<1xf32> to vector<1x1xf32>
    %126 = vector.broadcast %119 : vector<1x32xf32> to vector<16x32xf32>
    %127 = arith.mulf %118, %126 : vector<16x32xf32>
    %cst_37 = arith.constant dense<0.000000e+00> : vector<16xf32>
    %128 = vector.multi_reduction <add>, %127, %cst_37 [1] : vector<16x32xf32> to vector<16xf32>
    %129 = vector.shape_cast %128 : vector<16xf32> to vector<16x1xf32>
    %cst_38 = arith.constant 2.000000e+00 : f32
    %130 = vector.broadcast %cst_38 : f32 to vector<16x1xf32>
    %131 = arith.mulf %130, %129 : vector<16x1xf32>
    %cst_39 = arith.constant 1.000000e+00 : f32
    %132 = vector.broadcast %cst_39 : f32 to vector<16x1xf32>
    %133 = arith.addf %132, %131 : vector<16x1xf32>
    %134 = vector.broadcast %125 : vector<1x1xf32> to vector<16x1xf32>
    %135 = arith.addf %133, %134 : vector<16x1xf32>
    %136 = vector.broadcast %135 : vector<16x1xf32> to vector<16x32xf32>
    %137 = arith.mulf %136, %118 : vector<16x32xf32>
    %cst_40 = arith.constant 1.000000e+00 : f32
    %138 = vector.broadcast %cst_40 : f32 to vector<16x1xf32>
    %139 = arith.subf %138, %122 : vector<16x1xf32>
    %140 = vector.broadcast %139 : vector<16x1xf32> to vector<16x32xf32>
    %141 = vector.broadcast %119 : vector<1x32xf32> to vector<16x32xf32>
    %142 = arith.mulf %140, %141 : vector<16x32xf32>
    %143 = arith.addf %137, %142 : vector<16x32xf32>
    %cst_41 = arith.constant 2.000000e+00 : f32
    %144 = vector.broadcast %cst_41 : f32 to vector<16x1xf32>
    %145 = arith.mulf %144, %129 : vector<16x1xf32>
    %cst_42 = arith.constant 1.000000e+00 : f32
    %146 = vector.broadcast %cst_42 : f32 to vector<16x1xf32>
    %147 = arith.addf %146, %145 : vector<16x1xf32>
    %148 = vector.broadcast %125 : vector<1x1xf32> to vector<16x1xf32>
    %149 = arith.mulf %122, %148 : vector<16x1xf32>
    %150 = arith.addf %147, %149 : vector<16x1xf32>
    %cst_43 = arith.constant 1.000000e-15 : f32
    %151 = vector.broadcast %cst_43 : f32 to vector<16x1xf32>
    %152 = arith.maximumf %150, %151 : vector<16x1xf32>
    %153 = vector.broadcast %152 : vector<16x1xf32> to vector<16x32xf32>
    %154 = arith.divf %143, %153 : vector<16x32xf32>
    %155 = arith.mulf %154, %154 : vector<16x32xf32>
    %cst_44 = arith.constant dense<0.000000e+00> : vector<16xf32>
    %156 = vector.multi_reduction <add>, %155, %cst_44 [1] : vector<16x32xf32> to vector<16xf32>
    %157 = vector.shape_cast %156 : vector<16xf32> to vector<16x1xf32>
    %158 = math.sqrt %157 : vector<16x1xf32>
    %cst_45 = arith.constant 1.000000e-15 : f32
    %159 = vector.broadcast %cst_45 : f32 to vector<16x1xf32>
    %160 = arith.maximumf %158, %159 : vector<16x1xf32>
    %cst_46 = arith.constant 0.999989986 : f32
    %161 = vector.broadcast %cst_46 : f32 to vector<16x1xf32>
    %162 = arith.cmpf ogt, %160, %161 : vector<16x1xf32>
    %cst_47 = arith.constant 0.999989986 : f32
    %163 = vector.broadcast %cst_47 : f32 to vector<16x1xf32>
    %164 = arith.divf %163, %160 : vector<16x1xf32>
    %165 = vector.broadcast %164 : vector<16x1xf32> to vector<16x32xf32>
    %166 = arith.mulf %154, %165 : vector<16x32xf32>
    %167 = vector.shape_cast %162 : vector<16x1xi1> to vector<16x1xi1>
    %168 = vector.broadcast %167 : vector<16x1xi1> to vector<16x32xi1>
    %169 = arith.select %168, %166, %154 : vector<16x32xi1>, vector<16x32xf32>
    %c0_48 = arith.constant 0 : index
    %c0_49 = arith.constant 0 : index
    %170 = vector.load %arg5[%c0_48, %c0_49] : memref<16x32xf32, #tpu.memory_space<vmem>>, vector<16x32xf32>
    tpu.vector_store %arg5[%c0_48, %c0_49], %169 {strides = array<i32>} : memref<16x32xf32, #tpu.memory_space<vmem>>, vector<16x32xf32>,
    %171 = vector.extract_strided_slice %23 {offsets = [0, 64], sizes = [16, 32], strides = [1, 1]} : vector<16x96xf32> to vector<16x32xf32>
    %172 = arith.mulf %171, %171 : vector<16x32xf32>
    %cst_50 = arith.constant dense<0.000000e+00> : vector<16xf32>
    %173 = vector.multi_reduction <add>, %172, %cst_50 [1] : vector<16x32xf32> to vector<16xf32>
    %174 = vector.shape_cast %173 : vector<16xf32> to vector<16x1xf32>
    %cst_51 = arith.constant 0.000000e+00 : f32
    %175 = vector.broadcast %cst_51 : f32 to vector<16x1xf32>
    %176 = arith.cmpf oeq, %174, %175 : vector<16x1xf32>
    %177 = math.sqrt %174 : vector<16x1xf32>
    %cst_52 = arith.constant 1.000000e-15 : f32
    %178 = vector.broadcast %cst_52 : f32 to vector<16x1xf32>
    %179 = arith.maximumf %177, %178 : vector<16x1xf32>
    %180 = arith.mulf %179, %7 : vector<16x1xf32>
    %181 = arith.mulf %180, %19 : vector<16x1xf32>
    %182 = math.tanh %181 : vector<16x1xf32>
    %183 = vector.broadcast %182 : vector<16x1xf32> to vector<16x32xf32>
    %184 = arith.mulf %183, %171 : vector<16x32xf32>
    %185 = tpu.reciprocal %179 {approx = true} : vector<16x1xf32> -> vector<16x1xf32>
    %186 = vector.broadcast %185 : vector<16x1xf32> to vector<16x32xf32>
    %187 = arith.mulf %184, %186 : vector<16x32xf32>
    %cst_53 = arith.constant 0.000000e+00 : f32
    %188 = vector.broadcast %cst_53 : f32 to vector<16x32xf32>
    %189 = vector.shape_cast %176 : vector<16x1xi1> to vector<16x1xi1>
    %190 = vector.broadcast %189 : vector<16x1xi1> to vector<16x32xi1>
    %191 = arith.select %190, %188, %187 : vector<16x32xi1>, vector<16x32xf32>
    %192 = vector.extract_strided_slice %24 {offsets = [2, 0], sizes = [1, 32], strides = [1, 1]} : vector<3x32xf32> to vector<1x32xf32>
    %193 = arith.mulf %191, %191 : vector<16x32xf32>
    %cst_54 = arith.constant dense<0.000000e+00> : vector<16xf32>
    %194 = vector.multi_reduction <add>, %193, %cst_54 [1] : vector<16x32xf32> to vector<16xf32>
    %195 = vector.shape_cast %194 : vector<16xf32> to vector<16x1xf32>
    %196 = arith.mulf %192, %192 : vector<1x32xf32>
    %cst_55 = arith.constant dense<0.000000e+00> : vector<1xf32>
    %197 = vector.multi_reduction <add>, %196, %cst_55 [1] : vector<1x32xf32> to vector<1xf32>
    %198 = vector.shape_cast %197 : vector<1xf32> to vector<1x1xf32>
    %199 = vector.broadcast %192 : vector<1x32xf32> to vector<16x32xf32>
    %200 = arith.mulf %191, %199 : vector<16x32xf32>
    %cst_56 = arith.constant dense<0.000000e+00> : vector<16xf32>
    %201 = vector.multi_reduction <add>, %200, %cst_56 [1] : vector<16x32xf32> to vector<16xf32>
    %202 = vector.shape_cast %201 : vector<16xf32> to vector<16x1xf32>
    %cst_57 = arith.constant 2.000000e+00 : f32
    %203 = vector.broadcast %cst_57 : f32 to vector<16x1xf32>
    %204 = arith.mulf %203, %202 : vector<16x1xf32>
    %cst_58 = arith.constant 1.000000e+00 : f32
    %205 = vector.broadcast %cst_58 : f32 to vector<16x1xf32>
    %206 = arith.addf %205, %204 : vector<16x1xf32>
    %207 = vector.broadcast %198 : vector<1x1xf32> to vector<16x1xf32>
    %208 = arith.addf %206, %207 : vector<16x1xf32>
    %209 = vector.broadcast %208 : vector<16x1xf32> to vector<16x32xf32>
    %210 = arith.mulf %209, %191 : vector<16x32xf32>
    %cst_59 = arith.constant 1.000000e+00 : f32
    %211 = vector.broadcast %cst_59 : f32 to vector<16x1xf32>
    %212 = arith.subf %211, %195 : vector<16x1xf32>
    %213 = vector.broadcast %212 : vector<16x1xf32> to vector<16x32xf32>
    %214 = vector.broadcast %192 : vector<1x32xf32> to vector<16x32xf32>
    %215 = arith.mulf %213, %214 : vector<16x32xf32>
    %216 = arith.addf %210, %215 : vector<16x32xf32>
    %cst_60 = arith.constant 2.000000e+00 : f32
    %217 = vector.broadcast %cst_60 : f32 to vector<16x1xf32>
    %218 = arith.mulf %217, %202 : vector<16x1xf32>
    %cst_61 = arith.constant 1.000000e+00 : f32
    %219 = vector.broadcast %cst_61 : f32 to vector<16x1xf32>
    %220 = arith.addf %219, %218 : vector<16x1xf32>
    %221 = vector.broadcast %198 : vector<1x1xf32> to vector<16x1xf32>
    %222 = arith.mulf %195, %221 : vector<16x1xf32>
    %223 = arith.addf %220, %222 : vector<16x1xf32>
    %cst_62 = arith.constant 1.000000e-15 : f32
    %224 = vector.broadcast %cst_62 : f32 to vector<16x1xf32>
    %225 = arith.maximumf %223, %224 : vector<16x1xf32>
    %226 = vector.broadcast %225 : vector<16x1xf32> to vector<16x32xf32>
    %227 = arith.divf %216, %226 : vector<16x32xf32>
    %228 = arith.mulf %227, %227 : vector<16x32xf32>
    %cst_63 = arith.constant dense<0.000000e+00> : vector<16xf32>
    %229 = vector.multi_reduction <add>, %228, %cst_63 [1] : vector<16x32xf32> to vector<16xf32>
    %230 = vector.shape_cast %229 : vector<16xf32> to vector<16x1xf32>
    %231 = math.sqrt %230 : vector<16x1xf32>
    %cst_64 = arith.constant 1.000000e-15 : f32
    %232 = vector.broadcast %cst_64 : f32 to vector<16x1xf32>
    %233 = arith.maximumf %231, %232 : vector<16x1xf32>
    %cst_65 = arith.constant 0.999989986 : f32
    %234 = vector.broadcast %cst_65 : f32 to vector<16x1xf32>
    %235 = arith.cmpf ogt, %233, %234 : vector<16x1xf32>
    %cst_66 = arith.constant 0.999989986 : f32
    %236 = vector.broadcast %cst_66 : f32 to vector<16x1xf32>
    %237 = arith.divf %236, %233 : vector<16x1xf32>
    %238 = vector.broadcast %237 : vector<16x1xf32> to vector<16x32xf32>
    %239 = arith.mulf %227, %238 : vector<16x32xf32>
    %240 = vector.shape_cast %235 : vector<16x1xi1> to vector<16x1xi1>
    %241 = vector.broadcast %240 : vector<16x1xi1> to vector<16x32xi1>
    %242 = arith.select %241, %239, %227 : vector<16x32xi1>, vector<16x32xf32>
    %c0_67 = arith.constant 0 : index
    %c0_68 = arith.constant 0 : index
    %243 = vector.load %arg6[%c0_67, %c0_68] : memref<16x32xf32, #tpu.memory_space<vmem>>, vector<16x32xf32>
    tpu.vector_store %arg6[%c0_67, %c0_68], %242 {strides = array<i32>} : memref<16x32xf32, #tpu.memory_space<vmem>>, vector<16x32xf32>,
    return
  }
  func.func @transform_0(%arg0: i32) -> (i32, i32) {
    %c0_i32 = arith.constant 0 : i32
    %c0_i32_0 = arith.constant 0 : i32
    return %arg0, %c0_i32 : i32, i32
  }
  func.func @transform_1(%arg0: i32) -> (i32, i32) {
    %c0_i32 = arith.constant 0 : i32
    %c0_i32_0 = arith.constant 0 : i32
    %c0_i32_1 = arith.constant 0 : i32
    return %c0_i32, %c0_i32_0 : i32, i32
  }
  func.func @transform_2(%arg0: i32) -> (i32, i32) {
    %c0_i32 = arith.constant 0 : i32
    %c0_i32_0 = arith.constant 0 : i32
    %c0_i32_1 = arith.constant 0 : i32
    return %c0_i32, %c0_i32_0 : i32, i32
  }
  func.func @transform_3(%arg0: i32) -> (i32, i32) {
    %c0_i32 = arith.constant 0 : i32
    %c0_i32_0 = arith.constant 0 : i32
    return %arg0, %c0_i32 : i32, i32
  }
  func.func @transform_4(%arg0: i32) -> (i32, i32) {
    %c0_i32 = arith.constant 0 : i32
    %c0_i32_0 = arith.constant 0 : i32
    return %arg0, %c0_i32 : i32, i32
  }
  func.func @transform_5(%arg0: i32) -> (i32, i32) {
    %c0_i32 = arith.constant 0 : i32
    %c0_i32_0 = arith.constant 0 : i32
    return %arg0, %c0_i32 : i32, i32
  }
}

module attributes {stable_mosaic.version = 11 : i64} {
  func.func @_mobius_linear_kernel(%arg0: i32, %arg1: memref<16x32xf32, #tpu.memory_space<vmem>>, %arg2: memref<32x32xf32, #tpu.memory_space<vmem>>, %arg3: memref<1x32xf32, #tpu.memory_space<vmem>>, %arg4: memref<16x32xf32, #tpu.memory_space<vmem>>) attributes {dimension_semantics = [#tpu.dimension_semantics<parallel>], iteration_bounds = array<i64: 1>, scalar_prefetch = 0 : i64, scratch_operands = 0 : i64, tpu.core_type = #tpu.core_type<tc>, window_params = [{transform_indices = @transform_0, window_bounds = array<i64: 16, 32>}, {pipeline_mode = #tpu.pipeline_mode<synchronous>, transform_indices = @transform_1, window_bounds = array<i64: 32, 32>}, {pipeline_mode = #tpu.pipeline_mode<synchronous>, transform_indices = @transform_2, window_bounds = array<i64: 1, 32>}, {transform_indices = @transform_3, window_bounds = array<i64: 16, 32>}]} {
    %c0 = arith.constant 0 : index
    %c0_0 = arith.constant 0 : index
    %0 = vector.load %arg1[%c0, %c0_0] : memref<16x32xf32, #tpu.memory_space<vmem>>, vector<16x32xf32>
    %c0_1 = arith.constant 0 : index
    %c0_2 = arith.constant 0 : index
    %1 = vector.load %arg2[%c0_1, %c0_2] : memref<32x32xf32, #tpu.memory_space<vmem>>, vector<32x32xf32>
    %c0_3 = arith.constant 0 : index
    %c0_4 = arith.constant 0 : index
    %2 = vector.load %arg3[%c0_3, %c0_4] : memref<1x32xf32, #tpu.memory_space<vmem>>, vector<1x32xf32>
    %3 = arith.mulf %0, %0 : vector<16x32xf32>
    %cst = arith.constant dense<0.000000e+00> : vector<16xf32>
    %4 = vector.multi_reduction <add>, %3, %cst [1] : vector<16x32xf32> to vector<16xf32>
    %5 = vector.shape_cast %4 : vector<16xf32> to vector<16x1xf32>
    %6 = math.sqrt %5 : vector<16x1xf32>
    %cst_5 = arith.constant 1.000000e-15 : f32
    %7 = vector.broadcast %cst_5 : f32 to vector<16x1xf32>
    %8 = arith.maximumf %6, %7 : vector<16x1xf32>
    %9 = arith.truncf %0 : vector<16x32xf32> to vector<16x32xbf16>
    %10 = arith.truncf %1 : vector<32x32xf32> to vector<32x32xbf16>
    %cst_6 = arith.constant dense<0.000000e+00> : vector<16x32xf32>
    %11 = tpu.matmul %9, %10, %cst_6 {dimension_numbers = #tpu.dot_dimension_numbers<[1], [0], [0], [1], [0, 0, 1, 1], [], []>} : vector<16x32xbf16>, vector<32x32xbf16>, vector<16x32xf32> -> vector<16x32xf32>
    %12 = arith.mulf %11, %11 : vector<16x32xf32>
    %cst_7 = arith.constant dense<0.000000e+00> : vector<16xf32>
    %13 = vector.multi_reduction <add>, %12, %cst_7 [1] : vector<16x32xf32> to vector<16xf32>
    %14 = vector.shape_cast %13 : vector<16xf32> to vector<16x1xf32>
    %cst_8 = arith.constant 0.000000e+00 : f32
    %15 = vector.broadcast %cst_8 : f32 to vector<16x1xf32>
    %16 = arith.cmpf oeq, %14, %15 : vector<16x1xf32>
    %17 = math.sqrt %14 : vector<16x1xf32>
    %cst_9 = arith.constant 1.000000e-15 : f32
    %18 = vector.broadcast %cst_9 : f32 to vector<16x1xf32>
    %19 = arith.maximumf %17, %18 : vector<16x1xf32>
    %20 = tpu.reciprocal %8 {approx = true} : vector<16x1xf32> -> vector<16x1xf32>
    %21 = arith.mulf %19, %20 : vector<16x1xf32>
    %cst_10 = arith.constant -0.999998986 : f32
    %cst_11 = arith.constant 0.999998986 : f32
    %22 = vector.broadcast %cst_10 : f32 to vector<16x1xf32>
    %23 = arith.maximumf %22, %8 : vector<16x1xf32>
    %24 = vector.broadcast %cst_11 : f32 to vector<16x1xf32>
    %25 = arith.minimumf %24, %23 : vector<16x1xf32>
    %cst_12 = arith.constant 1.000000e+00 : f32
    %26 = vector.broadcast %cst_12 : f32 to vector<16x1xf32>
    %27 = arith.addf %26, %25 : vector<16x1xf32>
    %cst_13 = arith.constant 1.000000e+00 : f32
    %28 = vector.broadcast %cst_13 : f32 to vector<16x1xf32>
    %29 = arith.subf %28, %25 : vector<16x1xf32>
    %30 = arith.divf %27, %29 : vector<16x1xf32>
    %31 = math.log %30 : vector<16x1xf32>
    %cst_14 = arith.constant 5.000000e-01 : f32
    %32 = vector.broadcast %cst_14 : f32 to vector<16x1xf32>
    %33 = arith.mulf %32, %31 : vector<16x1xf32>
    %34 = arith.mulf %21, %33 : vector<16x1xf32>
    %35 = math.tanh %34 : vector<16x1xf32>
    %36 = vector.broadcast %35 : vector<16x1xf32> to vector<16x32xf32>
    %37 = arith.mulf %36, %11 : vector<16x32xf32>
    %38 = tpu.reciprocal %19 {approx = true} : vector<16x1xf32> -> vector<16x1xf32>
    %39 = vector.broadcast %38 : vector<16x1xf32> to vector<16x32xf32>
    %40 = arith.mulf %37, %39 : vector<16x32xf32>
    %cst_15 = arith.constant 0.000000e+00 : f32
    %41 = vector.broadcast %cst_15 : f32 to vector<16x32xf32>
    %42 = vector.shape_cast %16 : vector<16x1xi1> to vector<16x1xi1>
    %43 = vector.broadcast %42 : vector<16x1xi1> to vector<16x32xi1>
    %44 = arith.select %43, %41, %40 : vector<16x32xi1>, vector<16x32xf32>
    %45 = arith.mulf %44, %44 : vector<16x32xf32>
    %cst_16 = arith.constant dense<0.000000e+00> : vector<16xf32>
    %46 = vector.multi_reduction <add>, %45, %cst_16 [1] : vector<16x32xf32> to vector<16xf32>
    %47 = vector.shape_cast %46 : vector<16xf32> to vector<16x1xf32>
    %48 = arith.mulf %2, %2 : vector<1x32xf32>
    %cst_17 = arith.constant dense<0.000000e+00> : vector<1xf32>
    %49 = vector.multi_reduction <add>, %48, %cst_17 [1] : vector<1x32xf32> to vector<1xf32>
    %50 = vector.shape_cast %49 : vector<1xf32> to vector<1x1xf32>
    %51 = vector.broadcast %2 : vector<1x32xf32> to vector<16x32xf32>
    %52 = arith.mulf %44, %51 : vector<16x32xf32>
    %cst_18 = arith.constant dense<0.000000e+00> : vector<16xf32>
    %53 = vector.multi_reduction <add>, %52, %cst_18 [1] : vector<16x32xf32> to vector<16xf32>
    %54 = vector.shape_cast %53 : vector<16xf32> to vector<16x1xf32>
    %cst_19 = arith.constant 2.000000e+00 : f32
    %55 = vector.broadcast %cst_19 : f32 to vector<16x1xf32>
    %56 = arith.mulf %55, %54 : vector<16x1xf32>
    %cst_20 = arith.constant 1.000000e+00 : f32
    %57 = vector.broadcast %cst_20 : f32 to vector<16x1xf32>
    %58 = arith.addf %57, %56 : vector<16x1xf32>
    %59 = vector.broadcast %50 : vector<1x1xf32> to vector<16x1xf32>
    %60 = arith.addf %58, %59 : vector<16x1xf32>
    %61 = vector.broadcast %60 : vector<16x1xf32> to vector<16x32xf32>
    %62 = arith.mulf %61, %44 : vector<16x32xf32>
    %cst_21 = arith.constant 1.000000e+00 : f32
    %63 = vector.broadcast %cst_21 : f32 to vector<16x1xf32>
    %64 = arith.subf %63, %47 : vector<16x1xf32>
    %65 = vector.broadcast %64 : vector<16x1xf32> to vector<16x32xf32>
    %66 = vector.broadcast %2 : vector<1x32xf32> to vector<16x32xf32>
    %67 = arith.mulf %65, %66 : vector<16x32xf32>
    %68 = arith.addf %62, %67 : vector<16x32xf32>
    %cst_22 = arith.constant 2.000000e+00 : f32
    %69 = vector.broadcast %cst_22 : f32 to vector<16x1xf32>
    %70 = arith.mulf %69, %54 : vector<16x1xf32>
    %cst_23 = arith.constant 1.000000e+00 : f32
    %71 = vector.broadcast %cst_23 : f32 to vector<16x1xf32>
    %72 = arith.addf %71, %70 : vector<16x1xf32>
    %73 = vector.broadcast %50 : vector<1x1xf32> to vector<16x1xf32>
    %74 = arith.mulf %47, %73 : vector<16x1xf32>
    %75 = arith.addf %72, %74 : vector<16x1xf32>
    %cst_24 = arith.constant 1.000000e-15 : f32
    %76 = vector.broadcast %cst_24 : f32 to vector<16x1xf32>
    %77 = arith.maximumf %75, %76 : vector<16x1xf32>
    %78 = vector.broadcast %77 : vector<16x1xf32> to vector<16x32xf32>
    %79 = arith.divf %68, %78 : vector<16x32xf32>
    %80 = arith.mulf %79, %79 : vector<16x32xf32>
    %cst_25 = arith.constant dense<0.000000e+00> : vector<16xf32>
    %81 = vector.multi_reduction <add>, %80, %cst_25 [1] : vector<16x32xf32> to vector<16xf32>
    %82 = vector.shape_cast %81 : vector<16xf32> to vector<16x1xf32>
    %83 = math.sqrt %82 : vector<16x1xf32>
    %cst_26 = arith.constant 1.000000e-15 : f32
    %84 = vector.broadcast %cst_26 : f32 to vector<16x1xf32>
    %85 = arith.maximumf %83, %84 : vector<16x1xf32>
    %cst_27 = arith.constant 0.999989986 : f32
    %86 = vector.broadcast %cst_27 : f32 to vector<16x1xf32>
    %87 = arith.cmpf ogt, %85, %86 : vector<16x1xf32>
    %cst_28 = arith.constant 0.999989986 : f32
    %88 = vector.broadcast %cst_28 : f32 to vector<16x1xf32>
    %89 = arith.divf %88, %85 : vector<16x1xf32>
    %90 = vector.broadcast %89 : vector<16x1xf32> to vector<16x32xf32>
    %91 = arith.mulf %79, %90 : vector<16x32xf32>
    %92 = vector.shape_cast %87 : vector<16x1xi1> to vector<16x1xi1>
    %93 = vector.broadcast %92 : vector<16x1xi1> to vector<16x32xi1>
    %94 = arith.select %93, %91, %79 : vector<16x32xi1>, vector<16x32xf32>
    %c0_29 = arith.constant 0 : index
    %c0_30 = arith.constant 0 : index
    %95 = vector.load %arg4[%c0_29, %c0_30] : memref<16x32xf32, #tpu.memory_space<vmem>>, vector<16x32xf32>
    tpu.vector_store %arg4[%c0_29, %c0_30], %94 {strides = array<i32>} : memref<16x32xf32, #tpu.memory_space<vmem>>, vector<16x32xf32>,
    return
  }
  func.func @transform_0(%arg0: i32) -> (i32, i32) {
    %c0_i32 = arith.constant 0 : i32
    %c0_i32_0 = arith.constant 0 : i32
    return %arg0, %c0_i32 : i32, i32
  }
  func.func @transform_1(%arg0: i32) -> (i32, i32) {
    %c0_i32 = arith.constant 0 : i32
    %c0_i32_0 = arith.constant 0 : i32
    %c0_i32_1 = arith.constant 0 : i32
    return %c0_i32, %c0_i32_0 : i32, i32
  }
  func.func @transform_2(%arg0: i32) -> (i32, i32) {
    %c0_i32 = arith.constant 0 : i32
    %c0_i32_0 = arith.constant 0 : i32
    %c0_i32_1 = arith.constant 0 : i32
    return %c0_i32, %c0_i32_0 : i32, i32
  }
  func.func @transform_3(%arg0: i32) -> (i32, i32) {
    %c0_i32 = arith.constant 0 : i32
    %c0_i32_0 = arith.constant 0 : i32
    return %arg0, %c0_i32 : i32, i32
  }
}

module attributes {stable_mosaic.version = 11 : i64} {
  func.func @_residual_layernorm_kernel(%arg0: i32, %arg1: memref<16x32xf32, #tpu.memory_space<vmem>>, %arg2: memref<16x32xf32, #tpu.memory_space<vmem>>, %arg3: memref<1x32xf32, #tpu.memory_space<vmem>>, %arg4: memref<1x32xf32, #tpu.memory_space<vmem>>, %arg5: memref<1x32xf32, #tpu.memory_space<vmem>>, %arg6: memref<16x32xf32, #tpu.memory_space<vmem>>) attributes {dimension_semantics = [#tpu.dimension_semantics<parallel>], iteration_bounds = array<i64: 1>, scalar_prefetch = 0 : i64, scratch_operands = 0 : i64, tpu.core_type = #tpu.core_type<tc>, window_params = [{transform_indices = @transform_0, window_bounds = array<i64: 16, 32>}, {transform_indices = @transform_1, window_bounds = array<i64: 16, 32>}, {pipeline_mode = #tpu.pipeline_mode<synchronous>, transform_indices = @transform_2, window_bounds = array<i64: 1, 32>}, {pipeline_mode = #tpu.pipeline_mode<synchronous>, transform_indices = @transform_3, window_bounds = array<i64: 1, 32>}, {pipeline_mode = #tpu.pipeline_mode<synchronous>, transform_indices = @transform_4, window_bounds = array<i64: 1, 32>}, {transform_indices = @transform_5, window_bounds = array<i64: 16, 32>}]} {
    %c0 = arith.constant 0 : index
    %c0_0 = arith.constant 0 : index
    %0 = vector.load %arg1[%c0, %c0_0] : memref<16x32xf32, #tpu.memory_space<vmem>>, vector<16x32xf32>
    %c0_1 = arith.constant 0 : index
    %c0_2 = arith.constant 0 : index
    %1 = vector.load %arg2[%c0_1, %c0_2] : memref<16x32xf32, #tpu.memory_space<vmem>>, vector<16x32xf32>
    %2 = arith.mulf %0, %0 : vector<16x32xf32>
    %cst = arith.constant dense<0.000000e+00> : vector<16xf32>
    %3 = vector.multi_reduction <add>, %2, %cst [1] : vector<16x32xf32> to vector<16xf32>
    %4 = vector.shape_cast %3 : vector<16xf32> to vector<16x1xf32>
    %5 = arith.mulf %1, %1 : vector<16x32xf32>
    %cst_3 = arith.constant dense<0.000000e+00> : vector<16xf32>
    %6 = vector.multi_reduction <add>, %5, %cst_3 [1] : vector<16x32xf32> to vector<16xf32>
    %7 = vector.shape_cast %6 : vector<16xf32> to vector<16x1xf32>
    %8 = arith.mulf %0, %1 : vector<16x32xf32>
    %cst_4 = arith.constant dense<0.000000e+00> : vector<16xf32>
    %9 = vector.multi_reduction <add>, %8, %cst_4 [1] : vector<16x32xf32> to vector<16xf32>
    %10 = vector.shape_cast %9 : vector<16xf32> to vector<16x1xf32>
    %cst_5 = arith.constant 2.000000e+00 : f32
    %11 = vector.broadcast %cst_5 : f32 to vector<16x1xf32>
    %12 = arith.mulf %11, %10 : vector<16x1xf32>
    %cst_6 = arith.constant 1.000000e+00 : f32
    %13 = vector.broadcast %cst_6 : f32 to vector<16x1xf32>
    %14 = arith.addf %13, %12 : vector<16x1xf32>
    %15 = arith.addf %14, %7 : vector<16x1xf32>
    %16 = vector.broadcast %15 : vector<16x1xf32> to vector<16x32xf32>
    %17 = arith.mulf %16, %0 : vector<16x32xf32>
    %cst_7 = arith.constant 1.000000e+00 : f32
    %18 = vector.broadcast %cst_7 : f32 to vector<16x1xf32>
    %19 = arith.subf %18, %4 : vector<16x1xf32>
    %20 = vector.broadcast %19 : vector<16x1xf32> to vector<16x32xf32>
    %21 = arith.mulf %20, %1 : vector<16x32xf32>
    %22 = arith.addf %17, %21 : vector<16x32xf32>
    %cst_8 = arith.constant 2.000000e+00 : f32
    %23 = vector.broadcast %cst_8 : f32 to vector<16x1xf32>
    %24 = arith.mulf %23, %10 : vector<16x1xf32>
    %cst_9 = arith.constant 1.000000e+00 : f32
    %25 = vector.broadcast %cst_9 : f32 to vector<16x1xf32>
    %26 = arith.addf %25, %24 : vector<16x1xf32>
    %27 = arith.mulf %4, %7 : vector<16x1xf32>
    %28 = arith.addf %26, %27 : vector<16x1xf32>
    %cst_10 = arith.constant 1.000000e-15 : f32
    %29 = vector.broadcast %cst_10 : f32 to vector<16x1xf32>
    %30 = arith.maximumf %28, %29 : vector<16x1xf32>
    %31 = vector.broadcast %30 : vector<16x1xf32> to vector<16x32xf32>
    %32 = arith.divf %22, %31 : vector<16x32xf32>
    %33 = arith.mulf %32, %32 : vector<16x32xf32>
    %cst_11 = arith.constant dense<0.000000e+00> : vector<16xf32>
    %34 = vector.multi_reduction <add>, %33, %cst_11 [1] : vector<16x32xf32> to vector<16xf32>
    %35 = vector.shape_cast %34 : vector<16xf32> to vector<16x1xf32>
    %36 = math.sqrt %35 : vector<16x1xf32>
    %cst_12 = arith.constant 1.000000e-15 : f32
    %37 = vector.broadcast %cst_12 : f32 to vector<16x1xf32>
    %38 = arith.maximumf %36, %37 : vector<16x1xf32>
    %cst_13 = arith.constant -0.999998986 : f32
    %cst_14 = arith.constant 0.999998986 : f32
    %39 = vector.broadcast %cst_13 : f32 to vector<16x1xf32>
    %40 = arith.maximumf %39, %38 : vector<16x1xf32>
    %41 = vector.broadcast %cst_14 : f32 to vector<16x1xf32>
    %42 = arith.minimumf %41, %40 : vector<16x1xf32>
    %cst_15 = arith.constant 1.000000e+00 : f32
    %43 = vector.broadcast %cst_15 : f32 to vector<16x1xf32>
    %44 = arith.addf %43, %42 : vector<16x1xf32>
    %cst_16 = arith.constant 1.000000e+00 : f32
    %45 = vector.broadcast %cst_16 : f32 to vector<16x1xf32>
    %46 = arith.subf %45, %42 : vector<16x1xf32>
    %47 = arith.divf %44, %46 : vector<16x1xf32>
    %48 = math.log %47 : vector<16x1xf32>
    %cst_17 = arith.constant 5.000000e-01 : f32
    %49 = vector.broadcast %cst_17 : f32 to vector<16x1xf32>
    %50 = arith.mulf %49, %48 : vector<16x1xf32>
    %51 = vector.broadcast %50 : vector<16x1xf32> to vector<16x32xf32>
    %52 = arith.mulf %51, %32 : vector<16x32xf32>
    %53 = tpu.reciprocal %38 {approx = true} : vector<16x1xf32> -> vector<16x1xf32>
    %54 = vector.broadcast %53 : vector<16x1xf32> to vector<16x32xf32>
    %55 = arith.mulf %52, %54 : vector<16x32xf32>
    %cst_18 = arith.constant dense<0.000000e+00> : vector<16xf32>
    %56 = vector.multi_reduction <add>, %55, %cst_18 [1] : vector<16x32xf32> to vector<16xf32>
    %57 = vector.shape_cast %56 : vector<16xf32> to vector<16x1xf32>
    %cst_19 = arith.constant 3.200000e+01 : f32
    %58 = vector.broadcast %cst_19 : f32 to vector<16x1xf32>
    %59 = arith.divf %57, %58 : vector<16x1xf32>
    %60 = vector.broadcast %59 : vector<16x1xf32> to vector<16x32xf32>
    %61 = arith.subf %55, %60 : vector<16x32xf32>
    %62 = arith.mulf %61, %61 : vector<16x32xf32>
    %cst_20 = arith.constant dense<0.000000e+00> : vector<16xf32>
    %63 = vector.multi_reduction <add>, %62, %cst_20 [1] : vector<16x32xf32> to vector<16xf32>
    %64 = vector.shape_cast %63 : vector<16xf32> to vector<16x1xf32>
    %cst_21 = arith.constant 3.100000e+01 : f32
    %65 = vector.broadcast %cst_21 : f32 to vector<16x1xf32>
    %66 = arith.divf %64, %65 : vector<16x1xf32>
    %67 = math.sqrt %66 : vector<16x1xf32>
    %cst_22 = arith.constant 9.99999997E-7 : f32
    %68 = vector.broadcast %cst_22 : f32 to vector<16x1xf32>
    %69 = arith.addf %67, %68 : vector<16x1xf32>
    %70 = tpu.reciprocal %69 {approx = true} : vector<16x1xf32> -> vector<16x1xf32>
    %71 = vector.broadcast %70 : vector<16x1xf32> to vector<16x32xf32>
    %72 = arith.mulf %61, %71 : vector<16x32xf32>
    %c0_23 = arith.constant 0 : index
    %c0_24 = arith.constant 0 : index
    %73 = vector.load %arg3[%c0_23, %c0_24] : memref<1x32xf32, #tpu.memory_space<vmem>>, vector<1x32xf32>
    %74 = vector.broadcast %73 : vector<1x32xf32> to vector<16x32xf32>
    %75 = arith.mulf %74, %72 : vector<16x32xf32>
    %c0_25 = arith.constant 0 : index
    %c0_26 = arith.constant 0 : index
    %76 = vector.load %arg4[%c0_25, %c0_26] : memref<1x32xf32, #tpu.memory_space<vmem>>, vector<1x32xf32>
    %77 = vector.broadcast %76 : vector<1x32xf32> to vector<16x32xf32>
    %78 = arith.addf %75, %77 : vector<16x32xf32>
    %79 = arith.mulf %78, %78 : vector<16x32xf32>
    %cst_27 = arith.constant dense<0.000000e+00> : vector<16xf32>
    %80 = vector.multi_reduction <add>, %79, %cst_27 [1] : vector<16x32xf32> to vector<16xf32>
    %81 = vector.shape_cast %80 : vector<16xf32> to vector<16x1xf32>
    %82 = math.sqrt %81 : vector<16x1xf32>
    %cst_28 = arith.constant 1.000000e-15 : f32
    %83 = vector.broadcast %cst_28 : f32 to vector<16x1xf32>
    %84 = arith.maximumf %82, %83 : vector<16x1xf32>
    %85 = math.tanh %84 : vector<16x1xf32>
    %86 = vector.broadcast %85 : vector<16x1xf32> to vector<16x32xf32>
    %87 = arith.mulf %86, %78 : vector<16x32xf32>
    %88 = tpu.reciprocal %84 {approx = true} : vector<16x1xf32> -> vector<16x1xf32>
    %89 = vector.broadcast %88 : vector<16x1xf32> to vector<16x32xf32>
    %90 = arith.mulf %87, %89 : vector<16x32xf32>
    %c0_29 = arith.constant 0 : index
    %c0_30 = arith.constant 0 : index
    %91 = vector.load %arg5[%c0_29, %c0_30] : memref<1x32xf32, #tpu.memory_space<vmem>>, vector<1x32xf32>
    %92 = arith.mulf %90, %90 : vector<16x32xf32>
    %cst_31 = arith.constant dense<0.000000e+00> : vector<16xf32>
    %93 = vector.multi_reduction <add>, %92, %cst_31 [1] : vector<16x32xf32> to vector<16xf32>
    %94 = vector.shape_cast %93 : vector<16xf32> to vector<16x1xf32>
    %95 = arith.mulf %91, %91 : vector<1x32xf32>
    %cst_32 = arith.constant dense<0.000000e+00> : vector<1xf32>
    %96 = vector.multi_reduction <add>, %95, %cst_32 [1] : vector<1x32xf32> to vector<1xf32>
    %97 = vector.shape_cast %96 : vector<1xf32> to vector<1x1xf32>
    %98 = vector.broadcast %91 : vector<1x32xf32> to vector<16x32xf32>
    %99 = arith.mulf %90, %98 : vector<16x32xf32>
    %cst_33 = arith.constant dense<0.000000e+00> : vector<16xf32>
    %100 = vector.multi_reduction <add>, %99, %cst_33 [1] : vector<16x32xf32> to vector<16xf32>
    %101 = vector.shape_cast %100 : vector<16xf32> to vector<16x1xf32>
    %cst_34 = arith.constant 2.000000e+00 : f32
    %102 = vector.broadcast %cst_34 : f32 to vector<16x1xf32>
    %103 = arith.mulf %102, %101 : vector<16x1xf32>
    %cst_35 = arith.constant 1.000000e+00 : f32
    %104 = vector.broadcast %cst_35 : f32 to vector<16x1xf32>
    %105 = arith.addf %104, %103 : vector<16x1xf32>
    %106 = vector.broadcast %97 : vector<1x1xf32> to vector<16x1xf32>
    %107 = arith.addf %105, %106 : vector<16x1xf32>
    %108 = vector.broadcast %107 : vector<16x1xf32> to vector<16x32xf32>
    %109 = arith.mulf %108, %90 : vector<16x32xf32>
    %cst_36 = arith.constant 1.000000e+00 : f32
    %110 = vector.broadcast %cst_36 : f32 to vector<16x1xf32>
    %111 = arith.subf %110, %94 : vector<16x1xf32>
    %112 = vector.broadcast %111 : vector<16x1xf32> to vector<16x32xf32>
    %113 = vector.broadcast %91 : vector<1x32xf32> to vector<16x32xf32>
    %114 = arith.mulf %112, %113 : vector<16x32xf32>
    %115 = arith.addf %109, %114 : vector<16x32xf32>
    %cst_37 = arith.constant 2.000000e+00 : f32
    %116 = vector.broadcast %cst_37 : f32 to vector<16x1xf32>
    %117 = arith.mulf %116, %101 : vector<16x1xf32>
    %cst_38 = arith.constant 1.000000e+00 : f32
    %118 = vector.broadcast %cst_38 : f32 to vector<16x1xf32>
    %119 = arith.addf %118, %117 : vector<16x1xf32>
    %120 = vector.broadcast %97 : vector<1x1xf32> to vector<16x1xf32>
    %121 = arith.mulf %94, %120 : vector<16x1xf32>
    %122 = arith.addf %119, %121 : vector<16x1xf32>
    %cst_39 = arith.constant 1.000000e-15 : f32
    %123 = vector.broadcast %cst_39 : f32 to vector<16x1xf32>
    %124 = arith.maximumf %122, %123 : vector<16x1xf32>
    %125 = vector.broadcast %124 : vector<16x1xf32> to vector<16x32xf32>
    %126 = arith.divf %115, %125 : vector<16x32xf32>
    %c0_40 = arith.constant 0 : index
    %c0_41 = arith.constant 0 : index
    %127 = vector.load %arg6[%c0_40, %c0_41] : memref<16x32xf32, #tpu.memory_space<vmem>>, vector<16x32xf32>
    tpu.vector_store %arg6[%c0_40, %c0_41], %126 {strides = array<i32>} : memref<16x32xf32, #tpu.memory_space<vmem>>, vector<16x32xf32>,
    return
  }
  func.func @transform_0(%arg0: i32) -> (i32, i32) {
    %c0_i32 = arith.constant 0 : i32
    %c0_i32_0 = arith.constant 0 : i32
    return %arg0, %c0_i32 : i32, i32
  }
  func.func @transform_1(%arg0: i32) -> (i32, i32) {
    %c0_i32 = arith.constant 0 : i32
    %c0_i32_0 = arith.constant 0 : i32
    return %arg0, %c0_i32 : i32, i32
  }
  func.func @transform_2(%arg0: i32) -> (i32, i32) {
    %c0_i32 = arith.constant 0 : i32
    %c0_i32_0 = arith.constant 0 : i32
    %c0_i32_1 = arith.constant 0 : i32
    return %c0_i32, %c0_i32_0 : i32, i32
  }
  func.func @transform_3(%arg0: i32) -> (i32, i32) {
    %c0_i32 = arith.constant 0 : i32
    %c0_i32_0 = arith.constant 0 : i32
    %c0_i32_1 = arith.constant 0 : i32
    return %c0_i32, %c0_i32_0 : i32, i32
  }
  func.func @transform_4(%arg0: i32) -> (i32, i32) {
    %c0_i32 = arith.constant 0 : i32
    %c0_i32_0 = arith.constant 0 : i32
    %c0_i32_1 = arith.constant 0 : i32
    return %c0_i32, %c0_i32_0 : i32, i32
  }
  func.func @transform_5(%arg0: i32) -> (i32, i32) {
    %c0_i32 = arith.constant 0 : i32
    %c0_i32_0 = arith.constant 0 : i32
    return %arg0, %c0_i32 : i32, i32
  }
}

module attributes {stable_mosaic.version = 11 : i64} {
  func.func @_ffn_kernel(%arg0: i32, %arg1: memref<16x32xf32, #tpu.memory_space<vmem>>, %arg2: memref<32x64xf32, #tpu.memory_space<vmem>>, %arg3: memref<1x64xf32, #tpu.memory_space<vmem>>, %arg4: memref<64x32xf32, #tpu.memory_space<vmem>>, %arg5: memref<1x32xf32, #tpu.memory_space<vmem>>, %arg6: memref<16x32xf32, #tpu.memory_space<vmem>>) attributes {dimension_semantics = [#tpu.dimension_semantics<parallel>], iteration_bounds = array<i64: 1>, scalar_prefetch = 0 : i64, scratch_operands = 0 : i64, tpu.core_type = #tpu.core_type<tc>, window_params = [{transform_indices = @transform_0, window_bounds = array<i64: 16, 32>}, {pipeline_mode = #tpu.pipeline_mode<synchronous>, transform_indices = @transform_1, window_bounds = array<i64: 32, 64>}, {pipeline_mode = #tpu.pipeline_mode<synchronous>, transform_indices = @transform_2, window_bounds = array<i64: 1, 64>}, {pipeline_mode = #tpu.pipeline_mode<synchronous>, transform_indices = @transform_3, window_bounds = array<i64: 64, 32>}, {pipeline_mode = #tpu.pipeline_mode<synchronous>, transform_indices = @transform_4, window_bounds = array<i64: 1, 32>}, {transform_indices = @transform_5, window_bounds = array<i64: 16, 32>}]} {
    %c0 = arith.constant 0 : index
    %c0_0 = arith.constant 0 : index
    %0 = vector.load %arg1[%c0, %c0_0] : memref<16x32xf32, #tpu.memory_space<vmem>>, vector<16x32xf32>
    %c0_1 = arith.constant 0 : index
    %c0_2 = arith.constant 0 : index
    %1 = vector.load %arg2[%c0_1, %c0_2] : memref<32x64xf32, #tpu.memory_space<vmem>>, vector<32x64xf32>
    %c0_3 = arith.constant 0 : index
    %c0_4 = arith.constant 0 : index
    %2 = vector.load %arg3[%c0_3, %c0_4] : memref<1x64xf32, #tpu.memory_space<vmem>>, vector<1x64xf32>
    %3 = arith.mulf %0, %0 : vector<16x32xf32>
    %cst = arith.constant dense<0.000000e+00> : vector<16xf32>
    %4 = vector.multi_reduction <add>, %3, %cst [1] : vector<16x32xf32> to vector<16xf32>
    %5 = vector.shape_cast %4 : vector<16xf32> to vector<16x1xf32>
    %6 = math.sqrt %5 : vector<16x1xf32>
    %cst_5 = arith.constant 1.000000e-15 : f32
    %7 = vector.broadcast %cst_5 : f32 to vector<16x1xf32>
    %8 = arith.maximumf %6, %7 : vector<16x1xf32>
    %9 = arith.truncf %0 : vector<16x32xf32> to vector<16x32xbf16>
    %10 = arith.truncf %1 : vector<32x64xf32> to vector<32x64xbf16>
    %cst_6 = arith.constant dense<0.000000e+00> : vector<16x64xf32>
    %11 = tpu.matmul %9, %10, %cst_6 {dimension_numbers = #tpu.dot_dimension_numbers<[1], [0], [0], [1], [0, 0, 1, 1], [], []>} : vector<16x32xbf16>, vector<32x64xbf16>, vector<16x64xf32> -> vector<16x64xf32>
    %12 = arith.mulf %11, %11 : vector<16x64xf32>
    %cst_7 = arith.constant dense<0.000000e+00> : vector<16xf32>
    %13 = vector.multi_reduction <add>, %12, %cst_7 [1] : vector<16x64xf32> to vector<16xf32>
    %14 = vector.shape_cast %13 : vector<16xf32> to vector<16x1xf32>
    %cst_8 = arith.constant 0.000000e+00 : f32
    %15 = vector.broadcast %cst_8 : f32 to vector<16x1xf32>
    %16 = arith.cmpf oeq, %14, %15 : vector<16x1xf32>
    %17 = math.sqrt %14 : vector<16x1xf32>
    %cst_9 = arith.constant 1.000000e-15 : f32
    %18 = vector.broadcast %cst_9 : f32 to vector<16x1xf32>
    %19 = arith.maximumf %17, %18 : vector<16x1xf32>
    %20 = tpu.reciprocal %8 {approx = true} : vector<16x1xf32> -> vector<16x1xf32>
    %21 = arith.mulf %19, %20 : vector<16x1xf32>
    %cst_10 = arith.constant -0.999998986 : f32
    %cst_11 = arith.constant 0.999998986 : f32
    %22 = vector.broadcast %cst_10 : f32 to vector<16x1xf32>
    %23 = arith.maximumf %22, %8 : vector<16x1xf32>
    %24 = vector.broadcast %cst_11 : f32 to vector<16x1xf32>
    %25 = arith.minimumf %24, %23 : vector<16x1xf32>
    %cst_12 = arith.constant 1.000000e+00 : f32
    %26 = vector.broadcast %cst_12 : f32 to vector<16x1xf32>
    %27 = arith.addf %26, %25 : vector<16x1xf32>
    %cst_13 = arith.constant 1.000000e+00 : f32
    %28 = vector.broadcast %cst_13 : f32 to vector<16x1xf32>
    %29 = arith.subf %28, %25 : vector<16x1xf32>
    %30 = arith.divf %27, %29 : vector<16x1xf32>
    %31 = math.log %30 : vector<16x1xf32>
    %cst_14 = arith.constant 5.000000e-01 : f32
    %32 = vector.broadcast %cst_14 : f32 to vector<16x1xf32>
    %33 = arith.mulf %32, %31 : vector<16x1xf32>
    %34 = arith.mulf %21, %33 : vector<16x1xf32>
    %35 = math.tanh %34 : vector<16x1xf32>
    %36 = vector.broadcast %35 : vector<16x1xf32> to vector<16x64xf32>
    %37 = arith.mulf %36, %11 : vector<16x64xf32>
    %38 = tpu.reciprocal %19 {approx = true} : vector<16x1xf32> -> vector<16x1xf32>
    %39 = vector.broadcast %38 : vector<16x1xf32> to vector<16x64xf32>
    %40 = arith.mulf %37, %39 : vector<16x64xf32>
    %cst_15 = arith.constant 0.000000e+00 : f32
    %41 = vector.broadcast %cst_15 : f32 to vector<16x64xf32>
    %42 = vector.shape_cast %16 : vector<16x1xi1> to vector<16x1xi1>
    %43 = vector.broadcast %42 : vector<16x1xi1> to vector<16x64xi1>
    %44 = arith.select %43, %41, %40 : vector<16x64xi1>, vector<16x64xf32>
    %45 = arith.mulf %44, %44 : vector<16x64xf32>
    %cst_16 = arith.constant dense<0.000000e+00> : vector<16xf32>
    %46 = vector.multi_reduction <add>, %45, %cst_16 [1] : vector<16x64xf32> to vector<16xf32>
    %47 = vector.shape_cast %46 : vector<16xf32> to vector<16x1xf32>
    %48 = arith.mulf %2, %2 : vector<1x64xf32>
    %cst_17 = arith.constant dense<0.000000e+00> : vector<1xf32>
    %49 = vector.multi_reduction <add>, %48, %cst_17 [1] : vector<1x64xf32> to vector<1xf32>
    %50 = vector.shape_cast %49 : vector<1xf32> to vector<1x1xf32>
    %51 = vector.broadcast %2 : vector<1x64xf32> to vector<16x64xf32>
    %52 = arith.mulf %44, %51 : vector<16x64xf32>
    %cst_18 = arith.constant dense<0.000000e+00> : vector<16xf32>
    %53 = vector.multi_reduction <add>, %52, %cst_18 [1] : vector<16x64xf32> to vector<16xf32>
    %54 = vector.shape_cast %53 : vector<16xf32> to vector<16x1xf32>
    %cst_19 = arith.constant 2.000000e+00 : f32
    %55 = vector.broadcast %cst_19 : f32 to vector<16x1xf32>
    %56 = arith.mulf %55, %54 : vector<16x1xf32>
    %cst_20 = arith.constant 1.000000e+00 : f32
    %57 = vector.broadcast %cst_20 : f32 to vector<16x1xf32>
    %58 = arith.addf %57, %56 : vector<16x1xf32>
    %59 = vector.broadcast %50 : vector<1x1xf32> to vector<16x1xf32>
    %60 = arith.addf %58, %59 : vector<16x1xf32>
    %61 = vector.broadcast %60 : vector<16x1xf32> to vector<16x64xf32>
    %62 = arith.mulf %61, %44 : vector<16x64xf32>
    %cst_21 = arith.constant 1.000000e+00 : f32
    %63 = vector.broadcast %cst_21 : f32 to vector<16x1xf32>
    %64 = arith.subf %63, %47 : vector<16x1xf32>
    %65 = vector.broadcast %64 : vector<16x1xf32> to vector<16x64xf32>
    %66 = vector.broadcast %2 : vector<1x64xf32> to vector<16x64xf32>
    %67 = arith.mulf %65, %66 : vector<16x64xf32>
    %68 = arith.addf %62, %67 : vector<16x64xf32>
    %cst_22 = arith.constant 2.000000e+00 : f32
    %69 = vector.broadcast %cst_22 : f32 to vector<16x1xf32>
    %70 = arith.mulf %69, %54 : vector<16x1xf32>
    %cst_23 = arith.constant 1.000000e+00 : f32
    %71 = vector.broadcast %cst_23 : f32 to vector<16x1xf32>
    %72 = arith.addf %71, %70 : vector<16x1xf32>
    %73 = vector.broadcast %50 : vector<1x1xf32> to vector<16x1xf32>
    %74 = arith.mulf %47, %73 : vector<16x1xf32>
    %75 = arith.addf %72, %74 : vector<16x1xf32>
    %cst_24 = arith.constant 1.000000e-15 : f32
    %76 = vector.broadcast %cst_24 : f32 to vector<16x1xf32>
    %77 = arith.maximumf %75, %76 : vector<16x1xf32>
    %78 = vector.broadcast %77 : vector<16x1xf32> to vector<16x64xf32>
    %79 = arith.divf %68, %78 : vector<16x64xf32>
    %80 = arith.mulf %79, %79 : vector<16x64xf32>
    %cst_25 = arith.constant dense<0.000000e+00> : vector<16xf32>
    %81 = vector.multi_reduction <add>, %80, %cst_25 [1] : vector<16x64xf32> to vector<16xf32>
    %82 = vector.shape_cast %81 : vector<16xf32> to vector<16x1xf32>
    %83 = math.sqrt %82 : vector<16x1xf32>
    %cst_26 = arith.constant 1.000000e-15 : f32
    %84 = vector.broadcast %cst_26 : f32 to vector<16x1xf32>
    %85 = arith.maximumf %83, %84 : vector<16x1xf32>
    %cst_27 = arith.constant 0.999989986 : f32
    %86 = vector.broadcast %cst_27 : f32 to vector<16x1xf32>
    %87 = arith.cmpf ogt, %85, %86 : vector<16x1xf32>
    %cst_28 = arith.constant 0.999989986 : f32
    %88 = vector.broadcast %cst_28 : f32 to vector<16x1xf32>
    %89 = arith.divf %88, %85 : vector<16x1xf32>
    %90 = vector.broadcast %89 : vector<16x1xf32> to vector<16x64xf32>
    %91 = arith.mulf %79, %90 : vector<16x64xf32>
    %92 = vector.shape_cast %87 : vector<16x1xi1> to vector<16x1xi1>
    %93 = vector.broadcast %92 : vector<16x1xi1> to vector<16x64xi1>
    %94 = arith.select %93, %91, %79 : vector<16x64xi1>, vector<16x64xf32>
    %95 = arith.mulf %94, %94 : vector<16x64xf32>
    %cst_29 = arith.constant dense<0.000000e+00> : vector<16xf32>
    %96 = vector.multi_reduction <add>, %95, %cst_29 [1] : vector<16x64xf32> to vector<16xf32>
    %97 = vector.shape_cast %96 : vector<16xf32> to vector<16x1xf32>
    %98 = math.sqrt %97 : vector<16x1xf32>
    %cst_30 = arith.constant 1.000000e-15 : f32
    %99 = vector.broadcast %cst_30 : f32 to vector<16x1xf32>
    %100 = arith.maximumf %98, %99 : vector<16x1xf32>
    %cst_31 = arith.constant -0.999998986 : f32
    %cst_32 = arith.constant 0.999998986 : f32
    %101 = vector.broadcast %cst_31 : f32 to vector<16x1xf32>
    %102 = arith.maximumf %101, %100 : vector<16x1xf32>
    %103 = vector.broadcast %cst_32 : f32 to vector<16x1xf32>
    %104 = arith.minimumf %103, %102 : vector<16x1xf32>
    %cst_33 = arith.constant 1.000000e+00 : f32
    %105 = vector.broadcast %cst_33 : f32 to vector<16x1xf32>
    %106 = arith.addf %105, %104 : vector<16x1xf32>
    %cst_34 = arith.constant 1.000000e+00 : f32
    %107 = vector.broadcast %cst_34 : f32 to vector<16x1xf32>
    %108 = arith.subf %107, %104 : vector<16x1xf32>
    %109 = arith.divf %106, %108 : vector<16x1xf32>
    %110 = math.log %109 : vector<16x1xf32>
    %cst_35 = arith.constant 5.000000e-01 : f32
    %111 = vector.broadcast %cst_35 : f32 to vector<16x1xf32>
    %112 = arith.mulf %111, %110 : vector<16x1xf32>
    %113 = vector.broadcast %112 : vector<16x1xf32> to vector<16x64xf32>
    %114 = arith.mulf %113, %94 : vector<16x64xf32>
    %115 = tpu.reciprocal %100 {approx = true} : vector<16x1xf32> -> vector<16x1xf32>
    %116 = vector.broadcast %115 : vector<16x1xf32> to vector<16x64xf32>
    %117 = arith.mulf %114, %116 : vector<16x64xf32>
    %cst_36 = arith.constant 0.000000e+00 : f32
    %118 = vector.broadcast %cst_36 : f32 to vector<16x64xf32>
    %119 = arith.maximumf %117, %118 : vector<16x64xf32>
    %120 = arith.mulf %119, %119 : vector<16x64xf32>
    %cst_37 = arith.constant dense<0.000000e+00> : vector<16xf32>
    %121 = vector.multi_reduction <add>, %120, %cst_37 [1] : vector<16x64xf32> to vector<16xf32>
    %122 = vector.shape_cast %121 : vector<16xf32> to vector<16x1xf32>
    %123 = math.sqrt %122 : vector<16x1xf32>
    %cst_38 = arith.constant 1.000000e-15 : f32
    %124 = vector.broadcast %cst_38 : f32 to vector<16x1xf32>
    %125 = arith.maximumf %123, %124 : vector<16x1xf32>
    %126 = math.tanh %125 : vector<16x1xf32>
    %127 = vector.broadcast %126 : vector<16x1xf32> to vector<16x64xf32>
    %128 = arith.mulf %127, %119 : vector<16x64xf32>
    %129 = tpu.reciprocal %125 {approx = true} : vector<16x1xf32> -> vector<16x1xf32>
    %130 = vector.broadcast %129 : vector<16x1xf32> to vector<16x64xf32>
    %131 = arith.mulf %128, %130 : vector<16x64xf32>
    %c0_39 = arith.constant 0 : index
    %c0_40 = arith.constant 0 : index
    %132 = vector.load %arg4[%c0_39, %c0_40] : memref<64x32xf32, #tpu.memory_space<vmem>>, vector<64x32xf32>
    %c0_41 = arith.constant 0 : index
    %c0_42 = arith.constant 0 : index
    %133 = vector.load %arg5[%c0_41, %c0_42] : memref<1x32xf32, #tpu.memory_space<vmem>>, vector<1x32xf32>
    %134 = arith.mulf %131, %131 : vector<16x64xf32>
    %cst_43 = arith.constant dense<0.000000e+00> : vector<16xf32>
    %135 = vector.multi_reduction <add>, %134, %cst_43 [1] : vector<16x64xf32> to vector<16xf32>
    %136 = vector.shape_cast %135 : vector<16xf32> to vector<16x1xf32>
    %137 = math.sqrt %136 : vector<16x1xf32>
    %cst_44 = arith.constant 1.000000e-15 : f32
    %138 = vector.broadcast %cst_44 : f32 to vector<16x1xf32>
    %139 = arith.maximumf %137, %138 : vector<16x1xf32>
    %140 = arith.truncf %131 : vector<16x64xf32> to vector<16x64xbf16>
    %141 = arith.truncf %132 : vector<64x32xf32> to vector<64x32xbf16>
    %cst_45 = arith.constant dense<0.000000e+00> : vector<16x32xf32>
    %142 = tpu.matmul %140, %141, %cst_45 {dimension_numbers = #tpu.dot_dimension_numbers<[1], [0], [0], [1], [0, 0, 1, 1], [], []>} : vector<16x64xbf16>, vector<64x32xbf16>, vector<16x32xf32> -> vector<16x32xf32>
    %143 = arith.mulf %142, %142 : vector<16x32xf32>
    %cst_46 = arith.constant dense<0.000000e+00> : vector<16xf32>
    %144 = vector.multi_reduction <add>, %143, %cst_46 [1] : vector<16x32xf32> to vector<16xf32>
    %145 = vector.shape_cast %144 : vector<16xf32> to vector<16x1xf32>
    %cst_47 = arith.constant 0.000000e+00 : f32
    %146 = vector.broadcast %cst_47 : f32 to vector<16x1xf32>
    %147 = arith.cmpf oeq, %145, %146 : vector<16x1xf32>
    %148 = math.sqrt %145 : vector<16x1xf32>
    %cst_48 = arith.constant 1.000000e-15 : f32
    %149 = vector.broadcast %cst_48 : f32 to vector<16x1xf32>
    %150 = arith.maximumf %148, %149 : vector<16x1xf32>
    %151 = tpu.reciprocal %139 {approx = true} : vector<16x1xf32> -> vector<16x1xf32>
    %152 = arith.mulf %150, %151 : vector<16x1xf32>
    %cst_49 = arith.constant -0.999998986 : f32
    %cst_50 = arith.constant 0.999998986 : f32
    %153 = vector.broadcast %cst_49 : f32 to vector<16x1xf32>
    %154 = arith.maximumf %153, %139 : vector<16x1xf32>
    %155 = vector.broadcast %cst_50 : f32 to vector<16x1xf32>
    %156 = arith.minimumf %155, %154 : vector<16x1xf32>
    %cst_51 = arith.constant 1.000000e+00 : f32
    %157 = vector.broadcast %cst_51 : f32 to vector<16x1xf32>
    %158 = arith.addf %157, %156 : vector<16x1xf32>
    %cst_52 = arith.constant 1.000000e+00 : f32
    %159 = vector.broadcast %cst_52 : f32 to vector<16x1xf32>
    %160 = arith.subf %159, %156 : vector<16x1xf32>
    %161 = arith.divf %158, %160 : vector<16x1xf32>
    %162 = math.log %161 : vector<16x1xf32>
    %cst_53 = arith.constant 5.000000e-01 : f32
    %163 = vector.broadcast %cst_53 : f32 to vector<16x1xf32>
    %164 = arith.mulf %163, %162 : vector<16x1xf32>
    %165 = arith.mulf %152, %164 : vector<16x1xf32>
    %166 = math.tanh %165 : vector<16x1xf32>
    %167 = vector.broadcast %166 : vector<16x1xf32> to vector<16x32xf32>
    %168 = arith.mulf %167, %142 : vector<16x32xf32>
    %169 = tpu.reciprocal %150 {approx = true} : vector<16x1xf32> -> vector<16x1xf32>
    %170 = vector.broadcast %169 : vector<16x1xf32> to vector<16x32xf32>
    %171 = arith.mulf %168, %170 : vector<16x32xf32>
    %cst_54 = arith.constant 0.000000e+00 : f32
    %172 = vector.broadcast %cst_54 : f32 to vector<16x32xf32>
    %173 = vector.shape_cast %147 : vector<16x1xi1> to vector<16x1xi1>
    %174 = vector.broadcast %173 : vector<16x1xi1> to vector<16x32xi1>
    %175 = arith.select %174, %172, %171 : vector<16x32xi1>, vector<16x32xf32>
    %176 = arith.mulf %175, %175 : vector<16x32xf32>
    %cst_55 = arith.constant dense<0.000000e+00> : vector<16xf32>
    %177 = vector.multi_reduction <add>, %176, %cst_55 [1] : vector<16x32xf32> to vector<16xf32>
    %178 = vector.shape_cast %177 : vector<16xf32> to vector<16x1xf32>
    %179 = arith.mulf %133, %133 : vector<1x32xf32>
    %cst_56 = arith.constant dense<0.000000e+00> : vector<1xf32>
    %180 = vector.multi_reduction <add>, %179, %cst_56 [1] : vector<1x32xf32> to vector<1xf32>
    %181 = vector.shape_cast %180 : vector<1xf32> to vector<1x1xf32>
    %182 = vector.broadcast %133 : vector<1x32xf32> to vector<16x32xf32>
    %183 = arith.mulf %175, %182 : vector<16x32xf32>
    %cst_57 = arith.constant dense<0.000000e+00> : vector<16xf32>
    %184 = vector.multi_reduction <add>, %183, %cst_57 [1] : vector<16x32xf32> to vector<16xf32>
    %185 = vector.shape_cast %184 : vector<16xf32> to vector<16x1xf32>
    %cst_58 = arith.constant 2.000000e+00 : f32
    %186 = vector.broadcast %cst_58 : f32 to vector<16x1xf32>
    %187 = arith.mulf %186, %185 : vector<16x1xf32>
    %cst_59 = arith.constant 1.000000e+00 : f32
    %188 = vector.broadcast %cst_59 : f32 to vector<16x1xf32>
    %189 = arith.addf %188, %187 : vector<16x1xf32>
    %190 = vector.broadcast %181 : vector<1x1xf32> to vector<16x1xf32>
    %191 = arith.addf %189, %190 : vector<16x1xf32>
    %192 = vector.broadcast %191 : vector<16x1xf32> to vector<16x32xf32>
    %193 = arith.mulf %192, %175 : vector<16x32xf32>
    %cst_60 = arith.constant 1.000000e+00 : f32
    %194 = vector.broadcast %cst_60 : f32 to vector<16x1xf32>
    %195 = arith.subf %194, %178 : vector<16x1xf32>
    %196 = vector.broadcast %195 : vector<16x1xf32> to vector<16x32xf32>
    %197 = vector.broadcast %133 : vector<1x32xf32> to vector<16x32xf32>
    %198 = arith.mulf %196, %197 : vector<16x32xf32>
    %199 = arith.addf %193, %198 : vector<16x32xf32>
    %cst_61 = arith.constant 2.000000e+00 : f32
    %200 = vector.broadcast %cst_61 : f32 to vector<16x1xf32>
    %201 = arith.mulf %200, %185 : vector<16x1xf32>
    %cst_62 = arith.constant 1.000000e+00 : f32
    %202 = vector.broadcast %cst_62 : f32 to vector<16x1xf32>
    %203 = arith.addf %202, %201 : vector<16x1xf32>
    %204 = vector.broadcast %181 : vector<1x1xf32> to vector<16x1xf32>
    %205 = arith.mulf %178, %204 : vector<16x1xf32>
    %206 = arith.addf %203, %205 : vector<16x1xf32>
    %cst_63 = arith.constant 1.000000e-15 : f32
    %207 = vector.broadcast %cst_63 : f32 to vector<16x1xf32>
    %208 = arith.maximumf %206, %207 : vector<16x1xf32>
    %209 = vector.broadcast %208 : vector<16x1xf32> to vector<16x32xf32>
    %210 = arith.divf %199, %209 : vector<16x32xf32>
    %211 = arith.mulf %210, %210 : vector<16x32xf32>
    %cst_64 = arith.constant dense<0.000000e+00> : vector<16xf32>
    %212 = vector.multi_reduction <add>, %211, %cst_64 [1] : vector<16x32xf32> to vector<16xf32>
    %213 = vector.shape_cast %212 : vector<16xf32> to vector<16x1xf32>
    %214 = math.sqrt %213 : vector<16x1xf32>
    %cst_65 = arith.constant 1.000000e-15 : f32
    %215 = vector.broadcast %cst_65 : f32 to vector<16x1xf32>
    %216 = arith.maximumf %214, %215 : vector<16x1xf32>
    %cst_66 = arith.constant 0.999989986 : f32
    %217 = vector.broadcast %cst_66 : f32 to vector<16x1xf32>
    %218 = arith.cmpf ogt, %216, %217 : vector<16x1xf32>
    %cst_67 = arith.constant 0.999989986 : f32
    %219 = vector.broadcast %cst_67 : f32 to vector<16x1xf32>
    %220 = arith.divf %219, %216 : vector<16x1xf32>
    %221 = vector.broadcast %220 : vector<16x1xf32> to vector<16x32xf32>
    %222 = arith.mulf %210, %221 : vector<16x32xf32>
    %223 = vector.shape_cast %218 : vector<16x1xi1> to vector<16x1xi1>
    %224 = vector.broadcast %223 : vector<16x1xi1> to vector<16x32xi1>
    %225 = arith.select %224, %222, %210 : vector<16x32xi1>, vector<16x32xf32>
    %c0_68 = arith.constant 0 : index
    %c0_69 = arith.constant 0 : index
    %226 = vector.load %arg6[%c0_68, %c0_69] : memref<16x32xf32, #tpu.memory_space<vmem>>, vector<16x32xf32>
    tpu.vector_store %arg6[%c0_68, %c0_69], %225 {strides = array<i32>} : memref<16x32xf32, #tpu.memory_space<vmem>>, vector<16x32xf32>,
    return
  }
  func.func @transform_0(%arg0: i32) -> (i32, i32) {
    %c0_i32 = arith.constant 0 : i32
    %c0_i32_0 = arith.constant 0 : i32
    return %arg0, %c0_i32 : i32, i32
  }
  func.func @transform_1(%arg0: i32) -> (i32, i32) {
    %c0_i32 = arith.constant 0 : i32
    %c0_i32_0 = arith.constant 0 : i32
    %c0_i32_1 = arith.constant 0 : i32
    return %c0_i32, %c0_i32_0 : i32, i32
  }
  func.func @transform_2(%arg0: i32) -> (i32, i32) {
    %c0_i32 = arith.constant 0 : i32
    %c0_i32_0 = arith.constant 0 : i32
    %c0_i32_1 = arith.constant 0 : i32
    return %c0_i32, %c0_i32_0 : i32, i32
  }
  func.func @transform_3(%arg0: i32) -> (i32, i32) {
    %c0_i32 = arith.constant 0 : i32
    %c0_i32_0 = arith.constant 0 : i32
    %c0_i32_1 = arith.constant 0 : i32
    return %c0_i32, %c0_i32_0 : i32, i32
  }
  func.func @transform_4(%arg0: i32) -> (i32, i32) {
    %c0_i32 = arith.constant 0 : i32
    %c0_i32_0 = arith.constant 0 : i32
    %c0_i32_1 = arith.constant 0 : i32
    return %c0_i32, %c0_i32_0 : i32, i32
  }
  func.func @transform_5(%arg0: i32) -> (i32, i32) {
    %c0_i32 = arith.constant 0 : i32
    %c0_i32_0 = arith.constant 0 : i32
    return %arg0, %c0_i32 : i32, i32
  }
}

</mosaic_0001>

<bundles_post_ra>
// kernel: hyperbolic_transformer_forward.13
= control target key start
LH: loop header
LB: loop body
LE: loop exit
PB: predicated region body
PF: predicated region fallthrough
CT: control target
= control target key end

     0   :  { %7 = vsyncpa [#allocation3], 0  ;;  %s724_s0 = inlined_call_operand.hbm [shape: f32[2,8,32], index: 0, kind: input, shape index: {}]   ;;  %s725_s1 = inlined_call_operand.hbm [shape: f32[8,32], index: 1, kind: input, shape index: {}]   ;;  %s726_s2 = inlined_call_operand.hbm [shape: f32[2,8,32], index: 2, kind: output, shape index: {}]  }
   0x1   :  { %9 = vsyncpa [#allocation3 + $0x1], 0 }
   0x2   :  { %10 = vsyncpa [#allocation6], 0 }
   0x3   :  { %11 = vsyncpa [#allocation4], 0 }
   0x4   :  { %13 = vsyncpa [#allocation4 + $0x1], 0  ;;  %s515_s9 = smov 0   ;;  %s517_s10 = smov 0  }
   0x5   :  { %s519_s11 = smov 0   ;;  %s521_s12 = smov 0  }
   0x6 LB: > { %s536_s13 = sadd.s32 4294967295, %s495_s12   ;;  %s294_s14 = sadd.s32 4294967294, %s495_s12   ;;  %s495_s12 = sphi %s521_s12, %s750_s12   ;;  %s491_s11 = sphi %s519_s11, %s749_s11   ;;  %s487_s10 = sphi %s517_s10, %s748_s10   ;;  %s483_s9 = sphi %s515_s9, %s747_s9  }
   0x7   : > { %p39_p0 = scmp.ne.s32.totalorder %s487_s10, %s483_s9  ;;  %p727_p1 = scmp.eq.s32.totalorder %s536_s13, 0 }
   0x8   : > { %p90_p3 = scmp.eq.s32.totalorder %s294_s14, 1  ;;  %p295_p5 = scmp.ge.s32.totalorder %s495_s12, 1 }
   0x9   : > { %p545_p4 = por %p727_p1, %p39_p0  ;;  %p97_p7 = scmp.lt.s32.totalorder %s495_s12, 3 }
   0xa   : > { %p550_p6 = por %p90_p3, %p39_p0  ;;  %s497_s18 = smov [#allocation5]  }
   0xb   : > { %s730_s15 = scalar_select %p545_p4, 1, 0 }
   0xc   : > { %s731_s16 = scalar_select %p550_p6, 1, 0 }
   0xd   : > { %p555_p8 = pnand %p295_p5, %p97_p7  ;;  %s110_s19 = sshll.u32 %s497_s18, 4  ;;  %s111_s19 = int_to_ptr.vmem [resolvable:$true] %s110_s19 }
   0xe   : > { %s563_s20 = sadd.s32 1, %s495_s12   ;;  %s26_s24 = sadd.s32 1, %s491_s11 }
   0xf   : > { %s732_s17 = scalar_select %p555_p8, 1, 0 }
  0x10   : > { %p316_p10 = pneg %p555_p8  ;;  %s23_s22 = ssub.s32 %s495_s12, %s563_s20 }
  0x11   : > { %p573_p12 = scmp.eq.s32.totalorder %s23_s22, 0  ;;  %s367_s27 = scalar_lea.hbm %s725_s1, 128 }
  0x12   : > { %p567_p11 = pnand %p316_p10, %p727_p1  ;;  %p368_p0 = scmp.ne.s32.totalorder %s725_s1, %s367_s27 }
  0x13   : > { %s734_s23 = scalar_select %p573_p12, 1, 0 }
  0x14   : > { %p369_p3 = pneg %p567_p11  ;;  %p374_p10 = scmp.lt.u32.totalorder %s367_s27, %s725_s1 }
  0x16   : > { %p370_p5 = pnand %p369_p3, %p368_p0 }
  0x18   : > { %p371_p7 = pneg %p370_p5 }
  0x1a   : > { %p376_p9 = pnand %p374_p10, %p371_p7 }
  0x1c   : > { %379 = shalt.err (!%p376_p9)
}
  0x1d   : > { %s380_s4 = scalar_lea.vmem %s111_s19, 128  ;;  %p388_p6 = scmp.lt.s32.totalorder %s111_s19, %s111_s19 }
  0x1e   : > { %p381_p1 = scmp.ne.s32.totalorder %s111_s19, %s380_s4  ;;  %p389_p4 = scmp.lt.s32.totalorder %s380_s4, %s380_s4 }
  0x20   : > { %p383_p2 = pnand %p381_p1, %p369_p3  ;;  %p390_p8 = por %p389_p4, %p388_p6 }
  0x22   : > { %p384_p13 = pneg %p383_p2 }
  0x24   : > { %p391_p12 = pnand %p390_p8, %p384_p13 }
  0x26   : > { %394 = shalt.err (!%p391_p12)
}
  0x27   : > { %319 = dma.hbm_to_vmem [thread:$0]  (!%p567_p11), %s725_s1, 128, %s111_s19, [#allocation6]  }
  0x28   : > { %p735_p1 = scmp.ne.s32.totalorder %s734_s23, 0  ;;  %p34_p2 = scmp.eq.s32.totalorder %s495_s12, 0 }
  0x29   : > { %p736_p4 = scmp.ne.s32.totalorder %s491_s11, %s487_s10  ;;  %p737_p6 = scmp.eq.s32.totalorder %s536_s13, 1 }
  0x2a   : > { %s599_s7 = scalar_select %p735_p1, %s491_s11, %s26_s24  }
  0x2b   : > { %p607_p8 = por %p737_p6, %p736_p4  ;;  %p329_p9 = scmp.lt.s32.totalorder %s495_s12, 2 }
  0x2c   : > { %s121_s14 = sand.u32 1, %s491_s11   ;;  %p739_p12 = pmov %p736_p4 }
  0x2d   : > { %s298_s18 = sshll.u32 %s121_s14, 3  ;;  %s299_s21 = sshll.u32 %s495_s12, 7 }
  0x2e   : > { %p35_p13 = por %p34_p2, %p739_p12  ;;  %s620_s19 = scalar_lea.hbm %s724_s0, %s299_s21 }
  0x2f   : > { %s125_s23 = scalar_lea.vmem [#allocation2], %s298_s18  ;;  %s122_s27 = scalar_lea.sflag [#allocation3], %s121_s14 }
  0x30   : > { %s132_s24 = sshll.u32 %s125_s23, 4  ;;  %p622_p11 = pnand %p329_p9, %p35_p13  ;;  %s626_s24 = int_to_ptr.vmem [resolvable:$true] %s132_s24 }
  0x31   : > { %s395_s28 = scalar_lea.hbm %s620_s19, 128  ;;  %s400_s3 = scalar_lea.hbm %s724_s0, 256 }
  0x32   : > { %p396_p0 = scmp.ne.s32.totalorder %s620_s19, %s395_s28  ;;  %p397_p3 = pneg %p622_p11 }
  0x33   : > { %p401_p10 = scmp.lt.u32.totalorder %s620_s19, %s724_s0  ;;  %p402_p1 = scmp.lt.u32.totalorder %s400_s3, %s395_s28 }
  0x34   : > { %p398_p5 = pnand %p397_p3, %p396_p0  ;;  %p404_p4 = scmp.lt.u32.totalorder %s395_s28, %s620_s19 }
  0x35   : > { %p403_p2 = por %p402_p1, %p401_p10 }
  0x36   : > { %p399_p7 = pneg %p398_p5 }
  0x37   : > { %p405_p6 = por %p404_p4, %p403_p2 }
  0x39   : > { %p406_p9 = pnand %p405_p6, %p399_p7 }
  0x3b   : > { %409 = shalt.err (!%p406_p9)
}
  0x3c   : > { %s410_s6 = scalar_lea.vmem %s626_s24, 128  ;;  %s498_s14 = smov [#allocation2]  }
  0x3d   : > { %p411_p12 = scmp.ne.s32.totalorder %s626_s24, %s410_s6  ;;  %s415_s18 = sshll.u32 %s498_s14, 4  ;;  %s416_s18 = int_to_ptr.vmem [resolvable:$false] %s415_s18 }
  0x3e   : > { %s417_s21 = scalar_lea.vmem %s416_s18, 256  ;;  %p418_p5 = scmp.lt.s32.totalorder %s626_s24, %s416_s18 }
  0x3f   : > { %p413_p13 = pnand %p411_p12, %p397_p3  ;;  %p419_p10 = scmp.lt.s32.totalorder %s417_s21, %s410_s6 }
  0x41   : > { %p414_p0 = pneg %p413_p13  ;;  %p420_p1 = por %p419_p10, %p418_p5 }
  0x43   : > { %p421_p2 = pnand %p420_p1, %p414_p0 }
  0x45   : > { %424 = shalt.err (!%p421_p2)
}
  0x46   : > { %323 = dma.hbm_to_vmem [thread:$0]  (!%p622_p11), %s620_s19, 128, %s626_s24, %s122_s27  }
  0x47   : > { %p741_p7 = scmp.ne.s32.totalorder %s732_s17, 0 }
  0x48   : > { %s656_s22 = sand.u32 (!%p741_p7), 1, %s487_s10   ;;  %p742_p3 = scmp.ne.s32.totalorder (!%p741_p7), %s730_s15, 0 }
  0x49   : > { %141 = sbr.rel (%p741_p7) target bundleno = 267 (0x10b), region = 28  ;;  %s301_s25 = sshll.u32 (!%p741_p7), %s656_s22, 3 }
  0x4a   : > { %s144_s23 = scalar_lea.sflag (!%p741_p7), [#allocation3], %s656_s22  ;;  %s147_s28 = scalar_lea.vmem (!%p741_p7), [#allocation2], %s301_s25 }
  0x50   : > { %470 = dma.done.wait (%p742_p3), %s144_s23, 128  }
  0x51   : > { %472 = vsyncadd (%p742_p3), %s144_s23, 4294967168  ;;  %p743_p11 = scmp.eq.s32.totalorder %s536_s13, 0 }
  0x53   : > { %474 = dma.done.wait (%p743_p11), [#allocation6], 128   ;;  %p744_p4 = pmov %p743_p11 }
  0x54   : > { %v172_v0 = vld [vmem:[%s147_s28] sm:$0xff]  ;;  %v173_v1 = vld [vmem:[#allocation5] sm:$0xff]  ;;  %vm175_vm0 = vcmask 261120   ;;  %s305_s15 = sshll.u32 %s536_s13, 7  ;;  %s171_s17 = scalar_lea.vmem [#allocation7], %s301_s25 }
  0x55   : > { %476 = vsyncadd (%p744_p4), [#allocation6], 4294967168  ;;  %v183_v2 = vmul.f32 %v173_v1, %v172_v0  ;;  %v179_v3 = vmul.f32 %v173_v1, %v173_v1  ;;  %v174_v4 = vmul.f32 %v172_v0, %v172_v0  ;;  %s214_s19 = sshll.u32 %s171_s17, 4  ;;  %s679_s27 = scalar_lea.hbm %s726_s2, %s305_s15  ;;  %s681_s19 = int_to_ptr.vmem [resolvable:$true] %s214_s19 }
  0x56   : > { %s201_s29 = scalar_lea.sflag [#allocation4], %s656_s22  ;;  %s425_s13 = scalar_lea.vmem %s681_s19, 128 }
  0x57   : > { %v184_v5 = vsel %vm175_vm0, %v183_v2, 0.0  ;;  %v180_v6 = vsel %vm175_vm0, %v179_v3, 0.0  ;;  %v176_v7 = vsel %vm175_vm0, %v174_v4, 0.0  ;;  %p426_p6 = scmp.ne.s32.totalorder %s681_s19, %s425_s13  ;;  %s499_s30 = smov [#allocation7]  }
  0x58   : > { %185 = vadd.xlane.f32.xlu0 %v184_v5  ;;  %181 = vadd.xlane.f32.xlu1 %v180_v6  ;;  %s429_s3 = sshll.u32 %s499_s30, 4  ;;  %s430_s3 = int_to_ptr.vmem [resolvable:$false] %s429_s3 }
  0x59   : > { %p427_p9 = pnand %p426_p6, %p607_p8  ;;  %s431_s4 = scalar_lea.vmem %s430_s3, 256 }
  0x5a   : > { %p432_p13 = scmp.lt.s32.totalorder %s681_s19, %s430_s3  ;;  %p433_p0 = scmp.lt.s32.totalorder %s431_s4, %s425_s13 }
  0x5b   : > { %p428_p12 = pneg %p427_p9 }
  0x5c   : > { %177 = vadd.xlane.f32.xlu0 %v176_v7  ;;  %p434_p5 = por %p433_p0, %p432_p13 }
  0x5e   : > { %p435_p10 = pnand %p434_p5, %p428_p12 }
  0xe5   : > { %v186_v8 = vpop.xlane.xlu0 %185  ;;  %v182_v10 = vpop.xlane.xlu1 %181 }
  0xe6   : > { %v187_v9 = vmul.f32 2.0, %v186_v8 }
  0xe8   : > { %v188_v12 = vadd.f32 1.0, %v187_v9 }
  0xe9   : > { %v178_v11 = vpop.xlane.xlu0 %177 }
  0xea   : > { %v194_v13 = vmul.f32 %v182_v10, %v178_v11  ;;  %v189_v16 = vadd.f32 %v188_v12, %v182_v10  ;;  %v191_v17 = vsub.f32 1.0, %v178_v11 }
  0xec   : > { %v195_v14 = vadd.f32 %v194_v13, %v188_v12  ;;  %v190_v18 = vmul.f32 %v189_v16, %v172_v0  ;;  %v192_v19 = vmul.f32 %v191_v17, %v173_v1 }
  0xee   : > { %v196_v15 = vmax.f32 %v195_v14, 1e-15  ;;  %v193_v20 = vadd.f32 %v192_v19, %v190_v18 }
  0xf0   : > { %365 = vrcp.f32 %v196_v15 }
  0xfa   : > { %v366_v21 = vpop.eup %365 }
  0xfb   : > { %v198_v22 = vmul.f32 %v366_v21, %v193_v20 }
  0xfd   : > { %199 = vst.msk [vmem:[%s171_s17] sm:$0xff] %vm175_vm0, %v198_v22 }
  0xfe   : > { %438 = shalt.err (!%p435_p10)
}
  0xff   : > { %s439_s5 = scalar_lea.hbm %s679_s27, 128  ;;  %s443_s18 = scalar_lea.hbm %s726_s2, 256 }
 0x100   : > { %p440_p1 = scmp.ne.s32.totalorder %s679_s27, %s439_s5  ;;  %p444_p3 = scmp.lt.u32.totalorder %s679_s27, %s726_s2 }
 0x101   : > { %p445_p11 = scmp.lt.u32.totalorder %s443_s18, %s439_s5  ;;  %p447_p6 = scmp.lt.u32.totalorder %s439_s5, %s679_s27 }
 0x102   : > { %p441_p2 = pnand %p440_p1, %p607_p8 }
 0x103   : > { %p446_p4 = por %p445_p11, %p444_p3 }
 0x104   : > { %p442_p7 = pneg %p441_p2 }
 0x105   : > { %p448_p9 = por %p447_p6, %p446_p4 }
 0x107   : > { %p449_p12 = pnand %p448_p9, %p442_p7 }
 0x109   : > { %452 = shalt.err (!%p449_p12)
}
 0x10a   : > { %314 = dma.vmem_to_hbm [thread:$0]  (%p607_p8), %s681_s19, 128, %s679_s27, %s201_s29  }
 0x10b PF: > { %s226_s25 = sand.u32 1, %s483_s9   ;;  %p745_p13 = scmp.ne.s32.totalorder %s731_s16, 0 }
 0x10c   : > { %p746_p0 = scmp.ge.s32.totalorder %s495_s12, 2  ;;  %s227_s23 = scalar_lea.sflag [#allocation4], %s226_s25 }
 0x10e   : > { %p325_p5 = pnand %p746_p0, %p745_p13 }
 0x110   : > { %478 = dma.done.wait (!%p325_p5), %s227_s23, 128  }
 0x111   : > { %480 = vsyncadd (!%p325_p5), %s227_s23, 4294967168  ;;  %p16_p10 = scmp.ge.s32.totalorder %s563_s20, 4   ;;  %s747_s9 = smov %s487_s10 }
 0x112   : > { %s748_s10 = smov %s491_s11  ;;  %s749_s11 = smov %s599_s7 }
 0x113   : > { %s750_s12 = smov %s563_s20  ;;  %18 = sbr.rel (!%p16_p10) target bundleno = 6 (0x6), region = 77 }
 0x11a   :  { %232 = vsyncpa [#allocation3], 1 }
 0x11b   :  { %234 = vsyncpa [#allocation3 + $0x1], 1 }
 0x11c   :  { %235 = vsyncpa [#allocation6], 1 }
 0x11d   :  { %236 = vsyncpa [#allocation4], 1 }
 0x11e   :  { %238 = vsyncpa [#allocation4 + $0x1], 1 }

// kernel: hyperbolic_transformer_forward.14
= control target key start
LH: loop header
LB: loop body
LE: loop exit
PB: predicated region body
PF: predicated region fallthrough
CT: control target
= control target key end

     0   :  { %11 = vsyncpa [#allocation3], 0  ;;  %s1376_s0 = inlined_call_operand.hbm [shape: f32[16,32], index: 0, kind: input, shape index: {}]   ;;  %s1377_s1 = inlined_call_operand.hbm [shape: f32[32,96], index: 1, kind: input, shape index: {}]   ;;  %s1378_s2 = inlined_call_operand.hbm [shape: f32[3,32], index: 2, kind: input, shape index: {}]   ;;  %s1379_s3 = inlined_call_operand.hbm [shape: f32[16,32], index: 3, kind: output, shape index: {0}]   ;;  %s1380_s4 = inlined_call_operand.hbm [shape: f32[16,32], index: 4, kind: output, shape index: {1}]   ;;  %s1381_s5 = inlined_call_operand.hbm [shape: f32[16,32], index: 5, kind: output, shape index: {2}]  }
   0x1   :  { %12 = vsyncpa [#allocation6], 0 }
   0x2   :  { %13 = vsyncpa [#allocation4], 0 }
   0x3   :  { %14 = vsyncpa [#allocation10], 0  ;;  %s969_s18 = smov [#allocation5]   ;;  %s970_s20 = smov [#allocation2]  }
   0x4   :  { %s32_s19 = sshll.u32 %s969_s18, 4  ;;  %s20_s21 = sshll.u32 %s970_s20, 4  ;;  %s33_s19 = int_to_ptr.vmem [resolvable:$true] %s32_s19  ;;  %s1012_s21 = int_to_ptr.vmem [resolvable:$true] %s20_s21 }
   0x5   :  { %s829_s24 = scalar_lea.hbm %s1377_s1, 512 }
   0x6   :  { %p830_p0 = scmp.ne.s32.totalorder %s1377_s1, %s829_s24  ;;  %p833_p1 = scmp.lt.u32.totalorder %s829_s24, %s1377_s1 }
   0x8   :  { %p835_p2 = pnand %p833_p1, %p830_p0 }
   0xa   :  { %838 = shalt.err (!%p835_p2)
}
   0xb   :  { %s839_s29 = scalar_lea.vmem %s33_s19, 512  ;;  %p844_p4 = scmp.lt.s32.totalorder %s33_s19, %s33_s19 }
   0xc   :  { %p840_p3 = scmp.ne.s32.totalorder %s33_s19, %s839_s29  ;;  %p845_p5 = scmp.lt.s32.totalorder %s839_s29, %s839_s29 }
   0xe   :  { %p846_p6 = por %p845_p5, %p844_p4 }
  0x10   :  { %p847_p7 = pnand %p846_p6, %p840_p3 }
  0x12   :  { %850 = shalt.err (!%p847_p7)
}
  0x13   :  { %s971_s30 = smov 128   ;;  %s972_s6 = smov 8  }
  0x14   :  { %38 = dma.hbm_to_vmem [thread:$0]  %s1377_s1, 512, %s33_s19, [#allocation6], %s971_s30, %s971_s30, %s972_s6  }
  0x15   :  { %s851_s11 = scalar_lea.hbm %s1376_s0, 256 }
  0x16   :  { %p852_p8 = scmp.ne.s32.totalorder %s1376_s0, %s851_s11  ;;  %p855_p9 = scmp.lt.u32.totalorder %s851_s11, %s1376_s0 }
  0x18   :  { %p857_p10 = pnand %p855_p9, %p852_p8 }
  0x1a   :  { %860 = shalt.err (!%p857_p10)
}
  0x1b   :  { %s861_s16 = scalar_lea.vmem %s1012_s21, 256  ;;  %p866_p12 = scmp.lt.s32.totalorder %s1012_s21, %s1012_s21 }
  0x1c   :  { %p862_p11 = scmp.ne.s32.totalorder %s1012_s21, %s861_s16  ;;  %p867_p13 = scmp.lt.s32.totalorder %s861_s16, %s861_s16 }
  0x1e   :  { %p868_p0 = por %p867_p13, %p866_p12 }
  0x20   :  { %p869_p1 = pnand %p868_p0, %p862_p11 }
  0x22   :  { %872 = shalt.err (!%p869_p1)
}
  0x23   :  { %26 = dma.hbm_to_vmem [thread:$0]  %s1376_s0, 256, %s1012_s21, [#allocation3], %s971_s30, %s971_s30, %s972_s6  }
  0x24   :  { %s973_s18 = smov [#allocation7]   ;;  %s873_s23 = scalar_lea.hbm %s1378_s2, 64 }
  0x25   :  { %s45_s19 = sshll.u32 %s973_s18, 4  ;;  %p874_p2 = scmp.ne.s32.totalorder %s1378_s2, %s873_s23  ;;  %s46_s19 = int_to_ptr.vmem [resolvable:$true] %s45_s19 }
  0x26   :  { %p877_p3 = scmp.lt.u32.totalorder %s873_s23, %s1378_s2 }
  0x28   :  { %p879_p4 = pnand %p877_p3, %p874_p2 }
  0x2a   :  { %882 = shalt.err (!%p879_p4)
}
  0x2b   :  { %s883_s28 = scalar_lea.vmem %s46_s19, 64  ;;  %p888_p6 = scmp.lt.s32.totalorder %s46_s19, %s46_s19 }
  0x2c   :  { %p884_p5 = scmp.ne.s32.totalorder %s46_s19, %s883_s28  ;;  %p889_p7 = scmp.lt.s32.totalorder %s883_s28, %s883_s28 }
  0x2e   :  { %p890_p8 = por %p889_p7, %p888_p6 }
  0x30   :  { %p891_p9 = pnand %p890_p8, %p884_p5 }
  0x32   :  { %894 = shalt.err (!%p891_p9)
}
  0x33   :  { %48 = dma.hbm_to_vmem [thread:$0]  %s1378_s2, 64, %s46_s19, [#allocation6]  }
  0x34   :  { %961 = dma.done.wait [#allocation3], 256  }
  0x35   :  { %962 = vsyncadd [#allocation3], 4294967040 }
  0x36   :  { %963 = dma.done.wait [#allocation6], 576  }
  0x37   :  { %964 = vsyncadd [#allocation6], 4294966720  ;;  %v974_v0 = vmov 0.0   ;;  %vm975_vm0 = vmmov 0   ;;  %v106_v1 = vld [vmem:[#allocation5] sm:$0xff]  ;;  %v107_v2 = vld [vmem:[#allocation5 + $0x8] sm:$0xff]  ;;  %v215_v24 = vlaneseq }
  0x38   :  { %720 = vmatprep.subr.bf16.mxu0 %v974_v0  ;;  %724 = vmatprep.mubr.msk.bf16.mxu0 %vm975_vm0, %v974_v0  ;;  %v108_v3 = vld [vmem:[#allocation5 + $0x10] sm:$0xff]  ;;  %v111_v4 = vpack.c.bf16 %v107_v2, %v106_v1  ;;  %v109_v5 = vld [vmem:[#allocation5 + $0x18] sm:$0xff]  ;;  %vm63_vm1 = vcmask 261120   ;;  %s976_s2 = smov 64   ;;  %s977_s29 = smov 96   ;;  %vm361_vm14 = vcmask 254977  }
  0x39   :  { %v112_v6 = vpack.c.bf16 %v109_v5, %v108_v3  ;;  %v59_v7 = vld [vmem:[#allocation2] sm:$0xff]  ;;  %v60_v8 = vld [vmem:[#allocation2 + $0x8] sm:$0xff]  ;;  %v1087_v28 = vshrl.u32 %v215_v24, 7  ;;  %v1091_v31 = vld [vmem:[#allocation7] sm:$0x7]  ;;  %s978_s7 = smov 32  }
  0x3a   :  { %721 = vmatpush3.bf16.msra.mxu0 %v111_v4  ;;  %v110_v9 = vpack.c.bf16 %v60_v8, %v59_v7  ;;  %v61_v16 = vmul.f32 %v59_v7, %v59_v7  ;;  %v62_v18 = vmul.f32 %v60_v8, %v60_v8  ;;  %vm545_vm15 = vcmask 256002   ;;  %s979_s8 = smov [#allocation8]  }
  0x3b   :  { %722 = vmatprep.subr.bf16.mxu0 %v974_v0  ;;  %v367_v30 = vsub.s32 1, %v1087_v28  ;;  %v551_v33 = vsub.s32 2, %v1087_v28  ;;  %s670_s9 = sshll.u32 %s979_s8, 4  ;;  %s671_s9 = int_to_ptr.vmem [resolvable:$true] %s670_s9 }
  0x3c   :  { %v64_v17 = vsel %vm63_vm1, %v61_v16, 0.0  ;;  %v67_v19 = vsel %vm63_vm1, %v62_v18, 0.0  ;;  %s895_s10 = scalar_lea.vmem %s671_s9, 256  ;;  %p900_p11 = scmp.lt.s32.totalorder %s671_s9, %s671_s9 }
  0x3d   :  { %v1096_v32 = vrot.slane %v1091_v31, %v367_v30  ;;  %v1104_v34 = vrot.slane %v1091_v31, %v551_v33  ;;  %p896_p10 = scmp.ne.s32.totalorder %s671_s9, %s895_s10  ;;  %p901_p12 = scmp.lt.s32.totalorder %s895_s10, %s895_s10 }
  0x3e   :  { %723 = vmatpush3.bf16.msra.mxu0 %v112_v6 }
  0x3f   :  { %p902_p13 = por %p901_p12, %p900_p11 }
  0x41   :  { %725 = vmatmul.mubr.msk.bf16.vlgmr.msra.gmra.mrb[0].mxu0 %vm63_vm1, %v110_v9  ;;  %p903_p0 = pnand %p902_p13, %p896_p10 }
 0x114   :  { %v1062_v10 = vpop.f32.mrb[0].mxu0 }
 0x115   :  { %v726_v11 = vpop.f32.mrb[1].mxu0  ;;  %v1066_v12 = vmul.f32 %v1062_v10, %v1062_v10 }
 0x116   :  { %v1068_v13 = vpop.f32.mrb[2].mxu0 }
 0x117   :  { %481 = vrot.lane.b32.xlu1 %v1066_v12, %s976_s2  ;;  %297 = vrot.lane.b32.xlu0 %v1066_v12, %s977_s29  ;;  %v727_v14 = vpop.f32.mrb[3].mxu0  ;;  %v1076_v15 = vmul.f32 %v1068_v13, %v1068_v13 }
 0x11b   :  { %483 = vrot.lane.b32.xlu1 %v1076_v15, %s976_s2  ;;  %299 = vrot.lane.b32.xlu0 %v1076_v15, %s977_s29 }
 0x13a   :  { %65 = vadd.xlane.f32.xlu0 %v64_v17 }
 0x13f   :  { %68 = vadd.xlane.f32.xlu1 %v67_v19 }
 0x189   :  { %v482_v20 = vpop.permute.xlu1 %481  ;;  %v298_v21 = vpop.permute.xlu0 %297 }
 0x18a   :  { %v487_v22 = vsel %vm63_vm1, %v482_v20, 0.0  ;;  %v303_v23 = vsel %vm63_vm1, %v298_v21, 0.0 }
 0x18b   :  { %488 = vadd.xlane.f32.xlu1 %v487_v22  ;;  %304 = vadd.xlane.f32.xlu0 %v303_v23 }
 0x18d   :  { %v300_v25 = vpop.permute.xlu0 %299  ;;  %v484_v27 = vpop.permute.xlu1 %483 }
 0x18e   :  { %v306_v26 = vsel %vm63_vm1, %v300_v25, 0.0  ;;  %v490_v29 = vsel %vm63_vm1, %v484_v27, 0.0 }
 0x18f   :  { %307 = vadd.xlane.f32.xlu0 %v306_v26 }
 0x193   :  { %491 = vadd.xlane.f32.xlu0 %v490_v29 }
 0x19c   :  { %370 = vrot.lane.b32.xlu1 %v1096_v32, %s978_s7 }
 0x1a9   :  { %554 = vrot.lane.b32.xlu0 %v1104_v34, %s976_s2 }
 0x1c7   :  { %v66_v35 = vpop.xlane.xlu0 %65 }
 0x1c8   :  { %741 = vrsqrt.f32 %v66_v35  ;;  %vm72_vm2 = vcmp.eq.f32.partialorder %v66_v35, inf  ;;  %v75_v40 = vand.u32 2147483648, %v66_v35  ;;  %vm74_vm3 = vcmp.eq.f32.partialorder %v66_v35, 0.0 }
 0x1cc   :  { %v69_v36 = vpop.xlane.xlu1 %68 }
 0x1cd   :  { %743 = vrsqrt.f32 %v69_v36  ;;  %vm79_vm4 = vcmp.eq.f32.partialorder %v69_v36, inf  ;;  %v82_v44 = vand.u32 2147483648, %v69_v36  ;;  %vm81_vm5 = vcmp.eq.f32.partialorder %v69_v36, 0.0 }
 0x1d2   :  { %v742_v37 = vpop.eup %741 }
 0x1d3   :  { %v71_v38 = vmul.f32 %v742_v37, %v66_v35 }
 0x1d5   :  { %v73_v41 = vsel %vm72_vm2, %v66_v35, %v71_v38 }
 0x1d6   :  { %v76_v43 = vsel %vm74_vm3, %v75_v40, %v73_v41 }
 0x1d7   :  { %v744_v39 = vpop.eup %743  ;;  %v84_v46 = vmax.f32 %v76_v43, 1e-15 }
 0x1d8   :  { %v78_v42 = vmul.f32 %v744_v39, %v69_v36 }
 0x1d9   :  { %v714_v48 = vclamps-f32 %v84_v46, 0.999999 }
 0x1da   :  { %v80_v45 = vsel %vm79_vm4, %v69_v36, %v78_v42 }
 0x1db   :  { %v83_v47 = vsel %vm81_vm5, %v82_v44, %v80_v45  ;;  %v94_v50 = vsub.f32 1.0, %v714_v48  ;;  %v92_v53 = vadd.f32 1.0, %v714_v48  ;;  %vm211_vm5 = vcmask 253952  }
 0x1dc   :  { %v85_v49 = vmax.f32 %v83_v47, 1e-15 }
 0x1dd   :  { %745 = vrcp.f32 %v94_v50 }
 0x1de   :  { %v715_v51 = vclamps-f32 %v85_v49, 0.999999 }
 0x1e0   :  { %v95_v52 = vsub.f32 1.0, %v715_v51  ;;  %v93_v55 = vadd.f32 1.0, %v715_v51 }
 0x1e2   :  { %747 = vrcp.f32 %v95_v52 }
 0x1e7   :  { %v746_v54 = vpop.eup %745 }
 0x1e8   :  { %v97_v56 = vmul.f32 %v746_v54, %v92_v53 }
 0x1ea   :  { %749 = vlog2.f32 %v97_v56 }
 0x1ec   :  { %v748_v57 = vpop.eup %747 }
 0x1ed   :  { %v99_v60 = vmul.f32 %v748_v57, %v93_v55 }
 0x1f4   :  { %v750_v63 = vpop.eup %749 }
 0x1f5   :  { %v101_v4 = vmul.f32 0.6931472, %v750_v63 }
 0x1f7   :  { %v1139_v23 = vmul.f32 0.5, %v101_v4 }
 0x218   :  { %v1108_v58 = vpop.xlane.xlu1 %488  ;;  %v1110_v59 = vpop.xlane.xlu0 %304 }
 0x219   :  { %751 = vrsqrt.f32 %v1108_v58  ;;  %vm497_vm6 = vcmp.eq.f32.partialorder %v1108_v58, inf  ;;  %v500_v5 = vand.u32 2147483648, %v1108_v58  ;;  %vm313_vm7 = vcmp.eq.f32.partialorder %v1110_v59, inf }
 0x21a   :  { %753 = vrsqrt.f32 %v1110_v59  ;;  %v316_v7 = vand.u32 2147483648, %v1110_v59  ;;  %vm493_vm8 = vcmp.eq.f32.partialorder %v1108_v58, 0.0  ;;  %vm309_vm9 = vcmp.eq.f32.partialorder %v1110_v59, 0.0 }
 0x21b   :  { %755 = vlog2.f32 %v99_v60 }
 0x21c   :  { %v1114_v61 = vpop.xlane.xlu0 %307 }
 0x21d   :  { %757 = vrsqrt.f32 %v1114_v61  ;;  %vm320_vm10 = vcmp.eq.f32.partialorder %v1114_v61, inf  ;;  %v323_v21 = vand.u32 2147483648, %v1114_v61  ;;  %vm310_vm11 = vcmp.eq.f32.partialorder %v1114_v61, 0.0 }
 0x21e   :  { %759 = vrcp.f32 %v84_v46 }
 0x220   :  { %v1117_v62 = vpop.xlane.xlu0 %491 }
 0x221   :  { %761 = vrsqrt.f32 %v1117_v62  ;;  %vm504_vm12 = vcmp.eq.f32.partialorder %v1117_v62, inf  ;;  %v507_v41 = vand.u32 2147483648, %v1117_v62  ;;  %vm494_vm13 = vcmp.eq.f32.partialorder %v1117_v62, 0.0 }
 0x222   :  { %763 = vrcp.f32 %v85_v49 }
 0x223   :  { %v752_v0 = vpop.eup %751 }
 0x224   :  { %v754_v1 = vpop.eup %753  ;;  %v496_v2 = vmul.f32 %v752_v0, %v1108_v58 }
 0x225   :  { %v312_v3 = vmul.f32 %v754_v1, %v1110_v59  ;;  %v756_v6 = vpop.eup %755 }
 0x226   :  { %v498_v8 = vsel %vm497_vm6, %v1108_v58, %v496_v2  ;;  %v103_v20 = vmul.f32 0.6931472, %v756_v6  ;;  %v371_v6 = vpop.permute.xlu1 %370 }
 0x227   :  { %v758_v9 = vpop.eup %757  ;;  %v314_v11 = vsel %vm313_vm7, %v1110_v59, %v312_v3  ;;  %v501_v14 = vsel %vm493_vm8, %v500_v5, %v498_v8 }
 0x228   :  { %v319_v16 = vmul.f32 %v758_v9, %v1114_v61  ;;  %v317_v17 = vsel %vm309_vm9, %v316_v7, %v314_v11  ;;  %v509_v18 = vmax.f32 %v501_v14, 1e-15  ;;  %v1135_v19 = vpop.eup %759  ;;  %v1151_v39 = vmul.f32 0.5, %v103_v20 }
 0x229   :  { %v325_v22 = vmax.f32 %v317_v17, 1e-15 }
 0x22a   :  { %v321_v24 = vsel %vm320_vm10, %v1114_v61, %v319_v16  ;;  %v511_v25 = vmul.f32 %v1135_v19, %v509_v18  ;;  %765 = vrcp.f32 %v509_v18  ;;  %v555_v61 = vpop.permute.xlu0 %554 }
 0x22b   :  { %v762_v26 = vpop.eup %761  ;;  %v324_v27 = vsel %vm310_vm11, %v323_v21, %v321_v24  ;;  %v327_v29 = vmul.f32 %v1135_v19, %v325_v22  ;;  %v1207_v24 = vmul.f32 %v1091_v31, %v1091_v31 }
 0x22c   :  { %v503_v35 = vmul.f32 %v762_v26, %v1117_v62  ;;  %v326_v36 = vmax.f32 %v324_v27, 1e-15  ;;  %v513_v37 = vmul.f32 %v511_v25, %v1139_v23  ;;  %v1149_v38 = vpop.eup %763 }
 0x22d   :  { %v329_v40 = vmul.f32 %v327_v29, %v1139_v23 }
 0x22e   :  { %v328_v42 = vmul.f32 %v1149_v38, %v326_v36  ;;  %v505_v43 = vsel %vm504_vm12, %v1117_v62, %v503_v35  ;;  %v362_v35 = vsel %vm361_vm14, %v1207_v24, 0.0 }
 0x22f   :  { %767 = vtanh.f32 %v329_v40  ;;  %v508_v44 = vsel %vm494_vm13, %v507_v41, %v505_v43  ;;  %v546_v43 = vsel %vm545_vm15, %v1207_v24, 0.0 }
 0x230   :  { %v330_v45 = vmul.f32 %v328_v42, %v1151_v39  ;;  %v510_v46 = vmax.f32 %v508_v44, 1e-15  ;;  %769 = vtanh.f32 %v513_v37 }
 0x231   :  { %771 = vrcp.f32 %v325_v22 }
 0x232   :  { %773 = vtanh.f32 %v330_v45  ;;  %v512_v47 = vmul.f32 %v1149_v38, %v510_v46  ;;  %v160_v45 = vsel %vm63_vm1, %v1066_v12, 0.0 }
 0x233   :  { %775 = vrcp.f32 %v326_v36 }
 0x234   :  { %v514_v48 = vmul.f32 %v512_v47, %v1151_v39  ;;  %v766_v49 = vpop.eup %765 }
 0x236   :  { %777 = vtanh.f32 %v514_v48 }
 0x237   :  { %779 = vrcp.f32 %v510_v46  ;;  %v163_v46 = vsel %vm63_vm1, %v1076_v15, 0.0 }
 0x239   :  { %v768_v50 = vpop.eup %767 }
 0x23a   :  { %v770_v51 = vpop.eup %769  ;;  %v333_v52 = vmul.f32 %v768_v50, %v1062_v10 }
 0x23b   :  { %v772_v53 = vpop.eup %771  ;;  %v517_v54 = vmul.f32 %v770_v51, %v1062_v10 }
 0x23c   :  { %v774_v55 = vpop.eup %773  ;;  %v337_v56 = vmul.f32 %v772_v53, %v333_v52 }
 0x23d   :  { %v334_v57 = vmul.f32 %v774_v55, %v1068_v13  ;;  %v521_v60 = vmul.f32 %v766_v49, %v517_v54  ;;  %v776_v63 = vpop.eup %775 }
 0x23e   :  { %v1169_v0 = vsel %vm309_vm9, 0.0, %v337_v56 }
 0x23f   :  { %v338_v1 = vmul.f32 %v776_v63, %v334_v57  ;;  %v1173_v2 = vsel %vm493_vm8, 0.0, %v521_v60  ;;  %v345_v3 = vmul.f32 %v1169_v0, %v1169_v0  ;;  %v373_v11 = vmul.f32 %v371_v6, %v1169_v0 }
 0x240   :  { %v778_v4 = vpop.eup %777  ;;  %v529_v5 = vmul.f32 %v1173_v2, %v1173_v2  ;;  %v557_v17 = vmul.f32 %v555_v61, %v1173_v2 }
 0x241   :  { %v1181_v7 = vsel %vm310_vm11, 0.0, %v338_v1  ;;  %v518_v59 = vmul.f32 %v778_v4, %v1068_v13  ;;  %349 = vrot.lane.b32.xlu1 %v345_v3, %s977_s29  ;;  %v780_v8 = vpop.eup %779 }
 0x242   :  { %533 = vrot.lane.b32.xlu0 %v529_v5, %s976_s2  ;;  %v346_v58 = vmul.f32 %v1181_v7, %v1181_v7  ;;  %v374_v18 = vmul.f32 %v371_v6, %v1181_v7 }
 0x243   :  { %v522_v9 = vmul.f32 %v780_v8, %v518_v59 }
 0x245   :  { %v1191_v14 = vsel %vm494_vm13, 0.0, %v522_v9  ;;  %351 = vrot.lane.b32.xlu1 %v346_v58, %s977_s29 }
 0x246   :  { %377 = vrot.lane.b32.xlu0 %v373_v11, %s977_s29  ;;  %v530_v16 = vmul.f32 %v1191_v14, %v1191_v14  ;;  %v558_v62 = vmul.f32 %v555_v61, %v1191_v14 }
 0x249   :  { %535 = vrot.lane.b32.xlu1 %v530_v16, %s976_s2 }
 0x24a   :  { %561 = vrot.lane.b32.xlu0 %v557_v17, %s976_s2 }
 0x24d   :  { %379 = vrot.lane.b32.xlu1 %v374_v18, %s977_s29 }
 0x251   :  { %563 = vrot.lane.b32.xlu1 %v558_v62, %s976_s2 }
 0x2b3   :  { %v350_v20 = vpop.permute.xlu1 %349 }
 0x2b4   :  { %v534_v21 = vpop.permute.xlu0 %533  ;;  %v355_v22 = vsel %vm63_vm1, %v350_v20, 0.0 }
 0x2b5   :  { %356 = vadd.xlane.f32.xlu0 %v355_v22  ;;  %v539_v29 = vsel %vm63_vm1, %v534_v21, 0.0 }
 0x2b7   :  { %v352_v25 = vpop.permute.xlu1 %351 }
 0x2b8   :  { %v378_v26 = vpop.permute.xlu0 %377  ;;  %v358_v27 = vsel %vm63_vm1, %v352_v25, 0.0 }
 0x2b9   :  { %359 = vadd.xlane.f32.xlu1 %v358_v27  ;;  %540 = vadd.xlane.f32.xlu0 %v539_v29  ;;  %v383_v41 = vsel %vm63_vm1, %v378_v26, 0.0 }
 0x2bb   :  { %v536_v36 = vpop.permute.xlu1 %535 }
 0x2bc   :  { %v542_v37 = vsel %vm63_vm1, %v536_v36, 0.0  ;;  %v562_v40 = vpop.permute.xlu0 %561 }
 0x2bd   :  { %363 = vadd.xlane.f32.xlu1 %v362_v35  ;;  %543 = vadd.xlane.f32.xlu0 %v542_v37  ;;  %v567_v42 = vsel %vm63_vm1, %v562_v40, 0.0 }
 0x2bf   :  { %v380_v44 = vpop.permute.xlu1 %379 }
 0x2c0   :  { %v386_v47 = vsel %vm63_vm1, %v380_v44, 0.0 }
 0x2c1   :  { %384 = vadd.xlane.f32.xlu0 %v383_v41  ;;  %568 = vadd.xlane.f32.xlu1 %v567_v42 }
 0x2c3   :  { %v564_v48 = vpop.permute.xlu1 %563 }
 0x2c4   :  { %v570_v49 = vsel %vm63_vm1, %v564_v48, 0.0 }
 0x2c5   :  { %547 = vadd.xlane.f32.xlu0 %v546_v43  ;;  %161 = vadd.xlane.f32.xlu1 %v160_v45 }
 0x2c9   :  { %164 = vadd.xlane.f32.xlu0 %v163_v46  ;;  %387 = vadd.xlane.f32.xlu1 %v386_v47 }
 0x2cd   :  { %571 = vadd.xlane.f32.xlu0 %v570_v49 }
 0x342   :  { %v357_v50 = vpop.xlane.xlu0 %356 }
 0x343   :  { %v401_v51 = vsub.f32 1.0, %v357_v50 }
 0x345   :  { %v403_v52 = vmul.f32 %v401_v51, %v1096_v32 }
 0x346   :  { %v360_v53 = vpop.xlane.xlu1 %359  ;;  %v541_v54 = vpop.xlane.xlu0 %540 }
 0x347   :  { %v402_v12 = vsub.f32 1.0, %v360_v53  ;;  %v585_v55 = vsub.f32 1.0, %v541_v54  ;;  %407 = vrot.lane.b32.xlu1 %v403_v52, %s978_s7 }
 0x349   :  { %v404_v15 = vmul.f32 %v402_v12, %v1096_v32  ;;  %v587_v56 = vmul.f32 %v585_v55, %v1104_v34 }
 0x34a   :  { %v544_v57 = vpop.xlane.xlu0 %543  ;;  %v364_v1 = vpop.xlane.xlu1 %363 }
 0x34b   :  { %v586_v60 = vsub.f32 1.0, %v544_v57  ;;  %409 = vrot.lane.b32.xlu0 %v404_v15, %s978_s7  ;;  %591 = vrot.lane.b32.xlu1 %v587_v56, %s976_s2  ;;  %v396_v58 = vrot.slane %v364_v1, %v367_v30 }
 0x34d   :  { %v588_v63 = vmul.f32 %v586_v60, %v1104_v34  ;;  %v415_v17 = vmul.f32 %v396_v58, %v357_v50  ;;  %v416_v25 = vmul.f32 %v396_v58, %v360_v53 }
 0x34e   :  { %v385_v3 = vpop.xlane.xlu0 %384  ;;  %v569_v4 = vpop.xlane.xlu1 %568 }
 0x34f   :  { %593 = vrot.lane.b32.xlu1 %v588_v63, %s976_s2  ;;  %v389_v32 = vmul.f32 2.0, %v385_v3  ;;  %v573_v61 = vmul.f32 2.0, %v569_v4 }
 0x351   :  { %v391_v11 = vadd.f32 1.0, %v389_v32  ;;  %v575_v22 = vadd.f32 1.0, %v573_v61 }
 0x352   :  { %v548_v5 = vpop.xlane.xlu0 %547  ;;  %v1230_v6 = vpop.xlane.xlu1 %161 }
 0x353   :  { %v580_v9 = vrot.slane %v548_v5, %v551_v33  ;;  %v417_v62 = vadd.f32 %v415_v17, %v391_v11  ;;  %v397_v42 = vadd.f32 %v396_v58, %v391_v11  ;;  %vm170_vm2 = vcmp.eq.f32.partialorder %v1230_v6, inf }
 0x354   :  { %v173_v12 = vand.u32 2147483648, %v1230_v6  ;;  %vm166_vm4 = vcmp.eq.f32.partialorder %v1230_v6, 0.0 }
 0x355   :  { %v599_v18 = vmul.f32 %v580_v9, %v541_v54  ;;  %v419_v30 = vmax.f32 %v417_v62, 1e-15  ;;  %v600_v33 = vmul.f32 %v580_v9, %v544_v57  ;;  %v399_v47 = vmul.f32 %v397_v42, %v1169_v0 }
 0x356   :  { %v1232_v59 = vpop.xlane.xlu0 %164  ;;  %v388_v8 = vpop.xlane.xlu1 %387  ;;  %v581_v48 = vadd.f32 %v580_v9, %v575_v22 }
 0x357   :  { %v390_v34 = vmul.f32 2.0, %v388_v8  ;;  %781 = vrsqrt.f32 %v1232_v59  ;;  %v601_v26 = vadd.f32 %v599_v18, %v575_v22  ;;  %vm177_vm0 = vcmp.eq.f32.partialorder %v1232_v59, inf }
 0x358   :  { %783 = vrsqrt.f32 %v1230_v6  ;;  %v180_v50 = vand.u32 2147483648, %v1232_v59  ;;  %vm167_vm3 = vcmp.eq.f32.partialorder %v1232_v59, 0.0  ;;  %v583_v56 = vmul.f32 %v581_v48, %v1173_v2 }
 0x359   :  { %v392_v20 = vadd.f32 1.0, %v390_v34  ;;  %v603_v35 = vmax.f32 %v601_v26, 1e-15  ;;  %785 = vrcp.f32 %v419_v30 }
 0x35a   :  { %v572_v16 = vpop.xlane.xlu0 %571 }
 0x35b   :  { %v574_v21 = vmul.f32 2.0, %v572_v16  ;;  %v418_v27 = vadd.f32 %v416_v25, %v392_v20  ;;  %787 = vrcp.f32 %v603_v35  ;;  %v398_v46 = vadd.f32 %v396_v58, %v392_v20 }
 0x35d   :  { %v576_v29 = vadd.f32 1.0, %v574_v21  ;;  %v420_v37 = vmax.f32 %v418_v27, 1e-15  ;;  %v400_v57 = vmul.f32 %v398_v46, %v1181_v7 }
 0x35f   :  { %v602_v40 = vadd.f32 %v600_v33, %v576_v29  ;;  %789 = vrcp.f32 %v420_v37  ;;  %v582_v55 = vadd.f32 %v580_v9, %v576_v29 }
 0x361   :  { %v782_v36 = vpop.eup %781  ;;  %v604_v44 = vmax.f32 %v602_v40, 1e-15  ;;  %v584_v2 = vmul.f32 %v582_v55, %v1191_v14 }
 0x362   :  { %v784_v41 = vpop.eup %783  ;;  %v176_v43 = vmul.f32 %v782_v36, %v1232_v59 }
 0x363   :  { %v169_v45 = vmul.f32 %v784_v41, %v1230_v6  ;;  %791 = vrcp.f32 %v604_v44  ;;  %v786_v54 = vpop.eup %785 }
 0x364   :  { %v178_v49 = vsel %vm177_vm0, %v1232_v59, %v176_v43 }
 0x365   :  { %v171_v53 = vsel %vm170_vm2, %v1230_v6, %v169_v45  ;;  %v181_v0 = vsel %vm167_vm3, %v180_v50, %v178_v49  ;;  %v788_v3 = vpop.eup %787 }
 0x366   :  { %v174_v1 = vsel %vm166_vm4, %v173_v12, %v171_v53  ;;  %v183_v8 = vmax.f32 %v181_v0, 1e-15 }
 0x367   :  { %v182_v34 = vmax.f32 %v174_v1, 1e-15 }
 0x368   :  { %v185_v18 = vmul.f32 %v1149_v38, %v183_v8 }
 0x369   :  { %v790_v58 = vpop.eup %789  ;;  %v184_v22 = vmul.f32 %v1135_v19, %v182_v34 }
 0x36a   :  { %v187_v21 = vmul.f32 %v185_v18, %v1151_v39  ;;  %v217_v39 = vsub.s32 0, %v1087_v28 }
 0x36b   :  { %v186_v25 = vmul.f32 %v184_v22, %v1139_v23  ;;  %v212_v23 = vsel %vm211_vm5, %v1207_v24, 0.0 }
 0x36c   :  { %793 = vtanh.f32 %v187_v21  ;;  %v218_v37 = vrot.slane %v1091_v31, %v217_v39 }
 0x36d   :  { %v792_v62 = vpop.eup %791  ;;  %795 = vtanh.f32 %v186_v25 }
 0x36e   :  { %797 = vrcp.f32 %v183_v8 }
 0x36f   :  { %799 = vrcp.f32 %v182_v34 }
 0x376   :  { %v794_v38 = vpop.eup %793 }
 0x377   :  { %v191_v26 = vmul.f32 %v794_v38, %v1068_v13  ;;  %v796_v30 = vpop.eup %795 }
 0x378   :  { %v798_v27 = vpop.eup %797  ;;  %v190_v33 = vmul.f32 %v796_v30, %v1062_v10 }
 0x379   :  { %v195_v29 = vmul.f32 %v798_v27, %v191_v26  ;;  %v800_v19 = vpop.eup %799 }
 0x37a   :  { %v194_v36 = vmul.f32 %v800_v19, %v190_v33 }
 0x37b   :  { %v201_v35 = vsel %vm167_vm3, 0.0, %v195_v29 }
 0x37c   :  { %v220_v40 = vmul.f32 %v218_v37, %v201_v35  ;;  %v200_v13 = vsel %vm166_vm4, 0.0, %v194_v36  ;;  %v203_v43 = vmul.f32 %v201_v35, %v201_v35 }
 0x37d   :  { %v202_v10 = vmul.f32 %v200_v13, %v200_v13  ;;  %v219_v28 = vmul.f32 %v218_v37, %v200_v13 }
 0x37e   :  { %v224_v41 = vsel %vm63_vm1, %v220_v40, 0.0  ;;  %v207_v24 = vsel %vm63_vm1, %v203_v43, 0.0 }
 0x37f   :  { %v204_v42 = vsel %vm63_vm1, %v202_v10, 0.0  ;;  %v221_v59 = vsel %vm63_vm1, %v219_v28, 0.0 }
 0x3b9   :  { %v408_v51 = vpop.permute.xlu1 %407 }
 0x3ba   :  { %v413_v52 = vadd.f32 %v408_v51, %v399_v47 }
 0x3bc   :  { %v1253_v15 = vmul.f32 %v786_v54, %v413_v52 }
 0x3bd   :  { %v592_v60 = vpop.permute.xlu1 %591  ;;  %v410_v63 = vpop.permute.xlu0 %409 }
 0x3be   :  { %v597_v4 = vadd.f32 %v592_v60, %v583_v56  ;;  %v414_v5 = vadd.f32 %v410_v63, %v400_v57  ;;  %v425_v32 = vmul.f32 %v1253_v15, %v1253_v15 }
 0x3c0   :  { %v1261_v9 = vmul.f32 %v788_v3, %v597_v4  ;;  %v1263_v11 = vmul.f32 %v790_v58, %v414_v5  ;;  %429 = vrot.lane.b32.xlu0 %v425_v32, %s977_s29 }
 0x3c1   :  { %v594_v7 = vpop.permute.xlu1 %593 }
 0x3c2   :  { %v598_v61 = vadd.f32 %v594_v7, %v584_v2  ;;  %v609_v16 = vmul.f32 %v1261_v9, %v1261_v9  ;;  %v426_v17 = vmul.f32 %v1263_v11, %v1263_v11 }
 0x3c4   :  { %v1272_v20 = vmul.f32 %v792_v62, %v598_v61  ;;  %613 = vrot.lane.b32.xlu0 %v609_v16, %s976_s2  ;;  %431 = vrot.lane.b32.xlu1 %v426_v17, %s977_s29 }
 0x3c6   :  { %v610_v14 = vmul.f32 %v1272_v20, %v1272_v20 }
 0x3c8   :  { %615 = vrot.lane.b32.xlu1 %v610_v14, %s976_s2 }
 0x3e3   :  { %213 = vadd.xlane.f32.xlu0 %v212_v23 }
 0x3e7   :  { %225 = vadd.xlane.f32.xlu0 %v224_v41 }
 0x3eb   :  { %205 = vadd.xlane.f32.xlu0 %v204_v42 }
 0x3ec   :  { %222 = vadd.xlane.f32.xlu1 %v221_v59 }
 0x3f0   :  { %208 = vadd.xlane.f32.xlu1 %v207_v24 }
 0x432   :  { %v430_v31 = vpop.permute.xlu0 %429 }
 0x433   :  { %v435_v44 = vsel %vm63_vm1, %v430_v31, 0.0 }
 0x434   :  { %436 = vadd.xlane.f32.xlu0 %v435_v44 }
 0x436   :  { %v432_v6 = vpop.permute.xlu1 %431  ;;  %v614_v45 = vpop.permute.xlu0 %613 }
 0x437   :  { %v438_v46 = vsel %vm63_vm1, %v432_v6, 0.0  ;;  %v619_v47 = vsel %vm63_vm1, %v614_v45, 0.0 }
 0x438   :  { %439 = vadd.xlane.f32.xlu1 %v438_v46  ;;  %620 = vadd.xlane.f32.xlu0 %v619_v47 }
 0x43a   :  { %v616_v48 = vpop.permute.xlu1 %615 }
 0x43b   :  { %v622_v49 = vsel %vm63_vm1, %v616_v48, 0.0 }
 0x43c   :  { %623 = vadd.xlane.f32.xlu1 %v622_v49 }
 0x470   :  { %v214_v50 = vpop.xlane.xlu0 %213 }
 0x471   :  { %v234_v52 = vrot.slane %v214_v50, %v217_v39 }
 0x474   :  { %v226_v51 = vpop.xlane.xlu0 %225 }
 0x475   :  { %v228_v12 = vmul.f32 2.0, %v226_v51 }
 0x477   :  { %v230_v60 = vadd.f32 1.0, %v228_v12 }
 0x478   :  { %v206_v53 = vpop.xlane.xlu0 %205 }
 0x479   :  { %v223_v54 = vpop.xlane.xlu1 %222  ;;  %v245_v55 = vmul.f32 %v234_v52, %v206_v53  ;;  %v239_v8 = vsub.f32 1.0, %v206_v53  ;;  %v236_v2 = vadd.f32 %v234_v52, %v230_v60 }
 0x47a   :  { %v227_v0 = vmul.f32 2.0, %v223_v54 }
 0x47b   :  { %v241_v34 = vmul.f32 %v239_v8, %v218_v37  ;;  %v238_v16 = vmul.f32 %v236_v2, %v201_v35 }
 0x47c   :  { %v229_v56 = vadd.f32 1.0, %v227_v0 }
 0x47d   :  { %v209_v57 = vpop.xlane.xlu1 %208 }
 0x47e   :  { %v247_v63 = vadd.f32 %v245_v55, %v229_v56  ;;  %v246_v1 = vmul.f32 %v234_v52, %v209_v57  ;;  %v235_v32 = vadd.f32 %v234_v52, %v229_v56  ;;  %v240_v58 = vsub.f32 1.0, %v209_v57 }
 0x480   :  { %v249_v3 = vmax.f32 %v247_v63, 1e-15  ;;  %v248_v4 = vadd.f32 %v246_v1, %v230_v60  ;;  %v237_v7 = vmul.f32 %v235_v32, %v200_v13  ;;  %v242_v61 = vmul.f32 %v240_v58, %v218_v37 }
 0x482   :  { %801 = vrcp.f32 %v249_v3  ;;  %v250_v5 = vmax.f32 %v248_v4, 1e-15  ;;  %v243_v17 = vadd.f32 %v241_v34, %v237_v7  ;;  %v244_v62 = vadd.f32 %v242_v61, %v238_v16 }
 0x484   :  { %803 = vrcp.f32 %v250_v5 }
 0x48c   :  { %v802_v18 = vpop.eup %801 }
 0x48d   :  { %v1299_v14 = vmul.f32 %v802_v18, %v243_v17 }
 0x48e   :  { %v804_v21 = vpop.eup %803 }
 0x48f   :  { %v255_v22 = vmul.f32 %v1299_v14, %v1299_v14  ;;  %v1303_v25 = vmul.f32 %v804_v21, %v244_v62 }
 0x491   :  { %v257_v38 = vsel %vm63_vm1, %v255_v22, 0.0  ;;  %v256_v26 = vmul.f32 %v1303_v25, %v1303_v25 }
 0x492   :  { %258 = vadd.xlane.f32.xlu0 %v257_v38 }
 0x493   :  { %v260_v30 = vsel %vm63_vm1, %v256_v26, 0.0 }
 0x494   :  { %261 = vadd.xlane.f32.xlu1 %v260_v30 }
 0x4c1   :  { %v437_v27 = vpop.xlane.xlu0 %436 }
 0x4c2   :  { %805 = vrsqrt.f32 %v437_v27  ;;  %vm443_vm6 = vcmp.eq.f32.partialorder %v437_v27, inf  ;;  %v446_v36 = vand.u32 2147483648, %v437_v27  ;;  %vm445_vm7 = vcmp.eq.f32.partialorder %v437_v27, 0.0 }
 0x4c5   :  { %v440_v29 = vpop.xlane.xlu1 %439  ;;  %v621_v33 = vpop.xlane.xlu0 %620 }
 0x4c6   :  { %807 = vrsqrt.f32 %v440_v29  ;;  %vm450_vm8 = vcmp.eq.f32.partialorder %v440_v29, inf  ;;  %vm452_vm9 = vcmp.eq.f32.partialorder %v440_v29, 0.0  ;;  %v453_v42 = vand.u32 2147483648, %v440_v29 }
 0x4c7   :  { %809 = vrsqrt.f32 %v621_v33  ;;  %vm627_vm10 = vcmp.eq.f32.partialorder %v621_v33, inf  ;;  %v630_v43 = vand.u32 2147483648, %v621_v33  ;;  %vm629_vm11 = vcmp.eq.f32.partialorder %v621_v33, 0.0 }
 0x4c9   :  { %v624_v39 = vpop.xlane.xlu1 %623 }
 0x4ca   :  { %811 = vrsqrt.f32 %v624_v39  ;;  %vm634_vm12 = vcmp.eq.f32.partialorder %v624_v39, inf  ;;  %v637_v47 = vand.u32 2147483648, %v624_v39  ;;  %vm636_vm13 = vcmp.eq.f32.partialorder %v624_v39, 0.0 }
 0x4cc   :  { %v806_v19 = vpop.eup %805 }
 0x4cd   :  { %v442_v35 = vmul.f32 %v806_v19, %v437_v27 }
 0x4cf   :  { %v444_v23 = vsel %vm443_vm6, %v437_v27, %v442_v35 }
 0x4d0   :  { %v808_v37 = vpop.eup %807  ;;  %v447_v40 = vsel %vm445_vm7, %v446_v36, %v444_v23 }
 0x4d1   :  { %v810_v13 = vpop.eup %809  ;;  %v449_v41 = vmul.f32 %v808_v37, %v440_v29  ;;  %v455_v10 = vmax.f32 %v447_v40, 1e-15 }
 0x4d2   :  { %v626_v28 = vmul.f32 %v810_v13, %v621_v33 }
 0x4d3   :  { %813 = vrcp.f32 %v455_v10  ;;  %v451_v59 = vsel %vm450_vm8, %v440_v29, %v449_v41  ;;  %vm457_vm14 = vcmp.gt.f32.partialorder %v455_v10, 0.99999 }
 0x4d4   :  { %v812_v24 = vpop.eup %811  ;;  %v454_v31 = vsel %vm452_vm9, %v453_v42, %v451_v59  ;;  %v628_v44 = vsel %vm627_vm10, %v621_v33, %v626_v28 }
 0x4d5   :  { %v633_v6 = vmul.f32 %v812_v24, %v624_v39  ;;  %v456_v45 = vmax.f32 %v454_v31, 1e-15  ;;  %v631_v46 = vsel %vm629_vm11, %v630_v43, %v628_v44 }
 0x4d6   :  { %v639_v48 = vmax.f32 %v631_v46, 1e-15 }
 0x4d7   :  { %815 = vrcp.f32 %v456_v45  ;;  %v635_v49 = vsel %vm634_vm12, %v624_v39, %v633_v6  ;;  %vm458_vm15 = vcmp.gt.f32.partialorder %v456_v45, 0.99999 }
 0x4d8   :  { %v638_v50 = vsel %vm636_vm13, %v637_v47, %v635_v49  ;;  %817 = vrcp.f32 %v639_v48  ;;  %vm641_vm2 = vcmp.gt.f32.partialorder %v639_v48, 0.99999 }
 0x4d9   :  { %v640_v51 = vmax.f32 %v638_v50, 1e-15 }
 0x4db   :  { %819 = vrcp.f32 %v640_v51  ;;  %vm642_vm0 = vcmp.gt.f32.partialorder %v640_v51, 0.99999 }
 0x4dd   :  { %v814_v52 = vpop.eup %813 }
 0x4de   :  { %v460_v53 = vmul.f32 0.99999, %v814_v52 }
 0x4e0   :  { %v463_v54 = vmul.f32 %v460_v53, %v1253_v15 }
 0x4e1   :  { %v816_v12 = vpop.eup %815 }
 0x4e2   :  { %v818_v0 = vpop.eup %817  ;;  %v469_v55 = vsel %vm457_vm14, %v463_v54, %v1253_v15  ;;  %v462_v56 = vmul.f32 0.99999, %v816_v12 }
 0x4e3   :  { %473 = vrot.lane.b32.xlu0 %v469_v55, %s977_s29  ;;  %v644_v57 = vmul.f32 0.99999, %v818_v0 }
 0x4e4   :  { %v464_v60 = vmul.f32 %v462_v56, %v1263_v11 }
 0x4e5   :  { %v820_v63 = vpop.eup %819  ;;  %v647_v4 = vmul.f32 %v644_v57, %v1261_v9 }
 0x4e6   :  { %v470_v1 = vsel %vm458_vm15, %v464_v60, %v1263_v11  ;;  %v646_v3 = vmul.f32 0.99999, %v820_v63 }
 0x4e7   :  { %475 = vrot.lane.b32.xlu1 %v470_v1, %s977_s29  ;;  %v653_v32 = vsel %vm641_vm2, %v647_v4, %v1261_v9 }
 0x4e8   :  { %v648_v5 = vmul.f32 %v646_v3, %v1272_v20 }
 0x4ea   :  { %v654_v15 = vsel %vm642_vm0, %v648_v5, %v1272_v20 }
 0x4eb   :  { %659 = vrot.lane.b32.xlu0 %v654_v15, %s976_s2  ;;  %657 = vrot.lane.b32.xlu1 %v653_v32, %s976_s2 }
 0x51f   :  { %v259_v8 = vpop.xlane.xlu0 %258 }
 0x520   :  { %821 = vrsqrt.f32 %v259_v8  ;;  %vm265_vm3 = vcmp.eq.f32.partialorder %v259_v8, inf  ;;  %v268_v34 = vand.u32 2147483648, %v259_v8  ;;  %vm267_vm4 = vcmp.eq.f32.partialorder %v259_v8, 0.0 }
 0x521   :  { %v262_v11 = vpop.xlane.xlu1 %261 }
 0x522   :  { %823 = vrsqrt.f32 %v262_v11  ;;  %vm272_vm5 = vcmp.eq.f32.partialorder %v262_v11, inf  ;;  %v275_v20 = vand.u32 2147483648, %v262_v11  ;;  %vm274_vm6 = vcmp.eq.f32.partialorder %v262_v11, 0.0 }
 0x52a   :  { %v822_v58 = vpop.eup %821 }
 0x52b   :  { %v264_v2 = vmul.f32 %v822_v58, %v259_v8 }
 0x52c   :  { %v824_v7 = vpop.eup %823 }
 0x52d   :  { %v266_v61 = vsel %vm265_vm3, %v259_v8, %v264_v2  ;;  %v271_v16 = vmul.f32 %v824_v7, %v262_v11 }
 0x52e   :  { %v269_v17 = vsel %vm267_vm4, %v268_v34, %v266_v61 }
 0x52f   :  { %v273_v9 = vsel %vm272_vm5, %v262_v11, %v271_v16  ;;  %v277_v18 = vmax.f32 %v269_v17, 1e-15 }
 0x530   :  { %v276_v62 = vsel %vm274_vm6, %v275_v20, %v273_v9 }
 0x531   :  { %v278_v21 = vmax.f32 %v276_v62, 1e-15  ;;  %825 = vrcp.f32 %v277_v18  ;;  %vm279_vm7 = vcmp.gt.f32.partialorder %v277_v18, 0.99999 }
 0x533   :  { %827 = vrcp.f32 %v278_v21  ;;  %vm280_vm8 = vcmp.gt.f32.partialorder %v278_v21, 0.99999 }
 0x53b   :  { %v826_v22 = vpop.eup %825 }
 0x53c   :  { %v282_v38 = vmul.f32 0.99999, %v826_v22 }
 0x53d   :  { %v828_v26 = vpop.eup %827 }
 0x53e   :  { %v284_v30 = vmul.f32 0.99999, %v828_v26  ;;  %v285_v27 = vmul.f32 %v282_v38, %v1299_v14 }
 0x540   :  { %v286_v29 = vmul.f32 %v284_v30, %v1303_v25  ;;  %v291_v33 = vsel %vm279_vm7, %v285_v27, %v1299_v14 }
 0x541   :  { %293 = vst.msk [vmem:[#allocation8] sm:$0xff] %vm63_vm1, %v291_v33 }
 0x542   :  { %v292_v39 = vsel %vm280_vm8, %v286_v29, %v1303_v25 }
 0x543   :  { %294 = vst.msk [vmem:[#allocation8 + $0x8] sm:$0xff] %vm63_vm1, %v292_v39 }
 0x544   :  { %906 = shalt.err (!%p903_p0)
}
 0x545   :  { %s907_s13 = scalar_lea.hbm %s1379_s3, 256 }
 0x546   :  { %p908_p1 = scmp.ne.s32.totalorder %s1379_s3, %s907_s13  ;;  %p911_p2 = scmp.lt.u32.totalorder %s907_s13, %s1379_s3 }
 0x548   :  { %p913_p3 = pnand %p911_p2, %p908_p1 }
 0x54a   :  { %916 = shalt.err (!%p913_p3)
}
 0x54b   :  { %676 = dma.vmem_to_hbm [thread:$0]  %s671_s9, 256, %s1379_s3, [#allocation4], %s971_s30, %s971_s30, %s972_s6  }
 0x54c   :  { %s980_s19 = smov [#allocation9]   ;;  %s981_s22 = smov [#allocation11]  }
 0x54d   :  { %s682_s20 = sshll.u32 %s980_s19, 4  ;;  %s694_s23 = sshll.u32 %s981_s22, 4  ;;  %s683_s20 = int_to_ptr.vmem [resolvable:$true] %s682_s20  ;;  %s695_s23 = int_to_ptr.vmem [resolvable:$true] %s694_s23 }
 0x54e   :  { %s917_s24 = scalar_lea.vmem %s683_s20, 256  ;;  %p922_p5 = scmp.lt.s32.totalorder %s683_s20, %s683_s20 }
 0x54f   :  { %p918_p4 = scmp.ne.s32.totalorder %s683_s20, %s917_s24  ;;  %p923_p6 = scmp.lt.s32.totalorder %s917_s24, %s917_s24 }
 0x551   :  { %p924_p7 = por %p923_p6, %p922_p5 }
 0x553   :  { %p925_p8 = pnand %p924_p7, %p918_p4 }
 0x555   :  { %v474_v14 = vpop.permute.xlu0 %473 }
 0x556   :  { %479 = vst.msk [vmem:[#allocation9] sm:$0xff] %vm63_vm1, %v474_v14 }
 0x559   :  { %v476_v25 = vpop.permute.xlu1 %475 }
 0x55a   :  { %480 = vst.msk [vmem:[#allocation9 + $0x8] sm:$0xff] %vm63_vm1, %v476_v25 }
 0x55b   :  { %928 = shalt.err (!%p925_p8)
}
 0x55c   :  { %s929_s26 = scalar_lea.hbm %s1380_s4, 256 }
 0x55d   :  { %p930_p9 = scmp.ne.s32.totalorder %s1380_s4, %s929_s26  ;;  %p933_p10 = scmp.lt.u32.totalorder %s929_s26, %s1380_s4 }
 0x55f   :  { %p935_p11 = pnand %p933_p10, %p930_p9 }
 0x561   :  { %938 = shalt.err (!%p935_p11)
}
 0x562   :  { %688 = dma.vmem_to_hbm [thread:$0]  %s683_s20, 256, %s1380_s4, [#allocation10], %s971_s30, %s971_s30, %s972_s6   ;;  %v658_v19 = vpop.permute.xlu1 %657  ;;  %v660_v35 = vpop.permute.xlu0 %659 }
 0x563   :  { %663 = vst.msk [vmem:[#allocation11] sm:$0xff] %vm63_vm1, %v658_v19  ;;  %664 = vst.msk [vmem:[#allocation11 + $0x8] sm:$0xff] %vm63_vm1, %v660_v35  ;;  %s939_s7 = scalar_lea.vmem %s695_s23, 256  ;;  %p944_p13 = scmp.lt.s32.totalorder %s695_s23, %s695_s23 }
 0x564   :  { %p940_p12 = scmp.ne.s32.totalorder %s695_s23, %s939_s7  ;;  %p945_p0 = scmp.lt.s32.totalorder %s939_s7, %s939_s7 }
 0x566   :  { %p946_p1 = por %p945_p0, %p944_p13 }
 0x568   :  { %p947_p2 = pnand %p946_p1, %p940_p12 }
 0x56a   :  { %950 = shalt.err (!%p947_p2)
}
 0x56b   :  { %s951_s10 = scalar_lea.hbm %s1381_s5, 256 }
 0x56c   :  { %p952_p3 = scmp.ne.s32.totalorder %s1381_s5, %s951_s10  ;;  %p955_p4 = scmp.lt.u32.totalorder %s951_s10, %s1381_s5 }
 0x56e   :  { %p957_p5 = pnand %p955_p4, %p952_p3 }
 0x570   :  { %960 = shalt.err (!%p957_p5)
}
 0x571   :  { %700 = dma.vmem_to_hbm [thread:$0]  %s695_s23, 256, %s1381_s5, [#allocation10], %s971_s30, %s971_s30, %s972_s6  }
 0x572   :  { %965 = dma.done.wait [#allocation4], 256  }
 0x573   :  { %966 = vsyncadd [#allocation4], 4294967040 }
 0x574   :  { %967 = dma.done.wait [#allocation10], 512  }
 0x575   :  { %968 = vsyncadd [#allocation10], 4294966784 }
 0x576   :  { %710 = vsyncpa [#allocation3], 1 }
 0x577   :  { %711 = vsyncpa [#allocation6], 1 }
 0x578   :  { %712 = vsyncpa [#allocation4], 1 }
 0x579   :  { %713 = vsyncpa [#allocation10], 1 }

// kernel: hyperbolic_transformer_forward.15
= control target key start
LH: loop header
LB: loop body
LE: loop exit
PB: predicated region body
PF: predicated region fallthrough
CT: control target
= control target key end

     0   :  { %s3295_s0 = inlined_call_operand.hbm [shape: f32[2,8,32], index: 0, kind: input, shape index: {}]   ;;  %s3296_s1 = inlined_call_operand.hbm [shape: f32[2,8,32], index: 1, kind: input, shape index: {}]   ;;  %s3297_s2 = inlined_call_operand.hbm [shape: f32[2,8,32], index: 2, kind: input, shape index: {}]   ;;  %s3298_s3 = inlined_call_operand.hbm [shape: f32[2,8,32], index: 3, kind: output, shape index: {0}]   ;;  %s3299_s4 = inlined_call_operand.hbm [shape: f32[2,4,8,8], index: 4, kind: output, shape index: {1}]  }
   0x1   :  { %3308 = sst [smem:[#allocation19_spill]] %s3296_s1 }
   0x2   :  { %10 = vsyncpa [#allocation3], 0 }
   0x3   :  { %12 = vsyncpa [#allocation3 + $0x1], 0 }
   0x4   :  { %13 = vsyncpa [#allocation6], 0 }
   0x5   :  { %15 = vsyncpa [#allocation6 + $0x1], 0 }
   0x6   :  { %16 = vsyncpa [#allocation4], 0 }
   0x7   :  { %18 = vsyncpa [#allocation4 + $0x1], 0 }
   0x8   :  { %19 = vsyncpa [#allocation10], 0 }
   0x9   :  { %21 = vsyncpa [#allocation10 + $0x1], 0  ;;  %s2802_s15 = smov 0   ;;  %s2804_s16 = smov 0  }
   0xa   :  { %s2806_s17 = smov 0   ;;  %s2808_s18 = smov 0  }
   0xb   :  { %s2810_s19 = smov 0   ;;  %s2812_s20 = smov 0  }
   0xc LB: > { %3309 = sst [smem:[#allocation15_spill]] %s2755_s19  ;;  %s2833_s21 = sadd.s32 4294967295, %s2759_s20   ;;  %s2759_s20 = sphi %s2812_s20, %s27_s20   ;;  %s2755_s19 = sphi %s2810_s19, %s3333_s19   ;;  %s2751_s18 = sphi %s2808_s18, %s3332_s18   ;;  %s2747_s17 = sphi %s2806_s17, %s3336_s17   ;;  %s2743_s16 = sphi %s2804_s16, %s3335_s16   ;;  %s2739_s15 = sphi %s2802_s15, %s3334_s15  }
   0xd   : > { %3310 = sst [smem:[#allocation16_spill]] %s2759_s20  ;;  %s2187_s22 = sadd.s32 4294967294, %s2759_s20  }
   0xe   : > { %s39_s23 = sadd.s32 1, %s2755_s19  ;;  %s48_s24 = sadd.s32 1, %s2747_s17 }
   0xf   : > { %p41_p0 = scmp.ge.s32.totalorder %s39_s23, 2  ;;  %p55_p1 = scmp.ne.s32.totalorder %s2747_s17, %s2743_s16 }
  0x10   : > { %p56_p2 = scmp.eq.s32.totalorder %s2759_s20, 0  ;;  %p61_p3 = scmp.ne.s32.totalorder %s2743_s16, %s2739_s15 }
  0x11   : > { %s3338_s23 = smov (%p41_p0, %s39_s23), 0  ;;  %p62_p5 = scmp.eq.s32.totalorder %s2833_s21, 0 }
  0x12   : > { %3311 = sst [smem:[#allocation17_spill]] %s3338_s23  ;;  %p2845_p4 = por %p56_p2, %p55_p1 }
  0x13   : > { %s43_s26 = ssub.s32 %s2755_s19, %s3338_s23  ;;  %p139_p6 = scmp.eq.s32.totalorder %s2833_s21, 1 }
  0x14   : > { %p46_p7 = scmp.eq.s32.totalorder %s43_s26, 0  ;;  %p2853_p8 = por %p62_p5, %p61_p3 }
  0x15   : > { %p2857_p9 = por %p139_p6, %p55_p1  ;;  %p145_p10 = scmp.eq.s32.totalorder %s2187_s22, 1 }
  0x16   : > { %s3313_s27 = scalar_select %p2853_p8, 1, 0 }
  0x17   : > { %s3314_s28 = scalar_select %p2857_p9, 1, 0 }
  0x18   : > { %s2862_s29 = scalar_select %p46_p7, %s2747_s17, %s48_s24  }
  0x19   : > { %p2864_p11 = por %p145_p10, %p61_p3  ;;  %p2384_p13 = scmp.lt.s32.totalorder %s2759_s20, 2 }
  0x1a   : > { %3315 = sst [smem:[#allocation18_spill]] %s2862_s29  ;;  %s3300_s5 = sand.u32 1, %s2747_s17  }
  0x1b   : > { %s3316_s30 = scalar_select %p2864_p11, 1, 0 }
  0x1c   : > { %s2873_s6 = sshll.u32 %s3300_s5, 3  ;;  %s2876_s7 = sshll.u32 %s2755_s19, 7 }
  0x1d   : > { %p2880_p0 = pnand %p2384_p13, %p2845_p4  ;;  %s212_s9 = sand.u32 1, %s2759_s20  }
  0x1e   : > { %s3318_s1 = sld [smem:[#allocation19_spill]]  ;;  %s216_s13 = scalar_lea.vmem [#allocation5], %s2873_s6 }
  0x1f   : > { %s3317_s8 = scalar_select %p2880_p0, 1, 0 }
  0x20   : > { %s223_s14 = sshll.u32 %s216_s13, 4  ;;  %s2896_s22 = scalar_lea.sflag [#allocation6], %s212_s9  ;;  %s2893_s14 = int_to_ptr.vmem [resolvable:$true] %s223_s14 }
  0x21   : > { %p2902_p4 = pneg %p2880_p0 }
  0x24   : > { %s2889_s12 = scalar_lea.hbm %s3318_s1, %s2876_s7  ;;  %s2556_s11 = scalar_lea.hbm %s3318_s1, 256 }
  0x25   : > { %s2551_s24 = scalar_lea.hbm %s2889_s12, 128  ;;  %p2557_p7 = scmp.lt.u32.totalorder %s2889_s12, %s3318_s1 }
  0x26   : > { %p2552_p3 = scmp.ne.s32.totalorder %s2889_s12, %s2551_s24  ;;  %p2558_p10 = scmp.lt.u32.totalorder %s2556_s11, %s2551_s24 }
  0x27   : > { %p2560_p12 = scmp.lt.u32.totalorder %s2551_s24, %s2889_s12 }
  0x28   : > { %p2554_p5 = pnand %p2902_p4, %p2552_p3  ;;  %p2559_p13 = por %p2558_p10, %p2557_p7 }
  0x2a   : > { %p2555_p6 = pneg %p2554_p5  ;;  %p2561_p1 = por %p2560_p12, %p2559_p13 }
  0x2c   : > { %p2562_p2 = pnand %p2561_p1, %p2555_p6 }
  0x2e   : > { %2565 = shalt.err (!%p2562_p2)
}
  0x2f   : > { %s2566_s9 = scalar_lea.vmem %s2893_s14, 128  ;;  %s2761_s26 = smov [#allocation5]  }
  0x30   : > { %p2567_p3 = scmp.ne.s32.totalorder %s2893_s14, %s2566_s9  ;;  %s2571_s10 = sshll.u32 %s2761_s26, 4  ;;  %s2572_s10 = int_to_ptr.vmem [resolvable:$false] %s2571_s10 }
  0x31   : > { %s2573_s5 = scalar_lea.vmem %s2572_s10, 256  ;;  %p2574_p9 = scmp.lt.s32.totalorder %s2893_s14, %s2572_s10 }
  0x32   : > { %p2569_p5 = pnand %p2567_p3, %p2902_p4  ;;  %p2575_p8 = scmp.lt.s32.totalorder %s2573_s5, %s2566_s9 }
  0x34   : > { %p2570_p11 = pneg %p2569_p5  ;;  %p2576_p7 = por %p2575_p8, %p2574_p9 }
  0x36   : > { %p2577_p10 = pnand %p2576_p7, %p2570_p11 }
  0x38   : > { %2580 = shalt.err (!%p2577_p10)
}
  0x39   : > { %2373 = dma.hbm_to_vmem [thread:$0]  (!%p2880_p0), %s2889_s12, 128, %s2893_s14, %s2896_s22  }
  0x3a   : > { %p3320_p12 = scmp.lt.s32.totalorder %s2759_s20, 3  ;;  %p3321_p1 = scmp.ge.s32.totalorder %s2759_s20, 1 }
  0x3b   : > { %s2938_s9 = scalar_lea.hbm %s3295_s0, %s2876_s7  ;;  %s197_s26 = scalar_lea.vmem [#allocation2], %s2873_s6 }
  0x3c   : > { %p2930_p2 = pnand %p3321_p1, %p3320_p12  ;;  %s205_s10 = sshll.u32 %s197_s26, 4  ;;  %s2941_s10 = int_to_ptr.vmem [resolvable:$true] %s205_s10 }
  0x3d   : > { %s2947_s5 = scalar_lea.hbm %s3297_s2, %s2876_s7  ;;  %s3323_s1 = sand.u32 1, %s2747_s17  }
  0x3e   : > { %s3322_s24 = scalar_select %p2930_p2, 1, 0 }
  0x3f   : > { %s194_s23 = scalar_lea.sflag [#allocation3], %s3323_s1  ;;  %s2581_s19 = scalar_lea.hbm %s2938_s9, 128 }
  0x40   : > { %p2582_p8 = scmp.ne.s32.totalorder %s2938_s9, %s2581_s19  ;;  %s2586_s29 = scalar_lea.hbm %s3295_s0, 256 }
  0x41   : > { %p2587_p6 = scmp.lt.u32.totalorder %s2938_s9, %s3295_s0  ;;  %p2588_p13 = scmp.lt.u32.totalorder %s2586_s29, %s2581_s19 }
  0x42   : > { %p2584_p9 = pnand %p2582_p8, %p2902_p4  ;;  %p2590_p5 = scmp.lt.u32.totalorder %s2581_s19, %s2938_s9 }
  0x43   : > { %p2589_p3 = por %p2588_p13, %p2587_p6 }
  0x44   : > { %p2585_p11 = pneg %p2584_p9 }
  0x45   : > { %p2591_p7 = por %p2590_p5, %p2589_p3 }
  0x47   : > { %p2592_p10 = pnand %p2591_p7, %p2585_p11 }
  0x49   : > { %2595 = shalt.err (!%p2592_p10)
}
  0x4a   : > { %s2596_s1 = scalar_lea.vmem %s2941_s10, 128  ;;  %s2762_s7 = smov [#allocation2]  }
  0x4b   : > { %p2597_p12 = scmp.ne.s32.totalorder %s2941_s10, %s2596_s1  ;;  %s2601_s12 = sshll.u32 %s2762_s7, 4  ;;  %s2602_s12 = int_to_ptr.vmem [resolvable:$false] %s2601_s12 }
  0x4c   : > { %s2603_s20 = scalar_lea.vmem %s2602_s12, 256  ;;  %p2604_p9 = scmp.lt.s32.totalorder %s2941_s10, %s2602_s12 }
  0x4d   : > { %p2599_p1 = pnand %p2597_p12, %p2902_p4  ;;  %p2605_p2 = scmp.lt.s32.totalorder %s2603_s20, %s2596_s1 }
  0x4f   : > { %p2600_p8 = pneg %p2599_p1  ;;  %p2606_p6 = por %p2605_p2, %p2604_p9 }
  0x51   : > { %p2607_p13 = pnand %p2606_p6, %p2600_p8 }
  0x53   : > { %2610 = shalt.err (!%p2607_p13)
}
  0x54   : > { %2370 = dma.hbm_to_vmem [thread:$0]  (!%p2880_p0), %s2938_s9, 128, %s2941_s10, %s194_s23  }
  0x55   : > { %s234_s19 = scalar_lea.vmem [#allocation7], %s2873_s6  ;;  %s2611_s14 = scalar_lea.hbm %s2947_s5, 128 }
  0x56   : > { %s241_s29 = sshll.u32 %s234_s19, 4  ;;  %p2612_p11 = scmp.ne.s32.totalorder %s2947_s5, %s2611_s14  ;;  %s242_s29 = int_to_ptr.vmem [resolvable:$true] %s241_s29 }
  0x57   : > { %s2616_s26 = scalar_lea.hbm %s3297_s2, 256  ;;  %p2617_p5 = scmp.lt.u32.totalorder %s2947_s5, %s3297_s2 }
  0x58   : > { %p2614_p2 = pnand %p2612_p11, %p2902_p4  ;;  %p2618_p7 = scmp.lt.u32.totalorder %s2616_s26, %s2611_s14 }
  0x59   : > { %p2620_p12 = scmp.lt.u32.totalorder %s2611_s14, %s2947_s5 }
  0x5a   : > { %p2615_p3 = pneg %p2614_p2  ;;  %p2619_p10 = por %p2618_p7, %p2617_p5 }
  0x5c   : > { %p2621_p1 = por %p2620_p12, %p2619_p10 }
  0x5e   : > { %p2622_p8 = pnand %p2621_p1, %p2615_p3 }
  0x60   : > { %2625 = shalt.err (!%p2622_p8)
}
  0x61   : > { %s2626_s23 = scalar_lea.vmem %s242_s29, 128  ;;  %s2763_s6 = smov [#allocation7]  }
  0x62   : > { %p2627_p9 = scmp.ne.s32.totalorder %s242_s29, %s2626_s23  ;;  %s2631_s9 = sshll.u32 %s2763_s6, 4  ;;  %s2632_s9 = int_to_ptr.vmem [resolvable:$false] %s2631_s9 }
  0x63   : > { %s2633_s10 = scalar_lea.vmem %s2632_s9, 256  ;;  %p2634_p11 = scmp.lt.s32.totalorder %s242_s29, %s2632_s9 }
  0x64   : > { %p2629_p6 = pnand %p2627_p9, %p2902_p4  ;;  %p2635_p2 = scmp.lt.s32.totalorder %s2633_s10, %s2626_s23 }
  0x66   : > { %p2630_p13 = pneg %p2629_p6  ;;  %p2636_p0 = por %p2635_p2, %p2634_p11 }
  0x68   : > { %p2637_p5 = pnand %p2636_p0, %p2630_p13 }
  0x6a   : > { %2640 = shalt.err (!%p2637_p5)
}
  0x6b   : > { %p3324_p7 = scmp.ne.s32.totalorder %s3317_s8, 0  ;;  %p3325_p3 = scmp.ne.s32.totalorder %s3322_s24, 0 }
  0x6c   : > { %s2994_s25 = sand.u32 (!%p3325_p3), 1, %s2743_s16   ;;  %p3326_p0 = scmp.ne.s32.totalorder (!%p3325_p3), %s3313_s27, 0 }
  0x6d   : > { %2376 = dma.hbm_to_vmem [thread:$0]  (!%p3324_p7), %s2947_s5, 128, %s242_s29, %s2896_s22  }
  0x6e   : > { %250 = sbr.rel (%p3325_p3) target bundleno = 3177 (0xc69), region = 32  ;;  %s2997_s12 = sshll.u32 (!%p3325_p3), %s2994_s25, 3 }
  0x6f   : > { %s253_s20 = scalar_lea.sflag (!%p3325_p3), [#allocation3], %s2994_s25  ;;  %s256_s19 = scalar_lea.vmem (!%p3325_p3), [#allocation2], %s2997_s12 }
  0x75   : > { %2722 = dma.done.wait (%p3326_p0), %s253_s20, 128  }
  0x76   : > { %2724 = vsyncadd (%p3326_p0), %s253_s20, 4294967168  ;;  %s261_s8 = sand.u32 1, %s2833_s21   ;;  %s265_s24 = scalar_lea.vmem [#allocation5], %s2997_s12 }
  0x77   : > { %s262_s22 = scalar_lea.sflag [#allocation6], %s261_s8 }
  0x78   : > { %2726 = dma.done.wait (%p3326_p0), %s262_s22, 256  }
  0x79   : > { %2728 = vsyncadd (%p3326_p0), %s262_s22, 4294967040  ;;  %v2764_v0 = vmov 0.0   ;;  %vm2765_vm0 = vmmov 0   ;;  %v2766_v1 = vmov 1.0   ;;  %v3019_v2 = vld [vmem:[%s256_s19] sm:$0xff]  ;;  %vm318_vm1 = vcmask 64512  }
  0x7a   : > { %2277 = vmatprep.subr.mxu0 %v2764_v0  ;;  %2279 = vmatprep.mubr.msk.f32.mxu0 %vm2765_vm0, %v2764_v0  ;;  %v3021_v3 = vld [vmem:[%s265_s24] sm:$0xff]  ;;  %v3025_v4 = vmul.f32 %v3019_v2, %v3019_v2  ;;  %v2767_v6 = vmov 0   ;;  %v547_v7 = vlaneseq  ;;  %s274_s21 = scalar_lea.vmem [#allocation7], %s2997_s12  ;;  %s2768_s27 = smov 120  }
  0x7b   : > { %2278 = vmatpush3.msra.mxu0 %v2766_v1  ;;  %2282 = vmatprep.subr.mxu1 %v2764_v0  ;;  %v3029_v5 = vmul.f32 %v3021_v3, %v3021_v3  ;;  %v3055_v22 = vld [vmem:[%s274_s21] sm:$0xff]  ;;  %s2201_s5 = sshll.u32 %s2994_s25, 5  ;;  %s2769_s14 = smov 112  }
  0x7c   : > { %2287 = vmatprep.subr.mxu0 %v2764_v0  ;;  %2284 = vmatprep.mubr.msk.f32.mxu1 %vm2765_vm0, %v2764_v0  ;;  %v548_v8 = vshrl.u32 %v547_v7, 7  ;;  %v3059_v23 = vmul.f32 %v3055_v22, %v3055_v22  ;;  %s3088_s29 = scalar_lea.vmem [#allocation9], %s2201_s5  ;;  %s2770_s11 = smov 104  }
  0x7d   : > { %2280 = vmatmul.mubr.msk.f32.vlgmr.msra.gmra.mrb[0].mxu0 %vm318_vm1, %v3025_v4  ;;  %2283 = vmatpush3.xpose.msk.msra.mxu1 %vm318_vm1, %v3029_v5  ;;  %s2771_s13 = smov 16   ;;  %s2772_s26 = smov 8  }
  0x7e   : > { %2289 = vmatprep.mubr.msk.f32.mxu0 %vm2765_vm0, %v2764_v0  ;;  %2292 = vmatprep.subr.mxu1 %v2764_v0  ;;  %v3051_v12 = vsub.s32 0, %v548_v8  ;;  %v615_v24 = vsel %vm318_vm1, %v3059_v23, 0.0  ;;  %s2244_s1 = sshll.u32 %s2751_s18, 9  ;;  %s2026_s7 = sshll.u32 %s3088_s29, 4  ;;  %s3211_s7 = int_to_ptr.vmem [resolvable:$true] %s2026_s7 }
  0x7f   : > { %2445 = vset.pattern.permute.xlu0 %v2767_v6  ;;  %2446 = vset.pattern.permute.xlu1 %v2767_v6  ;;  %s3209_s9 = scalar_lea.hbm %s3299_s4, %s2244_s1  ;;  %s1998_s10 = scalar_lea.sflag [#allocation10], %s2994_s25 }
  0x80   : > { %2285 = vmatmul.mubr.msk.f32.vlgmr.msra.gmra.mrb[0].mxu1 %vm318_vm1, %v2766_v1  ;;  %s2641_s20 = scalar_lea.vmem %s3211_s7, 512  ;;  %p3327_p10 = scmp.ne.s32.totalorder %s3314_s28, 0 }
  0x81   : > { %2294 = vmatprep.mubr.msk.f32.mxu1 %vm2765_vm0, %v2764_v0  ;;  %p2642_p4 = scmp.ne.s32.totalorder %s3211_s7, %s2641_s20  ;;  %s2773_s19 = smov [#allocation9]  }
  0x82   : > { %2288 = vmatpush3.xpose.msk.msra.mxu0 %vm318_vm1, %v3021_v3  ;;  %s2645_s8 = sshll.u32 %s2773_s19, 4  ;;  %s2646_s8 = int_to_ptr.vmem [resolvable:$false] %s2645_s8 }
  0x83   : > { %2297 = vmatprep.subr.mxu0 %v2764_v0  ;;  %p2643_p12 = pnand %p2642_p4, %p3327_p10  ;;  %s2647_s22 = scalar_lea.vmem %s2646_s8, 1024 }
  0x84   : > { %p2648_p8 = scmp.lt.s32.totalorder %s3211_s7, %s2646_s8  ;;  %p2649_p9 = scmp.lt.s32.totalorder %s2647_s22, %s2641_s20 }
  0x85   : > { %2290 = vmatmul.mubr.msk.f32.vlgmr.msra.gmra.mrb[2].mxu0 %vm318_vm1, %v3019_v2  ;;  %p2644_p1 = pneg %p2643_p12 }
  0x86   : > { %2298 = vmatpush3.msra.mxu0 %v2766_v1  ;;  %2299 = vmatprep.mubr.msk.f32.mxu0 %vm2765_vm0, %v2764_v0  ;;  %p2650_p6 = por %p2649_p9, %p2648_p8 }
  0x87   : > { %2307 = vmatprep.subr.mxu0 %v2764_v0 }
  0x88   : > { %p2651_p13 = pnand %p2650_p6, %p2644_p1 }
 0x150   : > { %v388_v9 = vpop.f32.mrb[0].mxu0 }
 0x151   : > { %v2281_v10 = vpop.f32.mrb[1].mxu0  ;;  %v552_v11 = vsub.f32 1.0, %v388_v9 }
 0x153   : > { %566 = vperm.xlu0 %2445, %v552_v11   ;;  %v572_v13 = vmul.f32 %v552_v11, %v552_v11  ;;  %v465_v14 = vpop.f32.mrb[0].mxu1 }
 0x154   : > { %v2286_v16 = vpop.f32.mrb[1].mxu1  ;;  %v550_v18 = vrot.slane %v465_v14, %v3051_v12 }
 0x155   : > { %575 = vperm.xlu1 %2446, %v572_v13  }
 0x157   : > { %555 = vperm.xlu0 %2445, %v388_v9  }
 0x158   : > { %v541_v15 = vpop.f32.mrb[2].mxu0 }
 0x159   : > { %v545_v17 = vmul.f32 2.0, %v541_v15  ;;  %v2291_v19 = vpop.f32.mrb[3].mxu0 }
 0x15b   : > { %v546_v20 = vsub.f32 1.0, %v545_v17 }
 0x15d   : > { %v551_v21 = vadd.f32 %v550_v18, %v546_v20 }
 0x15f   : > { %v563_v25 = vmul.f32 2.0, %v551_v21  ;;  %v561_v29 = vmul.f32 %v551_v21, %v551_v21 }
 0x176   : > { %616 = vadd.xlane.f32.xlu0 %v615_v24 }
 0x18c   : > { %728 = vrot.lane.b32.xlu0 %v3025_v4, %s2768_s27 }
 0x190   : > { %802 = vrot.lane.b32.xlu0 %v3029_v5, %s2768_s27 }
 0x1d2   : > { %v567_v26 = vpop.permute.xlu0 %566 }
 0x1d3   : > { %v569_v27 = vmul.f32 %v567_v26, %v563_v25 }
 0x1d4   : > { %v576_v30 = vpop.permute.xlu1 %575 }
 0x1d5   : > { %v570_v28 = vmul.f32 %v569_v27, %v541_v15  ;;  %v578_v34 = vmul.f32 %v576_v30, %v550_v18 }
 0x1d6   : > { %v556_v31 = vpop.permute.xlu0 %555 }
 0x1d7   : > { %v558_v32 = vmul.f32 %v556_v31, %v550_v18  ;;  %v562_v33 = vmul.f32 %v561_v29, %v556_v31 }
 0x1d9   : > { %v559_v35 = vadd.f32 %v558_v32, %v546_v20  ;;  %v571_v36 = vsub.f32 %v562_v33, %v570_v28 }
 0x1db   : > { %v579_v37 = vadd.f32 %v578_v34, %v571_v36  ;;  %v560_v39 = vmax.f32 %v559_v35, 1e-15 }
 0x1dd   : > { %v580_v38 = vmax.f32 %v579_v37, 0.0 }
 0x1df   : > { %2447 = vrsqrt.f32 %v580_v38  ;;  %vm583_vm2 = vcmp.eq.f32.partialorder %v580_v38, inf  ;;  %v586_v42 = vand.u32 2147483648, %v580_v38  ;;  %vm585_vm3 = vcmp.eq.f32.partialorder %v580_v38, 0.0 }
 0x1e0   : > { %2449 = vrcp.f32 %v560_v39 }
 0x1e9   : > { %v2448_v40 = vpop.eup %2447 }
 0x1ea   : > { %v582_v41 = vmul.f32 %v2448_v40, %v580_v38  ;;  %v2450_v44 = vpop.eup %2449 }
 0x1ec   : > { %v584_v43 = vsel %vm583_vm2, %v580_v38, %v582_v41 }
 0x1ed   : > { %v587_v45 = vsel %vm585_vm3, %v586_v42, %v584_v43 }
 0x1ee   : > { %v589_v46 = vmul.f32 %v2450_v44, %v587_v45 }
 0x1f0   : > { %v2207_v47 = vclamps-f32 %v589_v46, 0.999999 }
 0x1f2   : > { %v593_v48 = vsub.f32 1.0, %v2207_v47  ;;  %v592_v49 = vadd.f32 1.0, %v2207_v47 }
 0x1f4   : > { %2451 = vrcp.f32 %v593_v48 }
 0x1fe   : > { %v2452_v50 = vpop.eup %2451 }
 0x1ff   : > { %v595_v51 = vmul.f32 %v2452_v50, %v592_v49 }
 0x201   : > { %2453 = vlog2.f32 %v595_v51 }
 0x203   : > { %v617_v52 = vpop.xlane.xlu0 %616 }
 0x204   : > { %2455 = vrsqrt.f32 %v617_v52  ;;  %vm620_vm4 = vcmp.eq.f32.partialorder %v617_v52, inf  ;;  %v623_v63 = vand.u32 2147483648, %v617_v52  ;;  %vm622_vm5 = vcmp.eq.f32.partialorder %v617_v52, 0.0 }
 0x207   : > { %v729_v53 = vpop.permute.xlu0 %728 }
 0x208   : > { %2300 = vmatmul.mubr.msk.f32.vlgmr.msra.gmra.mrb[4].mxu0 %vm318_vm1, %v729_v53 }
 0x209   : > { %2309 = vmatprep.mubr.msk.f32.mxu0 %vm2765_vm0, %v2764_v0 }
 0x20b   : > { %v2454_v54 = vpop.eup %2453  ;;  %v803_v37 = vpop.permute.xlu0 %802 }
 0x20c   : > { %v597_v55 = vmul.f32 0.6931472, %v2454_v54 }
 0x20e   : > { %v598_v56 = vmul.f32 0.5, %v597_v55  ;;  %v2456_v61 = vpop.eup %2455 }
 0x20f   : > { %v619_v62 = vmul.f32 %v2456_v61, %v617_v52 }
 0x210   : > { %v599_v57 = vmul.f32 2.0, %v598_v56 }
 0x211   : > { %v621_v6 = vsel %vm620_vm4, %v617_v52, %v619_v62 }
 0x212   : > { %v600_v58 = vsub.f32 0.0, %v599_v57  ;;  %v624_v7 = vsel %vm622_vm5, %v623_v63, %v621_v6 }
 0x213   : > { %v625_v8 = vmax.f32 %v624_v7, 1e-15 }
 0x214   : > { %v601_v59 = vmul.f32 0.35355338, %v600_v58 }
 0x215   : > { %v2208_v9 = vclamps-f32 %v625_v8, 0.999999 }
 0x216   : > { %v602_v60 = vsel %vm318_vm1, %v601_v59, -inf }
 0x217   : > { %603 = vmax.xlane.f32.xlu1 %v602_v60  ;;  %v629_v10 = vsub.f32 1.0, %v2208_v9  ;;  %v628_v13 = vadd.f32 1.0, %v2208_v9 }
 0x219   : > { %2457 = vrcp.f32 %v629_v10 }
 0x223   : > { %v2458_v11 = vpop.eup %2457 }
 0x224   : > { %v631_v14 = vmul.f32 %v2458_v11, %v628_v13 }
 0x226   : > { %2459 = vlog2.f32 %v631_v14 }
 0x227   : > { %2461 = vrcp.f32 %v625_v8 }
 0x228   : > { %878 = vrot.lane.b32.xlu1 %v3021_v3, %s2768_s27 }
 0x230   : > { %v2460_v15 = vpop.eup %2459 }
 0x231   : > { %v633_v16 = vmul.f32 0.6931472, %v2460_v15  ;;  %v2462_v18 = vpop.eup %2461 }
 0x233   : > { %v634_v17 = vmul.f32 0.5, %v633_v16 }
 0x235   : > { %v635_v19 = vmul.f32 %v634_v17, %v3055_v22 }
 0x237   : > { %v637_v20 = vmul.f32 %v2462_v18, %v635_v19 }
 0x239   : > { %2293 = vmatpush3.msra.mxu1 %v637_v20 }
 0x23a   : > { %2302 = vmatprep.subr.mxu1 %v2764_v0 }
 0x2a4   : > { %v604_v21 = vpop.xlane.xlu1 %603 }
 0x2a5   : > { %v605_v24 = vsub.f32 %v601_v59, %v604_v21 }
 0x2a7   : > { %v606_v25 = vmul.f32 1.442695, %v605_v24 }
 0x2a8   : > { %v879_v26 = vpop.permute.xlu1 %878 }
 0x2a9   : > { %2463 = vpow2.f32 %v606_v25  ;;  %2308 = vmatpush3.xpose.msk.msra.mxu0 %vm318_vm1, %v879_v26 }
 0x2aa   : > { %2317 = vmatprep.subr.mxu0 %v2764_v0 }
 0x2b3   : > { %v2464_v27 = vpop.eup %2463 }
 0x2b4   : > { %v608_v28 = vsel %vm318_vm1, %v2464_v27, 0.0 }
 0x2b5   : > { %609 = vadd.xlane.f32.xlu1 %v608_v28 }
 0x2c6   : > { %876 = vrot.lane.b32.xlu1 %v3019_v2, %s2768_s27 }
 0x2db   : > { %v798_v29 = vpop.f32.mrb[4].mxu0 }
 0x2dc   : > { %v961_v30 = vsub.f32 1.0, %v798_v29  ;;  %964 = vperm.xlu1 %2446, %v798_v29   ;;  %v2301_v31 = vpop.f32.mrb[5].mxu0 }
 0x2de   : > { %v981_v32 = vmul.f32 %v961_v30, %v961_v30  ;;  %975 = vperm.xlu0 %2445, %v961_v30  }
 0x2e0   : > { %1025 = vrot.lane.b32.xlu1 %v3059_v23, %s2768_s27 }
 0x2e2   : > { %984 = vperm.xlu0 %2445, %v981_v32  }
 0x342   : > { %v610_v33 = vpop.xlane.xlu1 %609 }
 0x343   : > { %2465 = vrcp.f32 %v610_v33 }
 0x346   : > { %v877_v34 = vpop.permute.xlu1 %876 }
 0x347   : > { %2310 = vmatmul.mubr.msk.f32.vlgmr.msra.gmra.mrb[6].mxu0 %vm318_vm1, %v877_v34 }
 0x348   : > { %2318 = vmatpush3.msra.mxu0 %v2766_v1  ;;  %2319 = vmatprep.mubr.msk.f32.mxu0 %vm2765_vm0, %v2764_v0 }
 0x349   : > { %2327 = vmatprep.subr.mxu0 %v2764_v0 }
 0x34d   : > { %v2466_v35 = vpop.eup %2465 }
 0x34e   : > { %v612_v36 = vmul.f32 %v2466_v35, %v2464_v27 }
 0x350   : > { %613 = vst.msk [vmem:[%s3088_s29] sm:$0xff] %vm318_vm1, %v612_v36  ;;  %2295 = vmatmul.mubr.msk.f32.vlgmr.msra.gmra.mrb[2].mxu1 %vm318_vm1, %v612_v36 }
 0x351   : > { %2303 = vmatpush3.xpose.msk.msra.mxu1 %vm318_vm1, %v803_v37  ;;  %2304 = vmatprep.mubr.msk.f32.mxu1 %vm2765_vm0, %v2764_v0 }
 0x352   : > { %2312 = vmatprep.subr.mxu1 %v2764_v0 }
 0x354   : > { %2305 = vmatmul.mubr.msk.f32.vlgmr.msra.gmra.mrb[4].mxu1 %vm318_vm1, %v2766_v1 }
 0x355   : > { %2314 = vmatprep.mubr.msk.f32.mxu1 %vm2765_vm0, %v2764_v0 }
 0x35b   : > { %v965_v38 = vpop.permute.xlu1 %964 }
 0x35d   : > { %v976_v41 = vpop.permute.xlu0 %975 }
 0x35f   : > { %v1026_v39 = vpop.permute.xlu1 %1025 }
 0x360   : > { %v1028_v40 = vsel %vm318_vm1, %v1026_v39, 0.0 }
 0x361   : > { %1029 = vadd.xlane.f32.xlu0 %v1028_v40  ;;  %v985_v42 = vpop.permute.xlu0 %984 }
 0x377   : > { %1150 = vrot.lane.b32.xlu0 %v3025_v4, %s2769_s14 }
 0x37b   : > { %1300 = vrot.lane.b32.xlu0 %v3021_v3, %s2769_s14 }
 0x37f   : > { %1224 = vrot.lane.b32.xlu0 %v3029_v5, %s2769_s14 }
 0x3ee   : > { %v1030_v43 = vpop.xlane.xlu0 %1029 }
 0x3ef   : > { %2467 = vrsqrt.f32 %v1030_v43  ;;  %vm1033_vm6 = vcmp.eq.f32.partialorder %v1030_v43, inf  ;;  %v1036_v11 = vand.u32 2147483648, %v1030_v43  ;;  %vm1035_vm7 = vcmp.eq.f32.partialorder %v1030_v43, 0.0 }
 0x3f2   : > { %v1151_v44 = vpop.permute.xlu0 %1150 }
 0x3f3   : > { %2320 = vmatmul.mubr.msk.f32.vlgmr.msra.gmra.mrb[8].mxu0 %vm318_vm1, %v1151_v44 }
 0x3f4   : > { %2329 = vmatprep.mubr.msk.f32.mxu0 %vm2765_vm0, %v2764_v0 }
 0x3f9   : > { %v2468_v9 = vpop.eup %2467 }
 0x3fa   : > { %v1032_v10 = vmul.f32 %v2468_v9, %v1030_v43 }
 0x3fc   : > { %v1034_v13 = vsel %vm1033_vm6, %v1030_v43, %v1032_v10 }
 0x3fd   : > { %v1037_v16 = vsel %vm1035_vm7, %v1036_v11, %v1034_v13 }
 0x3fe   : > { %v1038_v21 = vmax.f32 %v1037_v16, 1e-15 }
 0x400   : > { %v2217_v27 = vclamps-f32 %v1038_v21, 0.999999 }
 0x402   : > { %v1042_v28 = vsub.f32 1.0, %v2217_v27  ;;  %v1041_v32 = vadd.f32 1.0, %v2217_v27 }
 0x41a   : > { %v950_v45 = vpop.f32.mrb[6].mxu0 }
 0x41b   : > { %v2311_v46 = vpop.f32.mrb[7].mxu0  ;;  %v954_v47 = vmul.f32 2.0, %v950_v45 }
 0x41d   : > { %v955_v50 = vsub.f32 1.0, %v954_v47 }
 0x423   : > { %v3111_v48 = vpop.f32.mrb[2].mxu1 }
 0x424   : > { %v2296_v49 = vpop.f32.mrb[3].mxu1 }
 0x425   : > { %v1301_v49 = vpop.permute.xlu0 %1300 }
 0x426   : > { %2328 = vmatpush3.xpose.msk.msra.mxu0 %vm318_vm1, %v1301_v49 }
 0x427   : > { %v872_v51 = vpop.f32.mrb[4].mxu1  ;;  %2337 = vmatprep.subr.mxu0 %v2764_v0 }
 0x428   : > { %v959_v52 = vrot.slane %v872_v51, %v3051_v12  ;;  %v2306_v53 = vpop.f32.mrb[5].mxu1 }
 0x429   : > { %v1225_v9 = vpop.permute.xlu0 %1224 }
 0x42a   : > { %v960_v54 = vadd.f32 %v959_v52, %v955_v50  ;;  %v967_v55 = vmul.f32 %v965_v38, %v959_v52  ;;  %v987_v56 = vmul.f32 %v985_v42, %v959_v52 }
 0x42c   : > { %v968_v57 = vadd.f32 %v967_v55, %v955_v50  ;;  %v970_v58 = vmul.f32 %v960_v54, %v960_v54  ;;  %v972_v59 = vmul.f32 2.0, %v960_v54 }
 0x42e   : > { %v978_v60 = vmul.f32 %v976_v41, %v972_v59  ;;  %v971_v61 = vmul.f32 %v970_v58, %v965_v38  ;;  %v969_v8 = vmax.f32 %v968_v57, 1e-15 }
 0x430   : > { %v979_v62 = vmul.f32 %v978_v60, %v950_v45 }
 0x432   : > { %v980_v63 = vsub.f32 %v971_v61, %v979_v62 }
 0x434   : > { %v988_v6 = vadd.f32 %v987_v56, %v980_v63 }
 0x436   : > { %v989_v7 = vmax.f32 %v988_v6, 0.0 }
 0x438   : > { %2469 = vrsqrt.f32 %v989_v7  ;;  %vm992_vm8 = vcmp.eq.f32.partialorder %v989_v7, inf  ;;  %v995_v17 = vand.u32 2147483648, %v989_v7  ;;  %vm994_vm9 = vcmp.eq.f32.partialorder %v989_v7, 0.0 }
 0x439   : > { %2471 = vrcp.f32 %v969_v8 }
 0x442   : > { %v2470_v14 = vpop.eup %2469 }
 0x443   : > { %v991_v15 = vmul.f32 %v2470_v14, %v989_v7  ;;  %v2472_v19 = vpop.eup %2471 }
 0x445   : > { %v993_v18 = vsel %vm992_vm8, %v989_v7, %v991_v15 }
 0x446   : > { %v996_v20 = vsel %vm994_vm9, %v995_v17, %v993_v18 }
 0x447   : > { %v998_v24 = vmul.f32 %v2472_v19, %v996_v20 }
 0x449   : > { %v2215_v25 = vclamps-f32 %v998_v24, 0.999999 }
 0x44b   : > { %v1002_v26 = vsub.f32 1.0, %v2215_v25  ;;  %v1001_v29 = vadd.f32 1.0, %v2215_v25 }
 0x44d   : > { %2473 = vrcp.f32 %v1002_v26 }
 0x44e   : > { %2475 = vrcp.f32 %v1042_v28 }
 0x457   : > { %v2474_v30 = vpop.eup %2473 }
 0x458   : > { %v1004_v31 = vmul.f32 %v2474_v30, %v1001_v29  ;;  %v2476_v33 = vpop.eup %2475 }
 0x459   : > { %v1044_v34 = vmul.f32 %v2476_v33, %v1041_v32 }
 0x45a   : > { %2477 = vlog2.f32 %v1004_v31 }
 0x45b   : > { %2479 = vlog2.f32 %v1044_v34 }
 0x45c   : > { %2481 = vrcp.f32 %v1038_v21 }
 0x464   : > { %v2478_v35 = vpop.eup %2477 }
 0x465   : > { %v1006_v36 = vmul.f32 0.6931472, %v2478_v35  ;;  %v2480_v41 = vpop.eup %2479 }
 0x466   : > { %v1046_v43 = vmul.f32 0.6931472, %v2480_v41  ;;  %v2482_v46 = vpop.eup %2481 }
 0x467   : > { %v1007_v37 = vmul.f32 0.5, %v1006_v36 }
 0x468   : > { %v1047_v44 = vmul.f32 0.5, %v1046_v43 }
 0x469   : > { %v1008_v38 = vmul.f32 2.0, %v1007_v37 }
 0x46a   : > { %v1048_v45 = vmul.f32 %v1047_v44, %v3055_v22 }
 0x46b   : > { %v1009_v39 = vsub.f32 0.0, %v1008_v38 }
 0x46c   : > { %v1050_v47 = vmul.f32 %v2482_v46, %v1048_v45 }
 0x46d   : > { %v1010_v40 = vmul.f32 0.35355338, %v1009_v39 }
 0x46f   : > { %v1011_v42 = vsel %vm318_vm1, %v1010_v40, -inf }
 0x470   : > { %1012 = vmax.xlane.f32.xlu1 %v1011_v42 }
 0x481   : > { %1052 = vrot.lane.b32.xlu1 %v1050_v47, %s2768_s27 }
 0x4c6   : > { %v1220_v50 = vpop.f32.mrb[8].mxu0 }
 0x4c7   : > { %v1383_v51 = vsub.f32 1.0, %v1220_v50  ;;  %v2321_v52 = vpop.f32.mrb[9].mxu0 }
 0x4c9   : > { %v1403_v53 = vmul.f32 %v1383_v51, %v1383_v51  ;;  %1397 = vperm.xlu0 %2445, %v1383_v51  }
 0x4cd   : > { %1406 = vperm.xlu0 %2445, %v1403_v53  }
 0x4fd   : > { %v1013_v54 = vpop.xlane.xlu1 %1012 }
 0x4fe   : > { %v1014_v55 = vsub.f32 %v1010_v40, %v1013_v54 }
 0x500   : > { %v1015_v56 = vmul.f32 1.442695, %v1014_v55 }
 0x501   : > { %v1053_v57 = vpop.permute.xlu1 %1052 }
 0x502   : > { %2483 = vpow2.f32 %v1015_v56  ;;  %2313 = vmatpush3.msra.mxu1 %v1053_v57 }
 0x503   : > { %2322 = vmatprep.subr.mxu1 %v2764_v0 }
 0x50c   : > { %v2484_v58 = vpop.eup %2483 }
 0x50d   : > { %v1017_v59 = vsel %vm318_vm1, %v2484_v58, 0.0 }
 0x50e   : > { %1018 = vadd.xlane.f32.xlu1 %v1017_v59 }
 0x51f   : > { %1298 = vrot.lane.b32.xlu1 %v3019_v2, %s2769_s14 }
 0x523   : > { %1386 = vperm.xlu1 %2446, %v1220_v50  }
 0x527   : > { %1446 = vrot.lane.b32.xlu1 %v3059_v23, %s2769_s14 }
 0x548   : > { %v1398_v10 = vpop.permute.xlu0 %1397 }
 0x54c   : > { %v1407_v11 = vpop.permute.xlu0 %1406 }
 0x59b   : > { %v1019_v60 = vpop.xlane.xlu1 %1018 }
 0x59c   : > { %2485 = vrcp.f32 %v1019_v60 }
 0x59f   : > { %v1299_v61 = vpop.permute.xlu1 %1298 }
 0x5a0   : > { %2330 = vmatmul.mubr.msk.f32.vlgmr.msra.gmra.mrb[10].mxu0 %vm318_vm1, %v1299_v61 }
 0x5a1   : > { %2338 = vmatpush3.msra.mxu0 %v2766_v1  ;;  %2339 = vmatprep.mubr.msk.f32.mxu0 %vm2765_vm0, %v2764_v0 }
 0x5a2   : > { %2347 = vmatprep.subr.mxu0 %v2764_v0 }
 0x5a3   : > { %v1387_v62 = vpop.permute.xlu1 %1386 }
 0x5a6   : > { %v2486_v63 = vpop.eup %2485 }
 0x5a7   : > { %v1021_v6 = vmul.f32 %v2486_v63, %v2484_v58  ;;  %v1447_v7 = vpop.permute.xlu1 %1446 }
 0x5a8   : > { %v1449_v8 = vsel %vm318_vm1, %v1447_v7, 0.0 }
 0x5a9   : > { %2216 = vst.msk [vmem:[%s3088_s29 + $0x8] sm:$0xff] %vm318_vm1, %v1021_v6  ;;  %2315 = vmatmul.mubr.msk.f32.vlgmr.msra.gmra.mrb[6].mxu1 %vm318_vm1, %v1021_v6  ;;  %1450 = vadd.xlane.f32.xlu0 %v1449_v8 }
 0x5aa   : > { %2323 = vmatpush3.xpose.msk.msra.mxu1 %vm318_vm1, %v1225_v9  ;;  %2324 = vmatprep.mubr.msk.f32.mxu1 %vm2765_vm0, %v2764_v0 }
 0x5ab   : > { %2332 = vmatprep.subr.mxu1 %v2764_v0 }
 0x5ad   : > { %2325 = vmatmul.mubr.msk.f32.vlgmr.msra.gmra.mrb[8].mxu1 %vm318_vm1, %v2766_v1 }
 0x5ae   : > { %2334 = vmatprep.mubr.msk.f32.mxu1 %vm2765_vm0, %v2764_v0 }
 0x5bf   : > { %1571 = vrot.lane.b32.xlu0 %v3025_v4, %s2770_s11 }
 0x5c3   : > { %1721 = vrot.lane.b32.xlu0 %v3021_v3, %s2770_s11 }
 0x5c7   : > { %1645 = vrot.lane.b32.xlu0 %v3029_v5, %s2770_s11 }
 0x636   : > { %v1451_v13 = vpop.xlane.xlu0 %1450 }
 0x637   : > { %2487 = vrsqrt.f32 %v1451_v13  ;;  %vm1454_vm10 = vcmp.eq.f32.partialorder %v1451_v13, inf  ;;  %v1457_v38 = vand.u32 2147483648, %v1451_v13  ;;  %vm1456_vm11 = vcmp.eq.f32.partialorder %v1451_v13, 0.0 }
 0x63a   : > { %v1572_v14 = vpop.permute.xlu0 %1571 }
 0x63b   : > { %2340 = vmatmul.mubr.msk.f32.vlgmr.msra.gmra.mrb[12].mxu0 %vm318_vm1, %v1572_v14 }
 0x63c   : > { %2349 = vmatprep.mubr.msk.f32.mxu0 %vm2765_vm0, %v2764_v0 }
 0x641   : > { %v2488_v36 = vpop.eup %2487 }
 0x642   : > { %v1453_v37 = vmul.f32 %v2488_v36, %v1451_v13 }
 0x644   : > { %v1455_v39 = vsel %vm1454_vm10, %v1451_v13, %v1453_v37 }
 0x645   : > { %v1458_v42 = vsel %vm1456_vm11, %v1457_v38, %v1455_v39 }
 0x646   : > { %v1459_v47 = vmax.f32 %v1458_v42, 1e-15 }
 0x648   : > { %v2226_v52 = vclamps-f32 %v1459_v47, 0.999999 }
 0x64a   : > { %v1463_v53 = vsub.f32 1.0, %v2226_v52  ;;  %v1462_v57 = vadd.f32 1.0, %v2226_v52 }
 0x673   : > { %v1372_v15 = vpop.f32.mrb[10].mxu0 }
 0x674   : > { %v2331_v16 = vpop.f32.mrb[11].mxu0  ;;  %v1376_v17 = vmul.f32 2.0, %v1372_v15 }
 0x675   : > { %v1722_v16 = vpop.permute.xlu0 %1721 }
 0x676   : > { %v1377_v19 = vsub.f32 1.0, %v1376_v17  ;;  %2348 = vmatpush3.xpose.msk.msra.mxu0 %vm318_vm1, %v1722_v16 }
 0x67c   : > { %v3151_v18 = vpop.f32.mrb[6].mxu1 }
 0x67d   : > { %v2316_v4 = vpop.f32.mrb[7].mxu1  ;;  %v1128_v16 = vmul.f32 %v3151_v18, %v3151_v18 }
 0x680   : > { %v1294_v3 = vpop.f32.mrb[8].mxu1 }
 0x681   : > { %v1381_v20 = vrot.slane %v1294_v3, %v3051_v12  ;;  %v2326_v5 = vpop.f32.mrb[9].mxu1 }
 0x683   : > { %v1382_v21 = vadd.f32 %v1381_v20, %v1377_v19  ;;  %v1389_v24 = vmul.f32 %v1387_v62, %v1381_v20  ;;  %v1409_v32 = vmul.f32 %v1407_v11, %v1381_v20 }
 0x685   : > { %v1390_v25 = vadd.f32 %v1389_v24, %v1377_v19  ;;  %v1392_v26 = vmul.f32 %v1382_v21, %v1382_v21  ;;  %v1394_v27 = vmul.f32 2.0, %v1382_v21 }
 0x687   : > { %v1400_v28 = vmul.f32 %v1398_v10, %v1394_v27  ;;  %v1393_v29 = vmul.f32 %v1392_v26, %v1387_v62  ;;  %v1391_v35 = vmax.f32 %v1390_v25, 1e-15 }
 0x689   : > { %v1401_v30 = vmul.f32 %v1400_v28, %v1372_v15 }
 0x68b   : > { %v1402_v31 = vsub.f32 %v1393_v29, %v1401_v30 }
 0x68d   : > { %v1410_v33 = vadd.f32 %v1409_v32, %v1402_v31  ;;  %v1646_v31 = vpop.permute.xlu0 %1645 }
 0x68f   : > { %v1411_v34 = vmax.f32 %v1410_v33, 0.0 }
 0x691   : > { %2489 = vrsqrt.f32 %v1411_v34  ;;  %vm1414_vm12 = vcmp.eq.f32.partialorder %v1411_v34, inf  ;;  %v1417_v43 = vand.u32 2147483648, %v1411_v34  ;;  %vm1416_vm13 = vcmp.eq.f32.partialorder %v1411_v34, 0.0 }
 0x692   : > { %2491 = vrcp.f32 %v1391_v35 }
 0x69b   : > { %v2490_v40 = vpop.eup %2489 }
 0x69c   : > { %v1413_v41 = vmul.f32 %v2490_v40, %v1411_v34  ;;  %v2492_v45 = vpop.eup %2491 }
 0x69e   : > { %v1415_v44 = vsel %vm1414_vm12, %v1411_v34, %v1413_v41 }
 0x69f   : > { %v1418_v46 = vsel %vm1416_vm13, %v1417_v43, %v1415_v44 }
 0x6a0   : > { %v1420_v49 = vmul.f32 %v2492_v45, %v1418_v46 }
 0x6a2   : > { %v2224_v50 = vclamps-f32 %v1420_v49, 0.999999 }
 0x6a4   : > { %v1424_v51 = vsub.f32 1.0, %v2224_v50  ;;  %v1423_v54 = vadd.f32 1.0, %v2224_v50 }
 0x6a6   : > { %2493 = vrcp.f32 %v1424_v51 }
 0x6a7   : > { %2495 = vrcp.f32 %v1463_v53 }
 0x6b0   : > { %v2494_v55 = vpop.eup %2493 }
 0x6b1   : > { %v1426_v56 = vmul.f32 %v2494_v55, %v1423_v54  ;;  %v2496_v58 = vpop.eup %2495 }
 0x6b2   : > { %v1465_v59 = vmul.f32 %v2496_v58, %v1462_v57 }
 0x6b3   : > { %2497 = vlog2.f32 %v1426_v56 }
 0x6b4   : > { %2499 = vlog2.f32 %v1465_v59 }
 0x6b5   : > { %2501 = vrcp.f32 %v1459_v47 }
 0x6bd   : > { %v2498_v60 = vpop.eup %2497 }
 0x6be   : > { %v1428_v61 = vmul.f32 0.6931472, %v2498_v60  ;;  %v2500_v8 = vpop.eup %2499 }
 0x6bf   : > { %v1467_v10 = vmul.f32 0.6931472, %v2500_v8  ;;  %v2502_v14 = vpop.eup %2501 }
 0x6c0   : > { %v1429_v62 = vmul.f32 0.5, %v1428_v61 }
 0x6c1   : > { %v1468_v11 = vmul.f32 0.5, %v1467_v10 }
 0x6c2   : > { %v1430_v63 = vmul.f32 2.0, %v1429_v62 }
 0x6c3   : > { %v1469_v13 = vmul.f32 %v1468_v11, %v3055_v22 }
 0x6c4   : > { %v1431_v6 = vsub.f32 0.0, %v1430_v63 }
 0x6c5   : > { %v1471_v15 = vmul.f32 %v2502_v14, %v1469_v13 }
 0x6c6   : > { %v1432_v7 = vmul.f32 0.35355338, %v1431_v6 }
 0x6c8   : > { %v1433_v9 = vsel %vm318_vm1, %v1432_v7, -inf }
 0x6c9   : > { %1434 = vmax.xlane.f32.xlu1 %v1433_v9 }
 0x6da   : > { %1473 = vrot.lane.b32.xlu1 %v1471_v15, %s2769_s14 }
 0x70e   : > { %v1641_v17 = vpop.f32.mrb[12].mxu0 }
 0x70f   : > { %v1804_v4 = vsub.f32 1.0, %v1641_v17  ;;  %v2341_v19 = vpop.f32.mrb[13].mxu0 }
 0x710   : > { %v1129_v19 = vsel %vm318_vm1, %v1128_v16, 0.0 }
 0x711   : > { %v1824_v3 = vmul.f32 %v1804_v4, %v1804_v4  ;;  %1818 = vperm.xlu0 %2445, %v1804_v4  }
 0x715   : > { %1827 = vperm.xlu0 %2445, %v1824_v3  }
 0x756   : > { %v1435_v20 = vpop.xlane.xlu1 %1434 }
 0x757   : > { %v1436_v5 = vsub.f32 %v1432_v7, %v1435_v20 }
 0x759   : > { %v1437_v21 = vmul.f32 1.442695, %v1436_v5 }
 0x75a   : > { %v1474_v24 = vpop.permute.xlu1 %1473 }
 0x75b   : > { %2503 = vpow2.f32 %v1437_v21  ;;  %2333 = vmatpush3.msra.mxu1 %v1474_v24 }
 0x75c   : > { %2342 = vmatprep.subr.mxu1 %v2764_v0 }
 0x765   : > { %v2504_v25 = vpop.eup %2503 }
 0x766   : > { %v1439_v26 = vsel %vm318_vm1, %v2504_v25, 0.0 }
 0x767   : > { %1440 = vadd.xlane.f32.xlu1 %v1439_v26 }
 0x778   : > { %1719 = vrot.lane.b32.xlu1 %v3019_v2, %s2770_s11 }
 0x77c   : > { %1807 = vperm.xlu1 %2446, %v1641_v17  }
 0x780   : > { %1867 = vrot.lane.b32.xlu1 %v3059_v23, %s2770_s11 }
 0x790   : > { %v1819_v43 = vpop.permute.xlu0 %1818 }
 0x794   : > { %v1828_v50 = vpop.permute.xlu0 %1827 }
 0x7f4   : > { %v1441_v27 = vpop.xlane.xlu1 %1440 }
 0x7f5   : > { %2505 = vrcp.f32 %v1441_v27 }
 0x7f8   : > { %v1720_v28 = vpop.permute.xlu1 %1719 }
 0x7f9   : > { %2350 = vmatmul.mubr.msk.f32.vlgmr.msra.gmra.mrb[14].mxu0 %vm318_vm1, %v1720_v28 }
 0x7fc   : > { %v1808_v2 = vpop.permute.xlu1 %1807 }
 0x7ff   : > { %v2506_v29 = vpop.eup %2505 }
 0x800   : > { %v1443_v30 = vmul.f32 %v2506_v29, %v2504_v25  ;;  %v1868_v23 = vpop.permute.xlu1 %1867 }
 0x801   : > { %v1870_v32 = vsel %vm318_vm1, %v1868_v23, 0.0 }
 0x802   : > { %2225 = vst.msk [vmem:[%s3088_s29 + $0x10] sm:$0xff] %vm318_vm1, %v1443_v30  ;;  %2335 = vmatmul.mubr.msk.f32.vlgmr.msra.gmra.mrb[10].mxu1 %vm318_vm1, %v1443_v30  ;;  %1871 = vadd.xlane.f32.xlu0 %v1870_v32 }
 0x803   : > { %2343 = vmatpush3.xpose.msk.msra.mxu1 %vm318_vm1, %v1646_v31  ;;  %2344 = vmatprep.mubr.msk.f32.mxu1 %vm2765_vm0, %v2764_v0 }
 0x804   : > { %2352 = vmatprep.subr.mxu1 %v2764_v0 }
 0x806   : > { %2345 = vmatmul.mubr.msk.f32.vlgmr.msra.gmra.mrb[12].mxu1 %vm318_vm1, %v2766_v1 }
 0x807   : > { %2354 = vmatprep.mubr.msk.f32.mxu1 %vm2765_vm0, %v2764_v0 }
 0x88f   : > { %v1872_v20 = vpop.xlane.xlu0 %1871 }
 0x890   : > { %vm1875_vm0 = vcmp.eq.f32.partialorder %v1872_v20, inf  ;;  %v1878_v24 = vand.u32 2147483648, %v1872_v20  ;;  %vm1877_vm2 = vcmp.eq.f32.partialorder %v1872_v20, 0.0 }
 0x8cc   : > { %v1793_v33 = vpop.f32.mrb[14].mxu0 }
 0x8cd   : > { %v2351_v34 = vpop.f32.mrb[15].mxu0  ;;  %v1797_v35 = vmul.f32 2.0, %v1793_v33 }
 0x8cf   : > { %v1798_v38 = vsub.f32 1.0, %v1797_v35 }
 0x8d5   : > { %v3177_v36 = vpop.f32.mrb[10].mxu1 }
 0x8d6   : > { %v2336_v37 = vpop.f32.mrb[11].mxu1  ;;  %v1549_v4 = vmul.f32 %v3177_v36, %v3177_v36 }
 0x8d8   : > { %v1550_v3 = vsel %vm318_vm1, %v1549_v4, 0.0 }
 0x8d9   : > { %v1715_v39 = vpop.f32.mrb[12].mxu1 }
 0x8da   : > { %v1802_v40 = vrot.slane %v1715_v39, %v3051_v12  ;;  %v2346_v41 = vpop.f32.mrb[13].mxu1 }
 0x8dc   : > { %v1803_v1 = vadd.f32 %v1802_v40, %v1798_v38  ;;  %v1810_v42 = vmul.f32 %v1808_v2, %v1802_v40  ;;  %v1830_v52 = vmul.f32 %v1828_v50, %v1802_v40 }
 0x8de   : > { %v1811_v0 = vadd.f32 %v1810_v42, %v1798_v38  ;;  %v1813_v44 = vmul.f32 %v1803_v1, %v1803_v1  ;;  %v1815_v45 = vmul.f32 2.0, %v1803_v1 }
 0x8e0   : > { %v1821_v46 = vmul.f32 %v1819_v43, %v1815_v45  ;;  %v1814_v47 = vmul.f32 %v1813_v44, %v1808_v2  ;;  %v1812_v55 = vmax.f32 %v1811_v0, 1e-15 }
 0x8e2   : > { %v1822_v49 = vmul.f32 %v1821_v46, %v1793_v33 }
 0x8e4   : > { %v1823_v51 = vsub.f32 %v1814_v47, %v1822_v49 }
 0x8e6   : > { %v1831_v53 = vadd.f32 %v1830_v52, %v1823_v51 }
 0x8e8   : > { %v1832_v54 = vmax.f32 %v1831_v53, 0.0 }
 0x8ea   : > { %2507 = vrsqrt.f32 %v1832_v54  ;;  %vm1835_vm14 = vcmp.eq.f32.partialorder %v1832_v54, inf  ;;  %v1838_v57 = vand.u32 2147483648, %v1832_v54  ;;  %vm1837_vm15 = vcmp.eq.f32.partialorder %v1832_v54, 0.0 }
 0x8eb   : > { %2509 = vrcp.f32 %v1812_v55 }
 0x8f4   : > { %v2508_v56 = vpop.eup %2507 }
 0x8f5   : > { %v1834_v12 = vmul.f32 %v2508_v56, %v1832_v54  ;;  %v2510_v59 = vpop.eup %2509 }
 0x8f7   : > { %v1836_v58 = vsel %vm1835_vm14, %v1832_v54, %v1834_v12 }
 0x8f8   : > { %v1839_v60 = vsel %vm1837_vm15, %v1838_v57, %v1836_v58 }
 0x8f9   : > { %v1841_v61 = vmul.f32 %v2510_v59, %v1839_v60 }
 0x8fb   : > { %v2233_v62 = vclamps-f32 %v1841_v61, 0.999999 }
 0x8fd   : > { %v1845_v63 = vsub.f32 1.0, %v2233_v62  ;;  %v1844_v6 = vadd.f32 1.0, %v2233_v62 }
 0x8ff   : > { %2511 = vrcp.f32 %v1845_v63 }
 0x909   : > { %v2512_v7 = vpop.eup %2511 }
 0x90a   : > { %v1847_v8 = vmul.f32 %v2512_v7, %v1844_v6 }
 0x90c   : > { %2513 = vlog2.f32 %v1847_v8 }
 0x90d   : > { %2515 = vrsqrt.f32 %v1872_v20 }
 0x916   : > { %v2514_v9 = vpop.eup %2513 }
 0x917   : > { %v1849_v10 = vmul.f32 0.6931472, %v2514_v9  ;;  %v2516_v5 = vpop.eup %2515  ;;  %v711_v9 = vmul.f32 %v3111_v48, %v3111_v48 }
 0x918   : > { %v1874_v21 = vmul.f32 %v2516_v5, %v1872_v20 }
 0x919   : > { %v1850_v11 = vmul.f32 0.5, %v1849_v10 }
 0x91a   : > { %v1876_v25 = vsel %vm1875_vm0, %v1872_v20, %v1874_v21 }
 0x91b   : > { %v1851_v13 = vmul.f32 2.0, %v1850_v11  ;;  %v1879_v26 = vsel %vm1877_vm2, %v1878_v24, %v1876_v25  ;;  %v712_v11 = vsel %vm318_vm1, %v711_v9, 0.0 }
 0x91c   : > { %v1880_v27 = vmax.f32 %v1879_v26, 1e-15 }
 0x91d   : > { %v1852_v14 = vsub.f32 0.0, %v1851_v13 }
 0x91e   : > { %v2235_v28 = vclamps-f32 %v1880_v27, 0.999999 }
 0x91f   : > { %v1853_v15 = vmul.f32 0.35355338, %v1852_v14 }
 0x920   : > { %v1884_v29 = vsub.f32 1.0, %v2235_v28  ;;  %v1883_v32 = vadd.f32 1.0, %v2235_v28 }
 0x921   : > { %v1854_v17 = vsel %vm318_vm1, %v1853_v15, -inf }
 0x922   : > { %1855 = vmax.xlane.f32.xlu1 %v1854_v17  ;;  %2517 = vrcp.f32 %v1884_v29 }
 0x926   : > { %1130 = vadd.xlane.f32.xlu1 %v1129_v19 }
 0x92a   : > { %1551 = vadd.xlane.f32.xlu1 %v1550_v3 }
 0x92c   : > { %v2518_v33 = vpop.eup %2517 }
 0x92d   : > { %v1886_v35 = vmul.f32 %v2518_v33, %v1883_v32 }
 0x9af   : > { %v1856_v30 = vpop.xlane.xlu1 %1855 }
 0x9b0   : > { %v1857_v31 = vsub.f32 %v1853_v15, %v1856_v30 }
 0x9b2   : > { %v1858_v2 = vmul.f32 1.442695, %v1857_v31 }
 0x9b3   : > { %v1131_v23 = vpop.xlane.xlu1 %1130 }
 0x9b4   : > { %2519 = vpow2.f32 %v1858_v2  ;;  %vm1134_vm3 = vcmp.eq.f32.partialorder %v1131_v23, inf  ;;  %v1137_v41 = vand.u32 2147483648, %v1131_v23  ;;  %vm1136_vm4 = vcmp.eq.f32.partialorder %v1131_v23, 0.0 }
 0x9b5   : > { %2521 = vrsqrt.f32 %v1131_v23 }
 0x9b7   : > { %v1552_v34 = vpop.xlane.xlu1 %1551 }
 0x9b8   : > { %2523 = vrsqrt.f32 %v1552_v34  ;;  %vm1555_vm5 = vcmp.eq.f32.partialorder %v1552_v34, inf  ;;  %v1558_v45 = vand.u32 2147483648, %v1552_v34  ;;  %vm1557_vm6 = vcmp.eq.f32.partialorder %v1552_v34, 0.0 }
 0x9b9   : > { %2525 = vlog2.f32 %v1886_v35 }
 0x9be   : > { %v2520_v37 = vpop.eup %2519 }
 0x9bf   : > { %v2522_v38 = vpop.eup %2521  ;;  %v1860_v39 = vsel %vm318_vm1, %v2520_v37, 0.0 }
 0x9c0   : > { %v1133_v40 = vmul.f32 %v2522_v38, %v1131_v23  ;;  %1861 = vadd.xlane.f32.xlu0 %v1860_v39 }
 0x9c2   : > { %v2524_v1 = vpop.eup %2523  ;;  %v1135_v42 = vsel %vm1134_vm3, %v1131_v23, %v1133_v40 }
 0x9c3   : > { %v1138_v43 = vsel %vm1136_vm4, %v1137_v41, %v1135_v42  ;;  %v1554_v0 = vmul.f32 %v2524_v1, %v1552_v34  ;;  %v2526_v46 = vpop.eup %2525 }
 0x9c4   : > { %v1139_v44 = vmax.f32 %v1138_v43, 1e-15  ;;  %v1888_v51 = vmul.f32 0.6931472, %v2526_v46 }
 0x9c5   : > { %v1556_v47 = vsel %vm1555_vm5, %v1552_v34, %v1554_v0 }
 0x9c6   : > { %2527 = vtanh.f32 %v1139_v44  ;;  %v1559_v49 = vsel %vm1557_vm6, %v1558_v45, %v1556_v47  ;;  %v1889_v52 = vmul.f32 0.5, %v1888_v51 }
 0x9c7   : > { %v1560_v50 = vmax.f32 %v1559_v49, 1e-15  ;;  %2529 = vrcp.f32 %v1880_v27 }
 0x9c8   : > { %2531 = vrcp.f32 %v1139_v44  ;;  %v1890_v54 = vmul.f32 %v1889_v52, %v3055_v22 }
 0x9c9   : > { %2533 = vtanh.f32 %v1560_v50 }
 0x9ca   : > { %2535 = vrcp.f32 %v1560_v50 }
 0x9d0   : > { %v2528_v53 = vpop.eup %2527 }
 0x9d1   : > { %v2530_v55 = vpop.eup %2529  ;;  %v1141_v56 = vmul.f32 %v2528_v53, %v3151_v18 }
 0x9d2   : > { %v2532_v12 = vpop.eup %2531  ;;  %v1892_v59 = vmul.f32 %v2530_v55, %v1890_v54 }
 0x9d3   : > { %v2534_v57 = vpop.eup %2533  ;;  %v1143_v58 = vmul.f32 %v2532_v12, %v1141_v56 }
 0x9d4   : > { %v1562_v60 = vmul.f32 %v2534_v57, %v3177_v36  ;;  %v2536_v61 = vpop.eup %2535 }
 0x9d6   : > { %1894 = vrot.lane.b32.xlu0 %v1892_v59, %s2770_s11  ;;  %v1564_v62 = vmul.f32 %v2536_v61, %v1562_v60 }
 0x9da   : > { %1566 = vrot.lane.b32.xlu0 %v1564_v62, %s2771_s13 }
 0xa4d   : > { %v1862_v63 = vpop.xlane.xlu0 %1861 }
 0xa4e   : > { %2537 = vrcp.f32 %v1862_v63 }
 0xa51   : > { %v1895_v6 = vpop.permute.xlu0 %1894 }
 0xa52   : > { %2353 = vmatpush3.msra.mxu1 %v1895_v6 }
 0xa58   : > { %v2538_v22 = vpop.eup %2537 }
 0xa59   : > { %v1864_v7 = vmul.f32 %v2538_v22, %v2520_v37 }
 0xa5b   : > { %2234 = vst.msk [vmem:[%s3088_s29 + $0x18] sm:$0xff] %vm318_vm1, %v1864_v7  ;;  %2355 = vmatmul.mubr.msk.f32.vlgmr.msra.gmra.mrb[14].mxu1 %vm318_vm1, %v1864_v7 }
 0xb2e   : > { %v3195_v18 = vpop.f32.mrb[14].mxu1 }
 0xb2f   : > { %v1970_v36 = vmul.f32 %v3195_v18, %v3195_v18  ;;  %v2356_v8 = vpop.f32.mrb[15].mxu1 }
 0xb31   : > { %v1971_v10 = vsel %vm318_vm1, %v1970_v36, 0.0 }
 0xb32   : > { %1972 = vadd.xlane.f32.xlu1 %v1971_v10 }
 0xb36   : > { %713 = vadd.xlane.f32.xlu1 %v712_v11 }
 0xb47   : > { %1145 = vrot.lane.b32.xlu1 %v1143_v58, %s2772_s26 }
 0xbbf   : > { %v1973_v13 = vpop.xlane.xlu1 %1972 }
 0xbc0   : > { %2539 = vrsqrt.f32 %v1973_v13  ;;  %vm1976_vm7 = vcmp.eq.f32.partialorder %v1973_v13, inf  ;;  %v1979_v17 = vand.u32 2147483648, %v1973_v13  ;;  %vm1978_vm8 = vcmp.eq.f32.partialorder %v1973_v13, 0.0 }
 0xbc3   : > { %v714_v14 = vpop.xlane.xlu1 %713 }
 0xbc4   : > { %2541 = vrsqrt.f32 %v714_v14  ;;  %vm717_vm9 = vcmp.eq.f32.partialorder %v714_v14, inf  ;;  %v720_v21 = vand.u32 2147483648, %v714_v14  ;;  %vm719_vm10 = vcmp.eq.f32.partialorder %v714_v14, 0.0 }
 0xbca   : > { %v2540_v15 = vpop.eup %2539 }
 0xbcb   : > { %v1975_v16 = vmul.f32 %v2540_v15, %v1973_v13 }
 0xbcd   : > { %v1977_v4 = vsel %vm1976_vm7, %v1973_v13, %v1975_v16 }
 0xbce   : > { %v2542_v19 = vpop.eup %2541  ;;  %v1980_v3 = vsel %vm1978_vm8, %v1979_v17, %v1977_v4 }
 0xbcf   : > { %v1981_v20 = vmax.f32 %v1980_v3, 1e-15  ;;  %v716_v5 = vmul.f32 %v2542_v19, %v714_v14 }
 0xbd1   : > { %2543 = vtanh.f32 %v1981_v20  ;;  %v718_v24 = vsel %vm717_vm9, %v714_v14, %v716_v5 }
 0xbd2   : > { %v721_v25 = vsel %vm719_vm10, %v720_v21, %v718_v24  ;;  %2545 = vrcp.f32 %v1981_v20 }
 0xbd3   : > { %v722_v26 = vmax.f32 %v721_v25, 1e-15 }
 0xbd5   : > { %2547 = vtanh.f32 %v722_v26 }
 0xbd6   : > { %2549 = vrcp.f32 %v722_v26 }
 0xbd7   : > { %2654 = shalt.err (!%p2651_p13)
}
 0xbd8   : > { %s2655_s24 = scalar_lea.hbm %s3209_s9, 512  ;;  %s2659_s5 = scalar_lea.hbm %s3299_s4, 1024 }
 0xbd9   : > { %p2656_p11 = scmp.ne.s32.totalorder %s3209_s9, %s2655_s24  ;;  %p2660_p7 = scmp.lt.u32.totalorder %s3209_s9, %s3299_s4 }
 0xbda   : > { %p2661_p3 = scmp.lt.u32.totalorder %s2659_s5, %s2655_s24  ;;  %p2663_p4 = scmp.lt.u32.totalorder %s2655_s24, %s3209_s9 }
 0xbdb   : > { %p2657_p2 = pnand %p2656_p11, %p3327_p10 }
 0xbdc   : > { %p2662_p0 = por %p2661_p3, %p2660_p7 }
 0xbdd   : > { %p2658_p5 = pneg %p2657_p2 }
 0xbde   : > { %p2664_p12 = por %p2663_p4, %p2662_p0 }
 0xbe0   : > { %p2665_p1 = pnand %p2664_p12, %p2658_p5 }
 0xbe2   : > { %2668 = shalt.err (!%p2665_p1)
}
 0xbe3   : > { %s2774_s11 = smov 128   ;;  %v2544_v27 = vpop.eup %2543  ;;  %s2775_s13 = smov 24   ;;  %vm1148_vm11 = vcmask 130112   ;;  %vm1569_vm12 = vcmask 195712   ;;  %v1146_v33 = vpop.permute.xlu1 %1145  ;;  %vm1990_vm13 = vcmask 261312  }
 0xbe4   : > { %2364 = dma.vmem_to_hbm [thread:$0]  (%p3327_p10), %s3211_s7, 512, %s3209_s9, %s1998_s10, %s2774_s11, %s2774_s11, %s2772_s26   ;;  %v1983_v28 = vmul.f32 %v2544_v27, %v3195_v18  ;;  %v2546_v29 = vpop.eup %2545  ;;  %v1567_v34 = vpop.permute.xlu0 %1566 }
 0xbe5   : > { %v2548_v31 = vpop.eup %2547  ;;  %s306_s1 = scalar_lea.vmem [#allocation8], %s2997_s12  ;;  %s2239_s26 = sshll.u32 %s2751_s18, 7 }
 0xbe6   : > { %v1985_v30 = vmul.f32 %v2546_v29, %v1983_v28  ;;  %v724_v2 = vmul.f32 %v2548_v31, %v3111_v48  ;;  %v2550_v23 = vpop.eup %2549  ;;  %s2012_s7 = sshll.u32 %s306_s1, 4  ;;  %s3246_s9 = scalar_lea.hbm %s3298_s3, %s2239_s26  ;;  %s3248_s7 = int_to_ptr.vmem [resolvable:$true] %s2012_s7 }
 0xbe7   : > { %s1993_s12 = scalar_lea.sflag [#allocation4], %s2994_s25  ;;  %s2669_s10 = scalar_lea.vmem %s3248_s7, 128 }
 0xbe8   : > { %1987 = vrot.lane.b32.xlu0 %v1985_v30, %s2775_s13  ;;  %v726_v32 = vmul.f32 %v2550_v23, %v724_v2  ;;  %p2670_p8 = scmp.ne.s32.totalorder %s3248_s7, %s2669_s10  ;;  %s2776_s18 = smov [#allocation8]  }
 0xbe9   : > { %s2673_s20 = sshll.u32 %s2776_s18, 4  ;;  %s2674_s20 = int_to_ptr.vmem [resolvable:$false] %s2673_s20 }
 0xbea   : > { %727 = vst.msk [vmem:[%s306_s1] sm:$0xff] %vm318_vm1, %v726_v32  ;;  %p2671_p9 = pnand %p2670_p8, %p3327_p10  ;;  %s2675_s19 = scalar_lea.vmem %s2674_s20, 256 }
 0xbeb   : > { %1149 = vst.msk [vmem:[%s306_s1] sm:$0xff] %vm1148_vm11, %v1146_v33  ;;  %p2676_p13 = scmp.lt.s32.totalorder %s3248_s7, %s2674_s20  ;;  %p2677_p11 = scmp.lt.s32.totalorder %s2675_s19, %s2669_s10 }
 0xbec   : > { %1570 = vst.msk [vmem:[%s306_s1] sm:$0xff] %vm1569_vm12, %v1567_v34  ;;  %p2672_p6 = pneg %p2671_p9 }
 0xbed   : > { %p2678_p2 = por %p2677_p11, %p2676_p13 }
 0xbef   : > { %p2679_p5 = pnand %p2678_p2, %p2672_p6 }
 0xc5a   : > { %v1988_v48 = vpop.permute.xlu0 %1987 }
 0xc5b   : > { %1991 = vst.msk [vmem:[%s306_s1] sm:$0xff] %vm1990_vm13, %v1988_v48 }
 0xc5c   : > { %2682 = shalt.err (!%p2679_p5)
}
 0xc5d   : > { %s2683_s25 = scalar_lea.hbm %s3246_s9, 128  ;;  %s2687_s24 = scalar_lea.hbm %s3298_s3, 256 }
 0xc5e   : > { %p2684_p7 = scmp.ne.s32.totalorder %s3246_s9, %s2683_s25  ;;  %p2688_p4 = scmp.lt.u32.totalorder %s3246_s9, %s3298_s3 }
 0xc5f   : > { %p2689_p12 = scmp.lt.u32.totalorder %s2687_s24, %s2683_s25  ;;  %p2691_p8 = scmp.lt.u32.totalorder %s2683_s25, %s3246_s9 }
 0xc60   : > { %p2685_p3 = pnand %p2684_p7, %p3327_p10 }
 0xc61   : > { %p2690_p1 = por %p2689_p12, %p2688_p4 }
 0xc62   : > { %p2686_p0 = pneg %p2685_p3 }
 0xc63   : > { %p2692_p9 = por %p2691_p8, %p2690_p1 }
 0xc65   : > { %p2693_p6 = pnand %p2692_p9, %p2686_p0 }
 0xc67   : > { %2696 = shalt.err (!%p2693_p6)
}
 0xc68   : > { %2363 = dma.vmem_to_hbm [thread:$0]  (%p3327_p10), %s3248_s7, 128, %s3246_s9, %s1993_s12  }
 0xc69 PF: > { %s3328_s5 = sld [smem:[#allocation16_spill]]  ;;  %s2041_s29 = sand.u32 1, %s2739_s15  }
 0xc6a   : > { %p3329_p13 = scmp.ne.s32.totalorder %s3316_s30, 0  ;;  %s2042_s14 = scalar_lea.sflag [#allocation4], %s2041_s29 }
 0xc6f   : > { %p3330_p11 = scmp.ge.s32.totalorder %s3328_s5, 2 }
 0xc71   : > { %p2378_p2 = pnand %p3330_p11, %p3329_p13 }
 0xc73   : > { %2730 = dma.done.wait (!%p2378_p2), %s2042_s14, 128  }
 0xc74   : > { %2732 = vsyncadd (!%p2378_p2), %s2042_s14, 4294967168  ;;  %s2051_s11 = scalar_lea.sflag [#allocation10], %s2041_s29 }
 0xc75   : > { %2734 = dma.done.wait (!%p2378_p2), %s2051_s11, 512  }
 0xc76   : > { %2736 = vsyncadd (!%p2378_p2), %s2051_s11, 4294966784  ;;  %s27_s20 = sadd.s32 1, %s3328_s5   ;;  %s3331_s28 = sld [smem:[#allocation18_spill]] }
 0xc77   : > { %p24_p5 = scmp.ge.s32.totalorder %s27_s20, 4   ;;  %s3332_s18 = sld [smem:[#allocation15_spill]] }
 0xc78   : > { %s3333_s19 = sld [smem:[#allocation17_spill]]  ;;  %s3334_s15 = smov %s2743_s16 }
 0xc79   : > { %s3335_s16 = smov %s2747_s17  ;;  %26 = sbr.rel (!%p24_p5) target bundleno = 12 (0xc), region = 121 }
 0xc7c   : > { %s3336_s17 = smov %s3331_s28 }
 0xc80   :  { %2056 = vsyncpa [#allocation3], 1 }
 0xc81   :  { %2058 = vsyncpa [#allocation3 + $0x1], 1 }
 0xc82   :  { %2059 = vsyncpa [#allocation6], 1 }
 0xc83   :  { %2061 = vsyncpa [#allocation6 + $0x1], 1 }
 0xc84   :  { %2062 = vsyncpa [#allocation4], 1 }
 0xc85   :  { %2064 = vsyncpa [#allocation4 + $0x1], 1 }
 0xc86   :  { %2065 = vsyncpa [#allocation10], 1 }
 0xc87   :  { %2067 = vsyncpa [#allocation10 + $0x1], 1 }

// kernel: hyperbolic_transformer_forward.16
= control target key start
LH: loop header
LB: loop body
LE: loop exit
PB: predicated region body
PF: predicated region fallthrough
CT: control target
= control target key end

     0   :  { %8 = vsyncpa [#allocation3], 0  ;;  %s591_s0 = inlined_call_operand.hbm [shape: f32[16,32], index: 0, kind: input, shape index: {}]   ;;  %s592_s1 = inlined_call_operand.hbm [shape: f32[32,32], index: 1, kind: input, shape index: {}]   ;;  %s593_s2 = inlined_call_operand.hbm [shape: f32[1,32], index: 2, kind: input, shape index: {}]   ;;  %s594_s3 = inlined_call_operand.hbm [shape: f32[16,32], index: 3, kind: output, shape index: {}]  }
   0x1   :  { %9 = vsyncpa [#allocation6], 0 }
   0x2   :  { %10 = vsyncpa [#allocation4], 0  ;;  %s467_s12 = smov [#allocation5]   ;;  %s468_s14 = smov [#allocation2]  }
   0x3   :  { %s28_s13 = sshll.u32 %s467_s12, 4  ;;  %s16_s15 = sshll.u32 %s468_s14, 4  ;;  %s29_s13 = int_to_ptr.vmem [resolvable:$true] %s28_s13  ;;  %s495_s15 = int_to_ptr.vmem [resolvable:$true] %s16_s15 }
   0x4   :  { %s373_s18 = scalar_lea.hbm %s592_s1, 512 }
   0x5   :  { %p374_p0 = scmp.ne.s32.totalorder %s592_s1, %s373_s18  ;;  %p377_p1 = scmp.lt.u32.totalorder %s373_s18, %s592_s1 }
   0x7   :  { %p379_p2 = pnand %p377_p1, %p374_p0 }
   0x9   :  { %382 = shalt.err (!%p379_p2)
}
   0xa   :  { %s383_s23 = scalar_lea.vmem %s29_s13, 512  ;;  %p388_p4 = scmp.lt.s32.totalorder %s29_s13, %s29_s13 }
   0xb   :  { %p384_p3 = scmp.ne.s32.totalorder %s29_s13, %s383_s23  ;;  %p389_p5 = scmp.lt.s32.totalorder %s383_s23, %s383_s23 }
   0xd   :  { %p390_p6 = por %p389_p5, %p388_p4 }
   0xf   :  { %p391_p7 = pnand %p390_p6, %p384_p3 }
  0x11   :  { %394 = shalt.err (!%p391_p7)
}
  0x12   :  { %s469_s24 = smov 128   ;;  %s470_s25 = smov 8  }
  0x13   :  { %34 = dma.hbm_to_vmem [thread:$0]  %s592_s1, 512, %s29_s13, [#allocation6], %s469_s24, %s469_s24, %s470_s25  }
  0x14   :  { %s395_s30 = scalar_lea.hbm %s591_s0, 256 }
  0x15   :  { %p396_p8 = scmp.ne.s32.totalorder %s591_s0, %s395_s30  ;;  %p399_p9 = scmp.lt.u32.totalorder %s395_s30, %s591_s0 }
  0x17   :  { %p401_p10 = pnand %p399_p9, %p396_p8 }
  0x19   :  { %404 = shalt.err (!%p401_p10)
}
  0x1a   :  { %s405_s8 = scalar_lea.vmem %s495_s15, 256  ;;  %p410_p12 = scmp.lt.s32.totalorder %s495_s15, %s495_s15 }
  0x1b   :  { %p406_p11 = scmp.ne.s32.totalorder %s495_s15, %s405_s8  ;;  %p411_p13 = scmp.lt.s32.totalorder %s405_s8, %s405_s8 }
  0x1d   :  { %p412_p0 = por %p411_p13, %p410_p12 }
  0x1f   :  { %p413_p1 = pnand %p412_p0, %p406_p11 }
  0x21   :  { %416 = shalt.err (!%p413_p1)
}
  0x22   :  { %22 = dma.hbm_to_vmem [thread:$0]  %s591_s0, 256, %s495_s15, [#allocation3], %s469_s24, %s469_s24, %s470_s25  }
  0x23   :  { %s471_s10 = smov [#allocation7]   ;;  %s417_s14 = scalar_lea.hbm %s593_s2, 16 }
  0x24   :  { %s41_s11 = sshll.u32 %s471_s10, 4  ;;  %p418_p2 = scmp.ne.s32.totalorder %s593_s2, %s417_s14  ;;  %s42_s11 = int_to_ptr.vmem [resolvable:$true] %s41_s11 }
  0x25   :  { %p421_p3 = scmp.lt.u32.totalorder %s417_s14, %s593_s2 }
  0x27   :  { %p423_p4 = pnand %p421_p3, %p418_p2 }
  0x29   :  { %426 = shalt.err (!%p423_p4)
}
  0x2a   :  { %s427_s20 = scalar_lea.vmem %s42_s11, 16  ;;  %s431_s0 = scalar_lea.vmem %s42_s11, 32 }
  0x2b   :  { %p428_p5 = scmp.ne.s32.totalorder %s42_s11, %s427_s20  ;;  %p432_p6 = scmp.lt.s32.totalorder %s42_s11, %s42_s11 }
  0x2c   :  { %p433_p7 = scmp.lt.s32.totalorder %s431_s0, %s427_s20 }
  0x2e   :  { %p434_p8 = por %p433_p7, %p432_p6 }
  0x30   :  { %p435_p9 = pnand %p434_p8, %p428_p5 }
  0x32   :  { %438 = shalt.err (!%p435_p9)
}
  0x33   :  { %44 = dma.hbm_to_vmem [thread:$0]  %s593_s2, 16, %s42_s11, [#allocation6]  }
  0x34   :  { %461 = dma.done.wait [#allocation3], 256  }
  0x35   :  { %462 = vsyncadd [#allocation3], 4294967040 }
  0x36   :  { %463 = dma.done.wait [#allocation6], 528  }
  0x37   :  { %464 = vsyncadd [#allocation6], 4294966768  ;;  %v472_v0 = vmov 0.0   ;;  %vm473_vm0 = vmmov 0   ;;  %v57_v1 = vld [vmem:[#allocation5] sm:$0xff]  ;;  %v58_v2 = vld [vmem:[#allocation5 + $0x8] sm:$0xff] }
  0x38   :  { %317 = vmatprep.subr.bf16.mxu0 %v472_v0  ;;  %321 = vmatprep.mubr.msk.bf16.mxu0 %vm473_vm0, %v472_v0  ;;  %v59_v3 = vld [vmem:[#allocation5 + $0x10] sm:$0xff]  ;;  %v88_v4 = vpack.c.bf16 %v58_v2, %v57_v1  ;;  %v60_v5 = vld [vmem:[#allocation5 + $0x18] sm:$0xff]  ;;  %vm64_vm1 = vcmask 261120   ;;  %v557_v22 = vld [vmem:[#allocation7] sm:$0x1]  ;;  %vm207_vm2 = vcmask 253952  }
  0x39   :  { %v55_v6 = vld [vmem:[#allocation2] sm:$0xff]  ;;  %v56_v7 = vld [vmem:[#allocation2 + $0x8] sm:$0xff]  ;;  %v89_v10 = vpack.c.bf16 %v60_v5, %v59_v3  ;;  %v206_v23 = vmul.f32 %v557_v22, %v557_v22  ;;  %s474_s2 = smov [#allocation8]  }
  0x3a   :  { %v62_v8 = vmul.f32 %v55_v6, %v55_v6  ;;  %v63_v9 = vmul.f32 %v56_v7, %v56_v7  ;;  %318 = vmatpush3.bf16.msra.mxu0 %v88_v4  ;;  %v87_v12 = vpack.c.bf16 %v56_v7, %v55_v6  ;;  %s298_s22 = sshll.u32 %s474_s2, 4  ;;  %s299_s22 = int_to_ptr.vmem [resolvable:$true] %s298_s22 }
  0x3b   :  { %319 = vmatprep.subr.bf16.mxu0 %v472_v0  ;;  %v208_v24 = vsel %vm207_vm2, %v206_v23, 0.0  ;;  %s439_s23 = scalar_lea.vmem %s299_s22, 256  ;;  %p444_p11 = scmp.lt.s32.totalorder %s299_s22, %s299_s22 }
  0x3c   :  { %v65_v11 = vsel %vm64_vm1, %v62_v8, 0.0  ;;  %v68_v13 = vsel %vm64_vm1, %v63_v9, 0.0  ;;  %v212_v8 = vlaneseq  ;;  %p440_p10 = scmp.ne.s32.totalorder %s299_s22, %s439_s23  ;;  %p445_p12 = scmp.lt.s32.totalorder %s439_s23, %s439_s23 }
  0x3d   :  { %66 = vadd.xlane.f32.xlu0 %v65_v11 }
  0x3e   :  { %320 = vmatpush3.bf16.msra.mxu0 %v89_v10  ;;  %p446_p13 = por %p445_p12, %p444_p11 }
  0x40   :  { %p447_p0 = pnand %p446_p13, %p440_p10 }
  0x41   :  { %69 = vadd.xlane.f32.xlu0 %v68_v13  ;;  %322 = vmatmul.mubr.msk.bf16.vlgmr.msra.gmra.mrb[0].mxu0 %vm64_vm1, %v87_v12  ;;  %v213_v12 = vshrl.u32 %v212_v8, 7 }
  0x43   :  { %v214_v13 = vsub.s32 0, %v213_v12 }
  0x45   :  { %209 = vadd.xlane.f32.xlu0 %v208_v24 }
  0xca   :  { %v67_v25 = vpop.xlane.xlu0 %66 }
  0xcb   :  { %333 = vrsqrt.f32 %v67_v25  ;;  %vm73_vm3 = vcmp.eq.f32.partialorder %v67_v25, inf  ;;  %v76_v30 = vand.u32 2147483648, %v67_v25  ;;  %vm75_vm4 = vcmp.eq.f32.partialorder %v67_v25, 0.0 }
  0xce   :  { %v70_v26 = vpop.xlane.xlu0 %69 }
  0xcf   :  { %335 = vrsqrt.f32 %v70_v26  ;;  %vm80_vm5 = vcmp.eq.f32.partialorder %v70_v26, inf  ;;  %v83_v34 = vand.u32 2147483648, %v70_v26  ;;  %vm82_vm6 = vcmp.eq.f32.partialorder %v70_v26, 0.0 }
  0xd5   :  { %v334_v27 = vpop.eup %333 }
  0xd6   :  { %v72_v28 = vmul.f32 %v334_v27, %v67_v25 }
  0xd8   :  { %v74_v31 = vsel %vm73_vm3, %v67_v25, %v72_v28 }
  0xd9   :  { %v336_v29 = vpop.eup %335  ;;  %v77_v33 = vsel %vm75_vm4, %v76_v30, %v74_v31 }
  0xda   :  { %v79_v32 = vmul.f32 %v336_v29, %v70_v26  ;;  %v85_v36 = vmax.f32 %v77_v33, 1e-15 }
  0xdc   :  { %v81_v35 = vsel %vm80_vm5, %v70_v26, %v79_v32  ;;  %v312_v38 = vclamps-f32 %v85_v36, 0.999999 }
  0xdd   :  { %v84_v37 = vsel %vm82_vm6, %v83_v34, %v81_v35 }
  0xde   :  { %v86_v39 = vmax.f32 %v84_v37, 1e-15  ;;  %v170_v40 = vsub.f32 1.0, %v312_v38  ;;  %v168_v43 = vadd.f32 1.0, %v312_v38 }
  0xe0   :  { %v313_v41 = vclamps-f32 %v86_v39, 0.999999  ;;  %337 = vrcp.f32 %v170_v40 }
  0xe2   :  { %v171_v42 = vsub.f32 1.0, %v313_v41  ;;  %v169_v45 = vadd.f32 1.0, %v313_v41 }
  0xe4   :  { %339 = vrcp.f32 %v171_v42 }
  0xea   :  { %v338_v44 = vpop.eup %337 }
  0xeb   :  { %v173_v46 = vmul.f32 %v338_v44, %v168_v43 }
  0xed   :  { %341 = vlog2.f32 %v173_v46 }
  0xee   :  { %v340_v47 = vpop.eup %339 }
  0xef   :  { %v175_v49 = vmul.f32 %v340_v47, %v169_v45 }
  0xf7   :  { %v342_v51 = vpop.eup %341 }
  0xf8   :  { %v177_v55 = vmul.f32 0.6931472, %v342_v51 }
  0xfa   :  { %v180_v0 = vmul.f32 0.5, %v177_v55 }
 0x114   :  { %v547_v14 = vpop.f32.mrb[0].mxu0 }
 0x115   :  { %v323_v15 = vpop.f32.mrb[1].mxu0  ;;  %v134_v16 = vmul.f32 %v547_v14, %v547_v14 }
 0x116   :  { %v551_v17 = vpop.f32.mrb[2].mxu0 }
 0x117   :  { %v135_v18 = vmul.f32 %v551_v17, %v551_v17  ;;  %v324_v19 = vpop.f32.mrb[3].mxu0  ;;  %v136_v20 = vsel %vm64_vm1, %v134_v16, 0.0 }
 0x118   :  { %137 = vadd.xlane.f32.xlu1 %v136_v20  ;;  %v215_v19 = vrot.slane %v557_v22, %v214_v13 }
 0x119   :  { %v139_v21 = vsel %vm64_vm1, %v135_v18, 0.0 }
 0x11c   :  { %140 = vadd.xlane.f32.xlu1 %v139_v21 }
 0x1a5   :  { %v138_v48 = vpop.xlane.xlu1 %137 }
 0x1a6   :  { %343 = vrsqrt.f32 %v138_v48  ;;  %vm146_vm7 = vcmp.eq.f32.partialorder %v138_v48, inf  ;;  %v149_v54 = vand.u32 2147483648, %v138_v48  ;;  %vm142_vm8 = vcmp.eq.f32.partialorder %v138_v48, 0.0 }
 0x1a7   :  { %345 = vlog2.f32 %v175_v49 }
 0x1a9   :  { %v141_v50 = vpop.xlane.xlu1 %140 }
 0x1aa   :  { %347 = vrsqrt.f32 %v141_v50  ;;  %vm153_vm9 = vcmp.eq.f32.partialorder %v141_v50, inf  ;;  %v156_v63 = vand.u32 2147483648, %v141_v50  ;;  %vm143_vm10 = vcmp.eq.f32.partialorder %v141_v50, 0.0 }
 0x1ab   :  { %349 = vrcp.f32 %v85_v36 }
 0x1ac   :  { %351 = vrcp.f32 %v86_v39 }
 0x1b0   :  { %v344_v52 = vpop.eup %343 }
 0x1b1   :  { %v145_v53 = vmul.f32 %v344_v52, %v138_v48  ;;  %v346_v56 = vpop.eup %345 }
 0x1b2   :  { %v179_v3 = vmul.f32 0.6931472, %v346_v56 }
 0x1b3   :  { %v147_v57 = vsel %vm146_vm7, %v138_v48, %v145_v53 }
 0x1b4   :  { %v348_v58 = vpop.eup %347  ;;  %v150_v59 = vsel %vm142_vm8, %v149_v54, %v147_v57  ;;  %v181_v10 = vmul.f32 0.5, %v179_v3 }
 0x1b5   :  { %v152_v60 = vmul.f32 %v348_v58, %v141_v50  ;;  %v158_v61 = vmax.f32 %v150_v59, 1e-15  ;;  %v350_v62 = vpop.eup %349 }
 0x1b6   :  { %v352_v7 = vpop.eup %351 }
 0x1b7   :  { %v162_v1 = vmul.f32 %v350_v62, %v158_v61  ;;  %v154_v2 = vsel %vm153_vm9, %v141_v50, %v152_v60 }
 0x1b8   :  { %v157_v4 = vsel %vm143_vm10, %v156_v63, %v154_v2 }
 0x1b9   :  { %v182_v5 = vmul.f32 %v180_v0, %v162_v1  ;;  %v159_v6 = vmax.f32 %v157_v4, 1e-15 }
 0x1bb   :  { %353 = vtanh.f32 %v182_v5  ;;  %v163_v9 = vmul.f32 %v352_v7, %v159_v6 }
 0x1bc   :  { %355 = vrcp.f32 %v158_v61 }
 0x1bd   :  { %v183_v11 = vmul.f32 %v181_v10, %v163_v9 }
 0x1bf   :  { %357 = vtanh.f32 %v183_v11 }
 0x1c0   :  { %359 = vrcp.f32 %v159_v6 }
 0x1c5   :  { %v354_v15 = vpop.eup %353 }
 0x1c6   :  { %v186_v16 = vmul.f32 %v354_v15, %v547_v14  ;;  %v356_v18 = vpop.eup %355 }
 0x1c8   :  { %v190_v20 = vmul.f32 %v356_v18, %v186_v16 }
 0x1c9   :  { %v358_v21 = vpop.eup %357 }
 0x1ca   :  { %v196_v23 = vsel %vm142_vm8, 0.0, %v190_v20  ;;  %v187_v24 = vmul.f32 %v358_v21, %v551_v17  ;;  %v360_v25 = vpop.eup %359  ;;  %v210_v17 = vpop.xlane.xlu0 %209 }
 0x1cb   :  { %v217_v26 = vmul.f32 %v215_v19, %v196_v23  ;;  %v198_v29 = vmul.f32 %v196_v23, %v196_v23  ;;  %v232_v36 = vrot.slane %v210_v17, %v214_v13 }
 0x1cc   :  { %v191_v27 = vmul.f32 %v360_v25, %v187_v24 }
 0x1cd   :  { %v219_v28 = vsel %vm64_vm1, %v217_v26, 0.0  ;;  %v200_v14 = vsel %vm64_vm1, %v198_v29, 0.0 }
 0x1ce   :  { %220 = vadd.xlane.f32.xlu1 %v219_v28  ;;  %v197_v30 = vsel %vm143_vm10, 0.0, %v191_v27 }
 0x1cf   :  { %v218_v31 = vmul.f32 %v215_v19, %v197_v30  ;;  %v199_v32 = vmul.f32 %v197_v30, %v197_v30 }
 0x1d1   :  { %v222_v22 = vsel %vm64_vm1, %v218_v31, 0.0  ;;  %v203_v33 = vsel %vm64_vm1, %v199_v32, 0.0 }
 0x1d2   :  { %201 = vadd.xlane.f32.xlu1 %v200_v14  ;;  %223 = vadd.xlane.f32.xlu0 %v222_v22 }
 0x1d6   :  { %204 = vadd.xlane.f32.xlu0 %v203_v33 }
 0x25b   :  { %v221_v34 = vpop.xlane.xlu1 %220 }
 0x25c   :  { %v225_v35 = vmul.f32 2.0, %v221_v34 }
 0x25e   :  { %v227_v39 = vadd.f32 1.0, %v225_v35 }
 0x25f   :  { %v202_v37 = vpop.xlane.xlu1 %201  ;;  %v224_v38 = vpop.xlane.xlu0 %223 }
 0x260   :  { %v243_v40 = vmul.f32 %v232_v36, %v202_v37  ;;  %v226_v41 = vmul.f32 2.0, %v224_v38  ;;  %v233_v47 = vadd.f32 %v232_v36, %v227_v39  ;;  %v237_v48 = vsub.f32 1.0, %v202_v37 }
 0x262   :  { %v245_v42 = vadd.f32 %v243_v40, %v227_v39  ;;  %v228_v45 = vadd.f32 1.0, %v226_v41  ;;  %v235_v51 = vmul.f32 %v233_v47, %v196_v23  ;;  %v239_v52 = vmul.f32 %v237_v48, %v215_v19 }
 0x263   :  { %v205_v43 = vpop.xlane.xlu0 %204 }
 0x264   :  { %v247_v44 = vmax.f32 %v245_v42, 1e-15  ;;  %v244_v46 = vmul.f32 %v232_v36, %v205_v43  ;;  %v234_v53 = vadd.f32 %v232_v36, %v228_v45  ;;  %v238_v54 = vsub.f32 1.0, %v205_v43 }
 0x265   :  { %v241_v55 = vadd.f32 %v239_v52, %v235_v51 }
 0x266   :  { %361 = vrcp.f32 %v247_v44  ;;  %v246_v49 = vadd.f32 %v244_v46, %v228_v45  ;;  %v236_v57 = vmul.f32 %v234_v53, %v197_v30  ;;  %v240_v58 = vmul.f32 %v238_v54, %v215_v19 }
 0x268   :  { %v248_v50 = vmax.f32 %v246_v49, 1e-15  ;;  %v242_v61 = vadd.f32 %v240_v58, %v236_v57 }
 0x26a   :  { %363 = vrcp.f32 %v248_v50 }
 0x270   :  { %v362_v56 = vpop.eup %361 }
 0x271   :  { %v250_v59 = vmul.f32 %v362_v56, %v241_v55 }
 0x273   :  { %v253_v60 = vmul.f32 %v250_v59, %v250_v59 }
 0x274   :  { %v364_v62 = vpop.eup %363 }
 0x275   :  { %v255_v63 = vsel %vm64_vm1, %v253_v60, 0.0  ;;  %v252_v0 = vmul.f32 %v364_v62, %v242_v61 }
 0x276   :  { %256 = vadd.xlane.f32.xlu1 %v255_v63 }
 0x277   :  { %v254_v1 = vmul.f32 %v252_v0, %v252_v0 }
 0x279   :  { %v258_v2 = vsel %vm64_vm1, %v254_v1, 0.0 }
 0x27a   :  { %259 = vadd.xlane.f32.xlu0 %v258_v2 }
 0x303   :  { %v257_v3 = vpop.xlane.xlu1 %256 }
 0x304   :  { %365 = vrsqrt.f32 %v257_v3  ;;  %vm263_vm11 = vcmp.eq.f32.partialorder %v257_v3, inf  ;;  %v266_v7 = vand.u32 2147483648, %v257_v3  ;;  %vm265_vm12 = vcmp.eq.f32.partialorder %v257_v3, 0.0 }
 0x307   :  { %v260_v4 = vpop.xlane.xlu0 %259 }
 0x308   :  { %367 = vrsqrt.f32 %v260_v4  ;;  %vm270_vm13 = vcmp.eq.f32.partialorder %v260_v4, inf  ;;  %v273_v13 = vand.u32 2147483648, %v260_v4  ;;  %vm272_vm14 = vcmp.eq.f32.partialorder %v260_v4, 0.0 }
 0x30e   :  { %v366_v5 = vpop.eup %365 }
 0x30f   :  { %v262_v6 = vmul.f32 %v366_v5, %v257_v3 }
 0x311   :  { %v264_v8 = vsel %vm263_vm11, %v257_v3, %v262_v6 }
 0x312   :  { %v267_v9 = vsel %vm265_vm12, %v266_v7, %v264_v8  ;;  %v368_v10 = vpop.eup %367 }
 0x313   :  { %v275_v11 = vmax.f32 %v267_v9, 1e-15  ;;  %v269_v12 = vmul.f32 %v368_v10, %v260_v4 }
 0x315   :  { %369 = vrcp.f32 %v275_v11  ;;  %v271_v15 = vsel %vm270_vm13, %v260_v4, %v269_v12  ;;  %vm277_vm15 = vcmp.gt.f32.partialorder %v275_v11, 0.99999 }
 0x316   :  { %v274_v16 = vsel %vm272_vm14, %v273_v13, %v271_v15 }
 0x317   :  { %v276_v18 = vmax.f32 %v274_v16, 1e-15 }
 0x319   :  { %371 = vrcp.f32 %v276_v18  ;;  %vm278_vm0 = vcmp.gt.f32.partialorder %v276_v18, 0.99999 }
 0x31f   :  { %v370_v19 = vpop.eup %369 }
 0x320   :  { %v280_v20 = vmul.f32 0.99999, %v370_v19 }
 0x322   :  { %v283_v21 = vmul.f32 %v280_v20, %v250_v59 }
 0x323   :  { %v372_v23 = vpop.eup %371 }
 0x324   :  { %v289_v24 = vsel %vm277_vm15, %v283_v21, %v250_v59  ;;  %v282_v25 = vmul.f32 0.99999, %v372_v23 }
 0x325   :  { %291 = vst.msk [vmem:[#allocation8] sm:$0xff] %vm64_vm1, %v289_v24 }
 0x326   :  { %v284_v26 = vmul.f32 %v282_v25, %v252_v0 }
 0x328   :  { %v290_v27 = vsel %vm278_vm0, %v284_v26, %v252_v0 }
 0x329   :  { %292 = vst.msk [vmem:[#allocation8 + $0x8] sm:$0xff] %vm64_vm1, %v290_v27 }
 0x32a   :  { %450 = shalt.err (!%p447_p0)
}
 0x32b   :  { %s451_s28 = scalar_lea.hbm %s594_s3, 256 }
 0x32c   :  { %p452_p1 = scmp.ne.s32.totalorder %s594_s3, %s451_s28  ;;  %p455_p2 = scmp.lt.u32.totalorder %s451_s28, %s594_s3 }
 0x32e   :  { %p457_p3 = pnand %p455_p2, %p452_p1 }
 0x330   :  { %460 = shalt.err (!%p457_p3)
}
 0x331   :  { %304 = dma.vmem_to_hbm [thread:$0]  %s299_s22, 256, %s594_s3, [#allocation4], %s469_s24, %s469_s24, %s470_s25  }
 0x332   :  { %465 = dma.done.wait [#allocation4], 256  }
 0x333   :  { %466 = vsyncadd [#allocation4], 4294967040 }
 0x334   :  { %308 = vsyncpa [#allocation3], 1 }
 0x335   :  { %309 = vsyncpa [#allocation6], 1 }
 0x336   :  { %310 = vsyncpa [#allocation4], 1 }

// kernel: hyperbolic_transformer_forward.17
= control target key start
LH: loop header
LB: loop body
LE: loop exit
PB: predicated region body
PF: predicated region fallthrough
CT: control target
= control target key end

     0   :  { %10 = vsyncpa [#allocation3], 0  ;;  %s696_s0 = inlined_call_operand.hbm [shape: f32[16,32], index: 0, kind: input, shape index: {}, may-alias: {0,5}]   ;;  %s697_s1 = inlined_call_operand.hbm [shape: f32[16,32], index: 1, kind: input, shape index: {}]   ;;  %s698_s2 = inlined_call_operand.hbm [shape: f32[1,32], index: 2, kind: input, shape index: {}]   ;;  %s699_s3 = inlined_call_operand.hbm [shape: f32[1,32], index: 3, kind: input, shape index: {}]   ;;  %s700_s4 = inlined_call_operand.hbm [shape: f32[1,32], index: 4, kind: input, shape index: {}]   ;;  %s701_s5 = inlined_call_operand.hbm [shape: f32[16,32], index: 5, kind: output, shape index: {}, may-alias: {0,5}]  }
   0x1   :  { %11 = vsyncpa [#allocation6], 0 }
   0x2   :  { %12 = vsyncpa [#allocation9], 0 }
   0x3   :  { %13 = vsyncpa [#allocation4], 0  ;;  %s549_s18 = smov [#allocation5]   ;;  %s550_s20 = smov [#allocation8]  }
   0x4   :  { %s31_s19 = sshll.u32 %s549_s18, 4  ;;  %s54_s21 = sshll.u32 %s550_s20, 4  ;;  %s32_s19 = int_to_ptr.vmem [resolvable:$true] %s31_s19  ;;  %s587_s21 = int_to_ptr.vmem [resolvable:$true] %s54_s21 }
   0x5   :  { %s409_s24 = scalar_lea.hbm %s697_s1, 256 }
   0x6   :  { %p410_p0 = scmp.ne.s32.totalorder %s697_s1, %s409_s24  ;;  %p413_p1 = scmp.lt.u32.totalorder %s409_s24, %s697_s1 }
   0x8   :  { %p415_p2 = pnand %p413_p1, %p410_p0 }
   0xa   :  { %418 = shalt.err (!%p415_p2)
}
   0xb   :  { %s419_s29 = scalar_lea.vmem %s32_s19, 256  ;;  %p424_p4 = scmp.lt.s32.totalorder %s32_s19, %s32_s19 }
   0xc   :  { %p420_p3 = scmp.ne.s32.totalorder %s32_s19, %s419_s29  ;;  %p425_p5 = scmp.lt.s32.totalorder %s419_s29, %s419_s29 }
   0xe   :  { %p426_p6 = por %p425_p5, %p424_p4 }
  0x10   :  { %p427_p7 = pnand %p426_p6, %p420_p3 }
  0x12   :  { %430 = shalt.err (!%p427_p7)
}
  0x13   :  { %s551_s30 = smov 128   ;;  %s552_s6 = smov 8  }
  0x14   :  { %37 = dma.hbm_to_vmem [thread:$0]  %s697_s1, 256, %s32_s19, [#allocation6], %s551_s30, %s551_s30, %s552_s6  }
  0x15   :  { %s431_s11 = scalar_lea.hbm %s699_s3, 16 }
  0x16   :  { %p432_p8 = scmp.ne.s32.totalorder %s699_s3, %s431_s11  ;;  %p435_p9 = scmp.lt.u32.totalorder %s431_s11, %s699_s3 }
  0x18   :  { %p437_p10 = pnand %p435_p9, %p432_p8 }
  0x1a   :  { %440 = shalt.err (!%p437_p10)
}
  0x1b   :  { %s441_s16 = scalar_lea.vmem %s587_s21, 16  ;;  %s445_s1 = scalar_lea.vmem %s587_s21, 32 }
  0x1c   :  { %p442_p11 = scmp.ne.s32.totalorder %s587_s21, %s441_s16  ;;  %p446_p12 = scmp.lt.s32.totalorder %s587_s21, %s587_s21 }
  0x1d   :  { %p447_p13 = scmp.lt.s32.totalorder %s445_s1, %s441_s16 }
  0x1f   :  { %p448_p0 = por %p447_p13, %p446_p12 }
  0x21   :  { %p449_p1 = pnand %p448_p0, %p442_p11 }
  0x23   :  { %452 = shalt.err (!%p449_p1)
}
  0x24   :  { %57 = dma.hbm_to_vmem [thread:$0]  %s699_s3, 16, %s587_s21, [#allocation9]  }
  0x25   :  { %s553_s19 = smov [#allocation2]   ;;  %s554_s22 = smov [#allocation7]  }
  0x26   :  { %s19_s20 = sshll.u32 %s553_s19, 4  ;;  %s44_s23 = sshll.u32 %s554_s22, 4  ;;  %s20_s20 = int_to_ptr.vmem [resolvable:$true] %s19_s20  ;;  %s45_s23 = int_to_ptr.vmem [resolvable:$true] %s44_s23 }
  0x27   :  { %s453_s26 = scalar_lea.hbm %s696_s0, 256 }
  0x28   :  { %p454_p2 = scmp.ne.s32.totalorder %s696_s0, %s453_s26  ;;  %p457_p3 = scmp.lt.u32.totalorder %s453_s26, %s696_s0 }
  0x2a   :  { %p459_p4 = pnand %p457_p3, %p454_p2 }
  0x2c   :  { %462 = shalt.err (!%p459_p4)
}
  0x2d   :  { %s463_s3 = scalar_lea.vmem %s20_s20, 256  ;;  %p468_p6 = scmp.lt.s32.totalorder %s20_s20, %s20_s20 }
  0x2e   :  { %p464_p5 = scmp.ne.s32.totalorder %s20_s20, %s463_s3  ;;  %p469_p7 = scmp.lt.s32.totalorder %s463_s3, %s463_s3 }
  0x30   :  { %p470_p8 = por %p469_p7, %p468_p6 }
  0x32   :  { %p471_p9 = pnand %p470_p8, %p464_p5 }
  0x34   :  { %474 = shalt.err (!%p471_p9)
}
  0x35   :  { %25 = dma.hbm_to_vmem [thread:$0]  %s696_s0, 256, %s20_s20, [#allocation3], %s551_s30, %s551_s30, %s552_s6  }
  0x36   :  { %s475_s11 = scalar_lea.hbm %s698_s2, 16 }
  0x37   :  { %p476_p10 = scmp.ne.s32.totalorder %s698_s2, %s475_s11  ;;  %p479_p11 = scmp.lt.u32.totalorder %s475_s11, %s698_s2 }
  0x39   :  { %p481_p12 = pnand %p479_p11, %p476_p10 }
  0x3b   :  { %484 = shalt.err (!%p481_p12)
}
  0x3c   :  { %s485_s16 = scalar_lea.vmem %s45_s23, 16  ;;  %s489_s1 = scalar_lea.vmem %s45_s23, 32 }
  0x3d   :  { %p486_p13 = scmp.ne.s32.totalorder %s45_s23, %s485_s16  ;;  %p490_p0 = scmp.lt.s32.totalorder %s45_s23, %s45_s23 }
  0x3e   :  { %p491_p1 = scmp.lt.s32.totalorder %s489_s1, %s485_s16 }
  0x40   :  { %p492_p2 = por %p491_p1, %p490_p0 }
  0x42   :  { %p493_p3 = pnand %p492_p2, %p486_p13 }
  0x44   :  { %496 = shalt.err (!%p493_p3)
}
  0x45   :  { %47 = dma.hbm_to_vmem [thread:$0]  %s698_s2, 16, %s45_s23, [#allocation6]  }
  0x46   :  { %s555_s18 = smov [#allocation10]   ;;  %s497_s24 = scalar_lea.hbm %s700_s4, 16 }
  0x47   :  { %s64_s19 = sshll.u32 %s555_s18, 4  ;;  %p498_p4 = scmp.ne.s32.totalorder %s700_s4, %s497_s24  ;;  %s65_s19 = int_to_ptr.vmem [resolvable:$true] %s64_s19 }
  0x48   :  { %p501_p5 = scmp.lt.u32.totalorder %s497_s24, %s700_s4 }
  0x4a   :  { %p503_p6 = pnand %p501_p5, %p498_p4 }
  0x4c   :  { %506 = shalt.err (!%p503_p6)
}
  0x4d   :  { %s507_s29 = scalar_lea.vmem %s65_s19, 16  ;;  %s511_s2 = scalar_lea.vmem %s65_s19, 32 }
  0x4e   :  { %p508_p7 = scmp.ne.s32.totalorder %s65_s19, %s507_s29  ;;  %p512_p8 = scmp.lt.s32.totalorder %s65_s19, %s65_s19 }
  0x4f   :  { %p513_p9 = scmp.lt.s32.totalorder %s511_s2, %s507_s29 }
  0x51   :  { %p514_p10 = por %p513_p9, %p512_p8 }
  0x53   :  { %p515_p11 = pnand %p514_p10, %p508_p7 }
  0x55   :  { %518 = shalt.err (!%p515_p11)
}
  0x56   :  { %67 = dma.hbm_to_vmem [thread:$0]  %s700_s4, 16, %s65_s19, [#allocation9]  }
  0x57   :  { %541 = dma.done.wait [#allocation3], 256  }
  0x58   :  { %542 = vsyncadd [#allocation3], 4294967040 }
  0x59   :  { %543 = dma.done.wait [#allocation6], 272  }
  0x5a   :  { %544 = vsyncadd [#allocation6], 4294967024 }
  0x5b   :  { %545 = dma.done.wait [#allocation9], 32  }
  0x5c   :  { %546 = vsyncadd [#allocation9], 4294967264  ;;  %v83_v0 = vld [vmem:[#allocation2] sm:$0xff]  ;;  %v85_v1 = vld [vmem:[#allocation5] sm:$0xff]  ;;  %vm89_vm0 = vcmask 261120   ;;  %vm286_vm9 = vcmask 253952  }
  0x5d   :  { %v84_v2 = vld [vmem:[#allocation2 + $0x8] sm:$0xff]  ;;  %v104_v3 = vmul.f32 %v85_v1, %v83_v0  ;;  %v87_v4 = vmul.f32 %v83_v0, %v83_v0  ;;  %v86_v5 = vld [vmem:[#allocation5 + $0x8] sm:$0xff]  ;;  %v96_v12 = vmul.f32 %v85_v1, %v85_v1  ;;  %s556_s4 = smov [#allocation11]  }
  0x5e   :  { %v88_v6 = vmul.f32 %v84_v2, %v84_v2  ;;  %v105_v7 = vmul.f32 %v86_v5, %v84_v2  ;;  %v97_v13 = vmul.f32 %v86_v5, %v86_v5  ;;  %s339_s3 = sshll.u32 %s556_s4, 4  ;;  %s340_s3 = int_to_ptr.vmem [resolvable:$true] %s339_s3 }
  0x5f   :  { %v106_v8 = vsel %vm89_vm0, %v104_v3, 0.0  ;;  %v90_v9 = vsel %vm89_vm0, %v87_v4, 0.0  ;;  %v98_v14 = vsel %vm89_vm0, %v96_v12, 0.0  ;;  %s519_s21 = scalar_lea.vmem %s340_s3, 256  ;;  %p524_p13 = scmp.lt.s32.totalorder %s340_s3, %s340_s3 }
  0x60   :  { %107 = vadd.xlane.f32.xlu0 %v106_v8  ;;  %91 = vadd.xlane.f32.xlu1 %v90_v9  ;;  %v109_v10 = vsel %vm89_vm0, %v105_v7, 0.0  ;;  %v93_v11 = vsel %vm89_vm0, %v88_v6, 0.0  ;;  %v101_v15 = vsel %vm89_vm0, %v97_v13, 0.0  ;;  %p520_p12 = scmp.ne.s32.totalorder %s340_s3, %s519_s21  ;;  %p525_p0 = scmp.lt.s32.totalorder %s519_s21, %s519_s21 }
  0x62   :  { %p526_p1 = por %p525_p0, %p524_p13 }
  0x64   :  { %110 = vadd.xlane.f32.xlu0 %v109_v10  ;;  %94 = vadd.xlane.f32.xlu1 %v93_v11  ;;  %p527_p2 = pnand %p526_p1, %p520_p12 }
  0x68   :  { %99 = vadd.xlane.f32.xlu0 %v98_v14  ;;  %102 = vadd.xlane.f32.xlu1 %v101_v15 }
  0xed   :  { %v108_v16 = vpop.xlane.xlu0 %107  ;;  %v92_v17 = vpop.xlane.xlu1 %91 }
  0xee   :  { %v112_v20 = vmul.f32 2.0, %v108_v16  ;;  %v120_v34 = vsub.f32 1.0, %v92_v17 }
  0xf0   :  { %v114_v24 = vadd.f32 1.0, %v112_v20  ;;  %v122_v38 = vmul.f32 %v120_v34, %v85_v1 }
  0xf1   :  { %v111_v18 = vpop.xlane.xlu0 %110  ;;  %v95_v19 = vpop.xlane.xlu1 %94 }
  0xf2   :  { %v113_v21 = vmul.f32 2.0, %v111_v18  ;;  %v121_v35 = vsub.f32 1.0, %v95_v19 }
  0xf4   :  { %v115_v25 = vadd.f32 1.0, %v113_v21  ;;  %v123_v39 = vmul.f32 %v121_v35, %v86_v5 }
  0xf5   :  { %v100_v22 = vpop.xlane.xlu0 %99  ;;  %v103_v23 = vpop.xlane.xlu1 %102 }
  0xf6   :  { %v126_v26 = vmul.f32 %v100_v22, %v92_v17  ;;  %v127_v27 = vmul.f32 %v103_v23, %v95_v19  ;;  %v116_v32 = vadd.f32 %v114_v24, %v100_v22  ;;  %v117_v33 = vadd.f32 %v115_v25, %v103_v23 }
  0xf8   :  { %v128_v28 = vadd.f32 %v126_v26, %v114_v24  ;;  %v129_v29 = vadd.f32 %v127_v27, %v115_v25  ;;  %v118_v36 = vmul.f32 %v116_v32, %v83_v0  ;;  %v119_v37 = vmul.f32 %v117_v33, %v84_v2 }
  0xfa   :  { %v130_v30 = vmax.f32 %v128_v28, 1e-15  ;;  %v131_v31 = vmax.f32 %v129_v29, 1e-15  ;;  %v124_v40 = vadd.f32 %v122_v38, %v118_v36  ;;  %v125_v42 = vadd.f32 %v123_v39, %v119_v37 }
  0xfc   :  { %365 = vrcp.f32 %v130_v30 }
  0xfd   :  { %367 = vrcp.f32 %v131_v31 }
 0x106   :  { %v366_v41 = vpop.eup %365 }
 0x107   :  { %v368_v43 = vpop.eup %367  ;;  %v133_v44 = vmul.f32 %v366_v41, %v124_v40 }
 0x108   :  { %v135_v45 = vmul.f32 %v368_v43, %v125_v42 }
 0x109   :  { %v136_v46 = vmul.f32 %v133_v44, %v133_v44 }
 0x10a   :  { %v137_v47 = vmul.f32 %v135_v45, %v135_v45 }
 0x10b   :  { %v138_v48 = vsel %vm89_vm0, %v136_v46, 0.0 }
 0x10c   :  { %139 = vadd.xlane.f32.xlu0 %v138_v48  ;;  %v141_v49 = vsel %vm89_vm0, %v137_v47, 0.0 }
 0x10d   :  { %142 = vadd.xlane.f32.xlu1 %v141_v49 }
 0x199   :  { %v140_v50 = vpop.xlane.xlu0 %139 }
 0x19a   :  { %369 = vrsqrt.f32 %v140_v50  ;;  %v143_v51 = vpop.xlane.xlu1 %142  ;;  %vm146_vm1 = vcmp.eq.f32.partialorder %v140_v50, inf  ;;  %v149_v55 = vand.u32 2147483648, %v140_v50  ;;  %vm148_vm2 = vcmp.eq.f32.partialorder %v140_v50, 0.0 }
 0x19b   :  { %371 = vrsqrt.f32 %v143_v51  ;;  %vm153_vm3 = vcmp.eq.f32.partialorder %v143_v51, inf  ;;  %v156_v58 = vand.u32 2147483648, %v143_v51  ;;  %vm155_vm4 = vcmp.eq.f32.partialorder %v143_v51, 0.0 }
 0x1a4   :  { %v370_v52 = vpop.eup %369 }
 0x1a5   :  { %v372_v53 = vpop.eup %371  ;;  %v145_v54 = vmul.f32 %v370_v52, %v140_v50 }
 0x1a6   :  { %v152_v56 = vmul.f32 %v372_v53, %v143_v51 }
 0x1a7   :  { %v147_v57 = vsel %vm146_vm1, %v140_v50, %v145_v54  ;;  %v356_v54 = vld [vmem:[#allocation8] ss:$0 sm:$0xff] }
 0x1a8   :  { %v150_v59 = vsel %vm148_vm2, %v149_v55, %v147_v57  ;;  %v154_v60 = vsel %vm153_vm3, %v143_v51, %v152_v56  ;;  %v355_v51 = vld [vmem:[#allocation7] ss:$0 sm:$0xff] }
 0x1a9   :  { %v158_v61 = vmax.f32 %v150_v59, 1e-15  ;;  %v157_v62 = vsel %vm155_vm4, %v156_v58, %v154_v60 }
 0x1aa   :  { %v159_v63 = vmax.f32 %v157_v62, 1e-15 }
 0x1ab   :  { %v353_v0 = vclamps-f32 %v158_v61, 0.999999 }
 0x1ac   :  { %v354_v1 = vclamps-f32 %v159_v63, 0.999999 }
 0x1ad   :  { %v166_v2 = vsub.f32 1.0, %v353_v0  ;;  %v164_v4 = vadd.f32 1.0, %v353_v0  ;;  %v276_v0 = vld [vmem:[#allocation10] sm:$0x1] }
 0x1ae   :  { %v167_v3 = vsub.f32 1.0, %v354_v1  ;;  %v165_v6 = vadd.f32 1.0, %v354_v1  ;;  %v285_v1 = vmul.f32 %v276_v0, %v276_v0 }
 0x1af   :  { %373 = vrcp.f32 %v166_v2 }
 0x1b0   :  { %375 = vrcp.f32 %v167_v3  ;;  %v287_v2 = vsel %vm286_vm9, %v285_v1, 0.0 }
 0x1b9   :  { %v374_v5 = vpop.eup %373 }
 0x1ba   :  { %v376_v7 = vpop.eup %375  ;;  %v169_v8 = vmul.f32 %v374_v5, %v164_v4 }
 0x1bb   :  { %v171_v9 = vmul.f32 %v376_v7, %v165_v6 }
 0x1bc   :  { %377 = vlog2.f32 %v169_v8 }
 0x1bd   :  { %379 = vlog2.f32 %v171_v9 }
 0x1be   :  { %381 = vrcp.f32 %v158_v61 }
 0x1bf   :  { %383 = vrcp.f32 %v159_v63 }
 0x1c6   :  { %v378_v10 = vpop.eup %377 }
 0x1c7   :  { %v380_v11 = vpop.eup %379  ;;  %v173_v12 = vmul.f32 0.6931472, %v378_v10 }
 0x1c8   :  { %v175_v13 = vmul.f32 0.6931472, %v380_v11  ;;  %v382_v17 = vpop.eup %381 }
 0x1c9   :  { %v176_v14 = vmul.f32 0.5, %v173_v12  ;;  %v384_v19 = vpop.eup %383 }
 0x1ca   :  { %v177_v15 = vmul.f32 0.5, %v175_v13 }
 0x1cb   :  { %v178_v16 = vmul.f32 %v176_v14, %v133_v44 }
 0x1cc   :  { %v179_v18 = vmul.f32 %v177_v15, %v135_v45 }
 0x1cd   :  { %v182_v20 = vmul.f32 %v382_v17, %v178_v16  ;;  %v291_v17 = vlaneseq }
 0x1ce   :  { %v183_v21 = vmul.f32 %v384_v19, %v179_v18 }
 0x1cf   :  { %v184_v22 = vsel %vm89_vm0, %v182_v20, 0.0  ;;  %v292_v18 = vshrl.u32 %v291_v17, 7 }
 0x1d0   :  { %185 = vadd.xlane.f32.xlu0 %v184_v22  ;;  %v187_v23 = vsel %vm89_vm0, %v183_v21, 0.0 }
 0x1d1   :  { %188 = vadd.xlane.f32.xlu1 %v187_v23  ;;  %v293_v19 = vsub.s32 0, %v292_v18 }
 0x1d3   :  { %v294_v22 = vrot.slane %v276_v0, %v293_v19 }
 0x25d   :  { %v186_v24 = vpop.xlane.xlu0 %185 }
 0x25e   :  { %v191_v25 = vmul.f32 0.03125, %v186_v24  ;;  %v189_v26 = vpop.xlane.xlu1 %188 }
 0x25f   :  { %v192_v27 = vmul.f32 0.03125, %v189_v26 }
 0x260   :  { %v193_v28 = vsub.f32 %v182_v20, %v191_v25 }
 0x261   :  { %v194_v29 = vsub.f32 %v183_v21, %v192_v27 }
 0x262   :  { %v195_v30 = vmul.f32 %v193_v28, %v193_v28 }
 0x263   :  { %v196_v31 = vmul.f32 %v194_v29, %v194_v29 }
 0x264   :  { %v197_v32 = vsel %vm89_vm0, %v195_v30, 0.0 }
 0x265   :  { %198 = vadd.xlane.f32.xlu0 %v197_v32  ;;  %v200_v33 = vsel %vm89_vm0, %v196_v31, 0.0 }
 0x266   :  { %201 = vadd.xlane.f32.xlu1 %v200_v33 }
 0x2f2   :  { %v199_v34 = vpop.xlane.xlu0 %198 }
 0x2f3   :  { %v204_v35 = vmul.f32 0.032258064, %v199_v34  ;;  %v202_v36 = vpop.xlane.xlu1 %201 }
 0x2f4   :  { %v205_v37 = vmul.f32 0.032258064, %v202_v36 }
 0x2f5   :  { %385 = vrsqrt.f32 %v204_v35  ;;  %vm208_vm5 = vcmp.eq.f32.partialorder %v204_v35, inf  ;;  %v211_v41 = vand.u32 2147483648, %v204_v35  ;;  %vm210_vm6 = vcmp.eq.f32.partialorder %v204_v35, 0.0 }
 0x2f6   :  { %387 = vrsqrt.f32 %v205_v37  ;;  %vm215_vm7 = vcmp.eq.f32.partialorder %v205_v37, inf  ;;  %v218_v44 = vand.u32 2147483648, %v205_v37  ;;  %vm217_vm8 = vcmp.eq.f32.partialorder %v205_v37, 0.0 }
 0x2ff   :  { %v386_v38 = vpop.eup %385 }
 0x300   :  { %v388_v39 = vpop.eup %387  ;;  %v207_v40 = vmul.f32 %v386_v38, %v204_v35 }
 0x301   :  { %v214_v42 = vmul.f32 %v388_v39, %v205_v37 }
 0x302   :  { %v209_v43 = vsel %vm208_vm5, %v204_v35, %v207_v40 }
 0x303   :  { %v216_v45 = vsel %vm215_vm7, %v205_v37, %v214_v42  ;;  %v212_v46 = vsel %vm210_vm6, %v211_v41, %v209_v43 }
 0x304   :  { %v220_v47 = vadd.f32 1e-06, %v212_v46  ;;  %v219_v48 = vsel %vm217_vm8, %v218_v44, %v216_v45 }
 0x305   :  { %v221_v49 = vadd.f32 1e-06, %v219_v48 }
 0x306   :  { %389 = vrcp.f32 %v220_v47 }
 0x307   :  { %391 = vrcp.f32 %v221_v49 }
 0x310   :  { %v390_v50 = vpop.eup %389 }
 0x311   :  { %v392_v52 = vpop.eup %391  ;;  %v224_v53 = vmul.f32 %v390_v50, %v193_v28 }
 0x312   :  { %v225_v55 = vmul.f32 %v392_v52, %v194_v29 }
 0x313   :  { %v233_v56 = vmul.f32 %v355_v51, %v224_v53 }
 0x314   :  { %v234_v57 = vmul.f32 %v355_v51, %v225_v55 }
 0x315   :  { %v242_v58 = vadd.f32 %v356_v54, %v233_v56 }
 0x316   :  { %v243_v59 = vadd.f32 %v356_v54, %v234_v57 }
 0x317   :  { %v244_v60 = vmul.f32 %v242_v58, %v242_v58 }
 0x318   :  { %v245_v61 = vmul.f32 %v243_v59, %v243_v59 }
 0x319   :  { %v246_v62 = vsel %vm89_vm0, %v244_v60, 0.0 }
 0x31a   :  { %247 = vadd.xlane.f32.xlu0 %v246_v62  ;;  %v249_v63 = vsel %vm89_vm0, %v245_v61, 0.0 }
 0x31b   :  { %250 = vadd.xlane.f32.xlu1 %v249_v63 }
 0x31e   :  { %288 = vadd.xlane.f32.xlu0 %v287_v2 }
 0x3a7   :  { %v248_v3 = vpop.xlane.xlu0 %247 }
 0x3a8   :  { %393 = vrsqrt.f32 %v248_v3  ;;  %v251_v4 = vpop.xlane.xlu1 %250  ;;  %vm254_vm10 = vcmp.eq.f32.partialorder %v248_v3, inf  ;;  %v257_v8 = vand.u32 2147483648, %v248_v3  ;;  %vm256_vm11 = vcmp.eq.f32.partialorder %v248_v3, 0.0 }
 0x3a9   :  { %395 = vrsqrt.f32 %v251_v4  ;;  %vm261_vm12 = vcmp.eq.f32.partialorder %v251_v4, inf  ;;  %v264_v11 = vand.u32 2147483648, %v251_v4  ;;  %vm263_vm13 = vcmp.eq.f32.partialorder %v251_v4, 0.0 }
 0x3ab   :  { %v289_v37 = vpop.xlane.xlu0 %288 }
 0x3ac   :  { %v311_v41 = vrot.slane %v289_v37, %v293_v19 }
 0x3b2   :  { %v394_v5 = vpop.eup %393 }
 0x3b3   :  { %v396_v6 = vpop.eup %395  ;;  %v253_v7 = vmul.f32 %v394_v5, %v248_v3 }
 0x3b4   :  { %v260_v9 = vmul.f32 %v396_v6, %v251_v4 }
 0x3b5   :  { %v255_v10 = vsel %vm254_vm10, %v248_v3, %v253_v7 }
 0x3b6   :  { %v258_v12 = vsel %vm256_vm11, %v257_v8, %v255_v10  ;;  %v262_v13 = vsel %vm261_vm12, %v251_v4, %v260_v9 }
 0x3b7   :  { %v266_v14 = vmax.f32 %v258_v12, 1e-15  ;;  %v265_v15 = vsel %vm263_vm13, %v264_v11, %v262_v13 }
 0x3b8   :  { %v267_v16 = vmax.f32 %v265_v15, 1e-15 }
 0x3b9   :  { %397 = vtanh.f32 %v266_v14 }
 0x3ba   :  { %399 = vrcp.f32 %v266_v14 }
 0x3bb   :  { %401 = vtanh.f32 %v267_v16 }
 0x3bc   :  { %403 = vrcp.f32 %v267_v16 }
 0x3c3   :  { %v398_v20 = vpop.eup %397 }
 0x3c4   :  { %v400_v21 = vpop.eup %399  ;;  %v270_v23 = vmul.f32 %v398_v20, %v242_v58 }
 0x3c5   :  { %v402_v24 = vpop.eup %401 }
 0x3c6   :  { %v274_v25 = vmul.f32 %v400_v21, %v270_v23  ;;  %v271_v26 = vmul.f32 %v402_v24, %v243_v59  ;;  %v404_v27 = vpop.eup %403 }
 0x3c8   :  { %v296_v28 = vmul.f32 %v294_v22, %v274_v25  ;;  %v275_v29 = vmul.f32 %v404_v27, %v271_v26  ;;  %v277_v32 = vmul.f32 %v274_v25, %v274_v25 }
 0x3ca   :  { %v298_v30 = vsel %vm89_vm0, %v296_v28, 0.0  ;;  %v297_v31 = vmul.f32 %v294_v22, %v275_v29  ;;  %v278_v34 = vmul.f32 %v275_v29, %v275_v29  ;;  %v279_v35 = vsel %vm89_vm0, %v277_v32, 0.0 }
 0x3cb   :  { %299 = vadd.xlane.f32.xlu1 %v298_v30 }
 0x3cc   :  { %v301_v33 = vsel %vm89_vm0, %v297_v31, 0.0  ;;  %v282_v36 = vsel %vm89_vm0, %v278_v34, 0.0 }
 0x3cd   :  { %302 = vadd.xlane.f32.xlu0 %v301_v33 }
 0x3cf   :  { %280 = vadd.xlane.f32.xlu1 %v279_v35 }
 0x3d1   :  { %283 = vadd.xlane.f32.xlu0 %v282_v36 }
 0x458   :  { %v300_v38 = vpop.xlane.xlu1 %299 }
 0x459   :  { %v304_v40 = vmul.f32 2.0, %v300_v38 }
 0x45a   :  { %v303_v39 = vpop.xlane.xlu0 %302 }
 0x45b   :  { %v305_v42 = vmul.f32 2.0, %v303_v39  ;;  %v306_v45 = vadd.f32 1.0, %v304_v40 }
 0x45c   :  { %v281_v43 = vpop.xlane.xlu1 %280 }
 0x45d   :  { %v322_v44 = vmul.f32 %v311_v41, %v281_v43  ;;  %v307_v47 = vadd.f32 1.0, %v305_v42  ;;  %v312_v53 = vadd.f32 %v311_v41, %v306_v45  ;;  %v316_v54 = vsub.f32 1.0, %v281_v43 }
 0x45e   :  { %v284_v46 = vpop.xlane.xlu0 %283 }
 0x45f   :  { %v323_v48 = vmul.f32 %v311_v41, %v284_v46  ;;  %v324_v49 = vadd.f32 %v322_v44, %v306_v45  ;;  %v313_v55 = vadd.f32 %v311_v41, %v307_v47  ;;  %v317_v56 = vsub.f32 1.0, %v284_v46 }
 0x460   :  { %v314_v57 = vmul.f32 %v312_v53, %v274_v25  ;;  %v318_v58 = vmul.f32 %v316_v54, %v294_v22 }
 0x461   :  { %v325_v50 = vadd.f32 %v323_v48, %v307_v47  ;;  %v326_v51 = vmax.f32 %v324_v49, 1e-15  ;;  %v315_v59 = vmul.f32 %v313_v55, %v275_v29  ;;  %v319_v60 = vmul.f32 %v317_v56, %v294_v22 }
 0x462   :  { %v320_v61 = vadd.f32 %v318_v58, %v314_v57 }
 0x463   :  { %v327_v52 = vmax.f32 %v325_v50, 1e-15  ;;  %405 = vrcp.f32 %v326_v51  ;;  %v321_v63 = vadd.f32 %v319_v60, %v315_v59 }
 0x465   :  { %407 = vrcp.f32 %v327_v52 }
 0x46d   :  { %v406_v62 = vpop.eup %405 }
 0x46e   :  { %v329_v1 = vmul.f32 %v406_v62, %v320_v61 }
 0x46f   :  { %v408_v0 = vpop.eup %407 }
 0x470   :  { %v331_v2 = vmul.f32 %v408_v0, %v321_v63  ;;  %332 = vst.msk [vmem:[#allocation11] sm:$0xff] %vm89_vm0, %v329_v1 }
 0x472   :  { %333 = vst.msk [vmem:[#allocation11 + $0x8] sm:$0xff] %vm89_vm0, %v331_v2 }
 0x473   :  { %530 = shalt.err (!%p527_p2)
}
 0x474   :  { %s531_s10 = scalar_lea.hbm %s701_s5, 256 }
 0x475   :  { %p532_p3 = scmp.ne.s32.totalorder %s701_s5, %s531_s10  ;;  %p535_p4 = scmp.lt.u32.totalorder %s531_s10, %s701_s5 }
 0x477   :  { %p537_p5 = pnand %p535_p4, %p532_p3 }
 0x479   :  { %540 = shalt.err (!%p537_p5)
}
 0x47a   :  { %345 = dma.vmem_to_hbm [thread:$0]  %s340_s3, 256, %s701_s5, [#allocation4], %s551_s30, %s551_s30, %s552_s6  }
 0x47b   :  { %547 = dma.done.wait [#allocation4], 256  }
 0x47c   :  { %548 = vsyncadd [#allocation4], 4294967040 }
 0x47d   :  { %349 = vsyncpa [#allocation3], 1 }
 0x47e   :  { %350 = vsyncpa [#allocation6], 1 }
 0x47f   :  { %351 = vsyncpa [#allocation9], 1 }
 0x480   :  { %352 = vsyncpa [#allocation4], 1 }

// kernel: hyperbolic_transformer_forward.18
= control target key start
LH: loop header
LB: loop body
LE: loop exit
PB: predicated region body
PF: predicated region fallthrough
CT: control target
= control target key end

     0   :  { %10 = vsyncpa [#allocation3], 0  ;;  %s1170_s0 = inlined_call_operand.hbm [shape: f32[16,32], index: 0, kind: input, shape index: {}]   ;;  %s1171_s1 = inlined_call_operand.hbm [shape: f32[32,64], index: 1, kind: input, shape index: {}]   ;;  %s1172_s2 = inlined_call_operand.hbm [shape: f32[1,64], index: 2, kind: input, shape index: {}]   ;;  %s1173_s3 = inlined_call_operand.hbm [shape: f32[64,32], index: 3, kind: input, shape index: {}]   ;;  %s1174_s4 = inlined_call_operand.hbm [shape: f32[1,32], index: 4, kind: input, shape index: {}]   ;;  %s1175_s5 = inlined_call_operand.hbm [shape: f32[16,32], index: 5, kind: output, shape index: {}]  }
   0x1   :  { %11 = vsyncpa [#allocation6], 0 }
   0x2   :  { %12 = vsyncpa [#allocation9], 0 }
   0x3   :  { %13 = vsyncpa [#allocation4], 0  ;;  %s959_s18 = smov [#allocation5]   ;;  %s960_s20 = smov [#allocation8]  }
   0x4   :  { %s31_s19 = sshll.u32 %s959_s18, 4  ;;  %s53_s21 = sshll.u32 %s960_s20, 4  ;;  %s32_s19 = int_to_ptr.vmem [resolvable:$true] %s31_s19  ;;  %s999_s21 = int_to_ptr.vmem [resolvable:$true] %s53_s21 }
   0x5   :  { %s819_s24 = scalar_lea.hbm %s1171_s1, 512 }
   0x6   :  { %p820_p0 = scmp.ne.s32.totalorder %s1171_s1, %s819_s24  ;;  %p823_p1 = scmp.lt.u32.totalorder %s819_s24, %s1171_s1 }
   0x8   :  { %p825_p2 = pnand %p823_p1, %p820_p0 }
   0xa   :  { %828 = shalt.err (!%p825_p2)
}
   0xb   :  { %s829_s29 = scalar_lea.vmem %s32_s19, 512  ;;  %p834_p4 = scmp.lt.s32.totalorder %s32_s19, %s32_s19 }
   0xc   :  { %p830_p3 = scmp.ne.s32.totalorder %s32_s19, %s829_s29  ;;  %p835_p5 = scmp.lt.s32.totalorder %s829_s29, %s829_s29 }
   0xe   :  { %p836_p6 = por %p835_p5, %p834_p4 }
  0x10   :  { %p837_p7 = pnand %p836_p6, %p830_p3 }
  0x12   :  { %840 = shalt.err (!%p837_p7)
}
  0x13   :  { %s961_s30 = smov 128   ;;  %s962_s6 = smov 8  }
  0x14   :  { %37 = dma.hbm_to_vmem [thread:$0]  %s1171_s1, 512, %s32_s19, [#allocation6], %s961_s30, %s961_s30, %s962_s6  }
  0x15   :  { %s841_s11 = scalar_lea.hbm %s1173_s3, 1024 }
  0x16   :  { %p842_p8 = scmp.ne.s32.totalorder %s1173_s3, %s841_s11  ;;  %p845_p9 = scmp.lt.u32.totalorder %s841_s11, %s1173_s3 }
  0x18   :  { %p847_p10 = pnand %p845_p9, %p842_p8 }
  0x1a   :  { %850 = shalt.err (!%p847_p10)
}
  0x1b   :  { %s851_s16 = scalar_lea.vmem %s999_s21, 1024  ;;  %p856_p12 = scmp.lt.s32.totalorder %s999_s21, %s999_s21 }
  0x1c   :  { %p852_p11 = scmp.ne.s32.totalorder %s999_s21, %s851_s16  ;;  %p857_p13 = scmp.lt.s32.totalorder %s851_s16, %s851_s16 }
  0x1e   :  { %p858_p0 = por %p857_p13, %p856_p12 }
  0x20   :  { %p859_p1 = pnand %p858_p0, %p852_p11 }
  0x22   :  { %862 = shalt.err (!%p859_p1)
}
  0x23   :  { %59 = dma.hbm_to_vmem [thread:$0]  %s1173_s3, 1024, %s999_s21, [#allocation9], %s961_s30, %s961_s30, %s962_s6  }
  0x24   :  { %s963_s18 = smov [#allocation2]   ;;  %s964_s20 = smov [#allocation7]  }
  0x25   :  { %s19_s19 = sshll.u32 %s963_s18, 4  ;;  %s44_s22 = sshll.u32 %s964_s20, 4  ;;  %s20_s19 = int_to_ptr.vmem [resolvable:$true] %s19_s19  ;;  %s45_s22 = int_to_ptr.vmem [resolvable:$true] %s44_s22 }
  0x26   :  { %s863_s25 = scalar_lea.hbm %s1170_s0, 256 }
  0x27   :  { %p864_p2 = scmp.ne.s32.totalorder %s1170_s0, %s863_s25  ;;  %p867_p3 = scmp.lt.u32.totalorder %s863_s25, %s1170_s0 }
  0x29   :  { %p869_p4 = pnand %p867_p3, %p864_p2 }
  0x2b   :  { %872 = shalt.err (!%p869_p4)
}
  0x2c   :  { %s873_s3 = scalar_lea.vmem %s20_s19, 256  ;;  %p878_p6 = scmp.lt.s32.totalorder %s20_s19, %s20_s19 }
  0x2d   :  { %p874_p5 = scmp.ne.s32.totalorder %s20_s19, %s873_s3  ;;  %p879_p7 = scmp.lt.s32.totalorder %s873_s3, %s873_s3 }
  0x2f   :  { %p880_p8 = por %p879_p7, %p878_p6 }
  0x31   :  { %p881_p9 = pnand %p880_p8, %p874_p5 }
  0x33   :  { %884 = shalt.err (!%p881_p9)
}
  0x34   :  { %25 = dma.hbm_to_vmem [thread:$0]  %s1170_s0, 256, %s20_s19, [#allocation3], %s961_s30, %s961_s30, %s962_s6  }
  0x35   :  { %s885_s10 = scalar_lea.hbm %s1172_s2, 16 }
  0x36   :  { %p886_p10 = scmp.ne.s32.totalorder %s1172_s2, %s885_s10  ;;  %p889_p11 = scmp.lt.u32.totalorder %s885_s10, %s1172_s2 }
  0x38   :  { %p891_p12 = pnand %p889_p11, %p886_p10 }
  0x3a   :  { %894 = shalt.err (!%p891_p12)
}
  0x3b   :  { %s895_s15 = scalar_lea.vmem %s45_s22, 16  ;;  %s899_s16 = scalar_lea.vmem %s45_s22, 32 }
  0x3c   :  { %p896_p13 = scmp.ne.s32.totalorder %s45_s22, %s895_s15  ;;  %p900_p0 = scmp.lt.s32.totalorder %s45_s22, %s45_s22 }
  0x3d   :  { %p901_p1 = scmp.lt.s32.totalorder %s899_s16, %s895_s15 }
  0x3f   :  { %p902_p2 = por %p901_p1, %p900_p0 }
  0x41   :  { %p903_p3 = pnand %p902_p2, %p896_p13 }
  0x43   :  { %906 = shalt.err (!%p903_p3)
}
  0x44   :  { %47 = dma.hbm_to_vmem [thread:$0]  %s1172_s2, 16, %s45_s22, [#allocation6]  }
  0x45   :  { %s965_s17 = smov [#allocation10]   ;;  %s907_s23 = scalar_lea.hbm %s1174_s4, 16 }
  0x46   :  { %s66_s18 = sshll.u32 %s965_s17, 4  ;;  %p908_p4 = scmp.ne.s32.totalorder %s1174_s4, %s907_s23  ;;  %s67_s18 = int_to_ptr.vmem [resolvable:$true] %s66_s18 }
  0x47   :  { %p911_p5 = scmp.lt.u32.totalorder %s907_s23, %s1174_s4 }
  0x49   :  { %p913_p6 = pnand %p911_p5, %p908_p4 }
  0x4b   :  { %916 = shalt.err (!%p913_p6)
}
  0x4c   :  { %s917_s28 = scalar_lea.vmem %s67_s18, 16  ;;  %s921_s2 = scalar_lea.vmem %s67_s18, 32 }
  0x4d   :  { %p918_p7 = scmp.ne.s32.totalorder %s67_s18, %s917_s28  ;;  %p922_p8 = scmp.lt.s32.totalorder %s67_s18, %s67_s18 }
  0x4e   :  { %p923_p9 = scmp.lt.s32.totalorder %s921_s2, %s917_s28 }
  0x50   :  { %p924_p10 = por %p923_p9, %p922_p8 }
  0x52   :  { %p925_p11 = pnand %p924_p10, %p918_p7 }
  0x54   :  { %928 = shalt.err (!%p925_p11)
}
  0x55   :  { %69 = dma.hbm_to_vmem [thread:$0]  %s1174_s4, 16, %s67_s18, [#allocation9]  }
  0x56   :  { %951 = dma.done.wait [#allocation3], 256  }
  0x57   :  { %952 = vsyncadd [#allocation3], 4294967040 }
  0x58   :  { %953 = dma.done.wait [#allocation6], 528  }
  0x59   :  { %954 = vsyncadd [#allocation6], 4294966768 }
  0x5a   :  { %955 = dma.done.wait [#allocation9], 1040  }
  0x5b   :  { %956 = vsyncadd [#allocation9], 4294966256  ;;  %v966_v0 = vmov 0.0   ;;  %vm967_vm0 = vmmov 0   ;;  %v88_v1 = vld [vmem:[#allocation5] sm:$0xff]  ;;  %v89_v2 = vld [vmem:[#allocation5 + $0x8] sm:$0xff] }
  0x5c   :  { %681 = vmatprep.subr.bf16.mxu0 %v966_v0  ;;  %685 = vmatprep.mubr.msk.bf16.mxu0 %vm967_vm0, %v966_v0  ;;  %v90_v3 = vld [vmem:[#allocation5 + $0x10] sm:$0xff]  ;;  %v119_v4 = vpack.c.bf16 %v89_v2, %v88_v1  ;;  %v91_v5 = vld [vmem:[#allocation5 + $0x18] sm:$0xff]  ;;  %vm95_vm1 = vcmask 261120   ;;  %vm167_vm2 = vcmask 523264   ;;  %v1093_v22 = vld [vmem:[#allocation7] sm:$0x1] }
  0x5d   :  { %689 = vmatprep.subr.bf16.mxu1 %v966_v0  ;;  %697 = vmatprep.mubr.msk.bf16.mxu1 %vm967_vm0, %v966_v0  ;;  %v86_v6 = vld [vmem:[#allocation2] sm:$0xff]  ;;  %v87_v7 = vld [vmem:[#allocation2 + $0x8] sm:$0xff]  ;;  %v120_v10 = vpack.c.bf16 %v91_v5, %v90_v3  ;;  %vm239_vm3 = vcmask 516096   ;;  %v238_v23 = vmul.f32 %v1093_v22, %v1093_v22  ;;  %s968_s4 = smov [#allocation11]  }
  0x5e   :  { %v93_v8 = vmul.f32 %v86_v6, %v86_v6  ;;  %v94_v9 = vmul.f32 %v87_v7, %v87_v7  ;;  %682 = vmatpush3.bf16.msra.mxu0 %v119_v4  ;;  %v118_v12 = vpack.c.bf16 %v87_v7, %v86_v6  ;;  %s651_s3 = sshll.u32 %s968_s4, 4  ;;  %s652_s3 = int_to_ptr.vmem [resolvable:$true] %s651_s3 }
  0x5f   :  { %683 = vmatprep.subr.bf16.mxu0 %v966_v0  ;;  %v240_v24 = vsel %vm239_vm3, %v238_v23, 0.0  ;;  %s929_s21 = scalar_lea.vmem %s652_s3, 256  ;;  %p934_p13 = scmp.lt.s32.totalorder %s652_s3, %s652_s3 }
  0x60   :  { %v96_v11 = vsel %vm95_vm1, %v93_v8, 0.0  ;;  %v99_v13 = vsel %vm95_vm1, %v94_v9, 0.0  ;;  %v244_v9 = vlaneseq  ;;  %p930_p12 = scmp.ne.s32.totalorder %s652_s3, %s929_s21  ;;  %p935_p0 = scmp.lt.s32.totalorder %s929_s21, %s929_s21 }
  0x61   :  { %97 = vadd.xlane.f32.xlu0 %v96_v11 }
  0x62   :  { %684 = vmatpush3.bf16.msra.mxu0 %v120_v10  ;;  %p936_p1 = por %p935_p0, %p934_p13 }
  0x64   :  { %p937_p2 = pnand %p936_p1, %p930_p12 }
  0x65   :  { %100 = vadd.xlane.f32.xlu0 %v99_v13  ;;  %686 = vmatmul.mubr.msk.bf16.vlgmr.msra.gmra.mrb[0].mxu0 %vm95_vm1, %v118_v12  ;;  %v245_v13 = vshrl.u32 %v244_v9, 7 }
  0x69   :  { %241 = vadd.xlane.f32.xlu0 %v240_v24 }
  0xee   :  { %v98_v25 = vpop.xlane.xlu0 %97 }
  0xef   :  { %711 = vrsqrt.f32 %v98_v25  ;;  %vm104_vm4 = vcmp.eq.f32.partialorder %v98_v25, inf  ;;  %v107_v30 = vand.u32 2147483648, %v98_v25  ;;  %vm106_vm5 = vcmp.eq.f32.partialorder %v98_v25, 0.0 }
  0xf2   :  { %v101_v26 = vpop.xlane.xlu0 %100 }
  0xf3   :  { %713 = vrsqrt.f32 %v101_v26  ;;  %vm111_vm6 = vcmp.eq.f32.partialorder %v101_v26, inf  ;;  %v114_v34 = vand.u32 2147483648, %v101_v26  ;;  %vm113_vm7 = vcmp.eq.f32.partialorder %v101_v26, 0.0 }
  0xf9   :  { %v712_v27 = vpop.eup %711 }
  0xfa   :  { %v103_v28 = vmul.f32 %v712_v27, %v98_v25 }
  0xfc   :  { %v105_v31 = vsel %vm104_vm4, %v98_v25, %v103_v28 }
  0xfd   :  { %v714_v29 = vpop.eup %713  ;;  %v108_v33 = vsel %vm106_vm5, %v107_v30, %v105_v31 }
  0xfe   :  { %v110_v32 = vmul.f32 %v714_v29, %v101_v26  ;;  %v116_v36 = vmax.f32 %v108_v33, 1e-15 }
 0x100   :  { %v112_v35 = vsel %vm111_vm6, %v101_v26, %v110_v32  ;;  %v666_v38 = vclamps-f32 %v116_v36, 0.999999 }
 0x101   :  { %v115_v37 = vsel %vm113_vm7, %v114_v34, %v112_v35 }
 0x102   :  { %v117_v39 = vmax.f32 %v115_v37, 1e-15  ;;  %v202_v40 = vsub.f32 1.0, %v666_v38  ;;  %v200_v43 = vadd.f32 1.0, %v666_v38 }
 0x104   :  { %v667_v41 = vclamps-f32 %v117_v39, 0.999999  ;;  %715 = vrcp.f32 %v202_v40 }
 0x106   :  { %v203_v42 = vsub.f32 1.0, %v667_v41  ;;  %v201_v45 = vadd.f32 1.0, %v667_v41 }
 0x108   :  { %717 = vrcp.f32 %v203_v42 }
 0x10e   :  { %v716_v44 = vpop.eup %715 }
 0x10f   :  { %v205_v46 = vmul.f32 %v716_v44, %v200_v43 }
 0x111   :  { %719 = vlog2.f32 %v205_v46 }
 0x112   :  { %v718_v47 = vpop.eup %717 }
 0x113   :  { %v207_v49 = vmul.f32 %v718_v47, %v201_v45 }
 0x11b   :  { %v720_v51 = vpop.eup %719 }
 0x11c   :  { %v209_v55 = vmul.f32 0.6931472, %v720_v51 }
 0x11e   :  { %v212_v1 = vmul.f32 0.5, %v209_v55 }
 0x138   :  { %v1083_v14 = vpop.f32.mrb[0].mxu0 }
 0x139   :  { %v687_v15 = vpop.f32.mrb[1].mxu0  ;;  %v165_v16 = vmul.f32 %v1083_v14, %v1083_v14 }
 0x13a   :  { %v1087_v17 = vpop.f32.mrb[2].mxu0  ;;  %v1099_v15 = vsub.s32 0, %v245_v13 }
 0x13b   :  { %v166_v18 = vmul.f32 %v1087_v17, %v1087_v17  ;;  %v688_v19 = vpop.f32.mrb[3].mxu0  ;;  %v168_v20 = vsel %vm167_vm2, %v165_v16, 0.0 }
 0x13c   :  { %169 = vadd.xlane.f32.xlu1 %v168_v20  ;;  %v247_v20 = vrot.slane %v1093_v22, %v1099_v15 }
 0x13d   :  { %v171_v21 = vsel %vm167_vm2, %v166_v18, 0.0 }
 0x140   :  { %172 = vadd.xlane.f32.xlu1 %v171_v21 }
 0x1c9   :  { %v170_v48 = vpop.xlane.xlu1 %169 }
 0x1ca   :  { %721 = vrsqrt.f32 %v170_v48  ;;  %vm178_vm8 = vcmp.eq.f32.partialorder %v170_v48, inf  ;;  %v181_v54 = vand.u32 2147483648, %v170_v48  ;;  %vm174_vm9 = vcmp.eq.f32.partialorder %v170_v48, 0.0 }
 0x1cb   :  { %723 = vlog2.f32 %v207_v49 }
 0x1cd   :  { %v173_v50 = vpop.xlane.xlu1 %172 }
 0x1ce   :  { %725 = vrsqrt.f32 %v173_v50  ;;  %vm185_vm10 = vcmp.eq.f32.partialorder %v173_v50, inf  ;;  %v188_v63 = vand.u32 2147483648, %v173_v50  ;;  %vm175_vm11 = vcmp.eq.f32.partialorder %v173_v50, 0.0 }
 0x1cf   :  { %727 = vrcp.f32 %v116_v36 }
 0x1d0   :  { %729 = vrcp.f32 %v117_v39 }
 0x1d4   :  { %v722_v52 = vpop.eup %721 }
 0x1d5   :  { %v177_v53 = vmul.f32 %v722_v52, %v170_v48  ;;  %v724_v56 = vpop.eup %723 }
 0x1d6   :  { %v211_v4 = vmul.f32 0.6931472, %v724_v56 }
 0x1d7   :  { %v179_v57 = vsel %vm178_vm8, %v170_v48, %v177_v53 }
 0x1d8   :  { %v726_v58 = vpop.eup %725  ;;  %v182_v59 = vsel %vm174_vm9, %v181_v54, %v179_v57  ;;  %v213_v11 = vmul.f32 0.5, %v211_v4 }
 0x1d9   :  { %v184_v60 = vmul.f32 %v726_v58, %v173_v50  ;;  %v190_v61 = vmax.f32 %v182_v59, 1e-15  ;;  %v728_v62 = vpop.eup %727 }
 0x1da   :  { %v730_v8 = vpop.eup %729 }
 0x1db   :  { %v194_v2 = vmul.f32 %v728_v62, %v190_v61  ;;  %v186_v3 = vsel %vm185_vm10, %v173_v50, %v184_v60 }
 0x1dc   :  { %v189_v5 = vsel %vm175_vm11, %v188_v63, %v186_v3 }
 0x1dd   :  { %v214_v6 = vmul.f32 %v212_v1, %v194_v2  ;;  %v191_v7 = vmax.f32 %v189_v5, 1e-15 }
 0x1df   :  { %731 = vtanh.f32 %v214_v6  ;;  %v195_v10 = vmul.f32 %v730_v8, %v191_v7 }
 0x1e0   :  { %733 = vrcp.f32 %v190_v61 }
 0x1e1   :  { %v215_v12 = vmul.f32 %v213_v11, %v195_v10 }
 0x1e3   :  { %735 = vtanh.f32 %v215_v12 }
 0x1e4   :  { %737 = vrcp.f32 %v191_v7 }
 0x1e9   :  { %v732_v16 = vpop.eup %731 }
 0x1ea   :  { %v218_v18 = vmul.f32 %v732_v16, %v1083_v14  ;;  %v734_v19 = vpop.eup %733 }
 0x1ec   :  { %v222_v21 = vmul.f32 %v734_v19, %v218_v18 }
 0x1ed   :  { %v736_v23 = vpop.eup %735 }
 0x1ee   :  { %v228_v24 = vsel %vm174_vm9, 0.0, %v222_v21  ;;  %v219_v25 = vmul.f32 %v736_v23, %v1087_v17  ;;  %v738_v26 = vpop.eup %737  ;;  %v242_v17 = vpop.xlane.xlu0 %241 }
 0x1ef   :  { %v249_v27 = vmul.f32 %v247_v20, %v228_v24  ;;  %v230_v30 = vmul.f32 %v228_v24, %v228_v24  ;;  %v264_v37 = vrot.slane %v242_v17, %v1099_v15 }
 0x1f0   :  { %v223_v28 = vmul.f32 %v738_v26, %v219_v25 }
 0x1f1   :  { %v251_v29 = vsel %vm167_vm2, %v249_v27, 0.0  ;;  %v232_v32 = vsel %vm167_vm2, %v230_v30, 0.0 }
 0x1f2   :  { %252 = vadd.xlane.f32.xlu1 %v251_v29  ;;  %v229_v31 = vsel %vm175_vm11, 0.0, %v223_v28 }
 0x1f3   :  { %v250_v14 = vmul.f32 %v247_v20, %v229_v31  ;;  %v231_v33 = vmul.f32 %v229_v31, %v229_v31 }
 0x1f5   :  { %v254_v22 = vsel %vm167_vm2, %v250_v14, 0.0  ;;  %v235_v34 = vsel %vm167_vm2, %v231_v33, 0.0 }
 0x1f6   :  { %233 = vadd.xlane.f32.xlu1 %v232_v32  ;;  %255 = vadd.xlane.f32.xlu0 %v254_v22 }
 0x1fa   :  { %236 = vadd.xlane.f32.xlu0 %v235_v34 }
 0x27f   :  { %v253_v35 = vpop.xlane.xlu1 %252 }
 0x280   :  { %v257_v36 = vmul.f32 2.0, %v253_v35 }
 0x282   :  { %v259_v40 = vadd.f32 1.0, %v257_v36 }
 0x283   :  { %v234_v38 = vpop.xlane.xlu1 %233  ;;  %v256_v39 = vpop.xlane.xlu0 %255 }
 0x284   :  { %v275_v41 = vmul.f32 %v264_v37, %v234_v38  ;;  %v258_v42 = vmul.f32 2.0, %v256_v39  ;;  %v265_v48 = vadd.f32 %v264_v37, %v259_v40  ;;  %v269_v49 = vsub.f32 1.0, %v234_v38 }
 0x286   :  { %v277_v43 = vadd.f32 %v275_v41, %v259_v40  ;;  %v260_v46 = vadd.f32 1.0, %v258_v42  ;;  %v267_v52 = vmul.f32 %v265_v48, %v228_v24  ;;  %v271_v53 = vmul.f32 %v269_v49, %v247_v20 }
 0x287   :  { %v237_v44 = vpop.xlane.xlu0 %236 }
 0x288   :  { %v279_v45 = vmax.f32 %v277_v43, 1e-15  ;;  %v276_v47 = vmul.f32 %v264_v37, %v237_v44  ;;  %v266_v54 = vadd.f32 %v264_v37, %v260_v46  ;;  %v270_v55 = vsub.f32 1.0, %v237_v44 }
 0x289   :  { %v273_v56 = vadd.f32 %v271_v53, %v267_v52 }
 0x28a   :  { %739 = vrcp.f32 %v279_v45  ;;  %v278_v50 = vadd.f32 %v276_v47, %v260_v46  ;;  %v268_v58 = vmul.f32 %v266_v54, %v229_v31  ;;  %v272_v59 = vmul.f32 %v270_v55, %v247_v20 }
 0x28c   :  { %v280_v51 = vmax.f32 %v278_v50, 1e-15  ;;  %v274_v62 = vadd.f32 %v272_v59, %v268_v58 }
 0x28e   :  { %741 = vrcp.f32 %v280_v51 }
 0x294   :  { %v740_v57 = vpop.eup %739 }
 0x295   :  { %v282_v60 = vmul.f32 %v740_v57, %v273_v56 }
 0x297   :  { %v285_v61 = vmul.f32 %v282_v60, %v282_v60 }
 0x298   :  { %v742_v63 = vpop.eup %741 }
 0x299   :  { %v287_v1 = vsel %vm167_vm2, %v285_v61, 0.0  ;;  %v284_v2 = vmul.f32 %v742_v63, %v274_v62 }
 0x29a   :  { %288 = vadd.xlane.f32.xlu1 %v287_v1 }
 0x29b   :  { %v286_v3 = vmul.f32 %v284_v2, %v284_v2 }
 0x29d   :  { %v290_v4 = vsel %vm167_vm2, %v286_v3, 0.0 }
 0x29e   :  { %291 = vadd.xlane.f32.xlu0 %v290_v4 }
 0x327   :  { %v289_v5 = vpop.xlane.xlu1 %288 }
 0x328   :  { %743 = vrsqrt.f32 %v289_v5  ;;  %vm295_vm12 = vcmp.eq.f32.partialorder %v289_v5, inf  ;;  %v298_v9 = vand.u32 2147483648, %v289_v5  ;;  %vm297_vm13 = vcmp.eq.f32.partialorder %v289_v5, 0.0 }
 0x32b   :  { %v292_v6 = vpop.xlane.xlu0 %291 }
 0x32c   :  { %745 = vrsqrt.f32 %v292_v6  ;;  %vm302_vm14 = vcmp.eq.f32.partialorder %v292_v6, inf  ;;  %v305_v18 = vand.u32 2147483648, %v292_v6  ;;  %vm304_vm15 = vcmp.eq.f32.partialorder %v292_v6, 0.0 }
 0x332   :  { %v744_v7 = vpop.eup %743 }
 0x333   :  { %v294_v8 = vmul.f32 %v744_v7, %v289_v5 }
 0x335   :  { %v296_v10 = vsel %vm295_vm12, %v289_v5, %v294_v8 }
 0x336   :  { %v299_v11 = vsel %vm297_vm13, %v298_v9, %v296_v10  ;;  %v746_v12 = vpop.eup %745 }
 0x337   :  { %v307_v13 = vmax.f32 %v299_v11, 1e-15  ;;  %v301_v16 = vmul.f32 %v746_v12, %v292_v6  ;;  %v405_v11 = vld [vmem:[#allocation8] sm:$0xff]  ;;  %v406_v12 = vld [vmem:[#allocation8 + $0x8] sm:$0xff] }
 0x339   :  { %747 = vrcp.f32 %v307_v13  ;;  %v303_v19 = vsel %vm302_vm14, %v292_v6, %v301_v16  ;;  %vm309_vm0 = vcmp.gt.f32.partialorder %v307_v13, 0.99999  ;;  %v439_v13 = vpack.c.bf16 %v406_v12, %v405_v11  ;;  %v407_v16 = vld [vmem:[#allocation8 + $0x10] sm:$0xff] }
 0x33a   :  { %v306_v20 = vsel %vm304_vm15, %v305_v18, %v303_v19  ;;  %v408_v18 = vld [vmem:[#allocation8 + $0x18] sm:$0xff] }
 0x33b   :  { %v308_v21 = vmax.f32 %v306_v20, 1e-15  ;;  %690 = vmatpush3.bf16.msra.mxu1 %v439_v13  ;;  %v440_v19 = vpack.c.bf16 %v408_v18, %v407_v16  ;;  %v409_v20 = vld [vmem:[#allocation8 + $0x20] sm:$0xff] }
 0x33c   :  { %691 = vmatprep.subr.bf16.mxu1 %v966_v0 }
 0x33d   :  { %749 = vrcp.f32 %v308_v21  ;;  %vm310_vm3 = vcmp.gt.f32.partialorder %v308_v21, 0.99999  ;;  %v410_v21 = vld [vmem:[#allocation8 + $0x28] sm:$0xff] }
 0x33f   :  { %692 = vmatpush3.bf16.msra.mxu1 %v440_v19 }
 0x340   :  { %693 = vmatprep.subr.bf16.mxu1 %v966_v0 }
 0x343   :  { %v748_v23 = vpop.eup %747 }
 0x344   :  { %v312_v24 = vmul.f32 0.99999, %v748_v23  ;;  %v441_v23 = vpack.c.bf16 %v410_v21, %v409_v20 }
 0x346   :  { %v315_v25 = vmul.f32 %v312_v24, %v282_v60  ;;  %v411_v24 = vld [vmem:[#allocation8 + $0x30] sm:$0xff]  ;;  %694 = vmatpush3.bf16.msra.mxu1 %v441_v23 }
 0x347   :  { %v750_v26 = vpop.eup %749  ;;  %695 = vmatprep.subr.bf16.mxu1 %v966_v0 }
 0x348   :  { %v321_v27 = vsel %vm309_vm0, %v315_v25, %v282_v60  ;;  %v314_v29 = vmul.f32 0.99999, %v750_v26  ;;  %v412_v25 = vld [vmem:[#allocation8 + $0x38] sm:$0xff] }
 0x349   :  { %v323_v28 = vmul.f32 %v321_v27, %v321_v27  ;;  %v442_v26 = vpack.c.bf16 %v412_v25, %v411_v24 }
 0x34a   :  { %v316_v31 = vmul.f32 %v314_v29, %v284_v2 }
 0x34b   :  { %v325_v30 = vsel %vm167_vm2, %v323_v28, 0.0  ;;  %696 = vmatpush3.bf16.msra.mxu1 %v442_v26 }
 0x34c   :  { %326 = vadd.xlane.f32.xlu1 %v325_v30  ;;  %v322_v14 = vsel %vm310_vm3, %v316_v31, %v284_v2 }
 0x34d   :  { %v324_v32 = vmul.f32 %v322_v14, %v322_v14 }
 0x34f   :  { %v328_v22 = vsel %vm167_vm2, %v324_v32, 0.0 }
 0x350   :  { %329 = vadd.xlane.f32.xlu0 %v328_v22 }
 0x3d9   :  { %v327_v33 = vpop.xlane.xlu1 %326 }
 0x3da   :  { %751 = vrsqrt.f32 %v327_v33  ;;  %vm333_vm4 = vcmp.eq.f32.partialorder %v327_v33, inf  ;;  %v336_v36 = vand.u32 2147483648, %v327_v33  ;;  %vm335_vm5 = vcmp.eq.f32.partialorder %v327_v33, 0.0 }
 0x3dd   :  { %v330_v34 = vpop.xlane.xlu0 %329 }
 0x3de   :  { %753 = vrsqrt.f32 %v330_v34  ;;  %vm340_vm6 = vcmp.eq.f32.partialorder %v330_v34, inf  ;;  %v343_v43 = vand.u32 2147483648, %v330_v34  ;;  %vm342_vm7 = vcmp.eq.f32.partialorder %v330_v34, 0.0 }
 0x3e4   :  { %v752_v17 = vpop.eup %751 }
 0x3e5   :  { %v332_v35 = vmul.f32 %v752_v17, %v327_v33 }
 0x3e7   :  { %v334_v37 = vsel %vm333_vm4, %v327_v33, %v332_v35 }
 0x3e8   :  { %v337_v38 = vsel %vm335_vm5, %v336_v36, %v334_v37  ;;  %v754_v39 = vpop.eup %753 }
 0x3e9   :  { %v345_v40 = vmax.f32 %v337_v38, 1e-15  ;;  %v339_v41 = vmul.f32 %v754_v39, %v330_v34 }
 0x3eb   :  { %v668_v42 = vclamps-f32 %v345_v40, 0.999999  ;;  %v341_v44 = vsel %vm340_vm6, %v330_v34, %v339_v41 }
 0x3ec   :  { %v344_v46 = vsel %vm342_vm7, %v343_v43, %v341_v44 }
 0x3ed   :  { %v353_v45 = vsub.f32 1.0, %v668_v42  ;;  %v346_v47 = vmax.f32 %v344_v46, 1e-15  ;;  %v351_v50 = vadd.f32 1.0, %v668_v42 }
 0x3ef   :  { %755 = vrcp.f32 %v353_v45  ;;  %v669_v48 = vclamps-f32 %v346_v47, 0.999999 }
 0x3f1   :  { %v354_v49 = vsub.f32 1.0, %v669_v48  ;;  %v352_v53 = vadd.f32 1.0, %v669_v48 }
 0x3f3   :  { %757 = vrcp.f32 %v354_v49 }
 0x3f9   :  { %v756_v51 = vpop.eup %755 }
 0x3fa   :  { %v356_v52 = vmul.f32 %v756_v51, %v351_v50 }
 0x3fc   :  { %759 = vlog2.f32 %v356_v52 }
 0x3fd   :  { %v758_v54 = vpop.eup %757 }
 0x3fe   :  { %v358_v55 = vmul.f32 %v758_v54, %v352_v53 }
 0x400   :  { %761 = vlog2.f32 %v358_v55 }
 0x401   :  { %763 = vrcp.f32 %v345_v40 }
 0x402   :  { %765 = vrcp.f32 %v346_v47 }
 0x406   :  { %v760_v56 = vpop.eup %759 }
 0x407   :  { %v360_v57 = vmul.f32 0.6931472, %v760_v56 }
 0x409   :  { %v363_v58 = vmul.f32 0.5, %v360_v57 }
 0x40a   :  { %v762_v59 = vpop.eup %761 }
 0x40b   :  { %v365_v60 = vmul.f32 %v363_v58, %v321_v27  ;;  %v764_v61 = vpop.eup %763  ;;  %v362_v62 = vmul.f32 0.6931472, %v762_v59  ;;  %v1134_v58 = vld [vmem:[#allocation10] sm:$0x1] }
 0x40c   :  { %v766_v4 = vpop.eup %765  ;;  %v559_v59 = vmul.f32 %v1134_v58, %v1134_v58 }
 0x40d   :  { %v369_v63 = vmul.f32 %v764_v61, %v365_v60  ;;  %v364_v1 = vmul.f32 0.5, %v362_v62 }
 0x40f   :  { %v371_v2 = vmax.f32 %v369_v63, 0.0  ;;  %v366_v3 = vmul.f32 %v364_v1, %v322_v14 }
 0x411   :  { %v373_v5 = vmul.f32 %v371_v2, %v371_v2  ;;  %v370_v6 = vmul.f32 %v766_v4, %v366_v3 }
 0x413   :  { %v375_v7 = vsel %vm167_vm2, %v373_v5, 0.0  ;;  %v372_v8 = vmax.f32 %v370_v6, 0.0 }
 0x414   :  { %376 = vadd.xlane.f32.xlu1 %v375_v7 }
 0x415   :  { %v374_v9 = vmul.f32 %v372_v8, %v372_v8 }
 0x417   :  { %v378_v10 = vsel %vm167_vm2, %v374_v9, 0.0 }
 0x418   :  { %379 = vadd.xlane.f32.xlu0 %v378_v10 }
 0x4a1   :  { %v377_v27 = vpop.xlane.xlu1 %376 }
 0x4a2   :  { %767 = vrsqrt.f32 %v377_v27  ;;  %vm383_vm8 = vcmp.eq.f32.partialorder %v377_v27, inf  ;;  %v386_v31 = vand.u32 2147483648, %v377_v27  ;;  %vm385_vm9 = vcmp.eq.f32.partialorder %v377_v27, 0.0 }
 0x4a5   :  { %v380_v28 = vpop.xlane.xlu0 %379 }
 0x4a6   :  { %769 = vrsqrt.f32 %v380_v28  ;;  %vm390_vm10 = vcmp.eq.f32.partialorder %v380_v28, inf  ;;  %v393_v17 = vand.u32 2147483648, %v380_v28  ;;  %vm392_vm11 = vcmp.eq.f32.partialorder %v380_v28, 0.0 }
 0x4ac   :  { %v768_v29 = vpop.eup %767 }
 0x4ad   :  { %v382_v30 = vmul.f32 %v768_v29, %v377_v27 }
 0x4af   :  { %v384_v14 = vsel %vm383_vm8, %v377_v27, %v382_v30 }
 0x4b0   :  { %v387_v32 = vsel %vm385_vm9, %v386_v31, %v384_v14  ;;  %v770_v22 = vpop.eup %769 }
 0x4b1   :  { %v395_v33 = vmax.f32 %v387_v32, 1e-15  ;;  %v389_v34 = vmul.f32 %v770_v22, %v380_v28 }
 0x4b3   :  { %771 = vtanh.f32 %v395_v33  ;;  %v391_v35 = vsel %vm390_vm10, %v380_v28, %v389_v34 }
 0x4b4   :  { %v394_v0 = vsel %vm392_vm11, %v393_v17, %v391_v35  ;;  %773 = vrcp.f32 %v395_v33 }
 0x4b5   :  { %v396_v36 = vmax.f32 %v394_v0, 1e-15 }
 0x4b7   :  { %775 = vtanh.f32 %v396_v36 }
 0x4b8   :  { %777 = vrcp.f32 %v396_v36 }
 0x4bd   :  { %v772_v37 = vpop.eup %771 }
 0x4be   :  { %v399_v38 = vmul.f32 %v772_v37, %v371_v2  ;;  %v774_v39 = vpop.eup %773 }
 0x4c0   :  { %v403_v40 = vmul.f32 %v774_v39, %v399_v38 }
 0x4c1   :  { %v776_v41 = vpop.eup %775 }
 0x4c2   :  { %v414_v42 = vmul.f32 %v403_v40, %v403_v40  ;;  %v400_v43 = vmul.f32 %v776_v41, %v372_v8  ;;  %v778_v44 = vpop.eup %777 }
 0x4c4   :  { %v416_v45 = vsel %vm167_vm2, %v414_v42, 0.0  ;;  %v404_v46 = vmul.f32 %v778_v44, %v400_v43 }
 0x4c5   :  { %417 = vadd.xlane.f32.xlu1 %v416_v45 }
 0x4c6   :  { %v438_v47 = vpack.c.bf16 %v404_v46, %v403_v40  ;;  %v415_v48 = vmul.f32 %v404_v46, %v404_v46 }
 0x4c8   :  { %698 = vmatmul.mubr.msk.bf16.vlgmr.msra.gmra.mrb[0].mxu1 %vm167_vm2, %v438_v47  ;;  %v419_v49 = vsel %vm167_vm2, %v415_v48, 0.0  ;;  %vm560_vm2 = vcmask 253952  }
 0x4c9   :  { %420 = vadd.xlane.f32.xlu0 %v419_v49  ;;  %v561_v60 = vsel %vm560_vm2, %v559_v59, 0.0 }
 0x552   :  { %v418_v61 = vpop.xlane.xlu1 %417 }
 0x553   :  { %779 = vrsqrt.f32 %v418_v61  ;;  %vm424_vm12 = vcmp.eq.f32.partialorder %v418_v61, inf  ;;  %v427_v5 = vand.u32 2147483648, %v418_v61  ;;  %vm426_vm14 = vcmp.eq.f32.partialorder %v418_v61, 0.0 }
 0x556   :  { %v421_v62 = vpop.xlane.xlu0 %420 }
 0x557   :  { %781 = vrsqrt.f32 %v421_v62  ;;  %vm431_vm13 = vcmp.eq.f32.partialorder %v421_v62, inf  ;;  %v434_v8 = vand.u32 2147483648, %v421_v62  ;;  %vm433_vm15 = vcmp.eq.f32.partialorder %v421_v62, 0.0 }
 0x55d   :  { %v780_v63 = vpop.eup %779 }
 0x55e   :  { %v423_v2 = vmul.f32 %v780_v63, %v418_v61 }
 0x560   :  { %v425_v4 = vsel %vm424_vm12, %v418_v61, %v423_v2 }
 0x561   :  { %v782_v1 = vpop.eup %781  ;;  %v428_v7 = vsel %vm426_vm14, %v427_v5, %v425_v4 }
 0x562   :  { %v430_v3 = vmul.f32 %v782_v1, %v421_v62  ;;  %v436_v10 = vmax.f32 %v428_v7, 1e-15 }
 0x564   :  { %v432_v6 = vsel %vm431_vm13, %v421_v62, %v430_v3  ;;  %v671_v12 = vclamps-f32 %v436_v10, 0.999999 }
 0x565   :  { %v435_v9 = vsel %vm433_vm15, %v434_v8, %v432_v6 }
 0x566   :  { %v437_v11 = vmax.f32 %v435_v9, 1e-15  ;;  %v523_v16 = vsub.f32 1.0, %v671_v12  ;;  %v521_v20 = vadd.f32 1.0, %v671_v12 }
 0x568   :  { %v672_v13 = vclamps-f32 %v437_v11, 0.999999  ;;  %783 = vrcp.f32 %v523_v16 }
 0x56a   :  { %v524_v18 = vsub.f32 1.0, %v672_v13  ;;  %v522_v23 = vadd.f32 1.0, %v672_v13 }
 0x56c   :  { %785 = vrcp.f32 %v524_v18 }
 0x572   :  { %v784_v19 = vpop.eup %783 }
 0x573   :  { %v526_v24 = vmul.f32 %v784_v19, %v521_v20 }
 0x575   :  { %787 = vlog2.f32 %v526_v24 }
 0x576   :  { %v786_v21 = vpop.eup %785 }
 0x577   :  { %v528_v25 = vmul.f32 %v786_v21, %v522_v23 }
 0x57f   :  { %v788_v28 = vpop.eup %787 }
 0x580   :  { %v530_v34 = vmul.f32 0.6931472, %v788_v28 }
 0x582   :  { %v533_v41 = vmul.f32 0.5, %v530_v34 }
 0x59b   :  { %v1124_v50 = vpop.f32.mrb[0].mxu1 }
 0x59c   :  { %v487_v51 = vmul.f32 %v1124_v50, %v1124_v50  ;;  %v699_v52 = vpop.f32.mrb[1].mxu1 }
 0x59d   :  { %v1128_v53 = vpop.f32.mrb[2].mxu1 }
 0x59e   :  { %v488_v54 = vmul.f32 %v1128_v53, %v1128_v53  ;;  %v700_v55 = vpop.f32.mrb[3].mxu1  ;;  %v489_v56 = vsel %vm95_vm1, %v487_v51, 0.0 }
 0x59f   :  { %490 = vadd.xlane.f32.xlu1 %v489_v56 }
 0x5a0   :  { %v492_v57 = vsel %vm95_vm1, %v488_v54, 0.0  ;;  %v568_v54 = vrot.slane %v1134_v58, %v1099_v15 }
 0x5a1   :  { %493 = vadd.xlane.f32.xlu0 %v492_v57 }
 0x5a3   :  { %562 = vadd.xlane.f32.xlu1 %v561_v60 }
 0x62c   :  { %v491_v26 = vpop.xlane.xlu1 %490 }
 0x62d   :  { %789 = vrsqrt.f32 %v491_v26  ;;  %vm499_vm0 = vcmp.eq.f32.partialorder %v491_v26, inf  ;;  %v502_v32 = vand.u32 2147483648, %v491_v26  ;;  %vm495_vm3 = vcmp.eq.f32.partialorder %v491_v26, 0.0 }
 0x62e   :  { %v494_v27 = vpop.xlane.xlu0 %493  ;;  %791 = vlog2.f32 %v528_v25 }
 0x62f   :  { %793 = vrsqrt.f32 %v494_v27  ;;  %vm506_vm4 = vcmp.eq.f32.partialorder %v494_v27, inf  ;;  %v509_v17 = vand.u32 2147483648, %v494_v27  ;;  %vm496_vm5 = vcmp.eq.f32.partialorder %v494_v27, 0.0 }
 0x630   :  { %795 = vrcp.f32 %v436_v10  ;;  %v563_v4 = vpop.xlane.xlu1 %562 }
 0x631   :  { %797 = vrcp.f32 %v437_v11  ;;  %v585_v8 = vrot.slane %v563_v4, %v1099_v15 }
 0x637   :  { %v790_v29 = vpop.eup %789 }
 0x638   :  { %v792_v30 = vpop.eup %791  ;;  %v498_v31 = vmul.f32 %v790_v29, %v491_v26 }
 0x639   :  { %v794_v14 = vpop.eup %793  ;;  %v532_v37 = vmul.f32 0.6931472, %v792_v30 }
 0x63a   :  { %v505_v22 = vmul.f32 %v794_v14, %v494_v27  ;;  %v500_v33 = vsel %vm499_vm0, %v491_v26, %v498_v31  ;;  %v796_v38 = vpop.eup %795 }
 0x63b   :  { %v503_v35 = vsel %vm495_vm3, %v502_v32, %v500_v33  ;;  %v798_v43 = vpop.eup %797  ;;  %v534_v46 = vmul.f32 0.5, %v532_v37 }
 0x63c   :  { %v511_v0 = vmax.f32 %v503_v35, 1e-15  ;;  %v507_v36 = vsel %vm506_vm4, %v494_v27, %v505_v22 }
 0x63d   :  { %v510_v39 = vsel %vm496_vm5, %v509_v17, %v507_v36 }
 0x63e   :  { %v515_v40 = vmul.f32 %v796_v38, %v511_v0  ;;  %v512_v42 = vmax.f32 %v510_v39, 1e-15 }
 0x640   :  { %v535_v44 = vmul.f32 %v533_v41, %v515_v40  ;;  %v516_v45 = vmul.f32 %v798_v43, %v512_v42 }
 0x642   :  { %799 = vtanh.f32 %v535_v44  ;;  %v536_v47 = vmul.f32 %v534_v46, %v516_v45 }
 0x643   :  { %801 = vrcp.f32 %v511_v0 }
 0x644   :  { %803 = vtanh.f32 %v536_v47 }
 0x645   :  { %805 = vrcp.f32 %v512_v42 }
 0x64c   :  { %v800_v48 = vpop.eup %799 }
 0x64d   :  { %v802_v49 = vpop.eup %801  ;;  %v539_v51 = vmul.f32 %v800_v48, %v1124_v50 }
 0x64e   :  { %v804_v52 = vpop.eup %803 }
 0x64f   :  { %v543_v55 = vmul.f32 %v802_v49, %v539_v51  ;;  %v540_v56 = vmul.f32 %v804_v52, %v1128_v53  ;;  %v806_v57 = vpop.eup %805 }
 0x651   :  { %v549_v59 = vsel %vm495_vm3, 0.0, %v543_v55  ;;  %v544_v60 = vmul.f32 %v806_v57, %v540_v56 }
 0x652   :  { %v570_v61 = vmul.f32 %v568_v54, %v549_v59  ;;  %v551_v2 = vmul.f32 %v549_v59, %v549_v59 }
 0x653   :  { %v550_v62 = vsel %vm496_vm5, 0.0, %v544_v60 }
 0x654   :  { %v572_v63 = vsel %vm95_vm1, %v570_v61, 0.0  ;;  %v571_v1 = vmul.f32 %v568_v54, %v550_v62  ;;  %v552_v3 = vmul.f32 %v550_v62, %v550_v62  ;;  %v553_v58 = vsel %vm95_vm1, %v551_v2, 0.0 }
 0x655   :  { %573 = vadd.xlane.f32.xlu0 %v572_v63 }
 0x656   :  { %v575_v50 = vsel %vm95_vm1, %v571_v1, 0.0  ;;  %v556_v53 = vsel %vm95_vm1, %v552_v3, 0.0 }
 0x657   :  { %576 = vadd.xlane.f32.xlu1 %v575_v50 }
 0x659   :  { %554 = vadd.xlane.f32.xlu0 %v553_v58 }
 0x65b   :  { %557 = vadd.xlane.f32.xlu1 %v556_v53 }
 0x6e2   :  { %v574_v5 = vpop.xlane.xlu0 %573 }
 0x6e3   :  { %v578_v6 = vmul.f32 2.0, %v574_v5 }
 0x6e4   :  { %v577_v7 = vpop.xlane.xlu1 %576 }
 0x6e5   :  { %v579_v9 = vmul.f32 2.0, %v577_v7  ;;  %v580_v11 = vadd.f32 1.0, %v578_v6 }
 0x6e6   :  { %v555_v10 = vpop.xlane.xlu0 %554 }
 0x6e7   :  { %v596_v12 = vmul.f32 %v585_v8, %v555_v10  ;;  %v581_v18 = vadd.f32 1.0, %v579_v9  ;;  %v586_v23 = vadd.f32 %v585_v8, %v580_v11  ;;  %v590_v24 = vsub.f32 1.0, %v555_v10 }
 0x6e8   :  { %v558_v13 = vpop.xlane.xlu1 %557 }
 0x6e9   :  { %v598_v16 = vadd.f32 %v596_v12, %v580_v11  ;;  %v597_v19 = vmul.f32 %v585_v8, %v558_v13  ;;  %v587_v26 = vadd.f32 %v585_v8, %v581_v18  ;;  %v591_v27 = vsub.f32 1.0, %v558_v13 }
 0x6ea   :  { %v588_v28 = vmul.f32 %v586_v23, %v549_v59  ;;  %v592_v29 = vmul.f32 %v590_v24, %v568_v54 }
 0x6eb   :  { %v600_v20 = vmax.f32 %v598_v16, 1e-15  ;;  %v599_v21 = vadd.f32 %v597_v19, %v581_v18  ;;  %v589_v15 = vmul.f32 %v587_v26, %v550_v62  ;;  %v593_v30 = vmul.f32 %v591_v27, %v568_v54 }
 0x6ec   :  { %v594_v31 = vadd.f32 %v592_v29, %v588_v28 }
 0x6ed   :  { %807 = vrcp.f32 %v600_v20  ;;  %v601_v25 = vmax.f32 %v599_v21, 1e-15  ;;  %v595_v22 = vadd.f32 %v593_v30, %v589_v15 }
 0x6ef   :  { %809 = vrcp.f32 %v601_v25 }
 0x6f7   :  { %v808_v14 = vpop.eup %807 }
 0x6f8   :  { %v603_v32 = vmul.f32 %v808_v14, %v594_v31 }
 0x6f9   :  { %v810_v33 = vpop.eup %809 }
 0x6fa   :  { %v606_v34 = vmul.f32 %v603_v32, %v603_v32  ;;  %v605_v17 = vmul.f32 %v810_v33, %v595_v22 }
 0x6fc   :  { %v608_v35 = vsel %vm95_vm1, %v606_v34, 0.0  ;;  %v607_v0 = vmul.f32 %v605_v17, %v605_v17 }
 0x6fd   :  { %609 = vadd.xlane.f32.xlu0 %v608_v35 }
 0x6fe   :  { %v611_v36 = vsel %vm95_vm1, %v607_v0, 0.0 }
 0x6ff   :  { %612 = vadd.xlane.f32.xlu1 %v611_v36 }
 0x78a   :  { %v610_v37 = vpop.xlane.xlu0 %609 }
 0x78b   :  { %811 = vrsqrt.f32 %v610_v37  ;;  %vm616_vm6 = vcmp.eq.f32.partialorder %v610_v37, inf  ;;  %v619_v41 = vand.u32 2147483648, %v610_v37  ;;  %vm618_vm7 = vcmp.eq.f32.partialorder %v610_v37, 0.0 }
 0x78c   :  { %v613_v38 = vpop.xlane.xlu1 %612 }
 0x78d   :  { %813 = vrsqrt.f32 %v613_v38  ;;  %vm623_vm8 = vcmp.eq.f32.partialorder %v613_v38, inf  ;;  %v626_v46 = vand.u32 2147483648, %v613_v38  ;;  %vm625_vm9 = vcmp.eq.f32.partialorder %v613_v38, 0.0 }
 0x795   :  { %v812_v39 = vpop.eup %811 }
 0x796   :  { %v615_v40 = vmul.f32 %v812_v39, %v610_v37 }
 0x797   :  { %v814_v42 = vpop.eup %813 }
 0x798   :  { %v617_v43 = vsel %vm616_vm6, %v610_v37, %v615_v40  ;;  %v622_v44 = vmul.f32 %v814_v42, %v613_v38 }
 0x799   :  { %v620_v45 = vsel %vm618_vm7, %v619_v41, %v617_v43 }
 0x79a   :  { %v628_v47 = vmax.f32 %v620_v45, 1e-15  ;;  %v624_v48 = vsel %vm623_vm8, %v613_v38, %v622_v44 }
 0x79b   :  { %v627_v49 = vsel %vm625_vm9, %v626_v46, %v624_v48 }
 0x79c   :  { %815 = vrcp.f32 %v628_v47  ;;  %v629_v51 = vmax.f32 %v627_v49, 1e-15  ;;  %vm630_vm10 = vcmp.gt.f32.partialorder %v628_v47, 0.99999 }
 0x79e   :  { %817 = vrcp.f32 %v629_v51  ;;  %vm631_vm11 = vcmp.gt.f32.partialorder %v629_v51, 0.99999 }
 0x7a6   :  { %v816_v52 = vpop.eup %815 }
 0x7a7   :  { %v633_v54 = vmul.f32 0.99999, %v816_v52 }
 0x7a8   :  { %v818_v55 = vpop.eup %817 }
 0x7a9   :  { %v636_v56 = vmul.f32 %v633_v54, %v603_v32  ;;  %v635_v57 = vmul.f32 0.99999, %v818_v55 }
 0x7ab   :  { %v642_v59 = vsel %vm630_vm10, %v636_v56, %v603_v32  ;;  %v637_v60 = vmul.f32 %v635_v57, %v605_v17 }
 0x7ac   :  { %644 = vst.msk [vmem:[#allocation11] sm:$0xff] %vm95_vm1, %v642_v59 }
 0x7ad   :  { %v643_v61 = vsel %vm631_vm11, %v637_v60, %v605_v17 }
 0x7ae   :  { %645 = vst.msk [vmem:[#allocation11 + $0x8] sm:$0xff] %vm95_vm1, %v643_v61 }
 0x7af   :  { %940 = shalt.err (!%p937_p2)
}
 0x7b0   :  { %s941_s9 = scalar_lea.hbm %s1175_s5, 256 }
 0x7b1   :  { %p942_p3 = scmp.ne.s32.totalorder %s1175_s5, %s941_s9  ;;  %p945_p4 = scmp.lt.u32.totalorder %s941_s9, %s1175_s5 }
 0x7b3   :  { %p947_p5 = pnand %p945_p4, %p942_p3 }
 0x7b5   :  { %950 = shalt.err (!%p947_p5)
}
 0x7b6   :  { %657 = dma.vmem_to_hbm [thread:$0]  %s652_s3, 256, %s1175_s5, [#allocation4], %s961_s30, %s961_s30, %s962_s6  }
 0x7b7   :  { %957 = dma.done.wait [#allocation4], 256  }
 0x7b8   :  { %958 = vsyncadd [#allocation4], 4294967040 }
 0x7b9   :  { %661 = vsyncpa [#allocation3], 1 }
 0x7ba   :  { %662 = vsyncpa [#allocation6], 1 }
 0x7bb   :  { %663 = vsyncpa [#allocation9], 1 }
 0x7bc   :  { %664 = vsyncpa [#allocation4], 1 }

</bundles_post_ra>
